<compile_context>
chip_gen: v5e
topology: v5e:2x2
jax: 0.10.0
libtpu: 0.0.40
codegen_flags: <defaults>
</compile_context>

<pallas_src>
import functools

import jax
import jax.numpy as jnp
from jax.experimental import pallas as pl
from jax.experimental.pallas import tpu as pltpu

TIME_DIM = 128
HIDDEN_DIM = 512
OUTPUT_DIM = 80
OUT_PAD = 128      # lane-dense padded output width (columns 80..127 are zeros)


def _device_kind():
    try:
        return jax.devices()[0].device_kind.lower()
    except Exception:  # pragma: no cover - backend probing should not be fatal
        return ""


_KIND = _device_kind()

# bf16 VPU/EUP exist from v6e on; v2-v5 chips keep the f32 epilogue (this
# kernel is MXU-bound there, so the elementwise chain is free filler anyway).
_EPI_DTYPE = (jnp.float32
              if any(g in _KIND for g in ("v2", "v3", "v4", "v5"))
              else jnp.bfloat16)

# v7x has 64 MiB VMEM per TensorCore; earlier generations have 128 MiB.
_VMEM_LIMIT = (40 if "7" in _KIND else 64) * 1024 * 1024


def _swish(x):
    # SiLU with a single transcendental per element:
    #   x * sigmoid(x) == 0.5 * x * (1 + tanh(x / 2))
    # (exp + reciprocal would be 2 EUP ops; the EUP has one VLIW slot).
    return 0.5 * x * (1.0 + jnp.tanh(0.5 * x))


def ttv_kernel(t_ref,
               w1_ref, b1_ref,
               w2_ref, b2_ref,
               w3_ref, b3_ref,
               w4_ref, b4_ref,
               w5_ref, b5_ref,
               w6_ref, b6_ref,
               w7_ref, b7_ref,
               o_ref):
    bf = jnp.bfloat16

    # Layer 1: Linear(1, 128).  K=1 is degenerate on the MXU -> broadcast FMA
    # on the VPU in f32 (exact); the SiLU epilogue runs in _EPI_DTYPE so its
    # output is already the operand dtype of the next matmul.
    z1 = t_ref[...] * w1_ref[...] + b1_ref[...]           # (TM, 128) f32
    h = _swish(z1.astype(_EPI_DTYPE))

    def dense(a, w_ref, b_ref, act):
        # MXU matmul with bf16 operands and f32 accumulation.  The epilogue
        # (bias add + SiLU) runs once in the bias dtype (_EPI_DTYPE for hidden
        # layers, f32 for the output layer) -- no separate cast pass.
        y = jnp.dot(a.astype(bf), w_ref[...],
                    preferred_element_type=jnp.float32)
        b = b_ref[...]
        y = y.astype(b.dtype) + b
        return _swish(y) if act else y

    h = dense(h, w2_ref, b2_ref, True)    # (TM, 128)
    h = dense(h, w3_ref, b3_ref, True)    # (TM, 512)
    h = dense(h, w4_ref, b4_ref, True)    # (TM, 512)
    h = dense(h, w5_ref, b5_ref, True)    # (TM, 512)
    h = dense(h, w6_ref, b6_ref, True)    # (TM, 512)
    o = dense(h, w7_ref, b7_ref, False)   # (TM, 128) f32; cols 80..127 are 0
    o_ref[...] = o.astype(o_ref.dtype)


def _full(shape):
    # Small weight/bias arrays: whole array resident on every grid step.
    # Constant block index -> the pipeliner does not re-DMA it per step.
    return pl.BlockSpec(shape, lambda i: (0,) * len(shape))


def _round_up(x, m):
    return -(-x // m) * m


def _choose_tiling(n):
    """Return (tm, n_pad).

    Large tiles amortize the ~0.35us/step pipeline overhead; the grid-step
    count is kept even (for B > 512) so v7x's two TensorCores get balanced
    work.  TM is capped at 2048: with bf16 epilogue activations (v6e/v7x) or
    128 MiB VMEM (v4/v5) that fits comfortably under the scoped VMEM limit.
    """
    TM_CAP = 2048
    if n <= 512:
        tm = max(8, _round_up(n, 8))      # latency regime: one tile, one step
        return tm, tm
    steps = _round_up(max(2, -(-n // TM_CAP)), 2)
    tm = _round_up(-(-n // steps), 8)
    return tm, steps * tm


def prepare_params(params):
    """One-time conversion of the f32 (w, b) pairs into the dtypes / padding
    the kernel consumes.  Hoisted out of the per-call path: call this once at
    parameter-load time and pass the result to time_to_vec_forward()."""
    (w1, b1), (w2, b2), (w3, b3), (w4, b4), (w5, b5), (w6, b6), (w7, b7) = params
    bf = jnp.bfloat16
    f32 = jnp.float32

    def r2(b):
        return jnp.asarray(b).reshape(1, -1)

    w7p = jnp.pad(w7, ((0, 0), (0, OUT_PAD - OUTPUT_DIM))).astype(bf)
    b7p = jnp.pad(r2(b7), ((0, 0), (0, OUT_PAD - OUTPUT_DIM))).astype(f32)
    return (
        jnp.asarray(w1, f32), r2(b1).astype(f32),            # layer 1 (VPU, f32)
        w2.astype(bf), r2(b2).astype(_EPI_DTYPE),
        w3.astype(bf), r2(b3).astype(_EPI_DTYPE),
        w4.astype(bf), r2(b4).astype(_EPI_DTYPE),
        w5.astype(bf), r2(b5).astype(_EPI_DTYPE),
        w6.astype(bf), r2(b6).astype(_EPI_DTYPE),
        w7p, b7p,                                             # output layer, f32 bias
    )


@functools.partial(jax.jit, static_argnums=(2, 3, 4))
def _ttv_pallas(t, prepared, tm, n_pad, trim):
    n = t.shape[0]
    t2 = t.reshape(n, 1).astype(jnp.float32)
    if n_pad != n:
        t2 = jnp.pad(t2, ((0, n_pad - n), (0, 0)))

    out = pl.pallas_call(
        ttv_kernel,
        out_shape=jax.ShapeDtypeStruct((n_pad, OUT_PAD), jnp.float32),
        grid_spec=pltpu.PrefetchScalarGridSpec(
            num_scalar_prefetch=0,
            grid=(n_pad // tm,),
            in_specs=[
                pl.BlockSpec((tm, 1), lambda i: (i, 0)),
                _full((1, TIME_DIM)), _full((1, TIME_DIM)),
                _full((TIME_DIM, TIME_DIM)), _full((1, TIME_DIM)),
                _full((TIME_DIM, HIDDEN_DIM)), _full((1, HIDDEN_DIM)),
                _full((HIDDEN_DIM, HIDDEN_DIM)), _full((1, HIDDEN_DIM)),
                _full((HIDDEN_DIM, HIDDEN_DIM)), _full((1, HIDDEN_DIM)),
                _full((HIDDEN_DIM, HIDDEN_DIM)), _full((1, HIDDEN_DIM)),
                _full((HIDDEN_DIM, OUT_PAD)), _full((1, OUT_PAD)),
            ],
            out_specs=pl.BlockSpec((tm, OUT_PAD), lambda i: (i, 0)),
        ),
        compiler_params=pltpu.CompilerParams(
            dimension_semantics=("parallel",),
            vmem_limit_bytes=_VMEM_LIMIT),
    )(t2, *prepared)

    if trim:
        out = out[:n, :OUTPUT_DIM]
    return out


def time_to_vec_forward(t, prepared_params):
    """Matches TimeToVecNet.forward: t of shape (B,) -> (B, 80)."""
    tm, n_pad = _choose_tiling(t.shape[0])
    return _ttv_pallas(t, tuple(prepared_params), tm, n_pad, True)


def time_to_vec_forward_padded(t, prepared_params):
    """Returns the raw lane-dense (n_pad, 128) kernel output (rows >= B are
    padding, columns 80..127 are zeros) so the consumer can fuse the trim and
    skip the extra HBM pass."""
    tm, n_pad = _choose_tiling(t.shape[0])
    return _ttv_pallas(t, tuple(prepared_params), tm, n_pad, False)


def init_params(key):
    """Deterministic init mimicking nn.Linear's uniform(-1/sqrt(fan_in), ...)."""
    dims = [(1, TIME_DIM), (TIME_DIM, TIME_DIM),
            (TIME_DIM, HIDDEN_DIM),
            (HIDDEN_DIM, HIDDEN_DIM), (HIDDEN_DIM, HIDDEN_DIM),
            (HIDDEN_DIM, HIDDEN_DIM),
            (HIDDEN_DIM, OUTPUT_DIM)]
    params = []
    for fan_in, fan_out in dims:
        key, kw, kb = jax.random.split(key, 3)
        bound = 1.0 / jnp.sqrt(float(fan_in))
        w = jax.random.uniform(kw, (fan_in, fan_out), jnp.float32,
                               minval=-bound, maxval=bound)
        b = jax.random.uniform(kb, (1, fan_out), jnp.float32,
                               minval=-bound, maxval=bound)
        params.append((w, b))
    return tuple(params)


def ttv_reference(t, params):
    """Pure-JAX f32 reference of the PyTorch forward."""
    (w1, b1), (w2, b2), (w3, b3), (w4, b4), (w5, b5), (w6, b6), (w7, b7) = params
    h = t.reshape(-1, 1).astype(jnp.float32)
    h = jax.nn.silu(h @ w1 + b1)
    h = jax.nn.silu(h @ w2 + b2)
    h = jax.nn.silu(h @ w3 + b3)
    h = jax.nn.silu(h @ w4 + b4)
    h = jax.nn.silu(h @ w5 + b5)
    h = jax.nn.silu(h @ w6 + b6)
    return h @ w7 + b7


if __name__ == "__main__":
    key = jax.random.PRNGKey(0)
    k_params, k_t = jax.random.split(key)

    params = init_params(k_params)
    prepared = prepare_params(params)        # one-time cast/pad, outside jit

    B = 64                                    # small test batch -> 1 grid step
    t = jax.random.uniform(k_t, (B,), dtype=jnp.float32)

    out = time_to_vec_forward(t, prepared)
    jax.block_until_ready(out)

    ref = ttv_reference(t, params)
    assert out.shape == (B, OUTPUT_DIM), (out.shape, (B, OUTPUT_DIM))
    # bf16 MXU operands (and, on v6e+/v7x, a bf16 bias/SiLU epilogue) chained
    # through 6 layers vs the pure-f32 reference -> loosened tolerance.
    max_err = float(jnp.max(jnp.abs(out - ref)))
    assert jnp.allclose(out, ref, atol=3e-2, rtol=3e-2), f"max err {max_err}"

    print("KERNEL_OK")
</pallas_src>

<mosaic_0001>
module attributes {stable_mosaic.version = 11 : i64} {
  func.func @ttv_kernel(%arg0: i32, %arg1: memref<64x1xf32, #tpu.memory_space<vmem>>, %arg2: memref<1x128xf32, #tpu.memory_space<vmem>>, %arg3: memref<1x128xf32, #tpu.memory_space<vmem>>, %arg4: memref<128x128xbf16, #tpu.memory_space<vmem>>, %arg5: memref<1x128xbf16, #tpu.memory_space<vmem>>, %arg6: memref<128x512xbf16, #tpu.memory_space<vmem>>, %arg7: memref<1x512xbf16, #tpu.memory_space<vmem>>, %arg8: memref<512x512xbf16, #tpu.memory_space<vmem>>, %arg9: memref<1x512xbf16, #tpu.memory_space<vmem>>, %arg10: memref<512x512xbf16, #tpu.memory_space<vmem>>, %arg11: memref<1x512xbf16, #tpu.memory_space<vmem>>, %arg12: memref<512x512xbf16, #tpu.memory_space<vmem>>, %arg13: memref<1x512xbf16, #tpu.memory_space<vmem>>, %arg14: memref<512x128xbf16, #tpu.memory_space<vmem>>, %arg15: memref<1x128xf32, #tpu.memory_space<vmem>>, %arg16: memref<64x128xf32, #tpu.memory_space<vmem>>) attributes {dimension_semantics = [#tpu.dimension_semantics<parallel>], iteration_bounds = array<i64: 1>, scalar_prefetch = 0 : i64, scratch_operands = 0 : i64, tpu.core_type = #tpu.core_type<tc>, window_params = [{transform_indices = @transform_0, window_bounds = array<i64: 64, 1>}, {pipeline_mode = #tpu.pipeline_mode<synchronous>, transform_indices = @transform_1, window_bounds = array<i64: 1, 128>}, {pipeline_mode = #tpu.pipeline_mode<synchronous>, transform_indices = @transform_2, window_bounds = array<i64: 1, 128>}, {pipeline_mode = #tpu.pipeline_mode<synchronous>, transform_indices = @transform_3, window_bounds = array<i64: 128, 128>}, {pipeline_mode = #tpu.pipeline_mode<synchronous>, transform_indices = @transform_4, window_bounds = array<i64: 1, 128>}, {pipeline_mode = #tpu.pipeline_mode<synchronous>, transform_indices = @transform_5, window_bounds = array<i64: 128, 512>}, {pipeline_mode = #tpu.pipeline_mode<synchronous>, transform_indices = @transform_6, window_bounds = array<i64: 1, 512>}, {pipeline_mode = #tpu.pipeline_mode<synchronous>, transform_indices = @transform_7, window_bounds = array<i64: 512, 512>}, {pipeline_mode = #tpu.pipeline_mode<synchronous>, transform_indices = @transform_8, window_bounds = array<i64: 1, 512>}, {pipeline_mode = #tpu.pipeline_mode<synchronous>, transform_indices = @transform_9, window_bounds = array<i64: 512, 512>}, {pipeline_mode = #tpu.pipeline_mode<synchronous>, transform_indices = @transform_10, window_bounds = array<i64: 1, 512>}, {pipeline_mode = #tpu.pipeline_mode<synchronous>, transform_indices = @transform_11, window_bounds = array<i64: 512, 512>}, {pipeline_mode = #tpu.pipeline_mode<synchronous>, transform_indices = @transform_12, window_bounds = array<i64: 1, 512>}, {pipeline_mode = #tpu.pipeline_mode<synchronous>, transform_indices = @transform_13, window_bounds = array<i64: 512, 128>}, {pipeline_mode = #tpu.pipeline_mode<synchronous>, transform_indices = @transform_14, window_bounds = array<i64: 1, 128>}, {transform_indices = @transform_15, window_bounds = array<i64: 64, 128>}]} {
    %c0 = arith.constant 0 : index
    %c0_0 = arith.constant 0 : index
    %0 = vector.load %arg1[%c0, %c0_0] : memref<64x1xf32, #tpu.memory_space<vmem>>, vector<64x1xf32>
    %c0_1 = arith.constant 0 : index
    %c0_2 = arith.constant 0 : index
    %1 = vector.load %arg2[%c0_1, %c0_2] : memref<1x128xf32, #tpu.memory_space<vmem>>, vector<1x128xf32>
    %2 = vector.broadcast %0 : vector<64x1xf32> to vector<64x128xf32>
    %3 = vector.broadcast %1 : vector<1x128xf32> to vector<64x128xf32>
    %4 = arith.mulf %2, %3 : vector<64x128xf32>
    %c0_3 = arith.constant 0 : index
    %c0_4 = arith.constant 0 : index
    %5 = vector.load %arg3[%c0_3, %c0_4] : memref<1x128xf32, #tpu.memory_space<vmem>>, vector<1x128xf32>
    %6 = vector.broadcast %5 : vector<1x128xf32> to vector<64x128xf32>
    %7 = arith.addf %4, %6 : vector<64x128xf32>
    %8 = arith.truncf %7 : vector<64x128xf32> to vector<64x128xbf16>
    %cst = arith.constant 5.000000e-01 : bf16
    %9 = vector.broadcast %cst : bf16 to vector<64x128xbf16>
    %10 = arith.mulf %9, %8 : vector<64x128xbf16>
    %cst_5 = arith.constant 5.000000e-01 : bf16
    %11 = vector.broadcast %cst_5 : bf16 to vector<64x128xbf16>
    %12 = arith.mulf %11, %8 : vector<64x128xbf16>
    %13 = math.tanh %12 : vector<64x128xbf16>
    %cst_6 = arith.constant 1.000000e+00 : bf16
    %14 = vector.broadcast %cst_6 : bf16 to vector<64x128xbf16>
    %15 = arith.addf %14, %13 : vector<64x128xbf16>
    %16 = arith.mulf %10, %15 : vector<64x128xbf16>
    %c0_7 = arith.constant 0 : index
    %c0_8 = arith.constant 0 : index
    %17 = vector.load %arg4[%c0_7, %c0_8] : memref<128x128xbf16, #tpu.memory_space<vmem>>, vector<128x128xbf16>
    %cst_9 = arith.constant dense<0.000000e+00> : vector<64x128xf32>
    %18 = tpu.matmul %16, %17, %cst_9 {dimension_numbers = #tpu.dot_dimension_numbers<[1], [0], [0], [1], [0, 0, 1, 1], [], []>} : vector<64x128xbf16>, vector<128x128xbf16>, vector<64x128xf32> -> vector<64x128xf32>
    %c0_10 = arith.constant 0 : index
    %c0_11 = arith.constant 0 : index
    %19 = vector.load %arg5[%c0_10, %c0_11] : memref<1x128xbf16, #tpu.memory_space<vmem>>, vector<1x128xbf16>
    %20 = arith.truncf %18 : vector<64x128xf32> to vector<64x128xbf16>
    %21 = vector.broadcast %19 : vector<1x128xbf16> to vector<64x128xbf16>
    %22 = arith.addf %20, %21 : vector<64x128xbf16>
    %cst_12 = arith.constant 5.000000e-01 : bf16
    %23 = vector.broadcast %cst_12 : bf16 to vector<64x128xbf16>
    %24 = arith.mulf %23, %22 : vector<64x128xbf16>
    %cst_13 = arith.constant 5.000000e-01 : bf16
    %25 = vector.broadcast %cst_13 : bf16 to vector<64x128xbf16>
    %26 = arith.mulf %25, %22 : vector<64x128xbf16>
    %27 = math.tanh %26 : vector<64x128xbf16>
    %cst_14 = arith.constant 1.000000e+00 : bf16
    %28 = vector.broadcast %cst_14 : bf16 to vector<64x128xbf16>
    %29 = arith.addf %28, %27 : vector<64x128xbf16>
    %30 = arith.mulf %24, %29 : vector<64x128xbf16>
    %c0_15 = arith.constant 0 : index
    %c0_16 = arith.constant 0 : index
    %31 = vector.load %arg6[%c0_15, %c0_16] : memref<128x512xbf16, #tpu.memory_space<vmem>>, vector<128x512xbf16>
    %cst_17 = arith.constant dense<0.000000e+00> : vector<64x512xf32>
    %32 = tpu.matmul %30, %31, %cst_17 {dimension_numbers = #tpu.dot_dimension_numbers<[1], [0], [0], [1], [0, 0, 1, 1], [], []>} : vector<64x128xbf16>, vector<128x512xbf16>, vector<64x512xf32> -> vector<64x512xf32>
    %c0_18 = arith.constant 0 : index
    %c0_19 = arith.constant 0 : index
    %33 = vector.load %arg7[%c0_18, %c0_19] : memref<1x512xbf16, #tpu.memory_space<vmem>>, vector<1x512xbf16>
    %34 = arith.truncf %32 : vector<64x512xf32> to vector<64x512xbf16>
    %35 = vector.broadcast %33 : vector<1x512xbf16> to vector<64x512xbf16>
    %36 = arith.addf %34, %35 : vector<64x512xbf16>
    %cst_20 = arith.constant 5.000000e-01 : bf16
    %37 = vector.broadcast %cst_20 : bf16 to vector<64x512xbf16>
    %38 = arith.mulf %37, %36 : vector<64x512xbf16>
    %cst_21 = arith.constant 5.000000e-01 : bf16
    %39 = vector.broadcast %cst_21 : bf16 to vector<64x512xbf16>
    %40 = arith.mulf %39, %36 : vector<64x512xbf16>
    %41 = math.tanh %40 : vector<64x512xbf16>
    %cst_22 = arith.constant 1.000000e+00 : bf16
    %42 = vector.broadcast %cst_22 : bf16 to vector<64x512xbf16>
    %43 = arith.addf %42, %41 : vector<64x512xbf16>
    %44 = arith.mulf %38, %43 : vector<64x512xbf16>
    %c0_23 = arith.constant 0 : index
    %c0_24 = arith.constant 0 : index
    %45 = vector.load %arg8[%c0_23, %c0_24] : memref<512x512xbf16, #tpu.memory_space<vmem>>, vector<512x512xbf16>
    %cst_25 = arith.constant dense<0.000000e+00> : vector<64x512xf32>
    %46 = tpu.matmul %44, %45, %cst_25 {dimension_numbers = #tpu.dot_dimension_numbers<[1], [0], [0], [1], [0, 0, 1, 1], [], []>} : vector<64x512xbf16>, vector<512x512xbf16>, vector<64x512xf32> -> vector<64x512xf32>
    %c0_26 = arith.constant 0 : index
    %c0_27 = arith.constant 0 : index
    %47 = vector.load %arg9[%c0_26, %c0_27] : memref<1x512xbf16, #tpu.memory_space<vmem>>, vector<1x512xbf16>
    %48 = arith.truncf %46 : vector<64x512xf32> to vector<64x512xbf16>
    %49 = vector.broadcast %47 : vector<1x512xbf16> to vector<64x512xbf16>
    %50 = arith.addf %48, %49 : vector<64x512xbf16>
    %cst_28 = arith.constant 5.000000e-01 : bf16
    %51 = vector.broadcast %cst_28 : bf16 to vector<64x512xbf16>
    %52 = arith.mulf %51, %50 : vector<64x512xbf16>
    %cst_29 = arith.constant 5.000000e-01 : bf16
    %53 = vector.broadcast %cst_29 : bf16 to vector<64x512xbf16>
    %54 = arith.mulf %53, %50 : vector<64x512xbf16>
    %55 = math.tanh %54 : vector<64x512xbf16>
    %cst_30 = arith.constant 1.000000e+00 : bf16
    %56 = vector.broadcast %cst_30 : bf16 to vector<64x512xbf16>
    %57 = arith.addf %56, %55 : vector<64x512xbf16>
    %58 = arith.mulf %52, %57 : vector<64x512xbf16>
    %c0_31 = arith.constant 0 : index
    %c0_32 = arith.constant 0 : index
    %59 = vector.load %arg10[%c0_31, %c0_32] : memref<512x512xbf16, #tpu.memory_space<vmem>>, vector<512x512xbf16>
    %cst_33 = arith.constant dense<0.000000e+00> : vector<64x512xf32>
    %60 = tpu.matmul %58, %59, %cst_33 {dimension_numbers = #tpu.dot_dimension_numbers<[1], [0], [0], [1], [0, 0, 1, 1], [], []>} : vector<64x512xbf16>, vector<512x512xbf16>, vector<64x512xf32> -> vector<64x512xf32>
    %c0_34 = arith.constant 0 : index
    %c0_35 = arith.constant 0 : index
    %61 = vector.load %arg11[%c0_34, %c0_35] : memref<1x512xbf16, #tpu.memory_space<vmem>>, vector<1x512xbf16>
    %62 = arith.truncf %60 : vector<64x512xf32> to vector<64x512xbf16>
    %63 = vector.broadcast %61 : vector<1x512xbf16> to vector<64x512xbf16>
    %64 = arith.addf %62, %63 : vector<64x512xbf16>
    %cst_36 = arith.constant 5.000000e-01 : bf16
    %65 = vector.broadcast %cst_36 : bf16 to vector<64x512xbf16>
    %66 = arith.mulf %65, %64 : vector<64x512xbf16>
    %cst_37 = arith.constant 5.000000e-01 : bf16
    %67 = vector.broadcast %cst_37 : bf16 to vector<64x512xbf16>
    %68 = arith.mulf %67, %64 : vector<64x512xbf16>
    %69 = math.tanh %68 : vector<64x512xbf16>
    %cst_38 = arith.constant 1.000000e+00 : bf16
    %70 = vector.broadcast %cst_38 : bf16 to vector<64x512xbf16>
    %71 = arith.addf %70, %69 : vector<64x512xbf16>
    %72 = arith.mulf %66, %71 : vector<64x512xbf16>
    %c0_39 = arith.constant 0 : index
    %c0_40 = arith.constant 0 : index
    %73 = vector.load %arg12[%c0_39, %c0_40] : memref<512x512xbf16, #tpu.memory_space<vmem>>, vector<512x512xbf16>
    %cst_41 = arith.constant dense<0.000000e+00> : vector<64x512xf32>
    %74 = tpu.matmul %72, %73, %cst_41 {dimension_numbers = #tpu.dot_dimension_numbers<[1], [0], [0], [1], [0, 0, 1, 1], [], []>} : vector<64x512xbf16>, vector<512x512xbf16>, vector<64x512xf32> -> vector<64x512xf32>
    %c0_42 = arith.constant 0 : index
    %c0_43 = arith.constant 0 : index
    %75 = vector.load %arg13[%c0_42, %c0_43] : memref<1x512xbf16, #tpu.memory_space<vmem>>, vector<1x512xbf16>
    %76 = arith.truncf %74 : vector<64x512xf32> to vector<64x512xbf16>
    %77 = vector.broadcast %75 : vector<1x512xbf16> to vector<64x512xbf16>
    %78 = arith.addf %76, %77 : vector<64x512xbf16>
    %cst_44 = arith.constant 5.000000e-01 : bf16
    %79 = vector.broadcast %cst_44 : bf16 to vector<64x512xbf16>
    %80 = arith.mulf %79, %78 : vector<64x512xbf16>
    %cst_45 = arith.constant 5.000000e-01 : bf16
    %81 = vector.broadcast %cst_45 : bf16 to vector<64x512xbf16>
    %82 = arith.mulf %81, %78 : vector<64x512xbf16>
    %83 = math.tanh %82 : vector<64x512xbf16>
    %cst_46 = arith.constant 1.000000e+00 : bf16
    %84 = vector.broadcast %cst_46 : bf16 to vector<64x512xbf16>
    %85 = arith.addf %84, %83 : vector<64x512xbf16>
    %86 = arith.mulf %80, %85 : vector<64x512xbf16>
    %c0_47 = arith.constant 0 : index
    %c0_48 = arith.constant 0 : index
    %87 = vector.load %arg14[%c0_47, %c0_48] : memref<512x128xbf16, #tpu.memory_space<vmem>>, vector<512x128xbf16>
    %cst_49 = arith.constant dense<0.000000e+00> : vector<64x128xf32>
    %88 = tpu.matmul %86, %87, %cst_49 {dimension_numbers = #tpu.dot_dimension_numbers<[1], [0], [0], [1], [0, 0, 1, 1], [], []>} : vector<64x512xbf16>, vector<512x128xbf16>, vector<64x128xf32> -> vector<64x128xf32>
    %c0_50 = arith.constant 0 : index
    %c0_51 = arith.constant 0 : index
    %89 = vector.load %arg15[%c0_50, %c0_51] : memref<1x128xf32, #tpu.memory_space<vmem>>, vector<1x128xf32>
    %90 = vector.broadcast %89 : vector<1x128xf32> to vector<64x128xf32>
    %91 = arith.addf %88, %90 : vector<64x128xf32>
    %c0_52 = arith.constant 0 : index
    %c0_53 = arith.constant 0 : index
    %92 = vector.load %arg16[%c0_52, %c0_53] : memref<64x128xf32, #tpu.memory_space<vmem>>, vector<64x128xf32>
    tpu.vector_store %arg16[%c0_52, %c0_53], %91 {strides = array<i32>} : memref<64x128xf32, #tpu.memory_space<vmem>>, vector<64x128xf32>,
    return
  }
  func.func @transform_0(%arg0: i32) -> (i32, i32) {
    %c0_i32 = arith.constant 0 : i32
    %c0_i32_0 = arith.constant 0 : i32
    return %arg0, %c0_i32 : i32, i32
  }
  func.func @transform_1(%arg0: i32) -> (i32, i32) {
    %c0_i32 = arith.constant 0 : i32
    %c0_i32_0 = arith.constant 0 : i32
    %c0_i32_1 = arith.constant 0 : i32
    return %c0_i32, %c0_i32_0 : i32, i32
  }
  func.func @transform_2(%arg0: i32) -> (i32, i32) {
    %c0_i32 = arith.constant 0 : i32
    %c0_i32_0 = arith.constant 0 : i32
    %c0_i32_1 = arith.constant 0 : i32
    return %c0_i32, %c0_i32_0 : i32, i32
  }
  func.func @transform_3(%arg0: i32) -> (i32, i32) {
    %c0_i32 = arith.constant 0 : i32
    %c0_i32_0 = arith.constant 0 : i32
    %c0_i32_1 = arith.constant 0 : i32
    return %c0_i32, %c0_i32_0 : i32, i32
  }
  func.func @transform_4(%arg0: i32) -> (i32, i32) {
    %c0_i32 = arith.constant 0 : i32
    %c0_i32_0 = arith.constant 0 : i32
    %c0_i32_1 = arith.constant 0 : i32
    return %c0_i32, %c0_i32_0 : i32, i32
  }
  func.func @transform_5(%arg0: i32) -> (i32, i32) {
    %c0_i32 = arith.constant 0 : i32
    %c0_i32_0 = arith.constant 0 : i32
    %c0_i32_1 = arith.constant 0 : i32
    return %c0_i32, %c0_i32_0 : i32, i32
  }
  func.func @transform_6(%arg0: i32) -> (i32, i32) {
    %c0_i32 = arith.constant 0 : i32
    %c0_i32_0 = arith.constant 0 : i32
    %c0_i32_1 = arith.constant 0 : i32
    return %c0_i32, %c0_i32_0 : i32, i32
  }
  func.func @transform_7(%arg0: i32) -> (i32, i32) {
    %c0_i32 = arith.constant 0 : i32
    %c0_i32_0 = arith.constant 0 : i32
    %c0_i32_1 = arith.constant 0 : i32
    return %c0_i32, %c0_i32_0 : i32, i32
  }
  func.func @transform_8(%arg0: i32) -> (i32, i32) {
    %c0_i32 = arith.constant 0 : i32
    %c0_i32_0 = arith.constant 0 : i32
    %c0_i32_1 = arith.constant 0 : i32
    return %c0_i32, %c0_i32_0 : i32, i32
  }
  func.func @transform_9(%arg0: i32) -> (i32, i32) {
    %c0_i32 = arith.constant 0 : i32
    %c0_i32_0 = arith.constant 0 : i32
    %c0_i32_1 = arith.constant 0 : i32
    return %c0_i32, %c0_i32_0 : i32, i32
  }
  func.func @transform_10(%arg0: i32) -> (i32, i32) {
    %c0_i32 = arith.constant 0 : i32
    %c0_i32_0 = arith.constant 0 : i32
    %c0_i32_1 = arith.constant 0 : i32
    return %c0_i32, %c0_i32_0 : i32, i32
  }
  func.func @transform_11(%arg0: i32) -> (i32, i32) {
    %c0_i32 = arith.constant 0 : i32
    %c0_i32_0 = arith.constant 0 : i32
    %c0_i32_1 = arith.constant 0 : i32
    return %c0_i32, %c0_i32_0 : i32, i32
  }
  func.func @transform_12(%arg0: i32) -> (i32, i32) {
    %c0_i32 = arith.constant 0 : i32
    %c0_i32_0 = arith.constant 0 : i32
    %c0_i32_1 = arith.constant 0 : i32
    return %c0_i32, %c0_i32_0 : i32, i32
  }
  func.func @transform_13(%arg0: i32) -> (i32, i32) {
    %c0_i32 = arith.constant 0 : i32
    %c0_i32_0 = arith.constant 0 : i32
    %c0_i32_1 = arith.constant 0 : i32
    return %c0_i32, %c0_i32_0 : i32, i32
  }
  func.func @transform_14(%arg0: i32) -> (i32, i32) {
    %c0_i32 = arith.constant 0 : i32
    %c0_i32_0 = arith.constant 0 : i32
    %c0_i32_1 = arith.constant 0 : i32
    return %c0_i32, %c0_i32_0 : i32, i32
  }
  func.func @transform_15(%arg0: i32) -> (i32, i32) {
    %c0_i32 = arith.constant 0 : i32
    %c0_i32_0 = arith.constant 0 : i32
    return %arg0, %c0_i32 : i32, i32
  }
}

</mosaic_0001>

<bundles_post_ra>
// kernel: _ttv_pallas.1
= control target key start
LH: loop header
LB: loop body
LE: loop exit
PB: predicated region body
PF: predicated region fallthrough
CT: control target
= control target key end

     0   :  { %20 = vsyncpa [#allocation3], 0  ;;  %s11495_s0 = inlined_call_operand.vmem [shape: f32[64,1], index: 0, kind: input, shape index: {}]   ;;  %s11496_s1 = inlined_call_operand.hbm [shape: f32[1,128], index: 1, kind: input, shape index: {}]   ;;  %s11497_s2 = inlined_call_operand.hbm [shape: f32[1,128], index: 2, kind: input, shape index: {}]   ;;  %s11498_s3 = inlined_call_operand.vmem [shape: bf16[128,128], index: 3, kind: input, shape index: {}]   ;;  %s11499_s4 = inlined_call_operand.hbm [shape: bf16[1,128], index: 4, kind: input, shape index: {}]   ;;  %s11500_s5 = inlined_call_operand.hbm [shape: bf16[128,512], index: 5, kind: input, shape index: {}]   ;;  %s11501_s6 = inlined_call_operand.vmem [shape: bf16[1,512], index: 6, kind: input, shape index: {}]   ;;  %s11502_s7 = inlined_call_operand.hbm [shape: bf16[512,512], index: 7, kind: input, shape index: {}]   ;;  %s11503_s8 = inlined_call_operand.vmem [shape: bf16[1,512], index: 8, kind: input, shape index: {}]   ;;  %s11504_s9 = inlined_call_operand.hbm [shape: bf16[512,512], index: 9, kind: input, shape index: {}]   ;;  %s11505_s10 = inlined_call_operand.hbm [shape: bf16[1,512], index: 10, kind: input, shape index: {}]   ;;  %s11506_s11 = inlined_call_operand.hbm [shape: bf16[512,512], index: 11, kind: input, shape index: {}]   ;;  %s11507_s12 = inlined_call_operand.vmem [shape: bf16[1,512], index: 12, kind: input, shape index: {}]   ;;  %s11508_s13 = inlined_call_operand.hbm [shape: bf16[512,128], index: 13, kind: input, shape index: {}]   ;;  %s11509_s14 = inlined_call_operand.vmem [shape: f32[1,128], index: 14, kind: input, shape index: {}]   ;;  %s11510_s15 = inlined_call_operand.hbm [shape: f32[64,128], index: 15, kind: output, shape index: {}]  }
   0x1   :  { %21 = vsyncpa [#allocation6], 0 }
   0x2   :  { %22 = vsyncpa [#allocation9], 0 }
   0x3   :  { %23 = vsyncpa [#allocation12], 0 }
   0x4   :  { %24 = vsyncpa [#allocation15], 0  ;;  %s44_s20 = sshll.u32 %s11497_s2, 4  ;;  %s45_s20 = int_to_ptr.hbm [resolvable:$true] %s44_s20 }
   0x5   :  { %25 = vsyncpa [#allocation4], 0  ;;  %s9604_s21 = smov [#allocation5]   ;;  %s67_s25 = sshll.u32 %s11500_s5, 4  ;;  %s68_s25 = int_to_ptr.hbm [resolvable:$true] %s67_s25 }
   0x6   :  { %s46_s22 = sshll.u32 %s9604_s21, 4  ;;  %s9605_s26 = smov [#allocation8]   ;;  %s47_s22 = int_to_ptr.vmem [resolvable:$true] %s46_s22 }
   0x7   :  { %49 = dma.hbm_to_vmem [thread:$0]  %s45_s20, 16, %s47_s22, [#allocation6]  }
   0x8   :  { %s69_s27 = sshll.u32 %s9605_s26, 4  ;;  %s9606_s28 = smov 256   ;;  %s70_s27 = int_to_ptr.vmem [resolvable:$true] %s69_s27 }
   0x9   :  { %s9607_s29 = smov 16   ;;  %s97_s16 = sshll.u32 %s11504_s9, 4  ;;  %s98_s16 = int_to_ptr.hbm [resolvable:$true] %s97_s16 }
   0xa   :  { %75 = dma.hbm_to_vmem [thread:$0]  %s68_s25, 4096, %s70_s27, [#allocation9], %s9606_s28, %s9606_s28, %s9607_s29  }
   0xb   :  { %s9608_s17 = smov [#allocation11]   ;;  %s121_s20 = sshll.u32 %s11506_s11, 4  ;;  %s122_s20 = int_to_ptr.hbm [resolvable:$true] %s121_s20 }
   0xc   :  { %s99_s18 = sshll.u32 %s9608_s17, 4  ;;  %s9609_s21 = smov [#allocation14]   ;;  %s100_s18 = int_to_ptr.vmem [resolvable:$true] %s99_s18 }
   0xd   :  { %105 = dma.hbm_to_vmem [thread:$0]  %s98_s16, 16384, %s100_s18, [#allocation12], %s9606_s28, %s9606_s28, %s9607_s29  }
   0xe   :  { %s123_s22 = sshll.u32 %s9609_s21, 4  ;;  %s33_s25 = sshll.u32 %s11496_s1, 4  ;;  %s124_s22 = int_to_ptr.vmem [resolvable:$true] %s123_s22  ;;  %s34_s25 = int_to_ptr.hbm [resolvable:$true] %s33_s25 }
   0xf   :  { %129 = dma.hbm_to_vmem [thread:$0]  %s122_s20, 16384, %s124_s22, [#allocation15], %s9606_s28, %s9606_s28, %s9607_s29  }
  0x10   :  { %s57_s11 = sshll.u32 %s11499_s4, 4  ;;  %s9610_s27 = smov [#allocation2]   ;;  %s58_s11 = int_to_ptr.hbm [resolvable:$true] %s57_s11 }
  0x11   :  { %s35_s2 = sshll.u32 %s9610_s27, 4  ;;  %s9611_s30 = smov [#allocation7]   ;;  %s36_s2 = int_to_ptr.vmem [resolvable:$true] %s35_s2 }
  0x12   :  { %38 = dma.hbm_to_vmem [thread:$0]  %s34_s25, 16, %s36_s2, [#allocation3]  }
  0x13   :  { %s59_s16 = sshll.u32 %s9611_s30, 4  ;;  %s82_s1 = sshll.u32 %s11502_s7, 4  ;;  %s60_s16 = int_to_ptr.vmem [resolvable:$true] %s59_s16  ;;  %s83_s1 = int_to_ptr.hbm [resolvable:$true] %s82_s1 }
  0x14   :  { %62 = dma.hbm_to_vmem [thread:$0]  %s58_s11, 16, %s60_s16, [#allocation6]  }
  0x15   :  { %s111_s20 = sshll.u32 %s11505_s10, 4  ;;  %s9612_s21 = smov [#allocation10]   ;;  %s112_s20 = int_to_ptr.hbm [resolvable:$true] %s111_s20 }
  0x16   :  { %s84_s4 = sshll.u32 %s9612_s21, 4  ;;  %s9613_s22 = smov [#allocation13]   ;;  %s85_s4 = int_to_ptr.vmem [resolvable:$true] %s84_s4 }
  0x17   :  { %90 = dma.hbm_to_vmem [thread:$0]  %s83_s1, 16384, %s85_s4, [#allocation9], %s9606_s28, %s9606_s28, %s9607_s29  }
  0x18   :  { %s113_s23 = sshll.u32 %s9613_s22, 4  ;;  %s136_s7 = sshll.u32 %s11508_s13, 4  ;;  %s114_s23 = int_to_ptr.vmem [resolvable:$true] %s113_s23  ;;  %s137_s7 = int_to_ptr.hbm [resolvable:$true] %s136_s7 }
  0x19   :  { %116 = dma.hbm_to_vmem [thread:$0]  %s112_s20, 64, %s114_s23, [#allocation12]  }
  0x1a   :  { %s9614_s9 = smov [#allocation16]   ;;  %s9615_s10 = smov 64  }
  0x1b   :  { %s138_s26 = sshll.u32 %s9614_s9, 4  ;;  %s9616_s11 = smov 4   ;;  %s139_s26 = int_to_ptr.vmem [resolvable:$true] %s138_s26 }
  0x1c   :  { %144 = dma.hbm_to_vmem [thread:$0]  %s137_s7, 4096, %s139_s26, [#allocation15], %s9615_s10, %s9615_s10, %s9616_s11  }
  0x1d   :  { %9592 = dma.done.wait [#allocation3], 16  }
  0x1e   :  { %9593 = vsyncadd [#allocation3], 4294967280 }
  0x1f   :  { %9594 = dma.done.wait [#allocation6], 32  }
  0x20   :  { %9595 = vsyncadd [#allocation6], 4294967264 }
  0x21   :  { %9596 = dma.done.wait [#allocation9], 20480  }
  0x22   :  { %9597 = vsyncadd [#allocation9], 4294946816 }
  0x23   :  { %9598 = dma.done.wait [#allocation12], 16448  }
  0x24   :  { %9599 = vsyncadd [#allocation12], 4294950848 }
  0x25   :  { %9600 = dma.done.wait [#allocation15], 20480  }
  0x26   :  { %9601 = vsyncadd [#allocation15], 4294946816  ;;  %v9617_v0 = vmov 0   ;;  %v185_v1 = vld [vmem:[%s11495_s0 + $0x10] sm:$0xff]  ;;  %v183_v2 = vld [vmem:[%s11495_s0] sm:$0xff]  ;;  %s6728_s4 = sshll.u32 %s11510_s15, 4  ;;  %s6729_s4 = int_to_ptr.hbm [resolvable:$true] %s6728_s4 }
  0x27   :  { %9059 = vset.pattern.permute.xlu1 %v9617_v0  ;;  %9058 = vset.pattern.permute.xlu0 %v9617_v0  ;;  %v187_v3 = vld [vmem:[%s11495_s0 + $0x20] sm:$0xff]  ;;  %v186_v4 = vld [vmem:[%s11495_s0 + $0x18] sm:$0xff]  ;;  %v184_v5 = vld [vmem:[%s11495_s0 + $0x8] sm:$0xff]  ;;  %s9619_s22 = smov 128   ;;  %s9620_s23 = smov 8  }
  0x28   :  { %9060 = vset.pattern.permute.xlu2 %v9617_v0  ;;  %204 = vperm.xlu1 %9059, %v185_v1   ;;  %v188_v6 = vld [vmem:[%s11495_s0 + $0x28] sm:$0xff]  ;;  %v190_v7 = vld [vmem:[%s11495_s0 + $0x38] sm:$0xff]  ;;  %v189_v8 = vld [vmem:[%s11495_s0 + $0x30] sm:$0xff] }
  0x29   :  { %194 = vperm.xlu0 %9058, %v183_v2   ;;  %214 = vperm.xlu2 %9060, %v187_v3   ;;  %v8576_v9 = vld [vmem:[%s11498_s3 + $0x38] sm:$0xff]  ;;  %v8575_v10 = vld [vmem:[%s11498_s3 + $0x30] sm:$0xff]  ;;  %v8574_v11 = vld [vmem:[%s11498_s3 + $0x28] sm:$0xff] }
  0x2a   :  { %9025 = vmatpush.bf16.msra.mxu1 %v8576_v9  ;;  %419 = vmatpush.bf16.msra.mxu0 %v8576_v9  ;;  %v9773_v12 = vld [vmem:[#allocation2] ss:$0 sm:$0xff]  ;;  %v8573_v13 = vld [vmem:[%s11498_s3 + $0x20] sm:$0xff]  ;;  %v9778_v14 = vld [vmem:[#allocation5] ss:$0 sm:$0xff] }
  0x2b   :  { %v8572_v17 = vld [vmem:[%s11498_s3 + $0x18] sm:$0xff]  ;;  %v8571_v20 = vld [vmem:[%s11498_s3 + $0x10] sm:$0xff]  ;;  %v8570_v25 = vld [vmem:[%s11498_s3 + $0x8] sm:$0xff] }
  0x2c   :  { %v8569_v30 = vld [vmem:[%s11498_s3] sm:$0xff] }
  0x2e   :  { %9026 = vmatpush.bf16.msra.mxu1 %v8575_v10  ;;  %420 = vmatpush.bf16.msra.mxu0 %v8575_v10 }
  0x30   :  { %209 = vperm.xlu1 %9059, %v186_v4  }
  0x31   :  { %199 = vperm.xlu0 %9058, %v184_v5   ;;  %219 = vperm.xlu2 %9060, %v188_v6  }
  0x32   :  { %9027 = vmatpush.bf16.msra.mxu1 %v8574_v11  ;;  %421 = vmatpush.bf16.msra.mxu0 %v8574_v11 }
  0x36   :  { %9028 = vmatpush.bf16.msra.mxu1 %v8573_v13  ;;  %422 = vmatpush.bf16.msra.mxu0 %v8573_v13 }
  0x38   :  { %229 = vperm.xlu1 %9059, %v190_v7  }
  0x39   :  { %224 = vperm.xlu0 %9058, %v189_v8  }
  0x3a   :  { %9029 = vmatpush.bf16.msra.mxu1 %v8572_v17  ;;  %423 = vmatpush.bf16.msra.mxu0 %v8572_v17 }
  0x3e   :  { %9030 = vmatpush.bf16.msra.mxu1 %v8571_v20  ;;  %424 = vmatpush.bf16.msra.mxu0 %v8571_v20 }
  0x42   :  { %9031 = vmatpush.bf16.msra.mxu1 %v8570_v25  ;;  %425 = vmatpush.bf16.msra.mxu0 %v8570_v25 }
  0x46   :  { %9032 = vmatpush.bf16.msra.mxu1 %v8569_v30  ;;  %426 = vmatpush.bf16.msra.mxu0 %v8569_v30 }
  0x83   :  { %v215_v15 = vpop.permute.xlu2 %214 }
  0x84   :  { %v239_v16 = vmul.f32 %v9773_v12, %v215_v15 }
  0x86   :  { %v251_v18 = vadd.f32 %v9778_v14, %v239_v16 }
  0x88   :  { %v259_v19 = vpack.c.bf16 %v251_v18, %v251_v18 }
  0x8a   :  { %v267_v21 = vunpack.c.l.bf16 %v259_v19 }
  0x8b   :  { %v220_v22 = vpop.permute.xlu2 %219 }
  0x8c   :  { %v275_v23 = vmul.f32 0.5, %v267_v21  ;;  %v240_v24 = vmul.f32 %v9773_v12, %v220_v22 }
  0x8e   :  { %v283_v26 = vpack.c.bf16 %v275_v23, %v275_v23  ;;  %v252_v27 = vadd.f32 %v9778_v14, %v240_v24 }
  0x90   :  { %v291_v28 = vunpack.c.l.bf16 %v283_v26  ;;  %v260_v29 = vpack.c.bf16 %v252_v27, %v252_v27 }
  0x92   :  { %9064 = vtanh.f32 %v291_v28  ;;  %v268_v31 = vunpack.c.l.bf16 %v260_v29 }
  0x94   :  { %v276_v32 = vmul.f32 0.5, %v268_v31 }
  0x96   :  { %v284_v33 = vpack.c.bf16 %v276_v32, %v276_v32 }
  0x98   :  { %v9065_v34 = vpop.eup %9064  ;;  %v292_v35 = vunpack.c.l.bf16 %v284_v33 }
  0x99   :  { %v307_v36 = vpack.c.bf16 %v9065_v34, %v9065_v34 }
  0x9a   :  { %9066 = vtanh.f32 %v292_v35  ;;  %v205_v37 = vpop.permute.xlu1 %204 }
  0x9b   :  { %v195_v38 = vpop.permute.xlu0 %194  ;;  %v237_v39 = vmul.f32 %v9773_v12, %v205_v37  ;;  %v315_v41 = vunpack.c.l.bf16 %v307_v36 }
  0x9c   :  { %v235_v40 = vmul.f32 %v9773_v12, %v195_v38 }
  0x9d   :  { %v249_v43 = vadd.f32 %v9778_v14, %v237_v39  ;;  %v323_v44 = vadd.f32 1.0, %v315_v41 }
  0x9e   :  { %v247_v42 = vadd.f32 %v9778_v14, %v235_v40 }
  0x9f   :  { %v257_v49 = vpack.c.bf16 %v249_v43, %v249_v43  ;;  %v331_v52 = vpack.c.bf16 %v323_v44, %v323_v44 }
  0xa0   :  { %v255_v45 = vpack.c.bf16 %v247_v42, %v247_v42  ;;  %v9067_v46 = vpop.eup %9066 }
  0xa1   :  { %v308_v48 = vpack.c.bf16 %v9067_v46, %v9067_v46  ;;  %v265_v60 = vunpack.c.l.bf16 %v257_v49  ;;  %v339_v62 = vunpack.c.l.bf16 %v331_v52 }
  0xa2   :  { %v263_v47 = vunpack.c.l.bf16 %v255_v45  ;;  %v210_v50 = vpop.permute.xlu1 %209 }
  0xa3   :  { %v200_v51 = vpop.permute.xlu0 %199  ;;  %v238_v54 = vmul.f32 %v9773_v12, %v210_v50  ;;  %v316_v56 = vunpack.c.l.bf16 %v308_v48  ;;  %v273_v5 = vmul.f32 0.5, %v265_v60  ;;  %v347_v9 = vmul.f32 %v339_v62, %v291_v28 }
  0xa4   :  { %v271_v53 = vmul.f32 0.5, %v263_v47  ;;  %v236_v55 = vmul.f32 %v9773_v12, %v200_v51 }
  0xa5   :  { %v250_v58 = vadd.f32 %v9778_v14, %v238_v54  ;;  %v324_v61 = vadd.f32 1.0, %v316_v56  ;;  %v281_v21 = vpack.c.bf16 %v273_v5, %v273_v5 }
  0xa6   :  { %v279_v57 = vpack.c.bf16 %v271_v53, %v271_v53  ;;  %v248_v59 = vadd.f32 %v9778_v14, %v236_v55 }
  0xa7   :  { %v258_v0 = vpack.c.bf16 %v250_v58, %v250_v58  ;;  %v332_v2 = vpack.c.bf16 %v324_v61, %v324_v61  ;;  %v289_v31 = vunpack.c.l.bf16 %v281_v21  ;;  %v6893_v21 = vld [vmem:[#allocation8 + $0xf0] sm:$0xf0] }
  0xa8   :  { %v9804_v63 = vunpack.c.l.bf16 %v279_v57  ;;  %v256_v1 = vpack.c.bf16 %v248_v59, %v248_v59 }
  0xa9   :  { %v266_v3 = vunpack.c.l.bf16 %v258_v0  ;;  %v340_v8 = vunpack.c.l.bf16 %v332_v2 }
  0xaa   :  { %v264_v4 = vunpack.c.l.bf16 %v256_v1  ;;  %9068 = vtanh.f32 %v9804_v63  ;;  %v230_v6 = vpop.permute.xlu1 %229 }
  0xab   :  { %v225_v7 = vpop.permute.xlu0 %224  ;;  %v274_v10 = vmul.f32 0.5, %v266_v3  ;;  %v242_v13 = vmul.f32 %v9773_v12, %v230_v6  ;;  %v348_v16 = vmul.f32 %v340_v8, %v292_v35 }
  0xac   :  { %v272_v11 = vmul.f32 0.5, %v264_v4  ;;  %v241_v15 = vmul.f32 %v9773_v12, %v225_v7 }
  0xad   :  { %v282_v17 = vpack.c.bf16 %v274_v10, %v274_v10  ;;  %v254_v19 = vadd.f32 %v9778_v14, %v242_v13  ;;  %v353_v22 = vpack.c.bf16 %v348_v16, %v347_v9 }
  0xae   :  { %v280_v18 = vpack.c.bf16 %v272_v11, %v272_v11  ;;  %v253_v20 = vadd.f32 %v9778_v14, %v241_v15 }
  0xaf   :  { %v262_v24 = vpack.c.bf16 %v254_v19, %v254_v19  ;;  %v290_v27 = vunpack.c.l.bf16 %v282_v17  ;;  %437 = vmatmul.bf16.vlgmr.msra.gmra.mxu1 %v353_v22  ;;  %v6891_v17 = vld [vmem:[#allocation8 + $0xe0] sm:$0xf]  ;;  %v8605_v19 = vld [vmem:[#allocation8 + $0xe4] sm:$0xf]  ;;  %v6899_v22 = vld [vmem:[#allocation8 + $0xe8] sm:$0xf] }
  0xb0   :  { %v288_v23 = vunpack.c.l.bf16 %v280_v18  ;;  %v261_v25 = vpack.c.bf16 %v253_v20, %v253_v20  ;;  %v9069_v26 = vpop.eup %9068  ;;  %v8607_v18 = vld [vmem:[#allocation8 + $0xec] sm:$0xf0] }
  0xb1   :  { %v270_v28 = vunpack.c.l.bf16 %v262_v24  ;;  %v303_v30 = vpack.c.bf16 %v9069_v26, %v9069_v26  ;;  %v6892_v20 = vor.u32 %v8607_v18, %v6891_v17  ;;  %v6896_v24 = vor.u32 %v8605_v19, %v6893_v21  ;;  %v8606_v26 = vld [vmem:[#allocation8 + $0xec] sm:$0xf]  ;;  %v6811_v19 = vld [vmem:[#allocation8 + $0x40] sm:$0xf]  ;;  %v8585_v21 = vld [vmem:[#allocation8 + $0x44] sm:$0xf] }
  0xb2   :  { %v269_v29 = vunpack.c.l.bf16 %v261_v25  ;;  %9070 = vtanh.f32 %v288_v23 }
  0xb3   :  { %v278_v12 = vmul.f32 0.5, %v270_v28  ;;  %v311_v33 = vunpack.c.l.bf16 %v303_v30  ;;  %9072 = vtanh.f32 %v290_v27  ;;  %v6901_v28 = vld [vmem:[#allocation8 + $0xf8] sm:$0xf0]  ;;  %770 = vmatpush.bf16.msrb.mxu1 %v6892_v20  ;;  %799 = vmatpush.bf16.msra.mxu2 %v6896_v24  ;;  %v6875_v30 = vld [vmem:[#allocation8 + $0xc0] sm:$0xf] }
  0xb4   :  { %v277_v32 = vmul.f32 0.5, %v269_v29  ;;  %9074 = vtanh.f32 %v289_v31  ;;  %v6904_v29 = vor.u32 %v8606_v26, %v6901_v28  ;;  %v8587_v20 = vld [vmem:[#allocation8 + $0x4c] sm:$0xf0]  ;;  %v6819_v24 = vld [vmem:[#allocation8 + $0x48] sm:$0xf] }
  0xb5   :  { %v286_v34 = vpack.c.bf16 %v278_v12, %v278_v12  ;;  %v319_v37 = vadd.f32 1.0, %v311_v33  ;;  %v6883_v33 = vld [vmem:[#allocation8 + $0xc8] sm:$0xf] }
  0xb6   :  { %v285_v35 = vpack.c.bf16 %v277_v32, %v277_v32  ;;  %857 = vmatpush.bf16.msrb.mxu0 %v6904_v29  ;;  %v6877_v32 = vld [vmem:[#allocation8 + $0xd0] sm:$0xf0] }
  0xb7   :  { %v294_v14 = vunpack.c.l.bf16 %v286_v34  ;;  %v327_v42 = vpack.c.bf16 %v319_v37, %v319_v37  ;;  %v8604_v34 = vld [vmem:[#allocation8 + $0xd4] sm:$0xf0]  ;;  %v6885_v37 = vld [vmem:[#allocation8 + $0xd8] sm:$0xf0] }
  0xb8   :  { %v293_v36 = vunpack.c.l.bf16 %v285_v35  ;;  %v9071_v38 = vpop.eup %9070 }
  0xb9   :  { %9076 = vtanh.f32 %v294_v14  ;;  %v304_v39 = vpack.c.bf16 %v9071_v38, %v9071_v38  ;;  %v9073_v40 = vpop.eup %9072  ;;  %v335_v48 = vunpack.c.l.bf16 %v327_v42 }
  0xba   :  { %9078 = vtanh.f32 %v293_v36  ;;  %v9075_v43 = vpop.eup %9074  ;;  %v306_v45 = vpack.c.bf16 %v9073_v40, %v9073_v40  ;;  %v8599_v40 = vld [vmem:[#allocation8 + $0xac] sm:$0xf0] }
  0xbb   :  { %v312_v41 = vunpack.c.l.bf16 %v304_v39  ;;  %v305_v49 = vpack.c.bf16 %v9075_v43, %v9075_v43  ;;  %v343_v56 = vmul.f32 %v335_v48, %v9804_v63  ;;  %v6859_v39 = vld [vmem:[#allocation8 + $0xa0] sm:$0xf]  ;;  %v6861_v43 = vld [vmem:[#allocation8 + $0xb0] sm:$0xf0]  ;;  %v8598_v48 = vld [vmem:[#allocation8 + $0xac] sm:$0xf] }
  0xbc   :  { %v314_v54 = vunpack.c.l.bf16 %v306_v45  ;;  %v6860_v42 = vor.u32 %v8599_v40, %v6859_v39  ;;  %v8600_v45 = vld [vmem:[#allocation8 + $0xb4] sm:$0xf0] }
  0xbd   :  { %v320_v44 = vadd.f32 1.0, %v312_v41  ;;  %v313_v59 = vunpack.c.l.bf16 %v305_v49  ;;  %v8597_v41 = vld [vmem:[#allocation8 + $0xa4] sm:$0xf]  ;;  %v6869_v49 = vld [vmem:[#allocation8 + $0xb8] sm:$0xf0] }
  0xbe   :  { %v322_v0 = vadd.f32 1.0, %v314_v54  ;;  %v8593_v54 = vld [vmem:[#allocation8 + $0x84] sm:$0xf] }
  0xbf   :  { %v9077_v46 = vpop.eup %9076  ;;  %v328_v47 = vpack.c.bf16 %v320_v44, %v320_v44  ;;  %v321_v3 = vadd.f32 1.0, %v313_v59  ;;  %v6867_v44 = vld [vmem:[#allocation8 + $0xa8] sm:$0xf] }
  0xc0   :  { %v9079_v50 = vpop.eup %9078  ;;  %v310_v51 = vpack.c.bf16 %v9077_v46, %v9077_v46  ;;  %v330_v6 = vpack.c.bf16 %v322_v0, %v322_v0  ;;  %v6864_v46 = vor.u32 %v8597_v41, %v6861_v43  ;;  %v6853_v0 = vld [vmem:[#allocation8 + $0x98] sm:$0xf0]  ;;  %v8584_v41 = vld [vmem:[#allocation8 + $0x34] sm:$0xf0] }
  0xc1   :  { %v336_v52 = vunpack.c.l.bf16 %v328_v47  ;;  %v309_v53 = vpack.c.bf16 %v9079_v50, %v9079_v50  ;;  %v329_v9 = vpack.c.bf16 %v321_v3, %v321_v3  ;;  %v6868_v47 = vor.u32 %v8600_v45, %v6867_v44  ;;  %v448_v50 = vld [vmem:[#allocation7] sm:$0x1]  ;;  %v6827_v3 = vld [vmem:[#allocation8 + $0x60] sm:$0xf] }
  0xc2   :  { %v318_v55 = vunpack.c.l.bf16 %v310_v51  ;;  %v338_v11 = vunpack.c.l.bf16 %v330_v6  ;;  %v6872_v51 = vor.u32 %v8598_v48, %v6869_v49  ;;  %v458_v59 = vpack.i.b16 %v448_v50, %v448_v50  ;;  %v6805_v43 = vld [vmem:[#allocation8 + $0x38] sm:$0xf0]  ;;  %v6779_v49 = vld [vmem:[#allocation8] sm:$0xf]  ;;  %v8579_v50 = vld [vmem:[#allocation8 + $0xc] sm:$0xf0] }
  0xc3   :  { %v344_v57 = vmul.f32 %v336_v52, %v288_v23  ;;  %v317_v58 = vunpack.c.l.bf16 %v309_v53  ;;  %v337_v63 = vunpack.c.l.bf16 %v329_v9  ;;  %v8608_v23 = vld [vmem:[#allocation8 + $0xf4] sm:$0xf0]  ;;  %v6843_v52 = vld [vmem:[#allocation8 + $0x80] sm:$0xf]  ;;  %v8595_v53 = vld [vmem:[#allocation8 + $0x8c] sm:$0xf0] }
  0xc4   :  { %v326_v60 = vadd.f32 1.0, %v318_v55  ;;  %v346_v13 = vmul.f32 %v338_v11, %v290_v27  ;;  %v6900_v25 = vor.u32 %v8608_v23, %v6899_v22  ;;  %v8603_v27 = vld [vmem:[#allocation8 + $0xcc] sm:$0xf0]  ;;  %v6844_v55 = vor.u32 %v8595_v53, %v6843_v52  ;;  %v8592_v9 = vld [vmem:[#allocation8 + $0x74] sm:$0xf0] }
  0xc5   :  { %v351_v61 = vpack.c.bf16 %v344_v57, %v343_v56  ;;  %v325_v62 = vadd.f32 1.0, %v317_v58  ;;  %v345_v15 = vmul.f32 %v337_v63, %v289_v31  ;;  %v8601_v31 = vld [vmem:[#allocation8 + $0xc4] sm:$0xf]  ;;  %v6876_v12 = vor.u32 %v8603_v27, %v6875_v30  ;;  %v6845_v56 = vld [vmem:[#allocation8 + $0x90] sm:$0xf0] }
  0xc6   :  { %v334_v1 = vpack.c.bf16 %v326_v60, %v326_v60  ;;  %828 = vmatpush.bf16.msra.mxu3 %v6900_v25  ;;  %v6880_v35 = vor.u32 %v8601_v31, %v6877_v32  ;;  %v6851_v57 = vld [vmem:[#allocation8 + $0x88] sm:$0xf]  ;;  %v8596_v58 = vld [vmem:[#allocation8 + $0x94] sm:$0xf0]  ;;  %v6848_v60 = vor.u32 %v8593_v54, %v6845_v56  ;;  %v6812_v22 = vor.u32 %v8587_v20, %v6811_v19  ;;  %v6813_v23 = vld [vmem:[#allocation8 + $0x50] sm:$0xf0] }
  0xc7   :  { %427 = vmatmul.bf16.vlgmr.msra.gmra.mxu0 %v351_v61  ;;  %v333_v2 = vpack.c.bf16 %v325_v62, %v325_v62  ;;  %v352_v16 = vpack.c.bf16 %v346_v13, %v345_v15  ;;  %771 = vmatpush.bf16.msrb.mxu1 %v6876_v12  ;;  %v6852_v61 = vor.u32 %v8596_v58, %v6851_v57  ;;  %v8594_v62 = vld [vmem:[#allocation8 + $0x8c] sm:$0xf]  ;;  %v6837_v15 = vld [vmem:[#allocation8 + $0x78] sm:$0xf0]  ;;  %v8588_v25 = vld [vmem:[#allocation8 + $0x54] sm:$0xf0] }
  0xc8   :  { %v342_v4 = vunpack.c.l.bf16 %v334_v1  ;;  %800 = vmatpush.bf16.msra.mxu2 %v6880_v35  ;;  %v8590_v13 = vld [vmem:[#allocation8 + $0x6c] sm:$0xf]  ;;  %v6816_v29 = vor.u32 %v8585_v21, %v6813_v23  ;;  %v6820_v30 = vor.u32 %v8588_v25, %v6819_v24  ;;  %v6821_v31 = vld [vmem:[#allocation8 + $0x58] sm:$0xf0]  ;;  %v6780_v53 = vor.u32 %v8579_v50, %v6779_v49  ;;  %v6781_v54 = vld [vmem:[#allocation8 + $0x10] sm:$0xf0] }
  0xc9   :  { %v341_v5 = vunpack.c.l.bf16 %v333_v2  ;;  %v6856_v2 = vor.u32 %v8594_v62, %v6853_v0  ;;  %v6840_v17 = vor.u32 %v8590_v13, %v6837_v15  ;;  %v8586_v27 = vld [vmem:[#allocation8 + $0x4c] sm:$0xf]  ;;  %v8580_v56 = vld [vmem:[#allocation8 + $0x14] sm:$0xf0] }
  0xca   :  { %v350_v7 = vmul.f32 %v342_v4, %v294_v14  ;;  %v6884_v14 = vor.u32 %v8604_v34, %v6883_v33  ;;  %v8591_v4 = vld [vmem:[#allocation8 + $0x6c] sm:$0xf0]  ;;  %v6824_v12 = vor.u32 %v8586_v27, %v6821_v31  ;;  %v6795_v33 = vld [vmem:[#allocation8 + $0x20] sm:$0xf] }
  0xcb   :  { %v349_v8 = vmul.f32 %v341_v5, %v293_v36  ;;  %v8602_v36 = vld [vmem:[#allocation8 + $0xcc] sm:$0xf]  ;;  %772 = vmatpush.bf16.msrb.mxu1 %v6860_v42  ;;  %v8589_v5 = vld [vmem:[#allocation8 + $0x64] sm:$0xf]  ;;  %v6828_v6 = vor.u32 %v8591_v4, %v6827_v3  ;;  %v8583_v34 = vld [vmem:[#allocation8 + $0x2c] sm:$0xf0] }
  0xcc   :  { %v6888_v38 = vor.u32 %v8602_v36, %v6885_v37  ;;  %829 = vmatpush.bf16.msra.mxu3 %v6884_v14  ;;  %801 = vmatpush.bf16.msra.mxu2 %v6864_v46  ;;  %v6796_v14 = vor.u32 %v8583_v34, %v6795_v33  ;;  %v8581_v36 = vld [vmem:[#allocation8 + $0x24] sm:$0xf]  ;;  %v6797_v37 = vld [vmem:[#allocation8 + $0x30] sm:$0xf0]  ;;  %v8582_v42 = vld [vmem:[#allocation8 + $0x2c] sm:$0xf] }
  0xcd   :  { %v354_v10 = vpack.c.bf16 %v350_v7, %v349_v8  ;;  %v6829_v7 = vld [vmem:[#allocation8 + $0x70] sm:$0xf0]  ;;  %v6835_v8 = vld [vmem:[#allocation8 + $0x68] sm:$0xf]  ;;  %v6800_v40 = vor.u32 %v8581_v36, %v6797_v37  ;;  %v6808_v46 = vor.u32 %v8582_v42, %v6805_v43 }
  0xce   :  { %858 = vmatpush.bf16.msrb.mxu0 %v6888_v38  ;;  %v6832_v11 = vor.u32 %v8589_v5, %v6829_v7  ;;  %v6836_v63 = vor.u32 %v8592_v9, %v6835_v8  ;;  %v6803_v38 = vld [vmem:[#allocation8 + $0x28] sm:$0xf] }
  0xcf   :  { %442 = vmatmul.bf16.gmra.mxu1 %v354_v10  ;;  %v460_v10 = vperm.slane %v458_v59, 0  ;;  %v6804_v45 = vor.u32 %v8584_v41, %v6803_v38 }
  0xd0   :  { %830 = vmatpush.bf16.msra.mxu3 %v6868_v47  ;;  %773 = vmatpush.bf16.msrb.mxu1 %v6844_v55  ;;  %v6787_v55 = vld [vmem:[#allocation8 + $0x8] sm:$0xf] }
  0xd1   :  { %802 = vmatpush.bf16.msra.mxu2 %v6848_v60  ;;  %v9814_v26 = vunpack.c.l.bf16 %v460_v10  ;;  %v8578_v60 = vld [vmem:[#allocation8 + $0xc] sm:$0xf]  ;;  %v6788_v0 = vor.u32 %v8580_v56, %v6787_v55 }
  0xd2   :  { %859 = vmatpush.bf16.msrb.mxu0 %v6872_v51  ;;  %v8577_v51 = vld [vmem:[#allocation8 + $0x4] sm:$0xf] }
  0xd3   :  { %v6784_v62 = vor.u32 %v8577_v51, %v6781_v54 }
  0xd4   :  { %831 = vmatpush.bf16.msra.mxu3 %v6852_v61  ;;  %774 = vmatpush.bf16.msrb.mxu1 %v6828_v6  ;;  %v6789_v61 = vld [vmem:[#allocation8 + $0x18] sm:$0xf0] }
  0xd5   :  { %803 = vmatpush.bf16.msra.mxu2 %v6832_v11 }
  0xd6   :  { %860 = vmatpush.bf16.msrb.mxu0 %v6856_v2  ;;  %v6792_v2 = vor.u32 %v8578_v60, %v6789_v61 }
  0xd7   :  { %432 = vmatmul.bf16.gmra.mxu0 %v352_v16 }
  0xd8   :  { %832 = vmatpush.bf16.msra.mxu3 %v6836_v63  ;;  %775 = vmatpush.bf16.msrb.mxu1 %v6812_v22 }
  0xd9   :  { %804 = vmatpush.bf16.msra.mxu2 %v6816_v29 }
  0xda   :  { %861 = vmatpush.bf16.msrb.mxu0 %v6840_v17 }
  0xdc   :  { %833 = vmatpush.bf16.msra.mxu3 %v6820_v30  ;;  %776 = vmatpush.bf16.msrb.mxu1 %v6796_v14 }
  0xdd   :  { %805 = vmatpush.bf16.msra.mxu2 %v6800_v40 }
  0xde   :  { %862 = vmatpush.bf16.msrb.mxu0 %v6824_v12 }
  0xe0   :  { %834 = vmatpush.bf16.msra.mxu3 %v6804_v45  ;;  %777 = vmatpush.bf16.msrb.mxu1 %v6780_v53 }
  0xe1   :  { %806 = vmatpush.bf16.msra.mxu2 %v6784_v62 }
  0xe2   :  { %863 = vmatpush.bf16.msrb.mxu0 %v6808_v46 }
  0xe4   :  { %835 = vmatpush.bf16.msra.mxu3 %v6788_v0 }
  0xe6   :  { %864 = vmatpush.bf16.msrb.mxu0 %v6792_v2 }
 0x12c   :  { %v9812_v1 = vpop.f32.mrf.mxu1 }
 0x12d   :  { %v453_v52 = vpack.c.bf16 %v9812_v1, %v9812_v1 }
 0x12f   :  { %v465_v5 = vunpack.c.l.bf16 %v453_v52 }
 0x131   :  { %v474_v63 = vadd.f32 %v9814_v26, %v465_v5 }
 0x133   :  { %v482_v19 = vpack.c.bf16 %v474_v63, %v474_v63 }
 0x134   :  { %v440_v35 = vpop.f32.mrf.mxu1 }
 0x135   :  { %v454_v57 = vpack.c.bf16 %v440_v35, %v440_v35  ;;  %v490_v27 = vunpack.c.l.bf16 %v482_v19 }
 0x137   :  { %v466_v6 = vunpack.c.l.bf16 %v454_v57  ;;  %v498_v37 = vmul.f32 0.5, %v490_v27 }
 0x139   :  { %v475_v13 = vadd.f32 %v9814_v26, %v466_v6 }
 0x13b   :  { %v483_v21 = vpack.c.bf16 %v475_v13, %v475_v13 }
 0x13d   :  { %v491_v12 = vunpack.c.l.bf16 %v483_v21 }
 0x13f   :  { %v499_v40 = vmul.f32 0.5, %v491_v12 }
 0x141   :  { %v507_v50 = vpack.c.bf16 %v499_v40, %v499_v40  ;;  %v8703_v40 = vld [vmem:[#allocation10 + $0x2ec] sm:$0xf0] }
 0x143   :  { %v9831_v60 = vunpack.c.l.bf16 %v507_v50  ;;  %v8699_v50 = vld [vmem:[#allocation10 + $0x2cc] sm:$0xf0] }
 0x144   :  { %v428_v16 = vpop.f32.mrf.mxu0 }
 0x145   :  { %v449_v18 = vpack.c.bf16 %v428_v16, %v428_v16 }
 0x147   :  { %v461_v28 = vunpack.c.l.bf16 %v449_v18 }
 0x149   :  { %v470_v32 = vadd.f32 %v9814_v26, %v461_v28 }
 0x14b   :  { %v478_v39 = vpack.c.bf16 %v470_v32, %v470_v32 }
 0x14c   :  { %v430_v44 = vpop.f32.mrf.mxu0  ;;  %v443_v1 = vpop.f32.mrf.mxu1 }
 0x14d   :  { %v486_v47 = vunpack.c.l.bf16 %v478_v39  ;;  %v450_v48 = vpack.c.bf16 %v430_v44, %v430_v44  ;;  %v455_v35 = vpack.c.bf16 %v443_v1, %v443_v1 }
 0x14f   :  { %v494_v58 = vmul.f32 0.5, %v486_v47  ;;  %v462_v59 = vunpack.c.l.bf16 %v450_v48  ;;  %v467_v45 = vunpack.c.l.bf16 %v455_v35  ;;  %v506_v47 = vpack.c.bf16 %v498_v37, %v498_v37  ;;  %v7147_v35 = vld [vmem:[#allocation10 + $0x1e0] sm:$0xf] }
 0x151   :  { %v502_v3 = vpack.c.bf16 %v494_v58, %v494_v58  ;;  %v471_v4 = vadd.f32 %v9814_v26, %v462_v59  ;;  %v476_v54 = vadd.f32 %v9814_v26, %v467_v45  ;;  %v9829_v56 = vunpack.c.l.bf16 %v506_v47  ;;  %v8667_v47 = vld [vmem:[#allocation10 + $0x1cc] sm:$0xf0] }
 0x153   :  { %v9820_v7 = vunpack.c.l.bf16 %v502_v3  ;;  %v479_v8 = vpack.c.bf16 %v471_v4, %v471_v4  ;;  %v484_v3 = vpack.c.bf16 %v476_v54, %v476_v54 }
 0x154   :  { %v433_v9 = vpop.f32.mrf.mxu0  ;;  %v445_v25 = vpop.f32.mrf.mxu1 }
 0x155   :  { %9080 = vtanh.f32 %v9820_v7  ;;  %v487_v10 = vunpack.c.l.bf16 %v479_v8  ;;  %v451_v11 = vpack.c.bf16 %v433_v9, %v433_v9  ;;  %v456_v33 = vpack.c.bf16 %v445_v25, %v445_v25 }
 0x156   :  { %v492_v8 = vunpack.c.l.bf16 %v484_v3 }
 0x157   :  { %v495_v15 = vmul.f32 0.5, %v487_v10  ;;  %v463_v16 = vunpack.c.l.bf16 %v451_v11  ;;  %v468_v42 = vunpack.c.l.bf16 %v456_v33 }
 0x159   :  { %v503_v17 = vpack.c.bf16 %v495_v15, %v495_v15  ;;  %v472_v18 = vadd.f32 %v9814_v26, %v463_v16  ;;  %v477_v51 = vadd.f32 %v9814_v26, %v468_v42  ;;  %v500_v16 = vmul.f32 0.5, %v492_v8  ;;  %v7019_v42 = vld [vmem:[#allocation10 + $0xe0] sm:$0xf] }
 0x15b   :  { %v9081_v20 = vpop.eup %9080  ;;  %v511_v22 = vunpack.c.l.bf16 %v503_v17  ;;  %v480_v23 = vpack.c.bf16 %v472_v18, %v472_v18  ;;  %v485_v61 = vpack.c.bf16 %v477_v51, %v477_v51  ;;  %v7403_v51 = vld [vmem:[#allocation10 + $0x3e0] sm:$0xf] }
 0x15c   :  { %v526_v24 = vpack.c.bf16 %v9081_v20, %v9081_v20  ;;  %v435_v28 = vpop.f32.mrf.mxu0 }
 0x15d   :  { %9082 = vtanh.f32 %v511_v22  ;;  %v488_v29 = vunpack.c.l.bf16 %v480_v23  ;;  %v452_v30 = vpack.c.bf16 %v435_v28, %v435_v28  ;;  %v493_v1 = vunpack.c.l.bf16 %v485_v61 }
 0x15e   :  { %v534_v31 = vunpack.c.l.bf16 %v526_v24 }
 0x15f   :  { %v496_v32 = vmul.f32 0.5, %v488_v29  ;;  %v464_v34 = vunpack.c.l.bf16 %v452_v30  ;;  %v501_v11 = vmul.f32 0.5, %v493_v1 }
 0x160   :  { %v542_v38 = vadd.f32 1.0, %v534_v31 }
 0x161   :  { %v504_v14 = vpack.c.bf16 %v496_v32, %v496_v32  ;;  %v473_v36 = vadd.f32 %v9814_v26, %v464_v34  ;;  %v509_v18 = vpack.c.bf16 %v501_v11, %v501_v11 }
 0x162   :  { %v550_v48 = vpack.c.bf16 %v542_v38, %v542_v38 }
 0x163   :  { %v9083_v39 = vpop.eup %9082  ;;  %v512_v41 = vunpack.c.l.bf16 %v504_v14  ;;  %v481_v43 = vpack.c.bf16 %v473_v36, %v473_v36  ;;  %v9836_v25 = vunpack.c.l.bf16 %v509_v18  ;;  %v8671_v14 = vld [vmem:[#allocation10 + $0x1ec] sm:$0xf0]  ;;  %v7275_v36 = vld [vmem:[#allocation10 + $0x2e0] sm:$0xf] }
 0x164   :  { %v527_v44 = vpack.c.bf16 %v9083_v39, %v9083_v39  ;;  %v558_v57 = vunpack.c.l.bf16 %v550_v48  ;;  %v7148_v39 = vor.u32 %v8671_v14, %v7147_v35  ;;  %v7259_v48 = vld [vmem:[#allocation10 + $0x2c0] sm:$0xf]  ;;  %v8727_v14 = vld [vmem:[#allocation10 + $0x3ac] sm:$0xf0] }
 0x165   :  { %9084 = vtanh.f32 %v512_v41  ;;  %v489_v46 = vunpack.c.l.bf16 %v481_v43  ;;  %v7260_v54 = vor.u32 %v8699_v50, %v7259_v48  ;;  %v7371_v35 = vld [vmem:[#allocation10 + $0x3a0] sm:$0xf]  ;;  %v8655_v48 = vld [vmem:[#allocation10 + $0x16c] sm:$0xf0] }
 0x166   :  { %v535_v49 = vunpack.c.l.bf16 %v527_v44  ;;  %v566_v4 = vmul.f32 %v558_v57, %v9820_v7  ;;  %v7276_v44 = vor.u32 %v8703_v40, %v7275_v36  ;;  %2122 = vmatpush.bf16.msrb.mxu2 %v7148_v39  ;;  %v7372_v36 = vor.u32 %v8727_v14, %v7371_v35  ;;  %v7179_v35 = vld [vmem:[#allocation10 + $0x220] sm:$0xf] }
 0x167   :  { %v497_v52 = vmul.f32 0.5, %v489_v46  ;;  %v7131_v46 = vld [vmem:[#allocation10 + $0x1c0] sm:$0xf] }
 0x168   :  { %v543_v53 = vadd.f32 1.0, %v535_v49  ;;  %v7132_v49 = vor.u32 %v8667_v47, %v7131_v46  ;;  %2151 = vmatpush.bf16.msrb.mxu3 %v7276_v44  ;;  %v8627_v46 = vld [vmem:[#allocation10 + $0x8c] sm:$0xf0]  ;;  %v7083_v47 = vld [vmem:[#allocation10 + $0x160] sm:$0xf] }
 0x169   :  { %v505_v55 = vpack.c.bf16 %v497_v52, %v497_v52  ;;  %v8735_v52 = vld [vmem:[#allocation10 + $0x3ec] sm:$0xf0] }
 0x16a   :  { %v551_v58 = vpack.c.bf16 %v543_v53, %v543_v53  ;;  %2123 = vmatpush.bf16.msrb.mxu2 %v7132_v49 }
 0x16b   :  { %v9085_v59 = vpop.eup %9084  ;;  %v513_v62 = vunpack.c.l.bf16 %v505_v55  ;;  %v7404_v55 = vor.u32 %v8735_v52, %v7403_v51  ;;  %v7084_v52 = vor.u32 %v8655_v48, %v7083_v47 }
 0x16c   :  { %v559_v0 = vunpack.c.l.bf16 %v551_v58  ;;  %v528_v2 = vpack.c.bf16 %v9085_v59, %v9085_v59  ;;  %2152 = vmatpush.bf16.msrb.mxu3 %v7260_v54  ;;  %v8723_v54 = vld [vmem:[#allocation10 + $0x38c] sm:$0xf0] }
 0x16d   :  { %9086 = vtanh.f32 %v513_v62  ;;  %2180 = vmatpush.bf16.msra.mxu0 %v7404_v55 }
 0x16e   :  { %9088 = vtanh.f32 %v9829_v56  ;;  %v567_v5 = vmul.f32 %v559_v0, %v511_v22  ;;  %v536_v26 = vunpack.c.l.bf16 %v528_v2  ;;  %v508_v22 = vpack.c.bf16 %v500_v16, %v500_v16 }
 0x16f   :  { %9090 = vtanh.f32 %v9831_v60 }
 0x170   :  { %v574_v6 = vpack.c.bf16 %v567_v5, %v566_v4  ;;  %v544_v9 = vadd.f32 1.0, %v536_v26  ;;  %v516_v27 = vunpack.c.l.bf16 %v508_v22  ;;  %9092 = vtanh.f32 %v9836_v25  ;;  %v7387_v22 = vld [vmem:[#allocation10 + $0x3c0] sm:$0xf] }
 0x172   :  { %778 = vmatmul.bf16.vlgmr.msrb.gmra.mxu1 %v574_v6  ;;  %807 = vmatmul.bf16.vlgmr.msra.gmra.mxu2 %v574_v6  ;;  %v552_v17 = vpack.c.bf16 %v544_v9, %v544_v9  ;;  %9094 = vtanh.f32 %v516_v27 }
 0x173   :  { %v9087_v10 = vpop.eup %9086  ;;  %836 = vmatmul.bf16.vlgmr.msra.gmra.mxu3 %v574_v6  ;;  %865 = vmatmul.bf16.vlgmr.msrb.gmra.mxu0 %v574_v6 }
 0x174   :  { %v9089_v63 = vpop.eup %9088  ;;  %v529_v13 = vpack.c.bf16 %v9087_v10, %v9087_v10  ;;  %v560_v23 = vunpack.c.l.bf16 %v552_v17  ;;  %v8663_v17 = vld [vmem:[#allocation10 + $0x1ac] sm:$0xf0] }
 0x175   :  { %v9091_v15 = vpop.eup %9090  ;;  %v530_v19 = vpack.c.bf16 %v9089_v63, %v9089_v63 }
 0x176   :  { %v537_v7 = vunpack.c.l.bf16 %v529_v13  ;;  %v531_v20 = vpack.c.bf16 %v9091_v15, %v9091_v15  ;;  %v568_v31 = vmul.f32 %v560_v23, %v512_v41  ;;  %v8639_v41 = vld [vmem:[#allocation10 + $0xec] sm:$0xf0]  ;;  %v9093_v43 = vpop.eup %9092  ;;  %v7115_v15 = vld [vmem:[#allocation10 + $0x1a0] sm:$0xf] }
 0x177   :  { %v538_v28 = vunpack.c.l.bf16 %v530_v19  ;;  %v7020_v45 = vor.u32 %v8639_v41, %v7019_v42  ;;  %v533_v59 = vpack.c.bf16 %v9093_v43, %v9093_v43  ;;  %v8635_v13 = vld [vmem:[#allocation10 + $0xcc] sm:$0xf0]  ;;  %v7227_v42 = vld [vmem:[#allocation10 + $0x280] sm:$0xf] }
 0x178   :  { %v545_v21 = vadd.f32 1.0, %v537_v7  ;;  %v539_v29 = vunpack.c.l.bf16 %v531_v20  ;;  %v9095_v53 = vpop.eup %9094  ;;  %v7116_v7 = vor.u32 %v8663_v17, %v7115_v15  ;;  %v8731_v23 = vld [vmem:[#allocation10 + $0x3cc] sm:$0xf0]  ;;  %v6971_v43 = vld [vmem:[#allocation10 + $0x80] sm:$0xf] }
 0x179   :  { %v546_v32 = vadd.f32 1.0, %v538_v28  ;;  %2093 = vmatpush.bf16.msra.mxu1 %v7020_v45  ;;  %v532_v61 = vpack.c.bf16 %v9095_v53, %v9095_v53  ;;  %v541_v2 = vunpack.c.l.bf16 %v533_v59  ;;  %v8695_v28 = vld [vmem:[#allocation10 + $0x2ac] sm:$0xf0]  ;;  %v6972_v51 = vor.u32 %v8627_v46, %v6971_v43  ;;  %v7355_v53 = vld [vmem:[#allocation10 + $0x380] sm:$0xf] }
 0x17a   :  { %v553_v24 = vpack.c.bf16 %v545_v21, %v545_v21  ;;  %v547_v33 = vadd.f32 1.0, %v539_v29  ;;  %2124 = vmatpush.bf16.msrb.mxu2 %v7116_v7  ;;  %v7388_v29 = vor.u32 %v8731_v23, %v7387_v22  ;;  %v8691_v41 = vld [vmem:[#allocation10 + $0x28c] sm:$0xf0]  ;;  %v7356_v59 = vor.u32 %v8723_v54, %v7355_v53  ;;  %v7035_v53 = vld [vmem:[#allocation10 + $0x100] sm:$0xf] }
 0x17b   :  { %v554_v37 = vpack.c.bf16 %v546_v32, %v546_v32  ;;  %v540_v3 = vunpack.c.l.bf16 %v532_v61  ;;  %v549_v4 = vadd.f32 1.0, %v541_v2  ;;  %v7099_v32 = vld [vmem:[#allocation10 + $0x180] sm:$0xf]  ;;  %v7228_v45 = vor.u32 %v8691_v41, %v7227_v42  ;;  %v8643_v54 = vld [vmem:[#allocation10 + $0x10c] sm:$0xf0] }
 0x17c   :  { %v561_v30 = vunpack.c.l.bf16 %v553_v24  ;;  %v555_v38 = vpack.c.bf16 %v547_v33, %v547_v33  ;;  %v2557_v24 = vld [vmem:[%s11503_s8] sm:$0xf]  ;;  %2181 = vmatpush.bf16.msra.mxu0 %v7388_v29  ;;  %v7211_v61 = vld [vmem:[#allocation10 + $0x260] sm:$0xf] }
 0x17d   :  { %v562_v57 = vunpack.c.l.bf16 %v554_v37  ;;  %v548_v26 = vadd.f32 1.0, %v540_v3  ;;  %v557_v1 = vpack.c.bf16 %v549_v4, %v549_v4  ;;  %v8659_v33 = vld [vmem:[#allocation10 + $0x18c] sm:$0xf0]  ;;  %v7339_v4 = vld [vmem:[#allocation10 + $0x360] sm:$0xf] }
 0x17e   :  { %v569_v12 = vmul.f32 %v561_v30, %v513_v62  ;;  %v563_v58 = vunpack.c.l.bf16 %v555_v38  ;;  %v8623_v3 = vld [vmem:[#allocation10 + $0x6c] sm:$0xf0] }
 0x17f   :  { %v570_v62 = vmul.f32 %v562_v57, %v9829_v56  ;;  %v556_v6 = vpack.c.bf16 %v548_v26, %v548_v26  ;;  %v565_v8 = vunpack.c.l.bf16 %v557_v1  ;;  %v886_v56 = vld [vmem:[%s11501_s6] sm:$0xf] }
 0x180   :  { %v575_v34 = vpack.c.bf16 %v569_v12, %v568_v31  ;;  %v571_v0 = vmul.f32 %v563_v58, %v9831_v60  ;;  %904 = vst [vmem:[#allocation1] ss:$9 sm:$0xff] %v886_v56  ;;  %v7003_v60 = vld [vmem:[#allocation10 + $0xc0] sm:$0xf]  ;;  %v8631_v31 = vld [vmem:[#allocation10 + $0xac] sm:$0xf0]  ;;  %2182 = vmatpush.bf16.msra.mxu0 %v7372_v36 }
 0x181   :  { %v564_v9 = vunpack.c.l.bf16 %v556_v6  ;;  %v573_v10 = vmul.f32 %v565_v8, %v9836_v25  ;;  %v7004_v16 = vor.u32 %v8635_v13, %v7003_v60  ;;  %v7243_v25 = vld [vmem:[#allocation10 + $0x2a0] sm:$0xf]  ;;  %v8651_v56 = vld [vmem:[#allocation10 + $0x14c] sm:$0xf0] }
 0x182   :  { %783 = vmatmul.bf16.gmra.mxu1 %v575_v34  ;;  %812 = vmatmul.bf16.gmra.mxu2 %v575_v34  ;;  %v576_v5 = vpack.c.bf16 %v571_v0, %v570_v62  ;;  %v7244_v30 = vor.u32 %v8695_v28, %v7243_v25  ;;  %v8687_v62 = vld [vmem:[#allocation10 + $0x26c] sm:$0xf0]  ;;  %v6955_v0 = vld [vmem:[#allocation10 + $0x60] sm:$0xf] }
 0x183   :  { %841 = vmatmul.bf16.gmra.mxu3 %v575_v34  ;;  %870 = vmatmul.bf16.gmra.mxu0 %v575_v34  ;;  %v572_v11 = vmul.f32 %v564_v9, %v516_v27  ;;  %v6987_v27 = vld [vmem:[#allocation10 + $0xa0] sm:$0xf]  ;;  %v7100_v34 = vor.u32 %v8659_v33, %v7099_v32  ;;  %v7212_v2 = vor.u32 %v8687_v62, %v7211_v61  ;;  %v8715_v29 = vld [vmem:[#allocation10 + $0x34c] sm:$0xf0] }
 0x184   :  { %2094 = vmatpush.bf16.msra.mxu1 %v7004_v16  ;;  %v6988_v12 = vor.u32 %v8631_v31, %v6987_v27  ;;  %2153 = vmatpush.bf16.msrb.mxu3 %v7244_v30  ;;  %v6956_v26 = vor.u32 %v8623_v3, %v6955_v0  ;;  %v7195_v60 = vld [vmem:[#allocation10 + $0x240] sm:$0xf]  ;;  %v7036_v61 = vor.u32 %v8643_v54, %v7035_v53  ;;  %v8675_v0 = vld [vmem:[#allocation10 + $0x20c] sm:$0xf0] }
 0x185   :  { %v577_v63 = vpack.c.bf16 %v573_v10, %v572_v11  ;;  %2125 = vmatpush.bf16.msrb.mxu2 %v7100_v34  ;;  %2183 = vmatpush.bf16.msra.mxu0 %v7356_v59  ;;  %v7323_v28 = vld [vmem:[#allocation10 + $0x340] sm:$0xf]  ;;  %v8647_v34 = vld [vmem:[#allocation10 + $0x12c] sm:$0xf0] }
 0x186   :  { %v7324_v31 = vor.u32 %v8715_v29, %v7323_v28  ;;  %v7051_v33 = vld [vmem:[#allocation10 + $0x120] sm:$0xf] }
 0x187   :  { %v905_v18 = vld [vmem:[#allocation1] sm:$0xff]  ;;  %v906_v19 = vld [vmem:[#allocation1 + $0x9] sm:$0xff]  ;;  %v907_v20 = vld [vmem:[#allocation1 + $0x12] sm:$0xff] }
 0x188   :  { %v908_v21 = vld [vmem:[#allocation1 + $0x1b] sm:$0xff]  ;;  %2095 = vmatpush.bf16.msra.mxu1 %v6988_v12  ;;  %v909_v37 = vpack.i.b16 %v905_v18, %v905_v18  ;;  %v912_v38 = vpack.i.b16 %v906_v19, %v906_v19  ;;  %v915_v39 = vpack.i.b16 %v907_v20, %v907_v20  ;;  %2154 = vmatpush.bf16.msrb.mxu3 %v7228_v45  ;;  %v6939_v19 = vld [vmem:[#allocation10 + $0x40] sm:$0xf] }
 0x189   :  { %2575 = vst [vmem:[#allocation1] ss:$9 sm:$0xff] %v2557_v24  ;;  %v918_v40 = vpack.i.b16 %v908_v21, %v908_v21  ;;  %2126 = vmatpush.bf16.msrb.mxu2 %v7084_v52  ;;  %v8683_v18 = vld [vmem:[#allocation10 + $0x24c] sm:$0xf0]  ;;  %v7163_v62 = vld [vmem:[#allocation10 + $0x200] sm:$0xf] }
 0x18a   :  { %v911_v50 = vperm.slane %v909_v37, 0  ;;  %v914_v55 = vperm.slane %v912_v38, 0  ;;  %v917_v57 = vperm.slane %v915_v39, 0  ;;  %v8619_v20 = vld [vmem:[#allocation10 + $0x4c] sm:$0xf0]  ;;  %v7196_v24 = vor.u32 %v8683_v18, %v7195_v60 }
 0x18b   :  { %v920_v58 = vperm.slane %v918_v40, 0  ;;  %v6940_v25 = vor.u32 %v8619_v20, %v6939_v19  ;;  %v7052_v37 = vor.u32 %v8647_v34, %v7051_v33  ;;  %v8679_v38 = vld [vmem:[#allocation10 + $0x22c] sm:$0xf0]  ;;  %v6923_v39 = vld [vmem:[#allocation10 + $0x20] sm:$0xf]  ;;  %v7164_v19 = vor.u32 %v8675_v0, %v7163_v62 }
 0x18c   :  { %2096 = vmatpush.bf16.msra.mxu1 %v6972_v51  ;;  %2155 = vmatpush.bf16.msrb.mxu3 %v7212_v2  ;;  %v9848_v9 = vunpack.c.l.bf16 %v911_v50  ;;  %v9850_v10 = vunpack.c.l.bf16 %v914_v55  ;;  %v9852_v15 = vunpack.c.l.bf16 %v917_v57  ;;  %v8615_v40 = vld [vmem:[#allocation10 + $0x2c] sm:$0xf0]  ;;  %v7180_v41 = vor.u32 %v8679_v38, %v7179_v35  ;;  %v7291_v60 = vld [vmem:[#allocation10 + $0x300] sm:$0xf] }
 0x18d   :  { %v9854_v16 = vunpack.c.l.bf16 %v920_v58  ;;  %v6924_v43 = vor.u32 %v8615_v40, %v6923_v39  ;;  %v8711_v45 = vld [vmem:[#allocation10 + $0x32c] sm:$0xf0] }
 0x190   :  { %2097 = vmatpush.bf16.msra.mxu1 %v6956_v26  ;;  %2156 = vmatpush.bf16.msrb.mxu3 %v7196_v24 }
 0x192   :  { %788 = vmatmul.bf16.gmra.mxu1 %v576_v5  ;;  %817 = vmatmul.bf16.gmra.mxu2 %v576_v5 }
 0x193   :  { %846 = vmatmul.bf16.gmra.mxu3 %v576_v5  ;;  %875 = vmatmul.bf16.gmra.mxu0 %v576_v5  ;;  %v8719_v5 = vld [vmem:[#allocation10 + $0x36c] sm:$0xf0] }
 0x194   :  { %v7340_v1 = vor.u32 %v8719_v5, %v7339_v4  ;;  %2098 = vmatpush.bf16.msra.mxu1 %v6940_v25  ;;  %2157 = vmatpush.bf16.msrb.mxu3 %v7180_v41 }
 0x196   :  { %2184 = vmatpush.bf16.msra.mxu0 %v7340_v1  ;;  %v6907_v1 = vld [vmem:[#allocation10] sm:$0xf] }
 0x198   :  { %2099 = vmatpush.bf16.msra.mxu1 %v6924_v43  ;;  %2158 = vmatpush.bf16.msrb.mxu3 %v7164_v19 }
 0x19a   :  { %2185 = vmatpush.bf16.msra.mxu0 %v7324_v31 }
 0x1a2   :  { %793 = vmatmul.bf16.gmra.mxu1 %v577_v63  ;;  %822 = vmatmul.bf16.gmra.mxu2 %v577_v63 }
 0x1a3   :  { %851 = vmatmul.bf16.gmra.mxu3 %v577_v63  ;;  %880 = vmatmul.bf16.gmra.mxu0 %v577_v63  ;;  %v7067_v63 = vld [vmem:[#allocation10 + $0x140] sm:$0xf] }
 0x1a4   :  { %v7068_v7 = vor.u32 %v8651_v56, %v7067_v63 }
 0x1a6   :  { %2127 = vmatpush.bf16.msrb.mxu2 %v7068_v7 }
 0x1aa   :  { %2128 = vmatpush.bf16.msrb.mxu2 %v7052_v37 }
 0x1ae   :  { %2129 = vmatpush.bf16.msrb.mxu2 %v7036_v61 }
 0x1ef   :  { %v779_v44 = vpop.f32.mrf.mxu1 }
 0x1f0   :  { %v866_v49 = vpop.f32.mrf.mxu0 }
 0x1f5   :  { %v808_v6 = vpop.f32.mrf.mxu2 }
 0x1f6   :  { %v887_v8 = vpack.c.bf16 %v808_v6, %v779_v44  ;;  %v837_v11 = vpop.f32.mrf.mxu3  ;;  %v7307_v44 = vld [vmem:[#allocation10 + $0x320] sm:$0xf]  ;;  %v8611_v6 = vld [vmem:[#allocation10 + $0xc] sm:$0xf0] }
 0x1f7   :  { %v888_v13 = vpack.c.bf16 %v866_v49, %v837_v11  ;;  %v781_v17 = vpop.f32.mrf.mxu1  ;;  %v7308_v48 = vor.u32 %v8711_v45, %v7307_v44 }
 0x1f8   :  { %v921_v21 = vunpack.c.l.bf16 %v887_v8  ;;  %v922_v22 = vunpack.c.h.bf16 %v887_v8  ;;  %v868_v23 = vpop.f32.mrf.mxu0 }
 0x1f9   :  { %v923_v30 = vunpack.c.l.bf16 %v888_v13  ;;  %v924_v27 = vunpack.c.h.bf16 %v888_v13  ;;  %2186 = vmatpush.bf16.msra.mxu0 %v7308_v48  ;;  %v8707_v13 = vld [vmem:[#allocation10 + $0x30c] sm:$0xf0] }
 0x1fa   :  { %v957_v12 = vadd.f32 %v9848_v9, %v921_v21  ;;  %v958_v32 = vadd.f32 %v9850_v10, %v922_v22  ;;  %v7292_v28 = vor.u32 %v8707_v13, %v7291_v60 }
 0x1fb   :  { %v959_v14 = vadd.f32 %v9852_v15, %v923_v30  ;;  %v960_v36 = vadd.f32 %v9854_v16, %v924_v27 }
 0x1fc   :  { %v989_v42 = vpack.c.bf16 %v958_v32, %v957_v12 }
 0x1fd   :  { %v990_v46 = vpack.c.bf16 %v960_v36, %v959_v14  ;;  %v810_v47 = vpop.f32.mrf.mxu2  ;;  %2187 = vmatpush.bf16.msra.mxu0 %v7292_v28 }
 0x1fe   :  { %v1005_v49 = vunpack.c.l.bf16 %v989_v42  ;;  %v1006_v50 = vunpack.c.h.bf16 %v989_v42  ;;  %v889_v51 = vpack.c.bf16 %v810_v47, %v781_v17  ;;  %v839_v52 = vpop.f32.mrf.mxu3 }
 0x1ff   :  { %v1007_v55 = vunpack.c.l.bf16 %v990_v46  ;;  %v1008_v57 = vunpack.c.h.bf16 %v990_v46  ;;  %v890_v58 = vpack.c.bf16 %v868_v23, %v839_v52  ;;  %v784_v59 = vpop.f32.mrf.mxu1  ;;  %v6908_v23 = vor.u32 %v8611_v6, %v6907_v1 }
 0x200   :  { %v1037_v2 = vmul.f32 0.5, %v1005_v49  ;;  %v1038_v3 = vmul.f32 0.5, %v1006_v50  ;;  %v925_v4 = vunpack.c.l.bf16 %v889_v51  ;;  %v926_v5 = vunpack.c.h.bf16 %v889_v51  ;;  %v871_v26 = vpop.f32.mrf.mxu0 }
 0x201   :  { %v1039_v8 = vmul.f32 0.5, %v1007_v55  ;;  %v1040_v11 = vmul.f32 0.5, %v1008_v57  ;;  %v927_v63 = vunpack.c.l.bf16 %v890_v58  ;;  %v928_v56 = vunpack.c.h.bf16 %v890_v58  ;;  %2100 = vmatpush.bf16.msra.mxu1 %v6908_v23 }
 0x202   :  { %v9860_v17 = vpack.c.bf16 %v1038_v3, %v1037_v2  ;;  %v961_v7 = vadd.f32 %v9848_v9, %v925_v4  ;;  %v962_v18 = vadd.f32 %v9850_v10, %v926_v5 }
 0x203   :  { %v9864_v20 = vpack.c.bf16 %v1040_v11, %v1039_v8  ;;  %v963_v21 = vadd.f32 %v9852_v15, %v927_v63  ;;  %v964_v22 = vadd.f32 %v9854_v16, %v928_v56 }
 0x204   :  { %v1086_v24 = vunpack.c.h.bf16 %v9860_v17  ;;  %v991_v25 = vpack.c.bf16 %v962_v18, %v961_v7  ;;  %v1085_v31 = vunpack.c.l.bf16 %v9860_v17 }
 0x205   :  { %v1088_v29 = vunpack.c.h.bf16 %v9864_v20  ;;  %v992_v30 = vpack.c.bf16 %v964_v22, %v963_v21  ;;  %v813_v27 = vpop.f32.mrf.mxu2  ;;  %v1087_v35 = vunpack.c.l.bf16 %v9864_v20 }
 0x206   :  { %v1009_v12 = vunpack.c.l.bf16 %v991_v25  ;;  %v1010_v32 = vunpack.c.h.bf16 %v991_v25  ;;  %v891_v33 = vpack.c.bf16 %v813_v27, %v784_v59  ;;  %v842_v34 = vpop.f32.mrf.mxu3  ;;  %9096 = vtanh.f32 %v1086_v24 }
 0x207   :  { %v1011_v14 = vunpack.c.l.bf16 %v992_v30  ;;  %v1012_v36 = vunpack.c.h.bf16 %v992_v30  ;;  %v892_v37 = vpack.c.bf16 %v871_v26, %v842_v34  ;;  %v786_v46 = vpop.f32.mrf.mxu1  ;;  %9098 = vtanh.f32 %v1085_v31 }
 0x208   :  { %v1041_v38 = vmul.f32 0.5, %v1009_v12  ;;  %v1042_v39 = vmul.f32 0.5, %v1010_v32  ;;  %v929_v40 = vunpack.c.l.bf16 %v891_v33  ;;  %v930_v42 = vunpack.c.h.bf16 %v891_v33  ;;  %v873_v50 = vpop.f32.mrf.mxu0 }
 0x209   :  { %v1043_v41 = vmul.f32 0.5, %v1011_v14  ;;  %v1044_v43 = vmul.f32 0.5, %v1012_v36  ;;  %v931_v44 = vunpack.c.l.bf16 %v892_v37  ;;  %v932_v45 = vunpack.c.h.bf16 %v892_v37 }
 0x20a   :  { %v9874_v47 = vpack.c.bf16 %v1042_v39, %v1041_v38  ;;  %v965_v48 = vadd.f32 %v9848_v9, %v929_v40  ;;  %v966_v49 = vadd.f32 %v9850_v10, %v930_v42  ;;  %9100 = vtanh.f32 %v1088_v29 }
 0x20b   :  { %v9882_v51 = vpack.c.bf16 %v1044_v43, %v1043_v41  ;;  %v967_v52 = vadd.f32 %v9852_v15, %v931_v44  ;;  %v968_v53 = vadd.f32 %v9854_v16, %v932_v45  ;;  %9102 = vtanh.f32 %v1087_v35 }
 0x20c   :  { %v1090_v54 = vunpack.c.h.bf16 %v9874_v47  ;;  %v993_v55 = vpack.c.bf16 %v966_v49, %v965_v48  ;;  %v9097_v57 = vpop.eup %9096  ;;  %v1089_v62 = vunpack.c.l.bf16 %v9874_v47 }
 0x20d   :  { %v1092_v58 = vunpack.c.h.bf16 %v9882_v51  ;;  %v994_v59 = vpack.c.bf16 %v968_v53, %v967_v52  ;;  %v815_v61 = vpop.f32.mrf.mxu2  ;;  %v1091_v0 = vunpack.c.l.bf16 %v9882_v51  ;;  %v9099_v8 = vpop.eup %9098 }
 0x20e   :  { %9104 = vtanh.f32 %v1090_v54  ;;  %v1013_v2 = vunpack.c.l.bf16 %v993_v55  ;;  %v1014_v3 = vunpack.c.h.bf16 %v993_v55  ;;  %v893_v4 = vpack.c.bf16 %v815_v61, %v786_v46  ;;  %v844_v5 = vpop.f32.mrf.mxu3 }
 0x20f   :  { %9106 = vtanh.f32 %v1092_v58  ;;  %v1015_v26 = vunpack.c.l.bf16 %v994_v59  ;;  %v1016_v1 = vunpack.c.h.bf16 %v994_v59  ;;  %v894_v6 = vpack.c.bf16 %v873_v50, %v844_v5  ;;  %v789_v32 = vpop.f32.mrf.mxu1 }
 0x210   :  { %v1045_v11 = vmul.f32 0.5, %v1013_v2  ;;  %v1046_v63 = vmul.f32 0.5, %v1014_v3  ;;  %v933_v56 = vunpack.c.l.bf16 %v893_v4  ;;  %v934_v60 = vunpack.c.h.bf16 %v893_v4  ;;  %v9101_v13 = vpop.eup %9100  ;;  %v876_v37 = vpop.f32.mrf.mxu0 }
 0x211   :  { %v1047_v7 = vmul.f32 0.5, %v1015_v26  ;;  %v1048_v18 = vmul.f32 0.5, %v1016_v1  ;;  %v935_v19 = vunpack.c.l.bf16 %v894_v6  ;;  %v936_v21 = vunpack.c.h.bf16 %v894_v6  ;;  %v9103_v22 = vpop.eup %9102 }
 0x212   :  { %v9896_v23 = vpack.c.bf16 %v1046_v63, %v1045_v11  ;;  %v969_v25 = vadd.f32 %v9848_v9, %v933_v56  ;;  %v970_v28 = vadd.f32 %v9850_v10, %v934_v60  ;;  %9108 = vtanh.f32 %v1089_v62 }
 0x213   :  { %v9902_v30 = vpack.c.bf16 %v1048_v18, %v1047_v7  ;;  %v971_v27 = vadd.f32 %v9852_v15, %v935_v19  ;;  %v972_v12 = vadd.f32 %v9854_v16, %v936_v21  ;;  %v1149_v33 = vpack.c.bf16 %v9097_v57, %v9099_v8 }
 0x214   :  { %v9105_v34 = vpop.eup %9104  ;;  %v1094_v14 = vunpack.c.h.bf16 %v9896_v23  ;;  %v995_v36 = vpack.c.bf16 %v970_v28, %v969_v25  ;;  %9110 = vtanh.f32 %v1091_v0  ;;  %v9910_v43 = vpack.c.bf16 %v9101_v13, %v9103_v22 }
 0x215   :  { %v9107_v38 = vpop.eup %9106  ;;  %v1096_v39 = vunpack.c.h.bf16 %v9902_v30  ;;  %v996_v40 = vpack.c.bf16 %v972_v12, %v971_v27  ;;  %v818_v42 = vpop.f32.mrf.mxu2  ;;  %v1165_v41 = vunpack.c.l.bf16 %v1149_v33  ;;  %v1166_v49 = vunpack.c.h.bf16 %v1149_v33 }
 0x216   :  { %v1017_v44 = vunpack.c.l.bf16 %v995_v36  ;;  %v1018_v45 = vunpack.c.h.bf16 %v995_v36  ;;  %v895_v46 = vpack.c.bf16 %v818_v42, %v789_v32  ;;  %v847_v48 = vpop.f32.mrf.mxu3  ;;  %9112 = vtanh.f32 %v1094_v14 }
 0x217   :  { %v1019_v50 = vunpack.c.l.bf16 %v996_v40  ;;  %v1020_v52 = vunpack.c.h.bf16 %v996_v40  ;;  %v896_v53 = vpack.c.bf16 %v876_v37, %v847_v48  ;;  %9114 = vtanh.f32 %v1096_v39  ;;  %v791_v27 = vpop.f32.mrf.mxu1 }
 0x218   :  { %v9109_v55 = vpop.eup %9108  ;;  %v1049_v57 = vmul.f32 0.5, %v1017_v44  ;;  %v1050_v59 = vmul.f32 0.5, %v1018_v45  ;;  %v937_v61 = vunpack.c.l.bf16 %v895_v46  ;;  %v938_v2 = vunpack.c.h.bf16 %v895_v46  ;;  %v878_v37 = vpop.f32.mrf.mxu0 }
 0x219   :  { %v1051_v3 = vmul.f32 0.5, %v1019_v50  ;;  %v1052_v4 = vmul.f32 0.5, %v1020_v52  ;;  %v939_v5 = vunpack.c.l.bf16 %v896_v53  ;;  %v940_v26 = vunpack.c.h.bf16 %v896_v53 }
 0x21a   :  { %v9111_v1 = vpop.eup %9110  ;;  %v9914_v6 = vpack.c.bf16 %v1050_v59, %v1049_v57  ;;  %v973_v8 = vadd.f32 %v9848_v9, %v937_v61  ;;  %v974_v11 = vadd.f32 %v9850_v10, %v938_v2  ;;  %v1151_v63 = vpack.c.bf16 %v9105_v34, %v9109_v55 }
 0x21b   :  { %v9920_v56 = vpack.c.bf16 %v1052_v4, %v1051_v3  ;;  %v975_v60 = vadd.f32 %v9852_v15, %v939_v5  ;;  %v976_v13 = vadd.f32 %v9854_v16, %v940_v26  ;;  %v1197_v21 = vadd.f32 1.0, %v1165_v41 }
 0x21c   :  { %v1098_v7 = vunpack.c.h.bf16 %v9914_v6  ;;  %v997_v18 = vpack.c.bf16 %v974_v11, %v973_v8  ;;  %v1169_v19 = vunpack.c.l.bf16 %v1151_v63  ;;  %v9925_v22 = vpop.eup %9112  ;;  %v1170_v32 = vunpack.c.h.bf16 %v1151_v63 }
 0x21d   :  { %v1100_v25 = vunpack.c.h.bf16 %v9920_v56  ;;  %v998_v28 = vpack.c.bf16 %v976_v13, %v975_v60  ;;  %v820_v12 = vpop.f32.mrf.mxu2  ;;  %v1198_v33 = vadd.f32 1.0, %v1166_v49  ;;  %v9928_v44 = vpack.c.bf16 %v9107_v38, %v9111_v1  ;;  %v9932_v55 = vpop.eup %9114 }
 0x21e   :  { %v1021_v34 = vunpack.c.l.bf16 %v997_v18  ;;  %v1022_v36 = vunpack.c.h.bf16 %v997_v18  ;;  %v897_v40 = vpack.c.bf16 %v820_v12, %v791_v27  ;;  %v849_v42 = vpop.f32.mrf.mxu3  ;;  %9116 = vtanh.f32 %v1098_v7 }
 0x21f   :  { %v1023_v41 = vunpack.c.l.bf16 %v998_v28  ;;  %v1024_v45 = vunpack.c.h.bf16 %v998_v28  ;;  %v898_v46 = vpack.c.bf16 %v878_v37, %v849_v42  ;;  %v1201_v4 = vadd.f32 1.0, %v1169_v19 }
 0x220   :  { %v1053_v48 = vmul.f32 0.5, %v1021_v34  ;;  %v1054_v50 = vmul.f32 0.5, %v1022_v36  ;;  %v941_v52 = vunpack.c.l.bf16 %v897_v40  ;;  %v942_v53 = vunpack.c.h.bf16 %v897_v40 }
 0x221   :  { %v1055_v49 = vmul.f32 0.5, %v1023_v41  ;;  %v1056_v57 = vmul.f32 0.5, %v1024_v45  ;;  %v943_v59 = vunpack.c.l.bf16 %v898_v46  ;;  %v944_v61 = vunpack.c.h.bf16 %v898_v46 }
 0x222   :  { %v9934_v2 = vpack.c.bf16 %v1054_v50, %v1053_v48  ;;  %v977_v38 = vadd.f32 %v9848_v9, %v941_v52  ;;  %v978_v3 = vadd.f32 %v9850_v10, %v942_v53  ;;  %v1202_v8 = vadd.f32 1.0, %v1170_v32  ;;  %v794_v53 = vpop.f32.mrf.mxu1 }
 0x223   :  { %v9938_v5 = vpack.c.bf16 %v1056_v57, %v1055_v49  ;;  %v979_v26 = vadd.f32 %v9852_v15, %v943_v59  ;;  %v980_v1 = vadd.f32 %v9854_v16, %v944_v61  ;;  %9118 = vtanh.f32 %v1100_v25  ;;  %v881_v61 = vpop.f32.mrf.mxu0 }
 0x224   :  { %v1102_v11 = vunpack.c.h.bf16 %v9934_v2  ;;  %v999_v63 = vpack.c.bf16 %v978_v3, %v977_v38  ;;  %v1229_v60 = vpack.c.bf16 %v1198_v33, %v1197_v21  ;;  %v9945_v13 = vpop.eup %9116  ;;  %v1231_v19 = vpack.c.bf16 %v1202_v8, %v1201_v4  ;;  %v8669_v4 = vld [vmem:[#allocation10 + $0x1e4] sm:$0xf] }
 0x225   :  { %v11515_v18 = vunpack.c.h.bf16 %v9938_v5  ;;  %v1000_v28 = vpack.c.bf16 %v980_v1, %v979_v26  ;;  %v1167_v27 = vunpack.c.l.bf16 %v9910_v43  ;;  %v1168_v32 = vunpack.c.h.bf16 %v9910_v43  ;;  %v823_v21 = vpop.f32.mrf.mxu2  ;;  %v7149_v26 = vld [vmem:[#allocation10 + $0x1f0] sm:$0xf0] }
 0x226   :  { %v1025_v12 = vunpack.c.l.bf16 %v999_v63  ;;  %v1026_v34 = vunpack.c.h.bf16 %v999_v63  ;;  %v1245_v36 = vunpack.c.l.bf16 %v1229_v60  ;;  %9120 = vtanh.f32 %v1102_v11  ;;  %v852_v48 = vpop.f32.mrf.mxu3 }
 0x227   :  { %v1027_v37 = vunpack.c.l.bf16 %v1000_v28  ;;  %v1028_v40 = vunpack.c.h.bf16 %v1000_v28  ;;  %v1249_v42 = vunpack.c.l.bf16 %v1231_v19  ;;  %v1246_v46 = vunpack.c.h.bf16 %v1229_v60  ;;  %v8701_v60 = vld [vmem:[#allocation10 + $0x2e4] sm:$0xf] }
 0x228   :  { %v1057_v33 = vmul.f32 0.5, %v1025_v12  ;;  %v1058_v41 = vmul.f32 0.5, %v1026_v34  ;;  %v1277_v45 = vmul.f32 %v1245_v36, %v1085_v31  ;;  %v1250_v49 = vunpack.c.h.bf16 %v1231_v19  ;;  %v7277_v12 = vld [vmem:[#allocation10 + $0x2f0] sm:$0xf0] }
 0x229   :  { %v1059_v50 = vmul.f32 0.5, %v1027_v37  ;;  %v1060_v52 = vmul.f32 0.5, %v1028_v40  ;;  %v1281_v43 = vmul.f32 %v1249_v42, %v1089_v62  ;;  %v9956_v57 = vpop.eup %9118  ;;  %v1278_v38 = vmul.f32 %v1246_v46, %v1086_v24 }
 0x22a   :  { %v9958_v59 = vpack.c.bf16 %v1058_v41, %v1057_v33  ;;  %v1171_v3 = vunpack.c.l.bf16 %v9928_v44  ;;  %v1172_v31 = vunpack.c.h.bf16 %v9928_v44  ;;  %v1282_v62 = vmul.f32 %v1250_v49, %v1090_v54 }
 0x22b   :  { %v9964_v1 = vpack.c.bf16 %v1060_v52, %v1059_v50  ;;  %v9966_v8 = vpack.c.bf16 %v1281_v43, %v1277_v45  ;;  %v1199_v63 = vadd.f32 1.0, %v1167_v27  ;;  %v1200_v19 = vadd.f32 1.0, %v1168_v32  ;;  %v8637_v52 = vld [vmem:[#allocation10 + $0xe4] sm:$0xf] }
 0x22c   :  { %v1106_v28 = vunpack.c.h.bf16 %v9958_v59  ;;  %v1203_v17 = vadd.f32 1.0, %v1171_v3  ;;  %v1204_v24 = vadd.f32 1.0, %v1172_v31  ;;  %v9971_v34 = vpop.eup %9120  ;;  %9122 = vtanh.f32 %v11515_v18 }
 0x22d   :  { %2101 = vmatmul.bf16.vlgmr.msra.gmra.mxu1 %v9966_v8  ;;  %v9976_v44 = vpack.c.bf16 %v1282_v62, %v1278_v38  ;;  %v7152_v36 = vor.u32 %v8669_v4, %v7149_v26  ;;  %v899_v47 = vpack.c.bf16 %v823_v21, %v794_v53  ;;  %v11517_v54 = vunpack.c.h.bf16 %v9964_v1  ;;  %v7021_v21 = vld [vmem:[#allocation10 + $0xf0] sm:$0xf0]  ;;  %v825_v3 = vpop.f32.mrf.mxu2 }
 0x22e   :  { %v1230_v27 = vpack.c.bf16 %v1200_v19, %v1199_v63  ;;  %v1232_v37 = vpack.c.bf16 %v1204_v24, %v1203_v17  ;;  %v900_v40 = vpack.c.bf16 %v881_v61, %v852_v48  ;;  %9124 = vtanh.f32 %v1106_v28  ;;  %v8665_v61 = vld [vmem:[#allocation10 + $0x1c4] sm:$0xf]  ;;  %v7133_v38 = vld [vmem:[#allocation10 + $0x1d0] sm:$0xf0]  ;;  %v854_v63 = vpop.f32.mrf.mxu3 }
 0x22f   :  { %2130 = vmatmul.bf16.vlgmr.msrb.gmra.mxu2 %v9976_v44  ;;  %v945_v32 = vunpack.c.l.bf16 %v899_v47  ;;  %v946_v42 = vunpack.c.h.bf16 %v899_v47  ;;  %v7280_v33 = vor.u32 %v8701_v60, %v7277_v12  ;;  %v8697_v60 = vld [vmem:[#allocation10 + $0x2c4] sm:$0xf]  ;;  %v7261_v47 = vld [vmem:[#allocation10 + $0x2d0] sm:$0xf0]  ;;  %v7136_v51 = vor.u32 %v8665_v61, %v7133_v38 }
 0x230   :  { %v1247_v41 = vunpack.c.l.bf16 %v1230_v27  ;;  %v1251_v45 = vunpack.c.l.bf16 %v1232_v37  ;;  %v1248_v46 = vunpack.c.h.bf16 %v1230_v27  ;;  %v1252_v50 = vunpack.c.h.bf16 %v1232_v37  ;;  %2238 = vmatpush.bf16.msra.mxu2 %v7152_v36  ;;  %v796_v36 = vpop.f32.mrf.mxu1  ;;  %v8733_v27 = vld [vmem:[#allocation10 + $0x3e4] sm:$0xf] }
 0x231   :  { %v981_v53 = vadd.f32 %v9848_v9, %v945_v32  ;;  %v982_v43 = vadd.f32 %v9850_v10, %v946_v42  ;;  %v947_v48 = vunpack.c.l.bf16 %v900_v40  ;;  %v948_v49 = vunpack.c.h.bf16 %v900_v40  ;;  %2267 = vmatpush.bf16.msra.mxu3 %v7280_v33 }
 0x232   :  { %v1279_v31 = vmul.f32 %v1247_v41, %v1087_v35  ;;  %v1283_v4 = vmul.f32 %v1251_v45, %v1091_v0  ;;  %v1280_v26 = vmul.f32 %v1248_v46, %v1088_v29  ;;  %v1284_v62 = vmul.f32 %v1252_v50, %v1092_v58  ;;  %v9992_v19 = vpop.eup %9122  ;;  %v7405_v0 = vld [vmem:[#allocation10 + $0x3f0] sm:$0xf0]  ;;  %v883_v29 = vpop.f32.mrf.mxu0 }
 0x233   :  { %v1001_v17 = vpack.c.bf16 %v982_v43, %v981_v53  ;;  %v983_v24 = vadd.f32 %v9852_v15, %v947_v48  ;;  %v984_v12 = vadd.f32 %v9854_v16, %v948_v49  ;;  %v7024_v35 = vor.u32 %v8637_v52, %v7021_v21  ;;  %v8633_v21 = vld [vmem:[#allocation10 + $0xc4] sm:$0xf]  ;;  %v7005_v53 = vld [vmem:[#allocation10 + $0xd0] sm:$0xf0] }
 0x234   :  { %v9996_v37 = vpack.c.bf16 %v1283_v4, %v1279_v31  ;;  %v9998_v20 = vpack.c.bf16 %v1284_v62, %v1280_v26  ;;  %v901_v58 = vpack.c.bf16 %v825_v3, %v796_v36  ;;  %v10000_v40 = vpop.eup %9124  ;;  %v902_v41 = vpack.c.bf16 %v883_v29, %v854_v63  ;;  %2239 = vmatpush.bf16.msra.mxu2 %v7136_v51  ;;  %v7245_v29 = vld [vmem:[#allocation10 + $0x2b0] sm:$0xf0]  ;;  %v8729_v51 = vld [vmem:[#allocation10 + $0x3c4] sm:$0xf] }
 0x235   :  { %v1029_v32 = vunpack.c.l.bf16 %v1001_v17  ;;  %v1030_v42 = vunpack.c.h.bf16 %v1001_v17  ;;  %v1002_v33 = vpack.c.bf16 %v984_v12, %v983_v24  ;;  %2209 = vmatpush.bf16.msrb.mxu1 %v7024_v35  ;;  %v7264_v50 = vor.u32 %v8697_v60, %v7261_v47  ;;  %v8661_v35 = vld [vmem:[#allocation10 + $0x1a4] sm:$0xf] }
 0x236   :  { %2159 = vmatmul.bf16.vlgmr.msrb.gmra.mxu3 %v9996_v37  ;;  %2188 = vmatmul.bf16.vlgmr.msra.gmra.mxu0 %v9998_v20  ;;  %v949_v45 = vunpack.c.l.bf16 %v901_v58  ;;  %v950_v46 = vunpack.c.h.bf16 %v901_v58  ;;  %v7408_v52 = vor.u32 %v8733_v27, %v7405_v0  ;;  %v951_v31 = vunpack.c.l.bf16 %v902_v41  ;;  %v8693_v47 = vld [vmem:[#allocation10 + $0x2a4] sm:$0xf] }
 0x237   :  { %v1061_v43 = vmul.f32 0.5, %v1029_v32  ;;  %v1062_v48 = vmul.f32 0.5, %v1030_v42  ;;  %v1031_v49 = vunpack.c.l.bf16 %v1002_v33  ;;  %v1032_v61 = vunpack.c.h.bf16 %v1002_v33  ;;  %2268 = vmatpush.bf16.msra.mxu3 %v7264_v50  ;;  %v8629_v42 = vld [vmem:[#allocation10 + $0xa4] sm:$0xf]  ;;  %v6989_v33 = vld [vmem:[#allocation10 + $0xb0] sm:$0xf0] }
 0x238   :  { %v985_v38 = vadd.f32 %v9848_v9, %v949_v45  ;;  %v986_v3 = vadd.f32 %v9850_v10, %v950_v46  ;;  %v952_v4 = vunpack.c.h.bf16 %v902_v41  ;;  %2296 = vmatpush.bf16.msrb.mxu0 %v7408_v52  ;;  %v7008_v60 = vor.u32 %v8633_v21, %v7005_v53  ;;  %v7117_v9 = vld [vmem:[#allocation10 + $0x1b0] sm:$0xf0]  ;;  %v8657_v41 = vld [vmem:[#allocation10 + $0x184] sm:$0xf] }
 0x239   :  { %v10006_v26 = vpack.c.bf16 %v1062_v48, %v1061_v43  ;;  %v1063_v62 = vmul.f32 0.5, %v1031_v49  ;;  %v1064_v63 = vmul.f32 0.5, %v1032_v61  ;;  %v987_v24 = vadd.f32 %v9852_v15, %v951_v31  ;;  %v7389_v15 = vld [vmem:[#allocation10 + $0x3d0] sm:$0xf0]  ;;  %v8689_v21 = vld [vmem:[#allocation10 + $0x284] sm:$0xf] }
 0x23a   :  { %v1003_v17 = vpack.c.bf16 %v986_v3, %v985_v38  ;;  %v988_v12 = vadd.f32 %v9854_v16, %v952_v4  ;;  %v1093_v36 = vunpack.c.l.bf16 %v9896_v23  ;;  %9126 = vtanh.f32 %v11517_v54  ;;  %2210 = vmatpush.bf16.msrb.mxu1 %v7008_v60  ;;  %v7101_v52 = vld [vmem:[#allocation10 + $0x190] sm:$0xf0]  ;;  %v8725_v38 = vld [vmem:[#allocation10 + $0x3a4] sm:$0xf] }
 0x23b   :  { %v11514_v10 = vunpack.c.h.bf16 %v10006_v26  ;;  %v10014_v27 = vpack.c.bf16 %v1064_v63, %v1063_v62  ;;  %v1097_v0 = vunpack.c.l.bf16 %v9914_v6  ;;  %v1095_v45 = vunpack.c.l.bf16 %v9902_v30  ;;  %v7229_v53 = vld [vmem:[#allocation10 + $0x290] sm:$0xf0]  ;;  %v8625_v60 = vld [vmem:[#allocation10 + $0x84] sm:$0xf] }
 0x23c   :  { %v1033_v58 = vunpack.c.l.bf16 %v1003_v17  ;;  %v1034_v16 = vunpack.c.h.bf16 %v1003_v17  ;;  %v1004_v32 = vpack.c.bf16 %v988_v12, %v987_v24  ;;  %9128 = vtanh.f32 %v1093_v36  ;;  %v7373_v3 = vld [vmem:[#allocation10 + $0x3b0] sm:$0xf0] }
 0x23d   :  { %9130 = vtanh.f32 %v11514_v10  ;;  %v1099_v46 = vunpack.c.l.bf16 %v9920_v56  ;;  %v7120_v50 = vor.u32 %v8661_v35, %v7117_v9  ;;  %v11512_v31 = vunpack.c.h.bf16 %v10014_v27  ;;  %v6973_v17 = vld [vmem:[#allocation10 + $0x90] sm:$0xf0] }
 0x23e   :  { %v1065_v43 = vmul.f32 0.5, %v1033_v58  ;;  %v1066_v48 = vmul.f32 0.5, %v1034_v16  ;;  %v1035_v49 = vunpack.c.l.bf16 %v1004_v32  ;;  %v1036_v61 = vunpack.c.h.bf16 %v1004_v32 }
 0x23f   :  { %2240 = vmatpush.bf16.msra.mxu2 %v7120_v50  ;;  %v7248_v4 = vor.u32 %v8693_v47, %v7245_v29  ;;  %v7392_v62 = vor.u32 %v8729_v51, %v7389_v15  ;;  %v6992_v63 = vor.u32 %v8629_v42, %v6989_v33  ;;  %9132 = vtanh.f32 %v1097_v0 }
 0x240   :  { %v10024_v24 = vpack.c.bf16 %v1066_v48, %v1065_v43  ;;  %v1067_v12 = vmul.f32 0.5, %v1035_v49  ;;  %v1068_v35 = vmul.f32 0.5, %v1036_v61  ;;  %v10028_v9 = vpop.eup %9126  ;;  %9134 = vtanh.f32 %v1095_v45 }
 0x241   :  { %2269 = vmatpush.bf16.msra.mxu3 %v7248_v4  ;;  %2297 = vmatpush.bf16.msrb.mxu0 %v7392_v62  ;;  %v7104_v58 = vor.u32 %v8657_v41, %v7101_v52  ;;  %v7232_v47 = vor.u32 %v8689_v21, %v7229_v53  ;;  %v7376_v29 = vor.u32 %v8725_v38, %v7373_v3  ;;  %9136 = vtanh.f32 %v1099_v46 }
 0x242   :  { %v9129_v51 = vpop.eup %9128  ;;  %v11513_v15 = vunpack.c.h.bf16 %v10024_v24  ;;  %v10033_v16 = vpack.c.bf16 %v1068_v35, %v1067_v12  ;;  %2211 = vmatpush.bf16.msrb.mxu1 %v6992_v63  ;;  %v6976_v32 = vor.u32 %v8625_v60, %v6973_v17  ;;  %9138 = vtanh.f32 %v11512_v31  ;;  %v8653_v63 = vld [vmem:[#allocation10 + $0x164] sm:$0xf]  ;;  %v7085_v60 = vld [vmem:[#allocation10 + $0x170] sm:$0xf0] }
 0x243   :  { %v10037_v42 = vpop.eup %9130  ;;  %v1153_v33 = vpack.c.bf16 %v9925_v22, %v9129_v51  ;;  %2241 = vmatpush.bf16.msra.mxu2 %v7104_v58  ;;  %v1101_v41 = vunpack.c.l.bf16 %v9934_v2  ;;  %v1105_v50 = vunpack.c.l.bf16 %v9958_v59  ;;  %v11516_v21 = vunpack.c.l.bf16 %v9938_v5  ;;  %v8645_v59 = vld [vmem:[#allocation10 + $0x124] sm:$0xf] }
 0x244   :  { %9140 = vtanh.f32 %v11513_v15  ;;  %v11511_v52 = vunpack.c.h.bf16 %v10033_v16  ;;  %v1107_v48 = vunpack.c.l.bf16 %v9964_v1  ;;  %v1109_v17 = vunpack.c.l.bf16 %v10006_v26 }
 0x245   :  { %v1173_v53 = vunpack.c.l.bf16 %v1153_v33  ;;  %v1174_v43 = vunpack.c.h.bf16 %v1153_v33  ;;  %2270 = vmatpush.bf16.msra.mxu3 %v7232_v47  ;;  %2298 = vmatpush.bf16.msrb.mxu0 %v7376_v29  ;;  %9142 = vtanh.f32 %v1101_v41  ;;  %v9133_v22 = vpop.eup %9132  ;;  %v1111_v12 = vunpack.c.l.bf16 %v10014_v27 }
 0x246   :  { %9144 = vtanh.f32 %v11511_v52  ;;  %2212 = vmatpush.bf16.msrb.mxu1 %v6976_v32  ;;  %v9135_v49 = vpop.eup %9134  ;;  %v1155_v61 = vpack.c.bf16 %v9945_v13, %v9133_v22  ;;  %v7088_v33 = vor.u32 %v8653_v63, %v7085_v60 }
 0x247   :  { %v1205_v38 = vadd.f32 1.0, %v1173_v53  ;;  %v1206_v3 = vadd.f32 1.0, %v1174_v43  ;;  %9146 = vtanh.f32 %v1105_v50  ;;  %v9137_v4 = vpop.eup %9136  ;;  %v1154_v62 = vpack.c.bf16 %v9932_v55, %v9135_v49 }
 0x248   :  { %9148 = vtanh.f32 %v11516_v21  ;;  %v10061_v35 = vpop.eup %9138  ;;  %v1177_v13 = vunpack.c.l.bf16 %v1155_v61  ;;  %v1178_v58 = vunpack.c.h.bf16 %v1155_v61  ;;  %v1156_v29 = vpack.c.bf16 %v9956_v57, %v9137_v4  ;;  %2242 = vmatpush.bf16.msra.mxu2 %v7088_v33 }
 0x249   :  { %v1233_v47 = vpack.c.bf16 %v1206_v3, %v1205_v38  ;;  %v1175_v32 = vunpack.c.l.bf16 %v1154_v62  ;;  %v1176_v55 = vunpack.c.h.bf16 %v1154_v62  ;;  %9150 = vtanh.f32 %v1107_v48 }
 0x24a   :  { %v10064_v51 = vpop.eup %9140  ;;  %v1209_v43 = vadd.f32 1.0, %v1177_v13  ;;  %v1210_v22 = vadd.f32 1.0, %v1178_v58  ;;  %v1179_v15 = vunpack.c.l.bf16 %v1156_v29  ;;  %v1180_v61 = vunpack.c.h.bf16 %v1156_v29 }
 0x24b   :  { %v9143_v53 = vpop.eup %9142  ;;  %v1253_v49 = vunpack.c.l.bf16 %v1233_v47  ;;  %v1254_v52 = vunpack.c.h.bf16 %v1233_v47  ;;  %v1207_v38 = vadd.f32 1.0, %v1175_v32  ;;  %v1208_v3 = vadd.f32 1.0, %v1176_v55 }
 0x24c   :  { %v10068_v31 = vpop.eup %9144  ;;  %v1235_v4 = vpack.c.bf16 %v1210_v22, %v1209_v43  ;;  %v1157_v60 = vpack.c.bf16 %v9971_v34, %v9143_v53  ;;  %v1211_v58 = vadd.f32 1.0, %v1179_v15  ;;  %v1212_v47 = vadd.f32 1.0, %v1180_v61  ;;  %v8685_v61 = vld [vmem:[#allocation10 + $0x264] sm:$0xf] }
 0x24d   :  { %v9147_v57 = vpop.eup %9146  ;;  %v1285_v62 = vmul.f32 %v1253_v49, %v1093_v36  ;;  %v1286_v63 = vmul.f32 %v1254_v52, %v1094_v14  ;;  %v1234_v10 = vpack.c.bf16 %v1208_v3, %v1207_v38  ;;  %v7213_v38 = vld [vmem:[#allocation10 + $0x270] sm:$0xf0]  ;;  %9152 = vtanh.f32 %v1109_v17 }
 0x24e   :  { %v9149_v13 = vpop.eup %9148  ;;  %v1159_v18 = vpack.c.bf16 %v10000_v40, %v9147_v57  ;;  %v1257_v29 = vunpack.c.l.bf16 %v1235_v4  ;;  %v1258_v32 = vunpack.c.h.bf16 %v1235_v4  ;;  %v1181_v55 = vunpack.c.l.bf16 %v1157_v60 }
 0x24f   :  { %v1182_v33 = vunpack.c.h.bf16 %v1157_v60  ;;  %v9151_v21 = vpop.eup %9150  ;;  %v1236_v43 = vpack.c.bf16 %v1212_v47, %v1211_v58  ;;  %v1255_v22 = vunpack.c.l.bf16 %v1234_v10  ;;  %v1256_v54 = vunpack.c.h.bf16 %v1234_v10 }
 0x250   :  { %v1185_v36 = vunpack.c.l.bf16 %v1159_v18  ;;  %v1289_v23 = vmul.f32 %v1257_v29, %v1097_v0  ;;  %v1290_v14 = vmul.f32 %v1258_v32, %v1098_v7  ;;  %v1186_v34 = vunpack.c.h.bf16 %v1159_v18  ;;  %v6957_v29 = vld [vmem:[#allocation10 + $0x70] sm:$0xf0] }
 0x251   :  { %v1213_v15 = vadd.f32 1.0, %v1181_v55  ;;  %v1259_v52 = vunpack.c.l.bf16 %v1236_v43  ;;  %v1287_v40 = vmul.f32 %v1255_v22, %v1095_v45  ;;  %v1260_v53 = vunpack.c.h.bf16 %v1236_v43  ;;  %v8681_v22 = vld [vmem:[#allocation10 + $0x244] sm:$0xf] }
 0x252   :  { %v1288_v49 = vmul.f32 %v1256_v54, %v1096_v39  ;;  %v10084_v10 = vpack.c.bf16 %v1289_v23, %v1285_v62  ;;  %v10086_v3 = vpack.c.bf16 %v1290_v14, %v1286_v63  ;;  %v1214_v0 = vadd.f32 1.0, %v1182_v33  ;;  %v8721_v62 = vld [vmem:[#allocation10 + $0x384] sm:$0xf]  ;;  %v7357_v63 = vld [vmem:[#allocation10 + $0x390] sm:$0xf0] }
 0x253   :  { %v1217_v57 = vadd.f32 1.0, %v1185_v36  ;;  %v1291_v6 = vmul.f32 %v1259_v52, %v1099_v46  ;;  %v1292_v7 = vmul.f32 %v1260_v53, %v1100_v25  ;;  %v1218_v18 = vadd.f32 1.0, %v1186_v34  ;;  %v7197_v36 = vld [vmem:[#allocation10 + $0x250] sm:$0xf0]  ;;  %v8717_v34 = vld [vmem:[#allocation10 + $0x364] sm:$0xf] }
 0x254   :  { %v1158_v45 = vpack.c.bf16 %v9992_v19, %v9149_v13  ;;  %2106 = vmatmul.bf16.gmra.mxu1 %v10084_v10  ;;  %2135 = vmatmul.bf16.gmra.mxu2 %v10086_v3  ;;  %v1237_v30 = vpack.c.bf16 %v1214_v0, %v1213_v15  ;;  %v1160_v39 = vpack.c.bf16 %v10028_v9, %v9151_v21  ;;  %v8621_v19 = vld [vmem:[#allocation10 + $0x64] sm:$0xf]  ;;  %v7069_v21 = vld [vmem:[#allocation10 + $0x150] sm:$0xf0]  ;;  %v1113_v52 = vunpack.c.l.bf16 %v10024_v24 }
 0x255   :  { %v7216_v54 = vor.u32 %v8685_v61, %v7213_v38  ;;  %v10098_v4 = vpack.c.bf16 %v1291_v6, %v1287_v40  ;;  %v10100_v46 = vpack.c.bf16 %v1292_v7, %v1288_v49  ;;  %v1239_v56 = vpack.c.bf16 %v1218_v18, %v1217_v57  ;;  %v8649_v9 = vld [vmem:[#allocation10 + $0x144] sm:$0xf]  ;;  %v7341_v15 = vld [vmem:[#allocation10 + $0x370] sm:$0xf0]  ;;  %v9153_v6 = vpop.eup %9152 }
 0x256   :  { %v1183_v25 = vunpack.c.l.bf16 %v1158_v45  ;;  %v1261_v60 = vunpack.c.l.bf16 %v1237_v30  ;;  %v1262_v13 = vunpack.c.h.bf16 %v1237_v30  ;;  %v1184_v58 = vunpack.c.h.bf16 %v1158_v45  ;;  %v8617_v0 = vld [vmem:[#allocation10 + $0x44] sm:$0xf]  ;;  %v6941_v57 = vld [vmem:[#allocation10 + $0x50] sm:$0xf0] }
 0x257   :  { %v1187_v47 = vunpack.c.l.bf16 %v1160_v39  ;;  %2271 = vmatpush.bf16.msra.mxu3 %v7216_v54  ;;  %2193 = vmatmul.bf16.gmra.mxu0 %v10100_v46  ;;  %v1265_v32 = vunpack.c.l.bf16 %v1239_v56  ;;  %v1266_v55 = vunpack.c.h.bf16 %v1239_v56  ;;  %v1188_v33 = vunpack.c.h.bf16 %v1160_v39 }
 0x258   :  { %2164 = vmatmul.bf16.gmra.mxu3 %v10098_v4  ;;  %v1215_v43 = vadd.f32 1.0, %v1183_v25  ;;  %v1216_v23 = vadd.f32 1.0, %v1184_v58  ;;  %v1115_v40 = vunpack.c.l.bf16 %v10033_v16  ;;  %v7360_v38 = vor.u32 %v8721_v62, %v7357_v63 }
 0x259   :  { %v1219_v14 = vadd.f32 1.0, %v1187_v47  ;;  %v1297_v53 = vmul.f32 %v1265_v32, %v1105_v50  ;;  %v1298_v49 = vmul.f32 %v1266_v55, %v1106_v28  ;;  %v1220_v61 = vadd.f32 1.0, %v1188_v33  ;;  %v7053_v28 = vld [vmem:[#allocation10 + $0x130] sm:$0xf0]  ;;  %v8641_v55 = vld [vmem:[#allocation10 + $0x104] sm:$0xf] }
 0x25a   :  { %v1238_v7 = vpack.c.bf16 %v1216_v23, %v1215_v43  ;;  %v6960_v18 = vor.u32 %v8621_v19, %v6957_v29  ;;  %v7072_v45 = vor.u32 %v8649_v9, %v7069_v21  ;;  %v7200_v30 = vor.u32 %v8681_v22, %v7197_v36  ;;  %2299 = vmatpush.bf16.msrb.mxu0 %v7360_v38  ;;  %v8677_v19 = vld [vmem:[#allocation10 + $0x224] sm:$0xf]  ;;  %v6925_v32 = vld [vmem:[#allocation10 + $0x30] sm:$0xf0] }
 0x25b   :  { %v1293_v39 = vmul.f32 %v1261_v60, %v1101_v41  ;;  %v1294_v54 = vmul.f32 %v1262_v13, %v1102_v11  ;;  %v1240_v56 = vpack.c.bf16 %v1220_v61, %v1219_v14  ;;  %v7344_v50 = vor.u32 %v8717_v34, %v7341_v15  ;;  %v7181_v11 = vld [vmem:[#allocation10 + $0x230] sm:$0xf0]  ;;  %v8713_v41 = vld [vmem:[#allocation10 + $0x344] sm:$0xf] }
 0x25c   :  { %v1263_v25 = vunpack.c.l.bf16 %v1238_v7  ;;  %v1264_v62 = vunpack.c.h.bf16 %v1238_v7  ;;  %2213 = vmatpush.bf16.msrb.mxu1 %v6960_v18  ;;  %2243 = vmatpush.bf16.msra.mxu2 %v7072_v45  ;;  %v6944_v63 = vor.u32 %v8617_v0, %v6941_v57  ;;  %9154 = vtanh.f32 %v1113_v52  ;;  %v7325_v60 = vld [vmem:[#allocation10 + $0x350] sm:$0xf0]  ;;  %v8613_v21 = vld [vmem:[#allocation10 + $0x24] sm:$0xf] }
 0x25d   :  { %v1267_v58 = vunpack.c.l.bf16 %v1240_v56  ;;  %v1268_v47 = vunpack.c.h.bf16 %v1240_v56  ;;  %2272 = vmatpush.bf16.msra.mxu3 %v7200_v30  ;;  %v1161_v2 = vpack.c.bf16 %v10037_v42, %v9153_v6  ;;  %9156 = vtanh.f32 %v1111_v12  ;;  %v7037_v23 = vld [vmem:[#allocation10 + $0x110] sm:$0xf0]  ;;  %v8673_v14 = vld [vmem:[#allocation10 + $0x204] sm:$0xf] }
 0x25e   :  { %v10119_v13 = vpack.c.bf16 %v1297_v53, %v1293_v39  ;;  %v10121_v29 = vpack.c.bf16 %v1298_v49, %v1294_v54  ;;  %9158 = vtanh.f32 %v1115_v40  ;;  %v7056_v9 = vor.u32 %v8645_v59, %v7053_v28  ;;  %2300 = vmatpush.bf16.msrb.mxu0 %v7344_v50  ;;  %v7165_v34 = vld [vmem:[#allocation10 + $0x210] sm:$0xf0]  ;;  %v8709_v6 = vld [vmem:[#allocation10 + $0x324] sm:$0xf] }
 0x25f   :  { %v1299_v42 = vmul.f32 %v1267_v58, %v1107_v48  ;;  %v11518_v33 = vunpack.c.h.bf16 %v9964_v1  ;;  %v1189_v22 = vunpack.c.l.bf16 %v1161_v2  ;;  %v1190_v36 = vunpack.c.h.bf16 %v1161_v2  ;;  %v7309_v7 = vld [vmem:[#allocation10 + $0x330] sm:$0xf0]  ;;  %v8609_v39 = vld [vmem:[#allocation10 + $0x4] sm:$0xf] }
 0x260   :  { %v11519_v15 = vunpack.c.l.bf16 %v9938_v5  ;;  %2214 = vmatpush.bf16.msrb.mxu1 %v6944_v63  ;;  %2244 = vmatpush.bf16.msra.mxu2 %v7056_v9  ;;  %v7184_v49 = vor.u32 %v8677_v19, %v7181_v11  ;;  %v7328_v61 = vor.u32 %v8713_v41, %v7325_v60  ;;  %v11520_v38 = vunpack.c.h.bf16 %v9938_v5  ;;  %v6909_v54 = vld [vmem:[#allocation10 + $0x10] sm:$0xf0]  ;;  %v8705_v19 = vld [vmem:[#allocation10 + $0x304] sm:$0xf] }
 0x261   :  { %v1300_v43 = vmul.f32 %v1268_v47, %v11518_v33  ;;  %v1221_v48 = vadd.f32 1.0, %v1189_v22  ;;  %v1222_v57 = vadd.f32 1.0, %v1190_v36  ;;  %v6928_v1 = vor.u32 %v8613_v21, %v6925_v32  ;;  %v7293_v58 = vld [vmem:[#allocation10 + $0x310] sm:$0xf0]  ;;  %v8672_v33 = vld [vmem:[#allocation10 + $0x1f4] sm:$0xf0] }
 0x262   :  { %v1295_v53 = vmul.f32 %v1263_v25, %v11519_v15  ;;  %v1296_v0 = vmul.f32 %v1264_v62, %v11520_v38  ;;  %v9155_v18 = vpop.eup %9154  ;;  %2273 = vmatpush.bf16.msra.mxu3 %v7184_v49  ;;  %v7040_v45 = vor.u32 %v8641_v55, %v7037_v23  ;;  %v7168_v30 = vor.u32 %v8673_v14, %v7165_v34  ;;  %v7283_v14 = vld [vmem:[#allocation10 + $0x2e8] sm:$0xf]  ;;  %v8640_v38 = vld [vmem:[#allocation10 + $0xf4] sm:$0xf0] }
 0x263   :  { %v9157_v56 = vpop.eup %9156  ;;  %v1163_v28 = vpack.c.bf16 %v10064_v51, %v9155_v18  ;;  %v1241_v5 = vpack.c.bf16 %v1222_v57, %v1221_v48  ;;  %2301 = vmatpush.bf16.msrb.mxu0 %v7328_v61  ;;  %v7312_v63 = vor.u32 %v8709_v6, %v7309_v7  ;;  %v6912_v41 = vor.u32 %v8609_v39, %v6909_v54  ;;  %v7027_v61 = vld [vmem:[#allocation10 + $0xe8] sm:$0xf]  ;;  %v8668_v7 = vld [vmem:[#allocation10 + $0x1d4] sm:$0xf0] }
 0x264   :  { %v10133_v50 = vpack.c.bf16 %v1299_v42, %v1295_v53  ;;  %v10135_v59 = vpack.c.bf16 %v1300_v43, %v1296_v0  ;;  %v9159_v25 = vpop.eup %9158  ;;  %2111 = vmatmul.bf16.gmra.mxu1 %v10119_v13  ;;  %2140 = vmatmul.bf16.gmra.mxu2 %v10121_v29  ;;  %v1162_v62 = vpack.c.bf16 %v10061_v35, %v9157_v56  ;;  %v7155_v42 = vld [vmem:[#allocation10 + $0x1e8] sm:$0xf]  ;;  %v11521_v39 = vunpack.c.h.bf16 %v10006_v26  ;;  %v8700_v56 = vld [vmem:[#allocation10 + $0x2d4] sm:$0xf0] }
 0x265   :  { %v1193_v47 = vunpack.c.l.bf16 %v1163_v28  ;;  %v1194_v2 = vunpack.c.h.bf16 %v1163_v28  ;;  %v1269_v11 = vunpack.c.l.bf16 %v1241_v5  ;;  %2215 = vmatpush.bf16.msrb.mxu1 %v6928_v1  ;;  %2245 = vmatpush.bf16.msra.mxu2 %v7040_v45  ;;  %v1164_v51 = vpack.c.bf16 %v10068_v31, %v9159_v25  ;;  %v8704_v31 = vld [vmem:[#allocation10 + $0x2f4] sm:$0xf0]  ;;  %v7139_v0 = vld [vmem:[#allocation10 + $0x1c8] sm:$0xf] }
 0x266   :  { %v1191_v60 = vunpack.c.l.bf16 %v1162_v62  ;;  %v1192_v9 = vunpack.c.h.bf16 %v1162_v62  ;;  %2274 = vmatpush.bf16.msra.mxu3 %v7168_v30  ;;  %v1270_v32 = vunpack.c.h.bf16 %v1241_v5  ;;  %v7296_v55 = vor.u32 %v8705_v19, %v7293_v58  ;;  %v7267_v18 = vld [vmem:[#allocation10 + $0x2c8] sm:$0xf]  ;;  %v8736_v5 = vld [vmem:[#allocation10 + $0x3f4] sm:$0xf0] }
 0x267   :  { %2198 = vmatmul.bf16.gmra.mxu0 %v10135_v59  ;;  %v1225_v21 = vadd.f32 1.0, %v1193_v47  ;;  %v1226_v35 = vadd.f32 1.0, %v1194_v2  ;;  %v1195_v43 = vunpack.c.l.bf16 %v1164_v51  ;;  %v1196_v22 = vunpack.c.h.bf16 %v1164_v51  ;;  %v7411_v28 = vld [vmem:[#allocation10 + $0x3e8] sm:$0xf]  ;;  %v8636_v47 = vld [vmem:[#allocation10 + $0xd4] sm:$0xf0] }
 0x268   :  { %2169 = vmatmul.bf16.gmra.mxu3 %v10133_v50  ;;  %v1223_v36 = vadd.f32 1.0, %v1191_v60  ;;  %v1224_v23 = vadd.f32 1.0, %v1192_v9  ;;  %2302 = vmatpush.bf16.msrb.mxu0 %v7312_v63  ;;  %v1301_v15 = vmul.f32 %v1269_v11, %v1109_v17  ;;  %v7156_v53 = vor.u32 %v8672_v33, %v7155_v42  ;;  %v7011_v58 = vld [vmem:[#allocation10 + $0xc8] sm:$0xf] }
 0x269   :  { %v1243_v34 = vpack.c.bf16 %v1226_v35, %v1225_v21  ;;  %2216 = vmatpush.bf16.msrb.mxu1 %v6912_v41  ;;  %v7284_v49 = vor.u32 %v8704_v31, %v7283_v14  ;;  %v1227_v48 = vadd.f32 1.0, %v1195_v43  ;;  %v1228_v57 = vadd.f32 1.0, %v1196_v22  ;;  %v8732_v14 = vld [vmem:[#allocation10 + $0x3d4] sm:$0xf0] }
 0x26a   :  { %v1242_v1 = vpack.c.bf16 %v1224_v23, %v1223_v36  ;;  %v7028_v6 = vor.u32 %v8640_v38, %v7027_v61  ;;  %v1302_v54 = vmul.f32 %v1270_v32, %v11521_v39  ;;  %2354 = vmatpush.bf16.msrb.mxu2 %v7156_v53  ;;  %v7140_v17 = vor.u32 %v8668_v7, %v7139_v0  ;;  %v7395_v23 = vld [vmem:[#allocation10 + $0x3c8] sm:$0xf]  ;;  %v8632_v53 = vld [vmem:[#allocation10 + $0xb4] sm:$0xf0] }
 0x26b   :  { %v1273_v45 = vunpack.c.l.bf16 %v1243_v34  ;;  %v1274_v30 = vunpack.c.h.bf16 %v1243_v34  ;;  %2383 = vmatpush.bf16.msrb.mxu3 %v7284_v49  ;;  %v1244_v25 = vpack.c.bf16 %v1228_v57, %v1227_v48  ;;  %v7268_v19 = vor.u32 %v8700_v56, %v7267_v18  ;;  %v7107_v49 = vld [vmem:[#allocation10 + $0x188] sm:$0xf]  ;;  %v8660_v38 = vld [vmem:[#allocation10 + $0x194] sm:$0xf0] }
 0x26c   :  { %v1271_v62 = vunpack.c.l.bf16 %v1242_v1  ;;  %v1272_v63 = vunpack.c.h.bf16 %v1242_v1  ;;  %2303 = vmatpush.bf16.msrb.mxu0 %v7296_v55  ;;  %v11522_v26 = vunpack.c.h.bf16 %v10024_v24  ;;  %v7412_v41 = vor.u32 %v8736_v5, %v7411_v28  ;;  %v7235_v0 = vld [vmem:[#allocation10 + $0x288] sm:$0xf]  ;;  %v8692_v48 = vld [vmem:[#allocation10 + $0x294] sm:$0xf0] }
 0x26d   :  { %2325 = vmatpush.bf16.msra.mxu1 %v7028_v6  ;;  %v1305_v2 = vmul.f32 %v1273_v45, %v1113_v52  ;;  %v7012_v51 = vor.u32 %v8636_v47, %v7011_v58  ;;  %v1275_v60 = vunpack.c.l.bf16 %v1244_v25  ;;  %v1276_v9 = vunpack.c.h.bf16 %v1244_v25  ;;  %v7379_v6 = vld [vmem:[#allocation10 + $0x3a8] sm:$0xf]  ;;  %v8728_v7 = vld [vmem:[#allocation10 + $0x3b4] sm:$0xf0] }
 0x26e   :  { %v1306_v11 = vmul.f32 %v1274_v30, %v11522_v26  ;;  %v1303_v32 = vmul.f32 %v1271_v62, %v1111_v12  ;;  %2355 = vmatpush.bf16.msrb.mxu2 %v7140_v17  ;;  %v11523_v52 = vunpack.c.h.bf16 %v10014_v27  ;;  %v11524_v42 = vunpack.c.h.bf16 %v10033_v16  ;;  %v7123_v12 = vld [vmem:[#allocation10 + $0x1a8] sm:$0xf]  ;;  %v8664_v27 = vld [vmem:[#allocation10 + $0x1b4] sm:$0xf0] }
 0x26f   :  { %v10152_v21 = vpack.c.bf16 %v1305_v2, %v1301_v15  ;;  %2384 = vmatpush.bf16.msrb.mxu3 %v7268_v19  ;;  %v1307_v55 = vmul.f32 %v1275_v60, %v1115_v40  ;;  %v7251_v40 = vld [vmem:[#allocation10 + $0x2a8] sm:$0xf]  ;;  %v7124_v36 = vor.u32 %v8664_v27, %v7123_v12  ;;  %v8696_v16 = vld [vmem:[#allocation10 + $0x2b4] sm:$0xf0]  ;;  %v7396_v34 = vor.u32 %v8732_v14, %v7395_v23 }
 0x270   :  { %v10154_v35 = vpack.c.bf16 %v1306_v11, %v1302_v54  ;;  %v1304_v24 = vmul.f32 %v1272_v63, %v11523_v52  ;;  %v1308_v33 = vmul.f32 %v1276_v9, %v11524_v42  ;;  %2412 = vmatpush.bf16.msra.mxu0 %v7412_v41  ;;  %v7252_v31 = vor.u32 %v8696_v16, %v7251_v40  ;;  %v6995_v15 = vld [vmem:[#allocation10 + $0xa8] sm:$0xf]  ;;  %v8628_v30 = vld [vmem:[#allocation10 + $0x94] sm:$0xf0] }
 0x271   :  { %2326 = vmatpush.bf16.msra.mxu1 %v7012_v51  ;;  %v10164_v43 = vpack.c.bf16 %v1307_v55, %v1303_v32  ;;  %v6996_v61 = vor.u32 %v8632_v53, %v6995_v15  ;;  %v7108_v57 = vor.u32 %v8660_v38, %v7107_v49  ;;  %v7236_v1 = vor.u32 %v8692_v48, %v7235_v0  ;;  %v6979_v18 = vld [vmem:[#allocation10 + $0x88] sm:$0xf]  ;;  %v8656_v17 = vld [vmem:[#allocation10 + $0x174] sm:$0xf0] }
 0x272   :  { %v10166_v22 = vpack.c.bf16 %v1308_v33, %v1304_v24  ;;  %2356 = vmatpush.bf16.msrb.mxu2 %v7124_v36  ;;  %v7380_v45 = vor.u32 %v8728_v7, %v7379_v6  ;;  %v6980_v39 = vor.u32 %v8628_v30, %v6979_v18  ;;  %v7091_v54 = vld [vmem:[#allocation10 + $0x168] sm:$0xf]  ;;  %v8688_v5 = vld [vmem:[#allocation10 + $0x274] sm:$0xf0] }
 0x273   :  { %2385 = vmatpush.bf16.msrb.mxu3 %v7252_v31  ;;  %v7219_v56 = vld [vmem:[#allocation10 + $0x268] sm:$0xf]  ;;  %v7092_v28 = vor.u32 %v8656_v17, %v7091_v54  ;;  %v8724_v62 = vld [vmem:[#allocation10 + $0x394] sm:$0xf0] }
 0x274   :  { %2116 = vmatmul.bf16.gmra.mxu1 %v10152_v21  ;;  %2145 = vmatmul.bf16.gmra.mxu2 %v10154_v35  ;;  %v7363_v25 = vld [vmem:[#allocation10 + $0x388] sm:$0xf]  ;;  %v7220_v63 = vor.u32 %v8688_v5, %v7219_v56  ;;  %v8624_v47 = vld [vmem:[#allocation10 + $0x74] sm:$0xf0]  ;;  %v7157_v5 = vld [vmem:[#allocation10 + $0x1f8] sm:$0xf0] }
 0x275   :  { %2413 = vmatpush.bf16.msra.mxu0 %v7396_v34  ;;  %2327 = vmatpush.bf16.msra.mxu1 %v6996_v61  ;;  %v7364_v19 = vor.u32 %v8724_v62, %v7363_v25  ;;  %v6963_v58 = vld [vmem:[#allocation10 + $0x68] sm:$0xf]  ;;  %v8652_v11 = vld [vmem:[#allocation10 + $0x154] sm:$0xf0]  ;;  %v8702_v25 = vld [vmem:[#allocation10 + $0x2ec] sm:$0xf] }
 0x276   :  { %2357 = vmatpush.bf16.msrb.mxu2 %v7108_v57  ;;  %v7075_v2 = vld [vmem:[#allocation10 + $0x148] sm:$0xf]  ;;  %v6964_v26 = vor.u32 %v8624_v47, %v6963_v58  ;;  %v8684_v51 = vld [vmem:[#allocation10 + $0x254] sm:$0xf0]  ;;  %v7029_v58 = vld [vmem:[#allocation10 + $0xf8] sm:$0xf0] }
 0x277   :  { %2203 = vmatmul.bf16.gmra.mxu0 %v10166_v22  ;;  %2386 = vmatpush.bf16.msrb.mxu3 %v7236_v1  ;;  %v7203_v41 = vld [vmem:[#allocation10 + $0x248] sm:$0xf]  ;;  %v7076_v60 = vor.u32 %v8652_v11, %v7075_v2  ;;  %v8720_v55 = vld [vmem:[#allocation10 + $0x374] sm:$0xf0]  ;;  %v7141_v11 = vld [vmem:[#allocation10 + $0x1d8] sm:$0xf0] }
 0x278   :  { %2174 = vmatmul.bf16.gmra.mxu3 %v10164_v43  ;;  %v7204_v9 = vor.u32 %v8684_v51, %v7203_v41  ;;  %v7347_v32 = vld [vmem:[#allocation10 + $0x368] sm:$0xf]  ;;  %v8620_v42 = vld [vmem:[#allocation10 + $0x54] sm:$0xf0]  ;;  %v8698_v41 = vld [vmem:[#allocation10 + $0x2cc] sm:$0xf] }
 0x279   :  { %2414 = vmatpush.bf16.msra.mxu0 %v7380_v45  ;;  %2328 = vmatpush.bf16.msra.mxu1 %v6980_v39  ;;  %v6947_v52 = vld [vmem:[#allocation10 + $0x48] sm:$0xf]  ;;  %v7348_v24 = vor.u32 %v8720_v55, %v7347_v32  ;;  %v8648_v27 = vld [vmem:[#allocation10 + $0x134] sm:$0xf0]  ;;  %v7413_v32 = vld [vmem:[#allocation10 + $0x3f8] sm:$0xf0] }
 0x27a   :  { %2358 = vmatpush.bf16.msrb.mxu2 %v7092_v28  ;;  %v6948_v33 = vor.u32 %v8620_v42, %v6947_v52  ;;  %v7059_v12 = vld [vmem:[#allocation10 + $0x128] sm:$0xf]  ;;  %v8680_v16 = vld [vmem:[#allocation10 + $0x234] sm:$0xf0]  ;;  %v8670_v28 = vld [vmem:[#allocation10 + $0x1ec] sm:$0xf] }
 0x27b   :  { %2387 = vmatpush.bf16.msrb.mxu3 %v7220_v63  ;;  %v7187_v40 = vld [vmem:[#allocation10 + $0x228] sm:$0xf]  ;;  %v7060_v36 = vor.u32 %v8648_v27, %v7059_v12  ;;  %v8716_v14 = vld [vmem:[#allocation10 + $0x354] sm:$0xf0]  ;;  %v7160_v62 = vor.u32 %v8670_v28, %v7157_v5  ;;  %v7285_v63 = vld [vmem:[#allocation10 + $0x2f8] sm:$0xf0] }
 0x27c   :  { %v7331_v23 = vld [vmem:[#allocation10 + $0x348] sm:$0xf]  ;;  %v7188_v31 = vor.u32 %v8680_v16, %v7187_v40  ;;  %v8616_v53 = vld [vmem:[#allocation10 + $0x34] sm:$0xf0]  ;;  %v7288_v47 = vor.u32 %v8702_v25, %v7285_v63  ;;  %v8634_v12 = vld [vmem:[#allocation10 + $0xcc] sm:$0xf] }
 0x27d   :  { %2415 = vmatpush.bf16.msra.mxu0 %v7364_v19  ;;  %2329 = vmatpush.bf16.msra.mxu1 %v6964_v26  ;;  %v7332_v34 = vor.u32 %v8716_v14, %v7331_v23  ;;  %v6931_v15 = vld [vmem:[#allocation10 + $0x28] sm:$0xf]  ;;  %v8644_v38 = vld [vmem:[#allocation10 + $0x114] sm:$0xf0]  ;;  %v8638_v19 = vld [vmem:[#allocation10 + $0xec] sm:$0xf] }
 0x27e   :  { %2359 = vmatpush.bf16.msrb.mxu2 %v7076_v60  ;;  %v7043_v49 = vld [vmem:[#allocation10 + $0x108] sm:$0xf]  ;;  %v6932_v61 = vor.u32 %v8616_v53, %v6931_v15  ;;  %v8712_v48 = vld [vmem:[#allocation10 + $0x334] sm:$0xf0]  ;;  %v7032_v2 = vor.u32 %v8638_v19, %v7029_v58  ;;  %v8666_v26 = vld [vmem:[#allocation10 + $0x1cc] sm:$0xf] }
 0x27f   :  { %2388 = vmatpush.bf16.msrb.mxu3 %v7204_v9  ;;  %v7315_v0 = vld [vmem:[#allocation10 + $0x328] sm:$0xf]  ;;  %v7044_v57 = vor.u32 %v8644_v38, %v7043_v49  ;;  %v8676_v7 = vld [vmem:[#allocation10 + $0x214] sm:$0xf0]  ;;  %v7144_v51 = vor.u32 %v8666_v26, %v7141_v11  ;;  %v7269_v60 = vld [vmem:[#allocation10 + $0x2d8] sm:$0xf0] }
 0x280   :  { %v7316_v1 = vor.u32 %v8712_v48, %v7315_v0  ;;  %v7171_v6 = vld [vmem:[#allocation10 + $0x208] sm:$0xf]  ;;  %v8612_v30 = vld [vmem:[#allocation10 + $0x14] sm:$0xf0]  ;;  %v8734_v9 = vld [vmem:[#allocation10 + $0x3ec] sm:$0xf]  ;;  %v7272_v55 = vor.u32 %v8698_v41, %v7269_v60 }
 0x281   :  { %2416 = vmatpush.bf16.msra.mxu0 %v7348_v24  ;;  %2330 = vmatpush.bf16.msra.mxu1 %v6948_v33  ;;  %v6915_v18 = vld [vmem:[#allocation10 + $0x8] sm:$0xf]  ;;  %v7172_v45 = vor.u32 %v8676_v7, %v7171_v6  ;;  %v8708_v54 = vld [vmem:[#allocation10 + $0x314] sm:$0xf0]  ;;  %v7416_v52 = vor.u32 %v8734_v9, %v7413_v32  ;;  %v7013_v27 = vld [vmem:[#allocation10 + $0xd8] sm:$0xf0] }
 0x282   :  { %2360 = vmatpush.bf16.msrb.mxu2 %v7060_v36  ;;  %v7299_v39 = vld [vmem:[#allocation10 + $0x308] sm:$0xf]  ;;  %v6916_v17 = vor.u32 %v8612_v30, %v6915_v18  ;;  %v7016_v40 = vor.u32 %v8634_v12, %v7013_v27  ;;  %v8662_v36 = vld [vmem:[#allocation10 + $0x1ac] sm:$0xf]  ;;  %v7125_v16 = vld [vmem:[#allocation10 + $0x1b8] sm:$0xf0] }
 0x283   :  { %2389 = vmatpush.bf16.msrb.mxu3 %v7188_v31  ;;  %v7300_v56 = vor.u32 %v8708_v54, %v7299_v39  ;;  %v8694_v23 = vld [vmem:[#allocation10 + $0x2ac] sm:$0xf]  ;;  %v7253_v15 = vld [vmem:[#allocation10 + $0x2b8] sm:$0xf0] }
 0x284   :  { %2217 = vmatmul.bf16.vlgmr.msrb.gmra.mxu1 %v9966_v8  ;;  %2246 = vmatmul.bf16.vlgmr.msra.gmra.mxu2 %v9976_v44  ;;  %v8730_v53 = vld [vmem:[#allocation10 + $0x3cc] sm:$0xf]  ;;  %v7397_v49 = vld [vmem:[#allocation10 + $0x3d8] sm:$0xf0]  ;;  %v7256_v48 = vor.u32 %v8694_v23, %v7253_v15 }
 0x285   :  { %2417 = vmatpush.bf16.msra.mxu0 %v7332_v34  ;;  %2331 = vmatpush.bf16.msra.mxu1 %v6932_v61  ;;  %v7128_v34 = vor.u32 %v8662_v36, %v7125_v16  ;;  %v8630_v7 = vld [vmem:[#allocation10 + $0xac] sm:$0xf]  ;;  %v6997_v18 = vld [vmem:[#allocation10 + $0xb8] sm:$0xf0] }
 0x286   :  { %2361 = vmatpush.bf16.msrb.mxu2 %v7044_v57  ;;  %v7400_v57 = vor.u32 %v8730_v53, %v7397_v49  ;;  %v7000_v30 = vor.u32 %v8630_v7, %v6997_v18  ;;  %v7109_v39 = vld [vmem:[#allocation10 + $0x198] sm:$0xf0]  ;;  %v8690_v54 = vld [vmem:[#allocation10 + $0x28c] sm:$0xf] }
 0x287   :  { %2304 = vmatmul.bf16.vlgmr.msrb.gmra.mxu0 %v9998_v20  ;;  %2390 = vmatpush.bf16.msrb.mxu3 %v7172_v45  ;;  %v8658_v45 = vld [vmem:[#allocation10 + $0x18c] sm:$0xf]  ;;  %v7381_v25 = vld [vmem:[#allocation10 + $0x3b8] sm:$0xf0] }
 0x288   :  { %2275 = vmatmul.bf16.vlgmr.msra.gmra.mxu3 %v9996_v37  ;;  %v8726_v5 = vld [vmem:[#allocation10 + $0x3ac] sm:$0xf]  ;;  %v6981_v26 = vld [vmem:[#allocation10 + $0x98] sm:$0xf0] }
 0x289   :  { %2418 = vmatpush.bf16.msra.mxu0 %v7316_v1  ;;  %2332 = vmatpush.bf16.msra.mxu1 %v6916_v17  ;;  %v7237_v17 = vld [vmem:[#allocation10 + $0x298] sm:$0xf0]  ;;  %v7384_v63 = vor.u32 %v8726_v5, %v7381_v25  ;;  %v8654_v41 = vld [vmem:[#allocation10 + $0x16c] sm:$0xf] }
 0x28a   :  { %2470 = vmatpush.bf16.msra.mxu2 %v7160_v62  ;;  %v7240_v28 = vor.u32 %v8690_v54, %v7237_v17  ;;  %v8686_v60 = vld [vmem:[#allocation10 + $0x26c] sm:$0xf]  ;;  %v7221_v32 = vld [vmem:[#allocation10 + $0x278] sm:$0xf0] }
 0x28b   :  { %2499 = vmatpush.bf16.msra.mxu3 %v7288_v47  ;;  %v6965_v12 = vld [vmem:[#allocation10 + $0x78] sm:$0xf0]  ;;  %v8650_v27 = vld [vmem:[#allocation10 + $0x14c] sm:$0xf] }
 0x28c   :  { %v7077_v36 = vld [vmem:[#allocation10 + $0x158] sm:$0xf0]  ;;  %v8682_v16 = vld [vmem:[#allocation10 + $0x24c] sm:$0xf] }
 0x28d   :  { %2419 = vmatpush.bf16.msra.mxu0 %v7300_v56  ;;  %2441 = vmatpush.bf16.msrb.mxu1 %v7032_v2  ;;  %v7112_v56 = vor.u32 %v8658_v45, %v7109_v39  ;;  %v8626_v2 = vld [vmem:[#allocation10 + $0x8c] sm:$0xf]  ;;  %v7205_v23 = vld [vmem:[#allocation10 + $0x258] sm:$0xf0] }
 0x28e   :  { %2471 = vmatpush.bf16.msra.mxu2 %v7144_v51  ;;  %v6984_v11 = vor.u32 %v8626_v2, %v6981_v26  ;;  %v7093_v51 = vld [vmem:[#allocation10 + $0x178] sm:$0xf0]  ;;  %v8678_v18 = vld [vmem:[#allocation10 + $0x22c] sm:$0xf] }
 0x28f   :  { %2500 = vmatpush.bf16.msra.mxu3 %v7272_v55  ;;  %v7096_v9 = vor.u32 %v8654_v41, %v7093_v51  ;;  %v8722_v55 = vld [vmem:[#allocation10 + $0x38c] sm:$0xf]  ;;  %v7349_v15 = vld [vmem:[#allocation10 + $0x378] sm:$0xf0] }
 0x290   :  { %v7061_v7 = vld [vmem:[#allocation10 + $0x138] sm:$0xf0]  ;;  %v8714_v54 = vld [vmem:[#allocation10 + $0x34c] sm:$0xf] }
 0x291   :  { %2528 = vmatpush.bf16.msrb.mxu0 %v7416_v52  ;;  %2442 = vmatpush.bf16.msrb.mxu1 %v7016_v40  ;;  %v7365_v52 = vld [vmem:[#allocation10 + $0x398] sm:$0xf0]  ;;  %v8642_v26 = vld [vmem:[#allocation10 + $0x10c] sm:$0xf] }
 0x292   :  { %2472 = vmatpush.bf16.msra.mxu2 %v7128_v34  ;;  %v8718_v34 = vld [vmem:[#allocation10 + $0x36c] sm:$0xf]  ;;  %v7189_v39 = vld [vmem:[#allocation10 + $0x238] sm:$0xf0] }
 0x293   :  { %2501 = vmatpush.bf16.msra.mxu3 %v7256_v48  ;;  %v7352_v53 = vor.u32 %v8718_v34, %v7349_v15  ;;  %v7333_v17 = vld [vmem:[#allocation10 + $0x358] sm:$0xf0]  ;;  %v8710_v51 = vld [vmem:[#allocation10 + $0x32c] sm:$0xf] }
 0x294   :  { %2222 = vmatmul.bf16.gmra.mxu1 %v10084_v10  ;;  %2251 = vmatmul.bf16.gmra.mxu2 %v10086_v3  ;;  %v7336_v5 = vor.u32 %v8714_v54, %v7333_v17  ;;  %v6933_v2 = vld [vmem:[#allocation10 + $0x38] sm:$0xf0] }
 0x295   :  { %2529 = vmatpush.bf16.msrb.mxu0 %v7400_v57  ;;  %2443 = vmatpush.bf16.msrb.mxu1 %v7000_v30  ;;  %v7045_v41 = vld [vmem:[#allocation10 + $0x118] sm:$0xf0] }
 0x296   :  { %2473 = vmatpush.bf16.msra.mxu2 %v7112_v56  ;;  %v7301_v15 = vld [vmem:[#allocation10 + $0x318] sm:$0xf0] }
 0x297   :  { %2309 = vmatmul.bf16.gmra.mxu0 %v10100_v46  ;;  %2502 = vmatpush.bf16.msra.mxu3 %v7240_v28  ;;  %v7192_v28 = vor.u32 %v8678_v18, %v7189_v39 }
 0x298   :  { %2280 = vmatmul.bf16.gmra.mxu3 %v10098_v4 }
 0x299   :  { %2530 = vmatpush.bf16.msrb.mxu0 %v7384_v63  ;;  %2444 = vmatpush.bf16.msrb.mxu1 %v6984_v11 }
 0x29a   :  { %2474 = vmatpush.bf16.msra.mxu2 %v7096_v9 }
 0x2a4   :  { %2227 = vmatmul.bf16.gmra.mxu1 %v10119_v13  ;;  %2256 = vmatmul.bf16.gmra.mxu2 %v10121_v29 }
 0x2a7   :  { %2314 = vmatmul.bf16.gmra.mxu0 %v10135_v59 }
 0x2a8   :  { %2285 = vmatmul.bf16.gmra.mxu3 %v10133_v50 }
 0x2aa   :  { %v2102_v24 = vpop.f32.mrf.mxu1 }
 0x2b2   :  { %v2131_v42 = vpop.f32.mrf.mxu2  ;;  %v2104_v38 = vpop.f32.mrf.mxu1 }
 0x2b3   :  { %v2132_v33 = vadd.f32 %v2131_v42, %v2102_v24  ;;  %v2189_v14 = vpop.f32.mrf.mxu0  ;;  %v7224_v24 = vor.u32 %v8686_v60, %v7221_v32  ;;  %v7368_v42 = vor.u32 %v8722_v55, %v7365_v52  ;;  %v7317_v60 = vld [vmem:[#allocation10 + $0x338] sm:$0xf0]  ;;  %v7048_v32 = vor.u32 %v8642_v26, %v7045_v41  ;;  %v8674_v52 = vld [vmem:[#allocation10 + $0x20c] sm:$0xf] }
 0x2b4   :  { %2232 = vmatmul.bf16.gmra.mxu1 %v10152_v21  ;;  %2261 = vmatmul.bf16.gmra.mxu2 %v10154_v35  ;;  %v7320_v55 = vor.u32 %v8710_v51, %v7317_v60  ;;  %v2576_v60 = vld [vmem:[#allocation1] sm:$0xff] }
 0x2b5   :  { %2503 = vmatpush.bf16.msra.mxu3 %v7224_v24  ;;  %2531 = vmatpush.bf16.msrb.mxu0 %v7368_v42  ;;  %v7173_v24 = vld [vmem:[#allocation10 + $0x218] sm:$0xf0] }
 0x2b7   :  { %2319 = vmatmul.bf16.gmra.mxu0 %v10166_v22 }
 0x2b8   :  { %2290 = vmatmul.bf16.gmra.mxu3 %v10164_v43 }
 0x2b9   :  { %v2160_v31 = vpop.f32.mrf.mxu3  ;;  %2532 = vmatpush.bf16.msrb.mxu0 %v7352_v53 }
 0x2ba   :  { %v2161_v61 = vadd.f32 %v2160_v31, %v2132_v33  ;;  %v2133_v0 = vpop.f32.mrf.mxu2  ;;  %v8622_v33 = vld [vmem:[#allocation10 + $0x6c] sm:$0xf]  ;;  %v7208_v31 = vor.u32 %v8682_v16, %v7205_v23 }
 0x2bb   :  { %v2134_v1 = vadd.f32 %v2133_v0, %v2104_v38  ;;  %v2191_v58 = vpop.f32.mrf.mxu0  ;;  %v6968_v40 = vor.u32 %v8622_v33, %v6965_v12  ;;  %v8618_v38 = vld [vmem:[#allocation10 + $0x4c] sm:$0xf]  ;;  %v6949_v0 = vld [vmem:[#allocation10 + $0x58] sm:$0xf0]  ;;  %v7176_v33 = vor.u32 %v8674_v52, %v7173_v24  ;;  %v2580_v52 = vpack.i.b16 %v2576_v60, %v2576_v60 }
 0x2bc   :  { %v10188_v6 = vadd.f32 %v2189_v14, %v2161_v61  ;;  %v7080_v14 = vor.u32 %v8650_v27, %v7077_v36  ;;  %2504 = vmatpush.bf16.msra.mxu3 %v7208_v31  ;;  %v6952_v48 = vor.u32 %v8618_v38, %v6949_v0  ;;  %v8610_v23 = vld [vmem:[#allocation10 + $0xc] sm:$0xf] }
 0x2bd   :  { %2445 = vmatpush.bf16.msrb.mxu1 %v6968_v40  ;;  %2533 = vmatpush.bf16.msrb.mxu0 %v7336_v5  ;;  %v8706_v31 = vld [vmem:[#allocation10 + $0x30c] sm:$0xf] }
 0x2be   :  { %2475 = vmatpush.bf16.msra.mxu2 %v7080_v14  ;;  %v6917_v14 = vld [vmem:[#allocation10 + $0x18] sm:$0xf0] }
 0x2bf   :  { %v6920_v34 = vor.u32 %v8610_v23, %v6917_v14  ;;  %v7531_v14 = vld [vmem:[#allocation11 + $0xe0] sm:$0xf] }
 0x2c0   :  { %2505 = vmatpush.bf16.msra.mxu3 %v7192_v28 }
 0x2c1   :  { %v2162_v62 = vpop.f32.mrf.mxu3  ;;  %2446 = vmatpush.bf16.msrb.mxu1 %v6952_v48  ;;  %2534 = vmatpush.bf16.msrb.mxu0 %v7320_v55 }
 0x2c2   :  { %v2163_v19 = vadd.f32 %v2162_v62, %v2134_v1  ;;  %v8646_v1 = vld [vmem:[#allocation10 + $0x12c] sm:$0xf] }
 0x2c3   :  { %v7064_v30 = vor.u32 %v8646_v1, %v7061_v7 }
 0x2c4   :  { %v10190_v47 = vadd.f32 %v2191_v58, %v2163_v19  ;;  %2333 = vmatmul.bf16.vlgmr.msra.gmra.mxu1 %v9966_v8  ;;  %2362 = vmatmul.bf16.vlgmr.msrb.gmra.mxu2 %v9976_v44  ;;  %v8614_v58 = vld [vmem:[#allocation10 + $0x2c] sm:$0xf] }
 0x2c5   :  { %2476 = vmatpush.bf16.msra.mxu2 %v7064_v30  ;;  %v6936_v11 = vor.u32 %v8614_v58, %v6933_v2  ;;  %2506 = vmatpush.bf16.msra.mxu3 %v7176_v33 }
 0x2c7   :  { %2420 = vmatmul.bf16.vlgmr.msra.gmra.mxu0 %v9998_v20  ;;  %2447 = vmatpush.bf16.msrb.mxu1 %v6936_v11 }
 0x2c8   :  { %2391 = vmatmul.bf16.vlgmr.msrb.gmra.mxu3 %v9996_v37 }
 0x2c9   :  { %2477 = vmatpush.bf16.msra.mxu2 %v7048_v32 }
 0x2cb   :  { %2448 = vmatpush.bf16.msrb.mxu1 %v6920_v34 }
 0x2d1   :  { %v2107_v49 = vpop.f32.mrf.mxu1 }
 0x2d4   :  { %v2194_v61 = vpop.f32.mrf.mxu0  ;;  %2338 = vmatmul.bf16.gmra.mxu1 %v10084_v10  ;;  %2367 = vmatmul.bf16.gmra.mxu2 %v10086_v3 }
 0x2d7   :  { %2425 = vmatmul.bf16.gmra.mxu0 %v10100_v46  ;;  %v2136_v57 = vpop.f32.mrf.mxu2 }
 0x2d8   :  { %2396 = vmatmul.bf16.gmra.mxu3 %v10098_v4  ;;  %v2137_v45 = vadd.f32 %v2136_v57, %v2107_v49  ;;  %v7304_v49 = vor.u32 %v8706_v31, %v7301_v15  ;;  %v8767_v31 = vld [vmem:[#allocation11 + $0xec] sm:$0xf0] }
 0x2d9   :  { %v2109_v56 = vpop.f32.mrf.mxu1  ;;  %v8799_v15 = vld [vmem:[#allocation11 + $0x1ec] sm:$0xf0] }
 0x2da   :  { %2535 = vmatpush.bf16.msrb.mxu0 %v7304_v49 }
 0x2db   :  { %v2165_v25 = vpop.f32.mrf.mxu3 }
 0x2dc   :  { %v2166_v62 = vadd.f32 %v2165_v25, %v2137_v45  ;;  %v2196_v63 = vpop.f32.mrf.mxu0 }
 0x2de   :  { %v10200_v19 = vadd.f32 %v2194_v61, %v2166_v62 }
 0x2df   :  { %v2138_v9 = vpop.f32.mrf.mxu2 }
 0x2e0   :  { %v2139_v42 = vadd.f32 %v2138_v9, %v2109_v56  ;;  %v2577_v9 = vld [vmem:[#allocation1 + $0x9] sm:$0xff] }
 0x2e1   :  { %v2112_v12 = vpop.f32.mrf.mxu1  ;;  %v2583_v24 = vpack.i.b16 %v2577_v9, %v2577_v9 }
 0x2e3   :  { %v2167_v27 = vpop.f32.mrf.mxu3 }
 0x2e4   :  { %v2168_v40 = vadd.f32 %v2167_v27, %v2139_v42  ;;  %v2199_v36 = vpop.f32.mrf.mxu0  ;;  %2343 = vmatmul.bf16.gmra.mxu1 %v10119_v13  ;;  %2372 = vmatmul.bf16.gmra.mxu2 %v10121_v29 }
 0x2e6   :  { %v10204_v16 = vadd.f32 %v2196_v63, %v2168_v40  ;;  %v2582_v40 = vperm.slane %v2580_v52, 0 }
 0x2e7   :  { %2430 = vmatmul.bf16.gmra.mxu0 %v10135_v59  ;;  %v2141_v53 = vpop.f32.mrf.mxu2 }
 0x2e8   :  { %2401 = vmatmul.bf16.gmra.mxu3 %v10133_v50  ;;  %v2142_v61 = vadd.f32 %v2141_v53, %v2112_v12 }
 0x2e9   :  { %v2114_v38 = vpop.f32.mrf.mxu1 }
 0x2eb   :  { %v2170_v0 = vpop.f32.mrf.mxu3 }
 0x2ec   :  { %v2171_v48 = vadd.f32 %v2170_v0, %v2142_v61  ;;  %v2201_v57 = vpop.f32.mrf.mxu0  ;;  %v10225_v61 = vunpack.c.l.bf16 %v2582_v40  ;;  %v7515_v0 = vld [vmem:[#allocation11 + $0xc0] sm:$0xf]  ;;  %v8787_v40 = vld [vmem:[#allocation11 + $0x18c] sm:$0xf0] }
 0x2ee   :  { %v10208_v1 = vadd.f32 %v2199_v36, %v2171_v48  ;;  %v2585_v36 = vperm.slane %v2583_v24, 0  ;;  %v8763_v48 = vld [vmem:[#allocation11 + $0xcc] sm:$0xf0] }
 0x2ef   :  { %v2143_v7 = vpop.f32.mrf.mxu2 }
 0x2f0   :  { %v2144_v18 = vadd.f32 %v2143_v7, %v2114_v38 }
 0x2f1   :  { %v2117_v45 = vpop.f32.mrf.mxu1 }
 0x2f3   :  { %v2172_v30 = vpop.f32.mrf.mxu3 }
 0x2f4   :  { %v2173_v39 = vadd.f32 %v2172_v30, %v2144_v18  ;;  %v2204_v54 = vpop.f32.mrf.mxu0  ;;  %2348 = vmatmul.bf16.gmra.mxu1 %v10152_v21  ;;  %2377 = vmatmul.bf16.gmra.mxu2 %v10154_v35  ;;  %v7516_v18 = vor.u32 %v8763_v48, %v7515_v0  ;;  %v8783_v48 = vld [vmem:[#allocation11 + $0x16c] sm:$0xf0] }
 0x2f6   :  { %v10212_v17 = vadd.f32 %v2201_v57, %v2173_v39  ;;  %v7643_v57 = vld [vmem:[#allocation11 + $0x1c0] sm:$0xf] }
 0x2f7   :  { %2435 = vmatmul.bf16.gmra.mxu0 %v10166_v22  ;;  %v2146_v56 = vpop.f32.mrf.mxu2 }
 0x2f8   :  { %2406 = vmatmul.bf16.gmra.mxu3 %v10164_v43  ;;  %v2147_v28 = vadd.f32 %v2146_v56, %v2117_v45  ;;  %v8795_v45 = vld [vmem:[#allocation11 + $0x1cc] sm:$0xf0] }
 0x2f9   :  { %v2119_v5 = vpop.f32.mrf.mxu1  ;;  %v7644_v56 = vor.u32 %v8795_v45, %v7643_v57 }
 0x2fb   :  { %v2175_v25 = vpop.f32.mrf.mxu3 }
 0x2fc   :  { %v2176_v62 = vadd.f32 %v2175_v25, %v2147_v28  ;;  %v2206_v63 = vpop.f32.mrf.mxu0 }
 0x2fe   :  { %v10216_v58 = vadd.f32 %v2204_v54, %v2176_v62  ;;  %v7499_v62 = vld [vmem:[#allocation11 + $0xa0] sm:$0xf] }
 0x2ff   :  { %v2148_v2 = vpop.f32.mrf.mxu2 }
 0x300   :  { %v2149_v26 = vadd.f32 %v2148_v2, %v2119_v5  ;;  %v7627_v2 = vld [vmem:[#allocation11 + $0x1a0] sm:$0xf] }
 0x301   :  { %v2218_v11 = vpop.f32.mrf.mxu1 }
 0x303   :  { %v2177_v41 = vpop.f32.mrf.mxu3 }
 0x304   :  { %v2178_v51 = vadd.f32 %v2177_v41, %v2149_v26  ;;  %v2305_v32 = vpop.f32.mrf.mxu0  ;;  %2449 = vmatmul.bf16.vlgmr.msrb.gmra.mxu1 %v9966_v8  ;;  %2478 = vmatmul.bf16.vlgmr.msra.gmra.mxu2 %v9976_v44  ;;  %v7659_v8 = vld [vmem:[#allocation11 + $0x1e0] sm:$0xf]  ;;  %v7532_v44 = vor.u32 %v8767_v31, %v7531_v14  ;;  %v8791_v41 = vld [vmem:[#allocation11 + $0x1ac] sm:$0xf0] }
 0x305   :  { %v7660_v49 = vor.u32 %v8799_v15, %v7659_v8  ;;  %v7628_v9 = vor.u32 %v8791_v41, %v7627_v2  ;;  %v8779_v2 = vld [vmem:[#allocation11 + $0x14c] sm:$0xf0] }
 0x306   :  { %v10220_v55 = vadd.f32 %v2206_v63, %v2178_v51  ;;  %3764 = vmatpush.bf16.msra.mxu1 %v7532_v44  ;;  %v8759_v63 = vld [vmem:[#allocation11 + $0xac] sm:$0xf0] }
 0x307   :  { %2536 = vmatmul.bf16.vlgmr.msrb.gmra.mxu0 %v9998_v20  ;;  %v2247_v42 = vpop.f32.mrf.mxu2  ;;  %v10227_v20 = vunpack.c.l.bf16 %v2585_v36  ;;  %3793 = vmatpush.bf16.msrb.mxu2 %v7660_v49  ;;  %v8751_v49 = vld [vmem:[#allocation11 + $0x6c] sm:$0xf0] }
 0x308   :  { %2507 = vmatmul.bf16.vlgmr.msra.gmra.mxu3 %v9996_v37  ;;  %v2248_v33 = vadd.f32 %v2247_v42, %v2218_v11  ;;  %v7500_v11 = vor.u32 %v8759_v63, %v7499_v62 }
 0x309   :  { %v2220_v12 = vpop.f32.mrf.mxu1 }
 0x30a   :  { %3765 = vmatpush.bf16.msra.mxu1 %v7516_v18 }
 0x30b   :  { %v2276_v27 = vpop.f32.mrf.mxu3  ;;  %3794 = vmatpush.bf16.msrb.mxu2 %v7644_v56 }
 0x30c   :  { %v2277_v23 = vadd.f32 %v2276_v27, %v2248_v33  ;;  %v2307_v34 = vpop.f32.mrf.mxu0  ;;  %v7483_v33 = vld [vmem:[#allocation11 + $0x80] sm:$0xf] }
 0x30e   :  { %v2306_v53 = vadd.f32 %v2305_v32, %v2277_v23  ;;  %3766 = vmatpush.bf16.msra.mxu1 %v7500_v11 }
 0x30f   :  { %v2249_v38 = vpop.f32.mrf.mxu2  ;;  %3795 = vmatpush.bf16.msrb.mxu2 %v7628_v9 }
 0x310   :  { %v2558_v37 = vpack.c.bf16 %v2306_v53, %v10188_v6  ;;  %v2250_v7 = vadd.f32 %v2249_v38, %v2220_v12  ;;  %v8755_v12 = vld [vmem:[#allocation11 + $0x8c] sm:$0xf0]  ;;  %v7467_v53 = vld [vmem:[#allocation11 + $0x60] sm:$0xf] }
 0x311   :  { %v2223_v54 = vpop.f32.mrf.mxu1  ;;  %v7468_v0 = vor.u32 %v8751_v49, %v7467_v53  ;;  %v8739_v53 = vld [vmem:[#allocation11 + $0xc] sm:$0xf0]  ;;  %v7547_v49 = vld [vmem:[#allocation11 + $0x100] sm:$0xf] }
 0x312   :  { %v2592_v30 = vunpack.c.l.bf16 %v2558_v37  ;;  %v2593_v39 = vunpack.c.h.bf16 %v2558_v37  ;;  %v7595_v37 = vld [vmem:[#allocation11 + $0x160] sm:$0xf] }
 0x313   :  { %v2278_v28 = vpop.f32.mrf.mxu3  ;;  %v7596_v45 = vor.u32 %v8783_v48, %v7595_v37 }
 0x314   :  { %v2628_v6 = vadd.f32 %v10225_v61, %v2592_v30  ;;  %v2629_v5 = vadd.f32 %v10227_v20, %v2593_v39  ;;  %v2279_v25 = vadd.f32 %v2278_v28, %v2250_v7  ;;  %v2310_v26 = vpop.f32.mrf.mxu0  ;;  %2454 = vmatmul.bf16.gmra.mxu1 %v10084_v10  ;;  %2483 = vmatmul.bf16.gmra.mxu2 %v10086_v3  ;;  %v7611_v10 = vld [vmem:[#allocation11 + $0x180] sm:$0xf] }
 0x315   :  { %v7484_v3 = vor.u32 %v8755_v12, %v7483_v33  ;;  %v7435_v33 = vld [vmem:[#allocation11 + $0x20] sm:$0xf]  ;;  %v8743_v12 = vld [vmem:[#allocation11 + $0x2c] sm:$0xf0] }
 0x316   :  { %v2660_v51 = vpack.c.bf16 %v2629_v5, %v2628_v6  ;;  %v2308_v60 = vadd.f32 %v2307_v34, %v2279_v25  ;;  %v7451_v6 = vld [vmem:[#allocation11 + $0x40] sm:$0xf]  ;;  %v8747_v5 = vld [vmem:[#allocation11 + $0x4c] sm:$0xf0] }
 0x317   :  { %2541 = vmatmul.bf16.gmra.mxu0 %v10100_v46  ;;  %v2252_v42 = vpop.f32.mrf.mxu2  ;;  %3767 = vmatpush.bf16.msra.mxu1 %v7484_v3  ;;  %v7579_v25 = vld [vmem:[#allocation11 + $0x140] sm:$0xf]  ;;  %v7452_v63 = vor.u32 %v8747_v5, %v7451_v6  ;;  %v7436_v3 = vor.u32 %v8743_v12, %v7435_v33 }
 0x318   :  { %v2676_v32 = vunpack.c.l.bf16 %v2660_v51  ;;  %v2677_v52 = vunpack.c.h.bf16 %v2660_v51  ;;  %v2560_v24 = vpack.c.bf16 %v2308_v60, %v10190_v47  ;;  %2512 = vmatmul.bf16.gmra.mxu3 %v10098_v4  ;;  %v2253_v27 = vadd.f32 %v2252_v42, %v2223_v54 }
 0x319   :  { %v2225_v8 = vpop.f32.mrf.mxu1  ;;  %v7612_v47 = vor.u32 %v8787_v40, %v7611_v10  ;;  %v7563_v10 = vld [vmem:[#allocation11 + $0x120] sm:$0xf]  ;;  %v8775_v40 = vld [vmem:[#allocation11 + $0x12c] sm:$0xf0] }
 0x31a   :  { %v2708_v36 = vmul.f32 0.5, %v2676_v32  ;;  %v2709_v23 = vmul.f32 0.5, %v2677_v52  ;;  %v2596_v14 = vunpack.c.l.bf16 %v2560_v24  ;;  %v2597_v31 = vunpack.c.h.bf16 %v2560_v24 }
 0x31b   :  { %v2281_v34 = vpop.f32.mrf.mxu3  ;;  %3796 = vmatpush.bf16.msrb.mxu2 %v7612_v47  ;;  %3768 = vmatpush.bf16.msra.mxu1 %v7468_v0  ;;  %v7580_v32 = vor.u32 %v8779_v2, %v7579_v25  ;;  %v8771_v0 = vld [vmem:[#allocation11 + $0x10c] sm:$0xf0] }
 0x31c   :  { %v10236_v44 = vpack.c.bf16 %v2709_v23, %v2708_v36  ;;  %v2632_v4 = vadd.f32 %v10225_v61, %v2596_v14  ;;  %v2633_v46 = vadd.f32 %v10227_v20, %v2597_v31  ;;  %v2282_v15 = vadd.f32 %v2281_v34, %v2253_v27  ;;  %v2312_v38 = vpop.f32.mrf.mxu0 }
 0x31e   :  { %v2757_v57 = vunpack.c.h.bf16 %v10236_v44  ;;  %v2662_v7 = vpack.c.bf16 %v2633_v46, %v2632_v4  ;;  %v2311_v18 = vadd.f32 %v2310_v26, %v2282_v15  ;;  %v2756_v30 = vunpack.c.l.bf16 %v10236_v44  ;;  %v7419_v15 = vld [vmem:[#allocation11] sm:$0xf] }
 0x31f   :  { %v2254_v28 = vpop.f32.mrf.mxu2  ;;  %3797 = vmatpush.bf16.msrb.mxu2 %v7596_v45  ;;  %3769 = vmatpush.bf16.msra.mxu1 %v7452_v63 }
 0x320   :  { %9160 = vtanh.f32 %v2757_v57  ;;  %v2680_v39 = vunpack.c.l.bf16 %v2662_v7  ;;  %v2681_v54 = vunpack.c.h.bf16 %v2662_v7  ;;  %v2562_v56 = vpack.c.bf16 %v2311_v18, %v10200_v19 }
 0x321   :  { %v2255_v62 = vadd.f32 %v2254_v28, %v2225_v8  ;;  %9162 = vtanh.f32 %v2756_v30  ;;  %v2228_v60 = vpop.f32.mrf.mxu1  ;;  %v7564_v8 = vor.u32 %v8775_v40, %v7563_v10 }
 0x322   :  { %v2712_v26 = vmul.f32 0.5, %v2680_v39  ;;  %v2713_v11 = vmul.f32 0.5, %v2681_v54  ;;  %v2600_v41 = vunpack.c.l.bf16 %v2562_v56  ;;  %v2601_v51 = vunpack.c.h.bf16 %v2562_v56 }
 0x323   :  { %v2283_v9 = vpop.f32.mrf.mxu3  ;;  %3798 = vmatpush.bf16.msrb.mxu2 %v7580_v32  ;;  %3770 = vmatpush.bf16.msra.mxu1 %v7436_v3 }
 0x324   :  { %v10247_v19 = vpack.c.bf16 %v2713_v11, %v2712_v26  ;;  %v2636_v52 = vadd.f32 %v10225_v61, %v2600_v41  ;;  %v2637_v24 = vadd.f32 %v10227_v20, %v2601_v51  ;;  %v2284_v42 = vadd.f32 %v2283_v9, %v2255_v62  ;;  %v2315_v27 = vpop.f32.mrf.mxu0  ;;  %2459 = vmatmul.bf16.gmra.mxu1 %v10119_v13 }
 0x325   :  { %2488 = vmatmul.bf16.gmra.mxu2 %v10121_v29 }
 0x326   :  { %v9161_v36 = vpop.eup %9160  ;;  %v2761_v23 = vunpack.c.h.bf16 %v10247_v19  ;;  %v2664_v14 = vpack.c.bf16 %v2637_v24, %v2636_v52  ;;  %v2313_v31 = vadd.f32 %v2312_v38, %v2284_v42  ;;  %v2760_v47 = vunpack.c.l.bf16 %v10247_v19 }
 0x327   :  { %v9163_v34 = vpop.eup %9162  ;;  %2546 = vmatmul.bf16.gmra.mxu0 %v10135_v59  ;;  %v2257_v46 = vpop.f32.mrf.mxu2  ;;  %v7420_v38 = vor.u32 %v8739_v53, %v7419_v15  ;;  %3799 = vmatpush.bf16.msrb.mxu2 %v7564_v8  ;;  %v7548_v59 = vor.u32 %v8771_v0, %v7547_v49 }
 0x328   :  { %9164 = vtanh.f32 %v2761_v23  ;;  %v2684_v4 = vunpack.c.l.bf16 %v2664_v14  ;;  %v2685_v13 = vunpack.c.h.bf16 %v2664_v14  ;;  %v2564_v29 = vpack.c.bf16 %v2313_v31, %v10204_v16  ;;  %2517 = vmatmul.bf16.gmra.mxu3 %v10133_v50 }
 0x329   :  { %v2258_v37 = vadd.f32 %v2257_v46, %v2228_v60  ;;  %9166 = vtanh.f32 %v2760_v47  ;;  %v2820_v48 = vpack.c.bf16 %v9161_v36, %v9163_v34  ;;  %v2230_v16 = vpop.f32.mrf.mxu1  ;;  %3771 = vmatpush.bf16.msra.mxu1 %v7420_v38 }
 0x32a   :  { %v2716_v7 = vmul.f32 0.5, %v2684_v4  ;;  %v2717_v18 = vmul.f32 0.5, %v2685_v13  ;;  %v2604_v45 = vunpack.c.l.bf16 %v2564_v29  ;;  %v2605_v39 = vunpack.c.h.bf16 %v2564_v29 }
 0x32b   :  { %v2286_v50 = vpop.f32.mrf.mxu3  ;;  %v2836_v54 = vunpack.c.l.bf16 %v2820_v48  ;;  %v2837_v56 = vunpack.c.h.bf16 %v2820_v48  ;;  %3800 = vmatpush.bf16.msrb.mxu2 %v7548_v59 }
 0x32c   :  { %v2640_v28 = vadd.f32 %v10225_v61, %v2604_v45  ;;  %v2641_v6 = vadd.f32 %v10227_v20, %v2605_v39  ;;  %v2287_v5 = vadd.f32 %v2286_v50, %v2258_v37  ;;  %v10264_v25 = vpack.c.bf16 %v2717_v18, %v2716_v7  ;;  %v2317_v62 = vpop.f32.mrf.mxu0 }
 0x32d   :  { %v2868_v41 = vadd.f32 1.0, %v2836_v54  ;;  %v2869_v51 = vadd.f32 1.0, %v2837_v56 }
 0x32e   :  { %v9165_v63 = vpop.eup %9164  ;;  %v2666_v2 = vpack.c.bf16 %v2641_v6, %v2640_v28  ;;  %v2316_v26 = vadd.f32 %v2315_v27, %v2287_v5  ;;  %v2764_v60 = vunpack.c.l.bf16 %v10264_v25  ;;  %v2765_v12 = vunpack.c.h.bf16 %v10264_v25 }
 0x32f   :  { %v9167_v11 = vpop.eup %9166  ;;  %v2259_v24 = vpop.f32.mrf.mxu2  ;;  %v2900_v34 = vpack.c.bf16 %v2869_v51, %v2868_v41 }
 0x330   :  { %v2688_v9 = vunpack.c.l.bf16 %v2666_v2  ;;  %v2689_v32 = vunpack.c.h.bf16 %v2666_v2  ;;  %v2566_v52 = vpack.c.bf16 %v2316_v26, %v10208_v1  ;;  %v2822_v42 = vpack.c.bf16 %v9165_v63, %v9167_v11 }
 0x331   :  { %v2260_v33 = vadd.f32 %v2259_v24, %v2230_v16  ;;  %v2233_v27 = vpop.f32.mrf.mxu1  ;;  %9168 = vtanh.f32 %v2764_v60  ;;  %v2916_v7 = vunpack.c.l.bf16 %v2900_v34  ;;  %v2917_v18 = vunpack.c.h.bf16 %v2900_v34 }
 0x332   :  { %v2720_v10 = vmul.f32 0.5, %v2688_v9  ;;  %v2721_v3 = vmul.f32 0.5, %v2689_v32  ;;  %v2608_v40 = vunpack.c.l.bf16 %v2566_v52  ;;  %v2609_v36 = vunpack.c.h.bf16 %v2566_v52 }
 0x333   :  { %v2288_v14 = vpop.f32.mrf.mxu3  ;;  %v2840_v31 = vunpack.c.l.bf16 %v2822_v42  ;;  %v2841_v8 = vunpack.c.h.bf16 %v2822_v42  ;;  %9170 = vtanh.f32 %v2765_v12  ;;  %v2949_v2 = vmul.f32 %v2917_v18, %v2757_v57 }
 0x334   :  { %v2644_v4 = vadd.f32 %v10225_v61, %v2608_v40  ;;  %v2645_v1 = vadd.f32 %v10227_v20, %v2609_v36  ;;  %v2289_v13 = vadd.f32 %v2288_v14, %v2260_v33  ;;  %v10273_v29 = vpack.c.bf16 %v2721_v3, %v2720_v10  ;;  %v2320_v46 = vpop.f32.mrf.mxu0  ;;  %2464 = vmatmul.bf16.gmra.mxu1 %v10152_v21 }
 0x335   :  { %2493 = vmatmul.bf16.gmra.mxu2 %v10154_v35  ;;  %v2872_v15 = vadd.f32 1.0, %v2840_v31  ;;  %v2873_v53 = vadd.f32 1.0, %v2841_v8 }
 0x336   :  { %v2668_v49 = vpack.c.bf16 %v2645_v1, %v2644_v4  ;;  %v2318_v37 = vadd.f32 %v2317_v62, %v2289_v13  ;;  %v2768_v38 = vunpack.c.l.bf16 %v10273_v29  ;;  %v2769_v0 = vunpack.c.h.bf16 %v10273_v29 }
 0x337   :  { %v2902_v48 = vpack.c.bf16 %v2873_v53, %v2872_v15  ;;  %2551 = vmatmul.bf16.gmra.mxu0 %v10166_v22  ;;  %v2262_v35 = vpop.f32.mrf.mxu2  ;;  %v9169_v16 = vpop.eup %9168  ;;  %v2948_v22 = vmul.f32 %v2916_v7, %v2756_v30 }
 0x338   :  { %v2692_v45 = vunpack.c.l.bf16 %v2668_v49  ;;  %v2693_v39 = vunpack.c.h.bf16 %v2668_v49  ;;  %v2568_v21 = vpack.c.bf16 %v2318_v37, %v10212_v17  ;;  %2522 = vmatmul.bf16.gmra.mxu3 %v10164_v43  ;;  %9172 = vtanh.f32 %v2768_v38 }
 0x339   :  { %v2263_v50 = vadd.f32 %v2262_v35, %v2233_v27  ;;  %v2920_v59 = vunpack.c.l.bf16 %v2902_v48  ;;  %v2921_v54 = vunpack.c.h.bf16 %v2902_v48  ;;  %9174 = vtanh.f32 %v2769_v0  ;;  %v2235_v17 = vpop.f32.mrf.mxu1  ;;  %v9171_v62 = vpop.eup %9170 }
 0x33a   :  { %v2724_v56 = vmul.f32 0.5, %v2692_v45  ;;  %v2725_v28 = vmul.f32 0.5, %v2693_v39  ;;  %v2612_v6 = vunpack.c.l.bf16 %v2568_v21  ;;  %v2613_v5 = vunpack.c.h.bf16 %v2568_v21 }
 0x33b   :  { %v2291_v43 = vpop.f32.mrf.mxu3  ;;  %v2952_v63 = vmul.f32 %v2920_v59, %v2760_v47  ;;  %v2953_v26 = vmul.f32 %v2921_v54, %v2761_v23  ;;  %v2824_v9 = vpack.c.bf16 %v9171_v62, %v9169_v16 }
 0x33c   :  { %v2648_v11 = vadd.f32 %v10225_v61, %v2612_v6  ;;  %v2649_v41 = vadd.f32 %v10227_v20, %v2613_v5  ;;  %v2292_v51 = vadd.f32 %v2291_v43, %v2263_v50  ;;  %v2322_v32 = vpop.f32.mrf.mxu0  ;;  %v10302_v30 = vpack.c.bf16 %v2725_v28, %v2724_v56  ;;  %v8765_v6 = vld [vmem:[#allocation11 + $0xe4] sm:$0xf]  ;;  %v7533_v5 = vld [vmem:[#allocation11 + $0xf0] sm:$0xf0] }
 0x33d   :  { %v10298_v52 = vpack.c.bf16 %v2952_v63, %v2948_v22  ;;  %v10300_v24 = vpack.c.bf16 %v2953_v26, %v2949_v2  ;;  %v2844_v57 = vunpack.c.l.bf16 %v2824_v9  ;;  %v2845_v33 = vunpack.c.h.bf16 %v2824_v9  ;;  %v7661_v9 = vld [vmem:[#allocation11 + $0x1f0] sm:$0xf0] }
 0x33e   :  { %v9173_v47 = vpop.eup %9172  ;;  %v2670_v42 = vpack.c.bf16 %v2649_v41, %v2648_v11  ;;  %v2321_v44 = vadd.f32 %v2320_v46, %v2292_v51  ;;  %v2772_v23 = vunpack.c.l.bf16 %v10302_v30  ;;  %v2773_v10 = vunpack.c.h.bf16 %v10302_v30  ;;  %v8797_v51 = vld [vmem:[#allocation11 + $0x1e4] sm:$0xf] }
 0x33f   :  { %v9175_v19 = vpop.eup %9174  ;;  %v2264_v27 = vpop.f32.mrf.mxu2  ;;  %v2876_v8 = vadd.f32 1.0, %v2844_v57  ;;  %v2877_v34 = vadd.f32 1.0, %v2845_v33  ;;  %v7536_v63 = vor.u32 %v8765_v6, %v7533_v5  ;;  %v8789_v6 = vld [vmem:[#allocation11 + $0x1a4] sm:$0xf]  ;;  %v7629_v5 = vld [vmem:[#allocation11 + $0x1b0] sm:$0xf0] }
 0x340   :  { %v2696_v3 = vunpack.c.l.bf16 %v2670_v42  ;;  %v2697_v40 = vunpack.c.h.bf16 %v2670_v42  ;;  %v2570_v36 = vpack.c.bf16 %v2321_v44, %v10216_v58  ;;  %v2826_v14 = vpack.c.bf16 %v9175_v19, %v9173_v47 }
 0x341   :  { %v2265_v31 = vadd.f32 %v2264_v27, %v2235_v17  ;;  %9176 = vtanh.f32 %v2772_v23  ;;  %v2334_v15 = vpop.f32.mrf.mxu1  ;;  %v2904_v48 = vpack.c.bf16 %v2877_v34, %v2876_v8  ;;  %3880 = vmatpush.bf16.msrb.mxu1 %v7536_v63 }
 0x342   :  { %v2728_v4 = vmul.f32 0.5, %v2696_v3  ;;  %v2729_v1 = vmul.f32 0.5, %v2697_v40  ;;  %v2616_v13 = vunpack.c.l.bf16 %v2570_v36  ;;  %v2617_v46 = vunpack.c.h.bf16 %v2570_v36 }
 0x343   :  { %v2293_v53 = vpop.f32.mrf.mxu3  ;;  %v2848_v49 = vunpack.c.l.bf16 %v2826_v14  ;;  %v2849_v37 = vunpack.c.h.bf16 %v2826_v14  ;;  %9178 = vtanh.f32 %v2773_v10  ;;  %v2924_v16 = vunpack.c.l.bf16 %v2904_v48 }
 0x344   :  { %v2652_v58 = vadd.f32 %v10225_v61, %v2616_v13  ;;  %v2653_v7 = vadd.f32 %v10227_v20, %v2617_v46  ;;  %v2294_v18 = vadd.f32 %v2293_v53, %v2265_v31  ;;  %v10313_v45 = vpack.c.bf16 %v2729_v1, %v2728_v4  ;;  %v2421_v39 = vpop.f32.mrf.mxu0  ;;  %3772 = vmatmul.bf16.vlgmr.msra.gmra.mxu1 %v10298_v52  ;;  %v8793_v53 = vld [vmem:[#allocation11 + $0x1c4] sm:$0xf] }
 0x345   :  { %3801 = vmatmul.bf16.vlgmr.msrb.gmra.mxu2 %v10300_v24  ;;  %v2880_v21 = vadd.f32 1.0, %v2848_v49  ;;  %v2881_v35 = vadd.f32 1.0, %v2849_v37  ;;  %v2925_v50 = vunpack.c.h.bf16 %v2904_v48  ;;  %v2956_v43 = vmul.f32 %v2924_v16, %v2764_v60 }
 0x346   :  { %v2672_v59 = vpack.c.bf16 %v2653_v7, %v2652_v58  ;;  %v2323_v54 = vadd.f32 %v2322_v32, %v2294_v18  ;;  %v2776_v56 = vunpack.c.l.bf16 %v10313_v45  ;;  %v2777_v28 = vunpack.c.h.bf16 %v10313_v45  ;;  %v7645_v7 = vld [vmem:[#allocation11 + $0x1d0] sm:$0xf0]  ;;  %v8757_v18 = vld [vmem:[#allocation11 + $0xa4] sm:$0xf] }
 0x347   :  { %v9177_v17 = vpop.eup %9176  ;;  %v2906_v62 = vpack.c.bf16 %v2881_v35, %v2880_v21  ;;  %v2957_v22 = vmul.f32 %v2925_v50, %v2765_v12  ;;  %v2363_v41 = vpop.f32.mrf.mxu2  ;;  %v7664_v36 = vor.u32 %v8797_v51, %v7661_v9  ;;  %v8745_v45 = vld [vmem:[#allocation11 + $0x44] sm:$0xf] }
 0x348   :  { %v2700_v2 = vunpack.c.l.bf16 %v2672_v59  ;;  %v2701_v26 = vunpack.c.h.bf16 %v2672_v59  ;;  %v2572_v11 = vpack.c.bf16 %v2323_v54, %v10220_v55  ;;  %9180 = vtanh.f32 %v2776_v56 }
 0x349   :  { %v9179_v32 = vpop.eup %9178  ;;  %v2364_v47 = vadd.f32 %v2363_v41, %v2334_v15  ;;  %v2928_v42 = vunpack.c.l.bf16 %v2906_v62  ;;  %v2929_v44 = vunpack.c.h.bf16 %v2906_v62  ;;  %9182 = vtanh.f32 %v2777_v28  ;;  %v2336_v33 = vpop.f32.mrf.mxu1  ;;  %3909 = vmatpush.bf16.msra.mxu2 %v7664_v36  ;;  %v8761_v15 = vld [vmem:[#allocation11 + $0xc4] sm:$0xf]  ;;  %v7613_v36 = vld [vmem:[#allocation11 + $0x190] sm:$0xf0] }
 0x34a   :  { %v2732_v25 = vmul.f32 0.5, %v2700_v2  ;;  %v2733_v60 = vmul.f32 0.5, %v2701_v26  ;;  %v2620_v12 = vunpack.c.l.bf16 %v2572_v11  ;;  %v2621_v57 = vunpack.c.h.bf16 %v2572_v11 }
 0x34b   :  { %v2392_v55 = vpop.f32.mrf.mxu3  ;;  %v2960_v19 = vmul.f32 %v2928_v42, %v2768_v38  ;;  %v2961_v3 = vmul.f32 %v2929_v44, %v2769_v0  ;;  %v2828_v40 = vpack.c.bf16 %v9179_v32, %v9177_v17  ;;  %v7648_v54 = vor.u32 %v8793_v53, %v7645_v7 }
 0x34c   :  { %v2656_v27 = vadd.f32 %v10225_v61, %v2620_v12  ;;  %v2657_v14 = vadd.f32 %v10227_v20, %v2621_v57  ;;  %v2393_v31 = vadd.f32 %v2392_v55, %v2364_v47  ;;  %v10334_v8 = vpack.c.bf16 %v2733_v60, %v2732_v25  ;;  %v10336_v34 = vpop.f32.mrf.mxu0  ;;  %v7517_v61 = vld [vmem:[#allocation11 + $0xd0] sm:$0xf0]  ;;  %v8753_v12 = vld [vmem:[#allocation11 + $0x84] sm:$0xf] }
 0x34d   :  { %v10338_v4 = vpack.c.bf16 %v2960_v19, %v2956_v43  ;;  %v10340_v1 = vpack.c.bf16 %v2961_v3, %v2957_v22  ;;  %v2852_v13 = vunpack.c.l.bf16 %v2828_v40  ;;  %v2853_v38 = vunpack.c.h.bf16 %v2828_v40  ;;  %3910 = vmatpush.bf16.msra.mxu2 %v7648_v54  ;;  %v7485_v57 = vld [vmem:[#allocation11 + $0x90] sm:$0xf0] }
 0x34e   :  { %v9181_v29 = vpop.eup %9180  ;;  %v2674_v0 = vpack.c.bf16 %v2657_v14, %v2656_v27  ;;  %v10342_v46 = vadd.f32 %v2421_v39, %v2393_v31  ;;  %v2780_v20 = vunpack.c.l.bf16 %v10334_v8  ;;  %v7520_v58 = vor.u32 %v8761_v15, %v7517_v61  ;;  %v7501_v39 = vld [vmem:[#allocation11 + $0xb0] sm:$0xf0]  ;;  %v8749_v27 = vld [vmem:[#allocation11 + $0x64] sm:$0xf] }
 0x34f   :  { %v9183_v49 = vpop.eup %9182  ;;  %v2884_v37 = vadd.f32 1.0, %v2852_v13  ;;  %v2885_v48 = vadd.f32 1.0, %v2853_v38  ;;  %v2781_v21 = vunpack.c.h.bf16 %v10334_v8  ;;  %v2365_v50 = vpop.f32.mrf.mxu2  ;;  %v7504_v43 = vor.u32 %v8757_v18, %v7501_v39  ;;  %v7469_v14 = vld [vmem:[#allocation11 + $0x70] sm:$0xf0] }
 0x350   :  { %v2704_v35 = vunpack.c.l.bf16 %v2674_v0  ;;  %v2705_v16 = vunpack.c.h.bf16 %v2674_v0  ;;  %v2830_v59 = vpack.c.bf16 %v9183_v49, %v9181_v29  ;;  %v10346_v17 = vadd.f32 %v2365_v50, %v2336_v33  ;;  %3881 = vmatpush.bf16.msrb.mxu1 %v7520_v58  ;;  %v8785_v33 = vld [vmem:[#allocation11 + $0x184] sm:$0xf]  ;;  %v7597_v15 = vld [vmem:[#allocation11 + $0x170] sm:$0xf0] }
 0x351   :  { %v2908_v62 = vpack.c.bf16 %v2885_v48, %v2884_v37  ;;  %v7632_v22 = vor.u32 %v8789_v6, %v7629_v5  ;;  %v2339_v26 = vpop.f32.mrf.mxu1  ;;  %9184 = vtanh.f32 %v2780_v20  ;;  %v7488_v40 = vor.u32 %v8753_v12, %v7485_v57  ;;  %v8781_v0 = vld [vmem:[#allocation11 + $0x164] sm:$0xf] }
 0x352   :  { %v2736_v63 = vmul.f32 0.5, %v2704_v35  ;;  %v2737_v2 = vmul.f32 0.5, %v2705_v16  ;;  %v2856_v11 = vunpack.c.l.bf16 %v2830_v59  ;;  %v2857_v41 = vunpack.c.h.bf16 %v2830_v59  ;;  %v8777_v5 = vld [vmem:[#allocation11 + $0x144] sm:$0xf] }
 0x353   :  { %v10348_v51 = vpop.f32.mrf.mxu3  ;;  %v2932_v9 = vunpack.c.l.bf16 %v2908_v62  ;;  %v2933_v25 = vunpack.c.h.bf16 %v2908_v62  ;;  %9186 = vtanh.f32 %v2781_v21  ;;  %3911 = vmatpush.bf16.msra.mxu2 %v7632_v22  ;;  %v7616_v29 = vor.u32 %v8785_v33, %v7613_v36  ;;  %v7581_v22 = vld [vmem:[#allocation11 + $0x150] sm:$0xf0]  ;;  %v8773_v57 = vld [vmem:[#allocation11 + $0x124] sm:$0xf] }
 0x354   :  { %v2888_v32 = vadd.f32 1.0, %v2856_v11  ;;  %v2889_v47 = vadd.f32 1.0, %v2857_v41  ;;  %v10352_v42 = vpack.c.bf16 %v2737_v2, %v2736_v63  ;;  %v2426_v44 = vpop.f32.mrf.mxu0  ;;  %3777 = vmatmul.bf16.gmra.mxu1 %v10338_v4  ;;  %v7600_v7 = vor.u32 %v8781_v0, %v7597_v15  ;;  %v7787_v63 = vld [vmem:[#allocation11 + $0x2e0] sm:$0xf]  ;;  %v8831_v2 = vld [vmem:[#allocation11 + $0x2ec] sm:$0xf0] }
 0x355   :  { %3806 = vmatmul.bf16.gmra.mxu2 %v10340_v1  ;;  %3882 = vmatpush.bf16.msrb.mxu1 %v7504_v43  ;;  %v2964_v3 = vmul.f32 %v2932_v9, %v2772_v23  ;;  %v2965_v49 = vmul.f32 %v2933_v25, %v2773_v10  ;;  %v7472_v23 = vor.u32 %v8749_v27, %v7469_v14  ;;  %v7565_v33 = vld [vmem:[#allocation11 + $0x130] sm:$0xf0] }
 0x356   :  { %v2910_v60 = vpack.c.bf16 %v2889_v47, %v2888_v32  ;;  %v2784_v55 = vunpack.c.l.bf16 %v10352_v42  ;;  %v2785_v19 = vunpack.c.h.bf16 %v10352_v42  ;;  %v7584_v32 = vor.u32 %v8777_v5, %v7581_v22  ;;  %v8741_v47 = vld [vmem:[#allocation11 + $0x24] sm:$0xf] }
 0x357   :  { %v2368_v31 = vpop.f32.mrf.mxu2  ;;  %v9185_v61 = vpop.eup %9184  ;;  %3912 = vmatpush.bf16.msra.mxu2 %v7616_v29  ;;  %v7568_v14 = vor.u32 %v8773_v57, %v7565_v33 }
 0x358   :  { %v2936_v13 = vunpack.c.l.bf16 %v2910_v60  ;;  %v2937_v38 = vunpack.c.h.bf16 %v2910_v60  ;;  %9188 = vtanh.f32 %v2784_v55  ;;  %v2369_v53 = vadd.f32 %v2368_v31, %v2339_v26 }
 0x359   :  { %9190 = vtanh.f32 %v2785_v19  ;;  %v2341_v37 = vpop.f32.mrf.mxu1  ;;  %3883 = vmatpush.bf16.msrb.mxu1 %v7488_v40  ;;  %v9187_v18 = vpop.eup %9186  ;;  %v7788_v60 = vor.u32 %v8831_v2, %v7787_v63 }
 0x35a   :  { %v2968_v48 = vmul.f32 %v2936_v13, %v2776_v56  ;;  %v2969_v58 = vmul.f32 %v2937_v38, %v2777_v28  ;;  %v2832_v10 = vpack.c.bf16 %v9187_v18, %v9185_v61  ;;  %v7453_v28 = vld [vmem:[#allocation11 + $0x50] sm:$0xf0] }
 0x35b   :  { %v2397_v35 = vpop.f32.mrf.mxu3  ;;  %3913 = vmatpush.bf16.msra.mxu2 %v7600_v7  ;;  %v7456_v43 = vor.u32 %v8745_v45, %v7453_v28  ;;  %3822 = vmatpush.bf16.msrb.mxu3 %v7788_v60  ;;  %v8827_v7 = vld [vmem:[#allocation11 + $0x2cc] sm:$0xf0] }
 0x35c   :  { %v2398_v16 = vadd.f32 %v2397_v35, %v2369_v53  ;;  %v10372_v50 = vpack.c.bf16 %v2968_v48, %v2964_v3  ;;  %v10374_v30 = vpack.c.bf16 %v2969_v58, %v2965_v49  ;;  %v10376_v59 = vpop.f32.mrf.mxu0  ;;  %v2860_v56 = vunpack.c.l.bf16 %v2832_v10  ;;  %v8737_v53 = vld [vmem:[#allocation11 + $0x4] sm:$0xf]  ;;  %v7421_v49 = vld [vmem:[#allocation11 + $0x10] sm:$0xf0]  ;;  %v7771_v58 = vld [vmem:[#allocation11 + $0x2c0] sm:$0xf] }
 0x35d   :  { %v2861_v6 = vunpack.c.h.bf16 %v2832_v10  ;;  %3884 = vmatpush.bf16.msrb.mxu1 %v7472_v23  ;;  %v8769_v23 = vld [vmem:[#allocation11 + $0x104] sm:$0xf]  ;;  %v7549_v48 = vld [vmem:[#allocation11 + $0x110] sm:$0xf0] }
 0x35e   :  { %v9189_v54 = vpop.eup %9188  ;;  %v10378_v39 = vadd.f32 %v2426_v44, %v2398_v16  ;;  %v2892_v41 = vadd.f32 1.0, %v2860_v56  ;;  %v7437_v44 = vld [vmem:[#allocation11 + $0x30] sm:$0xf0]  ;;  %v7552_v10 = vor.u32 %v8769_v23, %v7549_v48  ;;  %v7915_v56 = vld [vmem:[#allocation11 + $0x3e0] sm:$0xf] }
 0x35f   :  { %v9191_v62 = vpop.eup %9190  ;;  %v2370_v26 = vpop.f32.mrf.mxu2  ;;  %v2893_v9 = vadd.f32 1.0, %v2861_v6  ;;  %v7440_v12 = vor.u32 %v8741_v47, %v7437_v44  ;;  %3914 = vmatpush.bf16.msra.mxu2 %v7584_v32  ;;  %v8863_v6 = vld [vmem:[#allocation11 + $0x3ec] sm:$0xf0] }
 0x360   :  { %v2834_v11 = vpack.c.bf16 %v9191_v62, %v9189_v54  ;;  %v10380_v25 = vadd.f32 %v2370_v26, %v2341_v37  ;;  %v7424_v37 = vor.u32 %v8737_v53, %v7421_v49  ;;  %v7772_v54 = vor.u32 %v8827_v7, %v7771_v58  ;;  %v7739_v7 = vld [vmem:[#allocation11 + $0x280] sm:$0xf] }
 0x361   :  { %v2344_v3 = vpop.f32.mrf.mxu1  ;;  %v2912_v27 = vpack.c.bf16 %v2893_v9, %v2892_v41  ;;  %3885 = vmatpush.bf16.msrb.mxu1 %v7456_v43  ;;  %v7916_v5 = vor.u32 %v8863_v6, %v7915_v56 }
 0x362   :  { %v2864_v40 = vunpack.c.l.bf16 %v2834_v11  ;;  %v2865_v36 = vunpack.c.h.bf16 %v2834_v11  ;;  %3823 = vmatpush.bf16.msrb.mxu3 %v7772_v54  ;;  %v8855_v54 = vld [vmem:[#allocation11 + $0x3ac] sm:$0xf0] }
 0x363   :  { %v10382_v31 = vpop.f32.mrf.mxu3  ;;  %v2940_v0 = vunpack.c.l.bf16 %v2912_v27  ;;  %v2941_v61 = vunpack.c.h.bf16 %v2912_v27  ;;  %3915 = vmatpush.bf16.msra.mxu2 %v7568_v14  ;;  %3851 = vmatpush.bf16.msra.mxu0 %v7916_v5  ;;  %v4228_v27 = vld [vmem:[#allocation13] sm:$0xf] }
 0x364   :  { %v2896_v13 = vadd.f32 1.0, %v2864_v40  ;;  %v2897_v38 = vadd.f32 1.0, %v2865_v36  ;;  %v2431_v29 = vpop.f32.mrf.mxu0  ;;  %3782 = vmatmul.bf16.gmra.mxu1 %v10372_v50  ;;  %v2579_v40 = vld [vmem:[#allocation1 + $0x1b] sm:$0xff]  ;;  %v7755_v14 = vld [vmem:[#allocation11 + $0x2a0] sm:$0xf] }
 0x365   :  { %3811 = vmatmul.bf16.gmra.mxu2 %v10374_v30  ;;  %3886 = vmatpush.bf16.msrb.mxu1 %v7440_v12  ;;  %v2972_v28 = vmul.f32 %v2940_v0, %v2780_v20  ;;  %v2973_v22 = vmul.f32 %v2941_v61, %v2781_v21  ;;  %v7899_v0 = vld [vmem:[#allocation11 + $0x3c0] sm:$0xf]  ;;  %v2589_v48 = vpack.i.b16 %v2579_v40, %v2579_v40 }
 0x366   :  { %v2914_v15 = vpack.c.bf16 %v2897_v38, %v2896_v13  ;;  %v8823_v13 = vld [vmem:[#allocation11 + $0x2ac] sm:$0xf0]  ;;  %v7867_v5 = vld [vmem:[#allocation11 + $0x380] sm:$0xf] }
 0x367   :  { %v2373_v18 = vpop.f32.mrf.mxu2  ;;  %3916 = vmatpush.bf16.msra.mxu2 %v7552_v10 }
 0x368   :  { %v2944_v35 = vunpack.c.l.bf16 %v2914_v15  ;;  %v2945_v16 = vunpack.c.h.bf16 %v2914_v15  ;;  %v2374_v45 = vadd.f32 %v2373_v18, %v2344_v3  ;;  %v2578_v3 = vld [vmem:[#allocation1 + $0x12] sm:$0xff]  ;;  %v8859_v15 = vld [vmem:[#allocation11 + $0x3cc] sm:$0xf0] }
 0x369   :  { %v2346_v62 = vpop.f32.mrf.mxu1  ;;  %3887 = vmatpush.bf16.msrb.mxu1 %v7424_v37  ;;  %4246 = vst [vmem:[#allocation1] ss:$9 sm:$0xff] %v4228_v27  ;;  %v7900_v53 = vor.u32 %v8859_v15, %v7899_v0  ;;  %v2586_v37 = vpack.i.b16 %v2578_v3, %v2578_v3  ;;  %v8819_v18 = vld [vmem:[#allocation11 + $0x28c] sm:$0xf0]  ;;  %v7651_v0 = vld [vmem:[#allocation11 + $0x1c8] sm:$0xf]  ;;  %v2395_v15 = vadd.f32 %v10348_v51, %v10346_v17 }
 0x36a   :  { %v2976_v43 = vmul.f32 %v2944_v35, %v2784_v55  ;;  %v2977_v63 = vmul.f32 %v2945_v16, %v2785_v19  ;;  %v7883_v35 = vld [vmem:[#allocation11 + $0x3a0] sm:$0xf]  ;;  %v7740_v10 = vor.u32 %v8819_v18, %v7739_v7  ;;  %v8811_v7 = vld [vmem:[#allocation11 + $0x24c] sm:$0xf0]  ;;  %v7507_v51 = vld [vmem:[#allocation11 + $0xa8] sm:$0xf] }
 0x36b   :  { %v2402_v2 = vpop.f32.mrf.mxu3  ;;  %3852 = vmatpush.bf16.msra.mxu0 %v7900_v53  ;;  %v7884_v6 = vor.u32 %v8855_v54, %v7883_v35  ;;  %v7851_v18 = vld [vmem:[#allocation11 + $0x360] sm:$0xf]  ;;  %v8847_v54 = vld [vmem:[#allocation11 + $0x36c] sm:$0xf0] }
 0x36c   :  { %v2403_v26 = vadd.f32 %v2402_v2, %v2374_v45  ;;  %v10394_v11 = vpack.c.bf16 %v2976_v43, %v2972_v28  ;;  %v10396_v20 = vpack.c.bf16 %v2977_v63, %v2973_v22  ;;  %v10398_v41 = vpop.f32.mrf.mxu0  ;;  %v7723_v45 = vld [vmem:[#allocation11 + $0x260] sm:$0xf]  ;;  %v8815_v28 = vld [vmem:[#allocation11 + $0x26c] sm:$0xf0]  ;;  %v2588_v43 = vperm.slane %v2586_v37, 0 }
 0x36d   :  { %v2591_v22 = vperm.slane %v2589_v48, 0  ;;  %v7724_v63 = vor.u32 %v8815_v28, %v7723_v45  ;;  %v8851_v2 = vld [vmem:[#allocation11 + $0x38c] sm:$0xf0]  ;;  %v7852_v17 = vor.u32 %v8847_v54, %v7851_v18 }
 0x36e   :  { %v10400_v9 = vadd.f32 %v2431_v29, %v2403_v26  ;;  %v7756_v29 = vor.u32 %v8823_v13, %v7755_v14  ;;  %v7523_v13 = vld [vmem:[#allocation11 + $0xc8] sm:$0xf] }
 0x36f   :  { %v2375_v55 = vpop.f32.mrf.mxu2  ;;  %3853 = vmatpush.bf16.msra.mxu0 %v7884_v6  ;;  %v10421_v27 = vunpack.c.l.bf16 %v2591_v22 }
 0x370   :  { %v10402_v8 = vadd.f32 %v2375_v55, %v2346_v62  ;;  %3824 = vmatpush.bf16.msrb.mxu3 %v7756_v29  ;;  %v7868_v55 = vor.u32 %v8851_v2, %v7867_v5  ;;  %v8764_v29 = vld [vmem:[#allocation11 + $0xd4] sm:$0xf0]  ;;  %v7635_v5 = vld [vmem:[#allocation11 + $0x1a8] sm:$0xf] }
 0x371   :  { %v2349_v21 = vpop.f32.mrf.mxu1  ;;  %v7524_v53 = vor.u32 %v8764_v29, %v7523_v13 }
 0x373   :  { %v10404_v42 = vpop.f32.mrf.mxu3  ;;  %3854 = vmatpush.bf16.msra.mxu0 %v7868_v55 }
 0x374   :  { %v2436_v19 = vpop.f32.mrf.mxu0  ;;  %3787 = vmatmul.bf16.gmra.mxu1 %v10394_v11  ;;  %3825 = vmatpush.bf16.msrb.mxu3 %v7740_v10 }
 0x375   :  { %3816 = vmatmul.bf16.gmra.mxu2 %v10396_v20 }
 0x377   :  { %v2378_v32 = vpop.f32.mrf.mxu2  ;;  %3855 = vmatpush.bf16.msra.mxu0 %v7852_v17  ;;  %v7603_v17 = vld [vmem:[#allocation11 + $0x168] sm:$0xf] }
 0x378   :  { %v2379_v47 = vadd.f32 %v2378_v32, %v2349_v21  ;;  %v7539_v21 = vld [vmem:[#allocation11 + $0xe8] sm:$0xf]  ;;  %3826 = vmatpush.bf16.msrb.mxu3 %v7724_v63  ;;  %v8792_v63 = vld [vmem:[#allocation11 + $0x1b4] sm:$0xf0] }
 0x379   :  { %v2351_v44 = vpop.f32.mrf.mxu1  ;;  %v7667_v32 = vld [vmem:[#allocation11 + $0x1e8] sm:$0xf]  ;;  %v7636_v55 = vor.u32 %v8792_v63, %v7635_v5 }
 0x37b   :  { %v2407_v60 = vpop.f32.mrf.mxu3 }
 0x37c   :  { %v2408_v12 = vadd.f32 %v2407_v60, %v2379_v47  ;;  %v10408_v57 = vpop.f32.mrf.mxu0  ;;  %v8800_v60 = vld [vmem:[#allocation11 + $0x1f4] sm:$0xf0] }
 0x37d   :  { %v7668_v3 = vor.u32 %v8800_v60, %v7667_v32 }
 0x37e   :  { %v10410_v33 = vadd.f32 %v2436_v19, %v2408_v12  ;;  %v8768_v19 = vld [vmem:[#allocation11 + $0xf4] sm:$0xf0] }
 0x37f   :  { %v2380_v36 = vpop.f32.mrf.mxu2  ;;  %4025 = vmatpush.bf16.msrb.mxu2 %v7668_v3  ;;  %v7491_v3 = vld [vmem:[#allocation11 + $0x88] sm:$0xf] }
 0x380   :  { %v10412_v38 = vadd.f32 %v2380_v36, %v2351_v44  ;;  %v7540_v44 = vor.u32 %v8768_v19, %v7539_v21  ;;  %v10419_v36 = vunpack.c.l.bf16 %v2588_v43  ;;  %v7835_v21 = vld [vmem:[#allocation11 + $0x340] sm:$0xf]  ;;  %v8843_v19 = vld [vmem:[#allocation11 + $0x34c] sm:$0xf0] }
 0x381   :  { %v2450_v61 = vpop.f32.mrf.mxu1 }
 0x382   :  { %3996 = vmatpush.bf16.msra.mxu1 %v7540_v44 }
 0x383   :  { %v10414_v49 = vpop.f32.mrf.mxu3 }
 0x384   :  { %v2537_v23 = vpop.f32.mrf.mxu0  ;;  %3888 = vmatmul.bf16.vlgmr.msrb.gmra.mxu1 %v10298_v52 }
 0x385   :  { %3917 = vmatmul.bf16.vlgmr.msra.gmra.mxu2 %v10300_v24 }
 0x386   :  { %3997 = vmatpush.bf16.msra.mxu1 %v7524_v53 }
 0x387   :  { %v2479_v58 = vpop.f32.mrf.mxu2 }
 0x388   :  { %v2480_v16 = vadd.f32 %v2479_v58, %v2450_v61 }
 0x389   :  { %v2452_v56 = vpop.f32.mrf.mxu1 }
 0x38b   :  { %v2508_v62 = vpop.f32.mrf.mxu3 }
 0x38c   :  { %v2509_v26 = vadd.f32 %v2508_v62, %v2480_v16  ;;  %v2539_v47 = vpop.f32.mrf.mxu0  ;;  %v2424_v62 = vadd.f32 %v10336_v34, %v2395_v15  ;;  %v7836_v34 = vor.u32 %v8843_v19, %v7835_v21  ;;  %v7675_v21 = vld [vmem:[#allocation11 + $0x200] sm:$0xf]  ;;  %v8803_v19 = vld [vmem:[#allocation11 + $0x20c] sm:$0xf0] }
 0x38e   :  { %v2538_v12 = vadd.f32 %v2537_v23, %v2509_v26  ;;  %v8796_v23 = vld [vmem:[#allocation11 + $0x1d4] sm:$0xf0]  ;;  %3856 = vmatpush.bf16.msra.mxu0 %v7836_v34 }
 0x38f   :  { %v2481_v14 = vpop.f32.mrf.mxu2  ;;  %v7652_v35 = vor.u32 %v8796_v23, %v7651_v0  ;;  %v8788_v0 = vld [vmem:[#allocation11 + $0x194] sm:$0xf0] }
 0x390   :  { %v2559_v40 = vpack.c.bf16 %v2538_v12, %v10342_v46  ;;  %v2482_v61 = vadd.f32 %v2481_v14, %v2452_v56  ;;  %v7707_v46 = vld [vmem:[#allocation11 + $0x240] sm:$0xf]  ;;  %v8760_v56 = vld [vmem:[#allocation11 + $0xb4] sm:$0xf0]  ;;  %v7619_v14 = vld [vmem:[#allocation11 + $0x188] sm:$0xf] }
 0x391   :  { %v2455_v58 = vpop.f32.mrf.mxu1  ;;  %v7708_v10 = vor.u32 %v8811_v7, %v7707_v46  ;;  %4026 = vmatpush.bf16.msrb.mxu2 %v7652_v35  ;;  %v7508_v22 = vor.u32 %v8760_v56, %v7507_v51  ;;  %v7620_v18 = vor.u32 %v8788_v0, %v7619_v14  ;;  %v7819_v35 = vld [vmem:[#allocation11 + $0x320] sm:$0xf]  ;;  %v8748_v14 = vld [vmem:[#allocation11 + $0x54] sm:$0xf0]  ;;  %v7587_v0 = vld [vmem:[#allocation11 + $0x148] sm:$0xf] }
 0x392   :  { %v2594_v37 = vunpack.c.l.bf16 %v2559_v40  ;;  %v2595_v48 = vunpack.c.h.bf16 %v2559_v40  ;;  %v8756_v40 = vld [vmem:[#allocation11 + $0x94] sm:$0xf0] }
 0x393   :  { %v2510_v16 = vpop.f32.mrf.mxu3  ;;  %3827 = vmatpush.bf16.msrb.mxu3 %v7708_v10  ;;  %3998 = vmatpush.bf16.msra.mxu1 %v7508_v22  ;;  %v7492_v29 = vor.u32 %v8756_v40, %v7491_v3  ;;  %v7459_v40 = vld [vmem:[#allocation11 + $0x48] sm:$0xf] }
 0x394   :  { %v2630_v6 = vadd.f32 %v10419_v36, %v2594_v37  ;;  %v2631_v45 = vadd.f32 %v10421_v27, %v2595_v48  ;;  %v2511_v28 = vadd.f32 %v2510_v16, %v2482_v61  ;;  %v2542_v43 = vpop.f32.mrf.mxu0  ;;  %3893 = vmatmul.bf16.gmra.mxu1 %v10338_v4  ;;  %v7691_v37 = vld [vmem:[#allocation11 + $0x220] sm:$0xf]  ;;  %v8807_v48 = vld [vmem:[#allocation11 + $0x22c] sm:$0xf0] }
 0x395   :  { %3922 = vmatmul.bf16.gmra.mxu2 %v10340_v1  ;;  %v7692_v7 = vor.u32 %v8807_v48, %v7691_v37  ;;  %v8839_v16 = vld [vmem:[#allocation11 + $0x32c] sm:$0xf0] }
 0x396   :  { %v2661_v2 = vpack.c.bf16 %v2631_v45, %v2630_v6  ;;  %v2540_v26 = vadd.f32 %v2539_v47, %v2511_v28  ;;  %4027 = vmatpush.bf16.msrb.mxu2 %v7636_v55  ;;  %v7475_v45 = vld [vmem:[#allocation11 + $0x68] sm:$0xf]  ;;  %v8752_v28 = vld [vmem:[#allocation11 + $0x74] sm:$0xf0]  ;;  %v7820_v56 = vor.u32 %v8839_v16, %v7819_v35  ;;  %v2400_v55 = vadd.f32 %v10382_v31, %v10380_v25 }
 0x397   :  { %v2484_v12 = vpop.f32.mrf.mxu2  ;;  %3999 = vmatpush.bf16.msra.mxu1 %v7492_v29  ;;  %3828 = vmatpush.bf16.msrb.mxu3 %v7692_v7  ;;  %v7476_v5 = vor.u32 %v8752_v28, %v7475_v45  ;;  %v7676_v25 = vor.u32 %v8803_v19, %v7675_v21  ;;  %v7460_v29 = vor.u32 %v8748_v14, %v7459_v40  ;;  %v7443_v16 = vld [vmem:[#allocation11 + $0x28] sm:$0xf]  ;;  %v8776_v28 = vld [vmem:[#allocation11 + $0x134] sm:$0xf0] }
 0x398   :  { %v2678_v32 = vunpack.c.l.bf16 %v2661_v2  ;;  %v2679_v44 = vunpack.c.h.bf16 %v2661_v2  ;;  %v2561_v60 = vpack.c.bf16 %v2540_v26, %v2424_v62  ;;  %v2485_v13 = vadd.f32 %v2484_v12, %v2455_v58  ;;  %v8784_v62 = vld [vmem:[#allocation11 + $0x174] sm:$0xf0]  ;;  %3857 = vmatpush.bf16.msra.mxu0 %v7820_v56 }
 0x399   :  { %v2457_v23 = vpop.f32.mrf.mxu1  ;;  %v7604_v26 = vor.u32 %v8784_v62, %v7603_v17 }
 0x39a   :  { %v2710_v15 = vmul.f32 0.5, %v2678_v32  ;;  %v2711_v47 = vmul.f32 0.5, %v2679_v44  ;;  %v2598_v61 = vunpack.c.l.bf16 %v2561_v60  ;;  %v2599_v53 = vunpack.c.h.bf16 %v2561_v60  ;;  %4028 = vmatpush.bf16.msrb.mxu2 %v7620_v18  ;;  %v7803_v32 = vld [vmem:[#allocation11 + $0x300] sm:$0xf] }
 0x39b   :  { %v2513_v46 = vpop.f32.mrf.mxu3  ;;  %4000 = vmatpush.bf16.msra.mxu1 %v7476_v5  ;;  %3829 = vmatpush.bf16.msrb.mxu3 %v7676_v25 }
 0x39c   :  { %v10430_v10 = vpack.c.bf16 %v2711_v47, %v2710_v15  ;;  %v2634_v58 = vadd.f32 %v10419_v36, %v2598_v61  ;;  %v2635_v54 = vadd.f32 %v10421_v27, %v2599_v53  ;;  %v2514_v6 = vadd.f32 %v2513_v46, %v2485_v13  ;;  %v2544_v51 = vpop.f32.mrf.mxu0  ;;  %v8780_v15 = vld [vmem:[#allocation11 + $0x154] sm:$0xf0] }
 0x39e   :  { %v2759_v22 = vunpack.c.h.bf16 %v10430_v10  ;;  %v2663_v63 = vpack.c.bf16 %v2635_v54, %v2634_v58  ;;  %v2543_v2 = vadd.f32 %v2542_v43, %v2514_v6  ;;  %v2758_v44 = vunpack.c.l.bf16 %v10430_v10  ;;  %v8835_v43 = vld [vmem:[#allocation11 + $0x30c] sm:$0xf0]  ;;  %4029 = vmatpush.bf16.msrb.mxu2 %v7604_v26  ;;  %v8744_v58 = vld [vmem:[#allocation11 + $0x34] sm:$0xf0]  ;;  %v7571_v54 = vld [vmem:[#allocation11 + $0x128] sm:$0xf] }
 0x39f   :  { %v2486_v3 = vpop.f32.mrf.mxu2  ;;  %v7804_v31 = vor.u32 %v8835_v43, %v7803_v32  ;;  %4001 = vmatpush.bf16.msra.mxu1 %v7460_v29  ;;  %v2429_v6 = vadd.f32 %v10376_v59, %v2400_v55  ;;  %v7444_v45 = vor.u32 %v8744_v58, %v7443_v16  ;;  %v7572_v26 = vor.u32 %v8776_v28, %v7571_v54  ;;  %v7427_v32 = vld [vmem:[#allocation11 + $0x8] sm:$0xf]  ;;  %v8772_v43 = vld [vmem:[#allocation11 + $0x114] sm:$0xf0]  ;;  %v8829_v29 = vld [vmem:[#allocation11 + $0x2e4] sm:$0xf] }
 0x3a0   :  { %9192 = vtanh.f32 %v2759_v22  ;;  %v2682_v60 = vunpack.c.l.bf16 %v2663_v63  ;;  %v2683_v12 = vunpack.c.h.bf16 %v2663_v63  ;;  %v2563_v34 = vpack.c.bf16 %v2543_v2, %v10378_v39 }
 0x3a1   :  { %v2487_v13 = vadd.f32 %v2486_v3, %v2457_v23  ;;  %v2460_v48 = vpop.f32.mrf.mxu1  ;;  %3858 = vmatpush.bf16.msra.mxu0 %v7804_v31  ;;  %v7588_v39 = vor.u32 %v8780_v15, %v7587_v0  ;;  %9194 = vtanh.f32 %v2758_v44  ;;  %v7789_v0 = vld [vmem:[#allocation11 + $0x2f0] sm:$0xf0]  ;;  %v2405_v15 = vadd.f32 %v10404_v42, %v10402_v8 }
 0x3a2   :  { %v2714_v47 = vmul.f32 0.5, %v2682_v60  ;;  %v2715_v61 = vmul.f32 0.5, %v2683_v12  ;;  %v2602_v53 = vunpack.c.l.bf16 %v2563_v34  ;;  %v2603_v37 = vunpack.c.h.bf16 %v2563_v34  ;;  %v8740_v60 = vld [vmem:[#allocation11 + $0x14] sm:$0xf0]  ;;  %v7555_v12 = vld [vmem:[#allocation11 + $0x108] sm:$0xf] }
 0x3a3   :  { %v2515_v46 = vpop.f32.mrf.mxu3  ;;  %4030 = vmatpush.bf16.msrb.mxu2 %v7588_v39  ;;  %4002 = vmatpush.bf16.msra.mxu1 %v7444_v45  ;;  %v10466_v45 = vadd.f32 %v10414_v49, %v10412_v38 }
 0x3a4   :  { %v10443_v7 = vpack.c.bf16 %v2715_v61, %v2714_v47  ;;  %v2638_v23 = vadd.f32 %v10419_v36, %v2602_v53  ;;  %v2639_v18 = vadd.f32 %v10421_v27, %v2603_v37  ;;  %v2516_v35 = vadd.f32 %v2515_v46, %v2487_v13  ;;  %3898 = vmatmul.bf16.gmra.mxu1 %v10372_v50  ;;  %v2547_v2 = vpop.f32.mrf.mxu0 }
 0x3a5   :  { %3927 = vmatmul.bf16.gmra.mxu2 %v10374_v30  ;;  %v7792_v53 = vor.u32 %v8829_v29, %v7789_v0  ;;  %v7556_v37 = vor.u32 %v8772_v43, %v7555_v12 }
 0x3a6   :  { %v9193_v17 = vpop.eup %9192  ;;  %v2763_v56 = vunpack.c.h.bf16 %v10443_v7  ;;  %v2665_v5 = vpack.c.bf16 %v2639_v18, %v2638_v23  ;;  %v2545_v62 = vadd.f32 %v2544_v51, %v2516_v35  ;;  %v2762_v63 = vunpack.c.l.bf16 %v10443_v7 }
 0x3a7   :  { %v9195_v34 = vpop.eup %9194  ;;  %v7428_v51 = vor.u32 %v8740_v60, %v7427_v32  ;;  %4031 = vmatpush.bf16.msrb.mxu2 %v7572_v26  ;;  %3938 = vmatpush.bf16.msra.mxu3 %v7792_v53  ;;  %v8857_v53 = vld [vmem:[#allocation11 + $0x3c4] sm:$0xf] }
 0x3a8   :  { %9196 = vtanh.f32 %v2763_v56  ;;  %v2686_v59 = vunpack.c.l.bf16 %v2665_v5  ;;  %v2687_v55 = vunpack.c.h.bf16 %v2665_v5  ;;  %v2565_v21 = vpack.c.bf16 %v2545_v62, %v2429_v6  ;;  %v2489_v19 = vpop.f32.mrf.mxu2 }
 0x3a9   :  { %v2490_v3 = vadd.f32 %v2489_v19, %v2460_v48  ;;  %9198 = vtanh.f32 %v2762_v63  ;;  %v2462_v31 = vpop.f32.mrf.mxu1  ;;  %v2821_v61 = vpack.c.bf16 %v9193_v17, %v9195_v34  ;;  %4003 = vmatpush.bf16.msra.mxu1 %v7428_v51  ;;  %v2434_v6 = vadd.f32 %v10398_v41, %v2405_v15  ;;  %v8825_v34 = vld [vmem:[#allocation11 + $0x2c4] sm:$0xf] }
 0x3aa   :  { %v2718_v40 = vmul.f32 0.5, %v2686_v59  ;;  %v2719_v14 = vmul.f32 0.5, %v2687_v55  ;;  %v2606_v13 = vunpack.c.l.bf16 %v2565_v21  ;;  %v2607_v25 = vunpack.c.h.bf16 %v2565_v21 }
 0x3ab   :  { %v2518_v47 = vpop.f32.mrf.mxu3  ;;  %v2838_v18 = vunpack.c.l.bf16 %v2821_v61  ;;  %v2839_v35 = vunpack.c.h.bf16 %v2821_v61  ;;  %4032 = vmatpush.bf16.msrb.mxu2 %v7556_v37  ;;  %v7757_v61 = vld [vmem:[#allocation11 + $0x2b0] sm:$0xf0] }
 0x3ac   :  { %v2642_v48 = vadd.f32 %v10419_v36, %v2606_v13  ;;  %v2643_v46 = vadd.f32 %v10421_v27, %v2607_v25  ;;  %v2519_v39 = vadd.f32 %v2518_v47, %v2490_v3  ;;  %v10460_v23 = vpack.c.bf16 %v2719_v14, %v2718_v40  ;;  %v2549_v21 = vpop.f32.mrf.mxu0  ;;  %v7773_v3 = vld [vmem:[#allocation11 + $0x2d0] sm:$0xf0]  ;;  %v8861_v13 = vld [vmem:[#allocation11 + $0x3e4] sm:$0xf] }
 0x3ad   :  { %v2870_v28 = vadd.f32 1.0, %v2838_v18  ;;  %v2871_v17 = vadd.f32 1.0, %v2839_v35  ;;  %v7917_v25 = vld [vmem:[#allocation11 + $0x3f0] sm:$0xf0]  ;;  %v7776_v47 = vor.u32 %v8825_v34, %v7773_v3 }
 0x3ae   :  { %v9197_v16 = vpop.eup %9196  ;;  %v2667_v58 = vpack.c.bf16 %v2643_v46, %v2642_v48  ;;  %v2548_v54 = vadd.f32 %v2547_v2, %v2519_v39  ;;  %v2766_v8 = vunpack.c.l.bf16 %v10460_v23  ;;  %v2767_v32 = vunpack.c.h.bf16 %v10460_v23  ;;  %v7901_v37 = vld [vmem:[#allocation11 + $0x3d0] sm:$0xf0] }
 0x3af   :  { %v9199_v42 = vpop.eup %9198  ;;  %v2901_v19 = vpack.c.bf16 %v2871_v17, %v2870_v28  ;;  %3939 = vmatpush.bf16.msra.mxu3 %v7776_v47 }
 0x3b0   :  { %v2690_v5 = vunpack.c.l.bf16 %v2667_v58  ;;  %v2691_v62 = vunpack.c.h.bf16 %v2667_v58  ;;  %v2567_v26 = vpack.c.bf16 %v2548_v54, %v10400_v9  ;;  %v2491_v59 = vpop.f32.mrf.mxu2  ;;  %v2823_v55 = vpack.c.bf16 %v9197_v16, %v9199_v42 }
 0x3b1   :  { %v2492_v2 = vadd.f32 %v2491_v59, %v2462_v31  ;;  %9200 = vtanh.f32 %v2766_v8  ;;  %v2465_v12 = vpop.f32.mrf.mxu1  ;;  %v2918_v40 = vunpack.c.l.bf16 %v2901_v19  ;;  %v2919_v14 = vunpack.c.h.bf16 %v2901_v19  ;;  %v8821_v31 = vld [vmem:[#allocation11 + $0x2a4] sm:$0xf] }
 0x3b2   :  { %v2722_v41 = vmul.f32 0.5, %v2690_v5  ;;  %v2723_v60 = vmul.f32 0.5, %v2691_v62  ;;  %v2610_v38 = vunpack.c.l.bf16 %v2567_v26  ;;  %v2611_v49 = vunpack.c.h.bf16 %v2567_v26 }
 0x3b3   :  { %v2520_v51 = vpop.f32.mrf.mxu3  ;;  %v2842_v43 = vunpack.c.l.bf16 %v2823_v55  ;;  %v2843_v9 = vunpack.c.h.bf16 %v2823_v55  ;;  %v2950_v39 = vmul.f32 %v2918_v40, %v2758_v44  ;;  %v2951_v18 = vmul.f32 %v2919_v14, %v2759_v22  ;;  %v8817_v22 = vld [vmem:[#allocation11 + $0x284] sm:$0xf]  ;;  %v7741_v55 = vld [vmem:[#allocation11 + $0x290] sm:$0xf0] }
 0x3b4   :  { %v2646_v29 = vadd.f32 %v10419_v36, %v2610_v38  ;;  %v2647_v0 = vadd.f32 %v10421_v27, %v2611_v49  ;;  %v2521_v15 = vadd.f32 %v2520_v51, %v2492_v2  ;;  %3903 = vmatmul.bf16.gmra.mxu1 %v10394_v11  ;;  %v7920_v58 = vor.u32 %v8861_v13, %v7917_v25  ;;  %v8853_v51 = vld [vmem:[#allocation11 + $0x3a4] sm:$0xf] }
 0x3b5   :  { %3932 = vmatmul.bf16.gmra.mxu2 %v10396_v20  ;;  %v2874_v48 = vadd.f32 1.0, %v2842_v43  ;;  %v2875_v46 = vadd.f32 1.0, %v2843_v9  ;;  %v10480_v54 = vpack.c.bf16 %v2723_v60, %v2722_v41  ;;  %9202 = vtanh.f32 %v2767_v32  ;;  %v7885_v43 = vld [vmem:[#allocation11 + $0x3b0] sm:$0xf0] }
 0x3b6   :  { %v2669_v35 = vpack.c.bf16 %v2647_v0, %v2646_v29  ;;  %v2550_v16 = vadd.f32 %v2549_v21, %v2521_v15  ;;  %v7760_v17 = vor.u32 %v8821_v31, %v7757_v61  ;;  %v7904_v5 = vor.u32 %v8857_v53, %v7901_v37  ;;  %3967 = vmatpush.bf16.msrb.mxu0 %v7920_v58 }
 0x3b7   :  { %v9201_v42 = vpop.eup %9200  ;;  %v2903_v28 = vpack.c.bf16 %v2875_v46, %v2874_v48  ;;  %v2770_v10 = vunpack.c.l.bf16 %v10480_v54  ;;  %v2771_v41 = vunpack.c.h.bf16 %v10480_v54  ;;  %v7744_v14 = vor.u32 %v8817_v22, %v7741_v55  ;;  %v8813_v22 = vld [vmem:[#allocation11 + $0x264] sm:$0xf] }
 0x3b8   :  { %v2694_v62 = vunpack.c.l.bf16 %v2669_v35  ;;  %v2695_v26 = vunpack.c.h.bf16 %v2669_v35  ;;  %v2569_v59 = vpack.c.bf16 %v2550_v16, %v2434_v6  ;;  %v2494_v44 = vpop.f32.mrf.mxu2  ;;  %3940 = vmatpush.bf16.msra.mxu3 %v7760_v17  ;;  %v2552_v6 = vpop.f32.mrf.mxu0  ;;  %v7888_v7 = vor.u32 %v8853_v51, %v7885_v43 }
 0x3b9   :  { %v2495_v21 = vadd.f32 %v2494_v44, %v2465_v12  ;;  %v2922_v2 = vunpack.c.l.bf16 %v2903_v28  ;;  %v2923_v19 = vunpack.c.h.bf16 %v2903_v28  ;;  %v2467_v3 = vpop.f32.mrf.mxu1  ;;  %9204 = vtanh.f32 %v2770_v10 }
 0x3ba   :  { %v2726_v60 = vmul.f32 0.5, %v2694_v62  ;;  %v2727_v38 = vmul.f32 0.5, %v2695_v26  ;;  %v2614_v49 = vunpack.c.l.bf16 %v2569_v59  ;;  %v2615_v34 = vunpack.c.h.bf16 %v2569_v59  ;;  %3968 = vmatpush.bf16.msrb.mxu0 %v7904_v5 }
 0x3bb   :  { %v2523_v9 = vpop.f32.mrf.mxu3  ;;  %v2954_v40 = vmul.f32 %v2922_v2, %v2762_v63  ;;  %v2955_v12 = vmul.f32 %v2923_v19, %v2763_v56  ;;  %9206 = vtanh.f32 %v2771_v41  ;;  %v9203_v29 = vpop.eup %9202  ;;  %v2439_v58 = vadd.f32 %v10408_v57, %v10466_v45 }
 0x3bc   :  { %v2650_v13 = vadd.f32 %v10419_v36, %v2614_v49  ;;  %v2651_v25 = vadd.f32 %v10421_v27, %v2615_v34  ;;  %v2524_v31 = vadd.f32 %v2523_v9, %v2495_v21  ;;  %v10500_v56 = vpack.c.bf16 %v2727_v38, %v2726_v60  ;;  %3941 = vmatpush.bf16.msra.mxu3 %v7744_v14 }
 0x3bd   :  { %v10496_v0 = vpack.c.bf16 %v2954_v40, %v2950_v39  ;;  %v10498_v63 = vpack.c.bf16 %v2955_v12, %v2951_v18  ;;  %v2825_v61 = vpack.c.bf16 %v9203_v29, %v9201_v42 }
 0x3be   :  { %v2671_v15 = vpack.c.bf16 %v2651_v25, %v2650_v13  ;;  %v2553_v47 = vadd.f32 %v2552_v6, %v2524_v31  ;;  %v2774_v53 = vunpack.c.l.bf16 %v10500_v56  ;;  %v2775_v37 = vunpack.c.h.bf16 %v10500_v56  ;;  %3969 = vmatpush.bf16.msrb.mxu0 %v7888_v7  ;;  %v8778_v56 = vld [vmem:[#allocation11 + $0x14c] sm:$0xf] }
 0x3bf   :  { %3830 = vmatmul.bf16.vlgmr.msrb.gmra.mxu3 %v10496_v0  ;;  %3859 = vmatmul.bf16.vlgmr.msra.gmra.mxu0 %v10498_v63  ;;  %v2846_v35 = vunpack.c.l.bf16 %v2825_v61  ;;  %v9205_v16 = vpop.eup %9204  ;;  %v2847_v28 = vunpack.c.h.bf16 %v2825_v61 }
 0x3c0   :  { %v2698_v48 = vunpack.c.l.bf16 %v2671_v15  ;;  %v2699_v46 = vunpack.c.h.bf16 %v2671_v15  ;;  %v2571_v39 = vpack.c.bf16 %v2553_v47, %v10410_v33  ;;  %v2496_v18 = vpop.f32.mrf.mxu2  ;;  %9208 = vtanh.f32 %v2774_v53  ;;  %v7725_v33 = vld [vmem:[#allocation11 + $0x270] sm:$0xf0]  ;;  %v2554_v49 = vpop.f32.mrf.mxu0 }
 0x3c1   :  { %v2497_v42 = vadd.f32 %v2496_v18, %v2467_v3  ;;  %v9207_v17 = vpop.eup %9206  ;;  %v3773_v44 = vpop.f32.mrf.mxu1  ;;  %v2878_v2 = vadd.f32 1.0, %v2846_v35  ;;  %v2879_v19 = vadd.f32 1.0, %v2847_v28  ;;  %9210 = vtanh.f32 %v2775_v37  ;;  %v7709_v28 = vld [vmem:[#allocation11 + $0x250] sm:$0xf0] }
 0x3c2   :  { %v2730_v5 = vmul.f32 0.5, %v2698_v48  ;;  %v2731_v62 = vmul.f32 0.5, %v2699_v46  ;;  %v2618_v26 = vunpack.c.l.bf16 %v2571_v39  ;;  %v2619_v59 = vunpack.c.h.bf16 %v2571_v39  ;;  %v8849_v48 = vld [vmem:[#allocation11 + $0x384] sm:$0xf] }
 0x3c3   :  { %v2525_v55 = vpop.f32.mrf.mxu3  ;;  %v2827_v21 = vpack.c.bf16 %v9207_v17, %v9205_v16  ;;  %v2905_v51 = vpack.c.bf16 %v2879_v19, %v2878_v2  ;;  %v7728_v43 = vor.u32 %v8813_v22, %v7725_v33  ;;  %v7869_v16 = vld [vmem:[#allocation11 + $0x390] sm:$0xf0] }
 0x3c4   :  { %v2654_v57 = vadd.f32 %v10419_v36, %v2618_v26  ;;  %v2655_v45 = vadd.f32 %v10421_v27, %v2619_v59  ;;  %v2526_v60 = vadd.f32 %v2525_v55, %v2497_v42  ;;  %v10515_v38 = vpack.c.bf16 %v2731_v62, %v2730_v5  ;;  %4004 = vmatmul.bf16.vlgmr.msra.gmra.mxu1 %v10298_v52  ;;  %v8809_v42 = vld [vmem:[#allocation11 + $0x244] sm:$0xf]  ;;  %v7853_v33 = vld [vmem:[#allocation11 + $0x370] sm:$0xf0]  ;;  %v8766_v55 = vld [vmem:[#allocation11 + $0xec] sm:$0xf] }
 0x3c5   :  { %4033 = vmatmul.bf16.vlgmr.msrb.gmra.mxu2 %v10300_v24  ;;  %v2850_v34 = vunpack.c.l.bf16 %v2827_v21  ;;  %v2851_v3 = vunpack.c.h.bf16 %v2827_v21  ;;  %v2926_v31 = vunpack.c.l.bf16 %v2905_v51  ;;  %v2927_v29 = vunpack.c.h.bf16 %v2905_v51  ;;  %3942 = vmatpush.bf16.msra.mxu3 %v7728_v43  ;;  %v8845_v59 = vld [vmem:[#allocation11 + $0x364] sm:$0xf]  ;;  %v7541_v21 = vld [vmem:[#allocation11 + $0xf8] sm:$0xf0]  ;;  %v8762_v51 = vld [vmem:[#allocation11 + $0xcc] sm:$0xf] }
 0x3c6   :  { %v2673_v6 = vpack.c.bf16 %v2655_v45, %v2654_v57  ;;  %v2555_v9 = vadd.f32 %v2554_v49, %v2526_v60  ;;  %v2778_v40 = vunpack.c.l.bf16 %v10515_v38  ;;  %v2779_v12 = vunpack.c.h.bf16 %v10515_v38  ;;  %v9209_v14 = vpop.eup %9208  ;;  %v8798_v60 = vld [vmem:[#allocation11 + $0x1ec] sm:$0xf]  ;;  %v7525_v43 = vld [vmem:[#allocation11 + $0xd8] sm:$0xf0] }
 0x3c7   :  { %v2882_v13 = vadd.f32 1.0, %v2850_v34  ;;  %v2883_v25 = vadd.f32 1.0, %v2851_v3  ;;  %v9211_v46 = vpop.eup %9210  ;;  %v2958_v35 = vmul.f32 %v2926_v31, %v2766_v8  ;;  %v7872_v57 = vor.u32 %v8849_v48, %v7869_v16  ;;  %v7669_v3 = vld [vmem:[#allocation11 + $0x1f8] sm:$0xf0]  ;;  %v8805_v16 = vld [vmem:[#allocation11 + $0x224] sm:$0xf] }
 0x3c8   :  { %v2702_v7 = vunpack.c.l.bf16 %v2673_v6  ;;  %v2703_v15 = vunpack.c.h.bf16 %v2673_v6  ;;  %v2573_v47 = vpack.c.bf16 %v2555_v9, %v2439_v58  ;;  %v3802_v61 = vpop.f32.mrf.mxu2  ;;  %9212 = vtanh.f32 %v2778_v40 }
 0x3c9   :  { %v10521_v39 = vadd.f32 %v3802_v61, %v3773_v44  ;;  %v2907_v18 = vpack.c.bf16 %v2883_v25, %v2882_v13  ;;  %v3775_v26 = vpop.f32.mrf.mxu1  ;;  %v2959_v58 = vmul.f32 %v2927_v29, %v2767_v32  ;;  %9214 = vtanh.f32 %v2779_v12  ;;  %3970 = vmatpush.bf16.msrb.mxu0 %v7872_v57  ;;  %v7653_v13 = vld [vmem:[#allocation11 + $0x1d8] sm:$0xf0] }
 0x3ca   :  { %v2734_v17 = vmul.f32 0.5, %v2702_v7  ;;  %v2622_v5 = vunpack.c.l.bf16 %v2573_v47  ;;  %v2623_v62 = vunpack.c.h.bf16 %v2573_v47  ;;  %v2829_v8 = vpack.c.bf16 %v9211_v46, %v9209_v14  ;;  %v8794_v14 = vld [vmem:[#allocation11 + $0x1cc] sm:$0xf] }
 0x3cb   :  { %v2930_v44 = vunpack.c.l.bf16 %v2907_v18  ;;  %v2931_v22 = vunpack.c.h.bf16 %v2907_v18  ;;  %v7712_v45 = vor.u32 %v8809_v42, %v7709_v28  ;;  %v2735_v6 = vmul.f32 0.5, %v2703_v15  ;;  %v7693_v42 = vld [vmem:[#allocation11 + $0x230] sm:$0xf0]  ;;  %v8841_v28 = vld [vmem:[#allocation11 + $0x344] sm:$0xf] }
 0x3cc   :  { %v2658_v2 = vadd.f32 %v10419_v36, %v2622_v5  ;;  %v2659_v19 = vadd.f32 %v10421_v27, %v2623_v62  ;;  %v2854_v49 = vunpack.c.l.bf16 %v2829_v8  ;;  %v2855_v34 = vunpack.c.h.bf16 %v2829_v8  ;;  %v8758_v8 = vld [vmem:[#allocation11 + $0xac] sm:$0xf] }
 0x3cd   :  { %v2962_v23 = vmul.f32 %v2930_v44, %v2770_v10  ;;  %v2963_v32 = vmul.f32 %v2931_v22, %v2771_v41  ;;  %3943 = vmatpush.bf16.msra.mxu3 %v7712_v45  ;;  %v7856_v36 = vor.u32 %v8845_v59, %v7853_v33  ;;  %v7544_v27 = vor.u32 %v8766_v55, %v7541_v21  ;;  %v7837_v22 = vld [vmem:[#allocation11 + $0x350] sm:$0xf0]  ;;  %v8790_v21 = vld [vmem:[#allocation11 + $0x1ac] sm:$0xf] }
 0x3ce   :  { %v2675_v9 = vpack.c.bf16 %v2659_v19, %v2658_v2  ;;  %v9213_v25 = vpop.eup %9212  ;;  %v2886_v54 = vadd.f32 1.0, %v2854_v49  ;;  %v2887_v41 = vadd.f32 1.0, %v2855_v34  ;;  %v7672_v61 = vor.u32 %v8798_v60, %v7669_v3  ;;  %v7637_v60 = vld [vmem:[#allocation11 + $0x1b8] sm:$0xf0]  ;;  %v8801_v3 = vld [vmem:[#allocation11 + $0x204] sm:$0xf] }
 0x3cf   :  { %v10537_v31 = vpack.c.bf16 %v2962_v23, %v2958_v35  ;;  %v10539_v10 = vpack.c.bf16 %v2963_v32, %v2959_v58  ;;  %4112 = vmatpush.bf16.msrb.mxu1 %v7544_v27  ;;  %v7528_v15 = vor.u32 %v8762_v51, %v7525_v43  ;;  %v9215_v48 = vpop.eup %9214  ;;  %v7656_v35 = vor.u32 %v8794_v14, %v7653_v13  ;;  %v8754_v23 = vld [vmem:[#allocation11 + $0x8c] sm:$0xf]  ;;  %v7493_v32 = vld [vmem:[#allocation11 + $0x98] sm:$0xf0]  ;;  %v7677_v51 = vld [vmem:[#allocation11 + $0x210] sm:$0xf0] }
 0x3d0   :  { %v2706_v29 = vunpack.c.l.bf16 %v2675_v9  ;;  %v2707_v7 = vunpack.c.h.bf16 %v2675_v9  ;;  %v3804_v47 = vpop.f32.mrf.mxu2  ;;  %v10545_v18 = vpack.c.bf16 %v2887_v41, %v2886_v54  ;;  %v2831_v59 = vpack.c.bf16 %v9215_v48, %v9213_v25  ;;  %3971 = vmatpush.bf16.msrb.mxu0 %v7856_v36  ;;  %4141 = vmatpush.bf16.msra.mxu2 %v7672_v61  ;;  %v8837_v27 = vld [vmem:[#allocation11 + $0x324] sm:$0xf]  ;;  %v7821_v14 = vld [vmem:[#allocation11 + $0x330] sm:$0xf0]  ;;  %v8786_v41 = vld [vmem:[#allocation11 + $0x18c] sm:$0xf] }
 0x3d1   :  { %3835 = vmatmul.bf16.gmra.mxu3 %v10537_v31  ;;  %3864 = vmatmul.bf16.gmra.mxu0 %v10539_v10  ;;  %v10543_v46 = vadd.f32 %v3804_v47, %v3775_v26  ;;  %v3778_v58 = vpop.f32.mrf.mxu1  ;;  %v10547_v44 = vpack.c.bf16 %v2735_v6, %v2734_v17  ;;  %v7696_v33 = vor.u32 %v8805_v16, %v7693_v42  ;;  %v7509_v26 = vld [vmem:[#allocation11 + $0xb8] sm:$0xf0]  ;;  %v8750_v48 = vld [vmem:[#allocation11 + $0x6c] sm:$0xf]  ;;  %v8833_v16 = vld [vmem:[#allocation11 + $0x304] sm:$0xf] }
 0x3d2   :  { %v2738_v5 = vmul.f32 0.5, %v2706_v29  ;;  %v2739_v62 = vmul.f32 0.5, %v2707_v7  ;;  %v7840_v55 = vor.u32 %v8841_v28, %v7837_v22  ;;  %v2858_v2 = vunpack.c.l.bf16 %v2831_v59  ;;  %v7621_v29 = vld [vmem:[#allocation11 + $0x198] sm:$0xf0]  ;;  %v7805_v42 = vld [vmem:[#allocation11 + $0x310] sm:$0xf0] }
 0x3d3   :  { %v2859_v19 = vunpack.c.h.bf16 %v2831_v59  ;;  %4113 = vmatpush.bf16.msrb.mxu1 %v7528_v15  ;;  %v2782_v45 = vunpack.c.l.bf16 %v10547_v44  ;;  %v2934_v17 = vunpack.c.l.bf16 %v10545_v18  ;;  %v2783_v49 = vunpack.c.h.bf16 %v10547_v44  ;;  %3944 = vmatpush.bf16.msra.mxu3 %v7696_v33  ;;  %v7907_v44 = vld [vmem:[#allocation11 + $0x3c8] sm:$0xf] }
 0x3d4   :  { %v10549_v57 = vpack.c.bf16 %v2739_v62, %v2738_v5  ;;  %4009 = vmatmul.bf16.gmra.mxu1 %v10338_v4  ;;  %v7512_v34 = vor.u32 %v8758_v8, %v7509_v26  ;;  %v2890_v43 = vadd.f32 1.0, %v2858_v2  ;;  %4142 = vmatpush.bf16.msra.mxu2 %v7656_v35  ;;  %v2935_v13 = vunpack.c.h.bf16 %v10545_v18  ;;  %v7477_v18 = vld [vmem:[#allocation11 + $0x78] sm:$0xf0] }
 0x3d5   :  { %4038 = vmatmul.bf16.gmra.mxu2 %v10340_v1  ;;  %v2891_v6 = vadd.f32 1.0, %v2859_v19  ;;  %9216 = vtanh.f32 %v2782_v45  ;;  %3972 = vmatpush.bf16.msrb.mxu0 %v7840_v55  ;;  %v7640_v25 = vor.u32 %v8790_v21, %v7637_v60  ;;  %v7496_v54 = vor.u32 %v8754_v23, %v7493_v32  ;;  %v7605_v8 = vld [vmem:[#allocation11 + $0x178] sm:$0xf0]  ;;  %v8746_v60 = vld [vmem:[#allocation11 + $0x4c] sm:$0xf] }
 0x3d6   :  { %v2786_v9 = vunpack.c.l.bf16 %v10549_v57  ;;  %v2787_v36 = vunpack.c.h.bf16 %v10549_v57  ;;  %9218 = vtanh.f32 %v2783_v49  ;;  %v7680_v61 = vor.u32 %v8801_v3, %v7677_v51  ;;  %v7461_v23 = vld [vmem:[#allocation11 + $0x58] sm:$0xf0]  ;;  %v8860_v57 = vld [vmem:[#allocation11 + $0x3d4] sm:$0xf0] }
 0x3d7   :  { %v2911_v47 = vpack.c.bf16 %v2891_v6, %v2890_v43  ;;  %4114 = vmatpush.bf16.msrb.mxu1 %v7512_v34  ;;  %v7824_v15 = vor.u32 %v8837_v27, %v7821_v14  ;;  %v7624_v59 = vor.u32 %v8786_v41, %v7621_v29  ;;  %v2966_v22 = vmul.f32 %v2934_v17, %v2774_v53 }
 0x3d8   :  { %v3807_v7 = vpop.f32.mrf.mxu2  ;;  %9220 = vtanh.f32 %v2786_v9  ;;  %4143 = vmatpush.bf16.msra.mxu2 %v7640_v25  ;;  %3945 = vmatpush.bf16.msra.mxu3 %v7680_v61  ;;  %v7808_v33 = vor.u32 %v8833_v16, %v7805_v42  ;;  %v2967_v26 = vmul.f32 %v2935_v13, %v2775_v37  ;;  %v7480_v2 = vor.u32 %v8750_v48, %v7477_v18  ;;  %v7589_v37 = vld [vmem:[#allocation11 + $0x158] sm:$0xf0]  ;;  %v7795_v13 = vld [vmem:[#allocation11 + $0x2e8] sm:$0xf]  ;;  %v8832_v25 = vld [vmem:[#allocation11 + $0x2f4] sm:$0xf0] }
 0x3d9   :  { %v10563_v35 = vadd.f32 %v3807_v7, %v3778_v58  ;;  %v3780_v28 = vpop.f32.mrf.mxu1  ;;  %v2938_v5 = vunpack.c.l.bf16 %v2911_v47  ;;  %v2939_v62 = vunpack.c.h.bf16 %v2911_v47  ;;  %9222 = vtanh.f32 %v2787_v36  ;;  %3973 = vmatpush.bf16.msrb.mxu0 %v7824_v15  ;;  %v8782_v58 = vld [vmem:[#allocation11 + $0x16c] sm:$0xf]  ;;  %v7445_v47 = vld [vmem:[#allocation11 + $0x38] sm:$0xf0] }
 0x3da   :  { %v7608_v34 = vor.u32 %v8782_v58, %v7605_v8  ;;  %v7592_v29 = vor.u32 %v8778_v56, %v7589_v37  ;;  %v7796_v7 = vor.u32 %v8832_v25, %v7795_v13  ;;  %v8774_v16 = vld [vmem:[#allocation11 + $0x12c] sm:$0xf]  ;;  %v7573_v42 = vld [vmem:[#allocation11 + $0x138] sm:$0xf0] }
 0x3db   :  { %v2970_v55 = vmul.f32 %v2938_v5, %v2778_v40  ;;  %v2971_v21 = vmul.f32 %v2939_v62, %v2779_v12  ;;  %4115 = vmatpush.bf16.msrb.mxu1 %v7496_v54  ;;  %v9217_v19 = vpop.eup %9216  ;;  %v7464_v12 = vor.u32 %v8746_v60, %v7461_v23  ;;  %v8742_v54 = vld [vmem:[#allocation11 + $0x2c] sm:$0xf]  ;;  %v7429_v62 = vld [vmem:[#allocation11 + $0x18] sm:$0xf0] }
 0x3dc   :  { %v9219_v32 = vpop.eup %9218  ;;  %4144 = vmatpush.bf16.msra.mxu2 %v7624_v59  ;;  %4054 = vmatpush.bf16.msrb.mxu3 %v7796_v7  ;;  %v8738_v5 = vld [vmem:[#allocation11 + $0xc] sm:$0xf]  ;;  %v7779_v59 = vld [vmem:[#allocation11 + $0x2c8] sm:$0xf]  ;;  %v8824_v7 = vld [vmem:[#allocation11 + $0x2b4] sm:$0xf0] }
 0x3dd   :  { %v10577_v53 = vpack.c.bf16 %v2970_v55, %v2966_v22  ;;  %v10579_v17 = vpack.c.bf16 %v2971_v21, %v2967_v26  ;;  %v2833_v40 = vpack.c.bf16 %v9219_v32, %v9217_v19  ;;  %3974 = vmatpush.bf16.msrb.mxu0 %v7808_v33  ;;  %v8828_v33 = vld [vmem:[#allocation11 + $0x2d4] sm:$0xf0]  ;;  %v7923_v55 = vld [vmem:[#allocation11 + $0x3e8] sm:$0xf]  ;;  %v7576_v26 = vor.u32 %v8774_v16, %v7573_v42  ;;  %v8770_v32 = vld [vmem:[#allocation11 + $0x10c] sm:$0xf] }
 0x3de   :  { %v9221_v3 = vpop.eup %9220  ;;  %v7780_v21 = vor.u32 %v8828_v33, %v7779_v59  ;;  %v7432_v56 = vor.u32 %v8738_v5, %v7429_v62  ;;  %v7875_v33 = vld [vmem:[#allocation11 + $0x388] sm:$0xf] }
 0x3df   :  { %v9223_v51 = vpop.eup %9222  ;;  %4116 = vmatpush.bf16.msrb.mxu1 %v7480_v2  ;;  %v2862_v27 = vunpack.c.l.bf16 %v2833_v40  ;;  %v2863_v14 = vunpack.c.h.bf16 %v2833_v40  ;;  %v8864_v2 = vld [vmem:[#allocation11 + $0x3f4] sm:$0xf0] }
 0x3e0   :  { %v3809_v38 = vpop.f32.mrf.mxu2  ;;  %v2835_v6 = vpack.c.bf16 %v9223_v51, %v9221_v3  ;;  %4145 = vmatpush.bf16.msra.mxu2 %v7608_v34  ;;  %v7557_v34 = vld [vmem:[#allocation11 + $0x118] sm:$0xf0]  ;;  %v7924_v3 = vor.u32 %v8864_v2, %v7923_v55  ;;  %4055 = vmatpush.bf16.msrb.mxu3 %v7780_v21  ;;  %v8852_v21 = vld [vmem:[#allocation11 + $0x394] sm:$0xf0]  ;;  %v7715_v2 = vld [vmem:[#allocation11 + $0x248] sm:$0xf] }
 0x3e1   :  { %3840 = vmatmul.bf16.gmra.mxu3 %v10577_v53  ;;  %3869 = vmatmul.bf16.gmra.mxu0 %v10579_v17  ;;  %v10583_v43 = vadd.f32 %v3809_v38, %v3780_v28  ;;  %v3783_v41 = vpop.f32.mrf.mxu1  ;;  %v2894_v48 = vadd.f32 1.0, %v2862_v27  ;;  %v2895_v18 = vadd.f32 1.0, %v2863_v14  ;;  %v7448_v28 = vor.u32 %v8742_v54, %v7445_v47 }
 0x3e2   :  { %v2866_v61 = vunpack.c.l.bf16 %v2835_v6  ;;  %v2867_v15 = vunpack.c.h.bf16 %v2835_v6  ;;  %4083 = vmatpush.bf16.msra.mxu0 %v7924_v3  ;;  %v7560_v6 = vor.u32 %v8770_v32, %v7557_v34  ;;  %v8848_v32 = vld [vmem:[#allocation11 + $0x374] sm:$0xf0] }
 0x3e3   :  { %4117 = vmatpush.bf16.msrb.mxu1 %v7464_v12  ;;  %v2913_v8 = vpack.c.bf16 %v2895_v18, %v2894_v48  ;;  %v7891_v48 = vld [vmem:[#allocation11 + $0x3a8] sm:$0xf]  ;;  %v8856_v18 = vld [vmem:[#allocation11 + $0x3b4] sm:$0xf0] }
 0x3e4   :  { %4014 = vmatmul.bf16.gmra.mxu1 %v10372_v50  ;;  %v2898_v22 = vadd.f32 1.0, %v2866_v61  ;;  %v2899_v58 = vadd.f32 1.0, %v2867_v15  ;;  %4146 = vmatpush.bf16.msra.mxu2 %v7592_v29  ;;  %v8820_v61 = vld [vmem:[#allocation11 + $0x294] sm:$0xf0]  ;;  %v7908_v15 = vor.u32 %v8860_v57, %v7907_v44  ;;  %v7892_v42 = vor.u32 %v8856_v18, %v7891_v48  ;;  %v7811_v57 = vld [vmem:[#allocation11 + $0x308] sm:$0xf] }
 0x3e5   :  { %4043 = vmatmul.bf16.gmra.mxu2 %v10374_v30  ;;  %v2942_v60 = vunpack.c.l.bf16 %v2913_v8  ;;  %v2943_v23 = vunpack.c.h.bf16 %v2913_v8  ;;  %v8816_v8 = vld [vmem:[#allocation11 + $0x274] sm:$0xf0] }
 0x3e6   :  { %v2915_v19 = vpack.c.bf16 %v2899_v58, %v2898_v22  ;;  %4084 = vmatpush.bf16.msra.mxu0 %v7908_v15  ;;  %v7731_v58 = vld [vmem:[#allocation11 + $0x268] sm:$0xf] }
 0x3e7   :  { %4118 = vmatpush.bf16.msrb.mxu1 %v7448_v28  ;;  %v2974_v27 = vmul.f32 %v2942_v60, %v2782_v45  ;;  %v2975_v13 = vmul.f32 %v2943_v23, %v2783_v49  ;;  %v7876_v60 = vor.u32 %v8852_v21, %v7875_v33  ;;  %v7859_v23 = vld [vmem:[#allocation11 + $0x368] sm:$0xf]  ;;  %v8858_v21 = vld [vmem:[#allocation11 + $0x3cc] sm:$0xf] }
 0x3e8   :  { %v3812_v40 = vpop.f32.mrf.mxu2  ;;  %v2946_v51 = vunpack.c.l.bf16 %v2915_v19  ;;  %v2947_v38 = vunpack.c.h.bf16 %v2915_v19  ;;  %4147 = vmatpush.bf16.msra.mxu2 %v7576_v26  ;;  %v7732_v26 = vor.u32 %v8816_v8, %v7731_v58  ;;  %v8812_v19 = vld [vmem:[#allocation11 + $0x254] sm:$0xf0]  ;;  %v7860_v3 = vor.u32 %v8848_v32, %v7859_v23  ;;  %v8818_v32 = vld [vmem:[#allocation11 + $0x28c] sm:$0xf] }
 0x3e9   :  { %v10587_v37 = vadd.f32 %v3812_v40, %v3783_v41  ;;  %v3785_v12 = vpop.f32.mrf.mxu1  ;;  %v7716_v34 = vor.u32 %v8812_v19, %v7715_v2 }
 0x3ea   :  { %v2978_v14 = vmul.f32 %v2946_v51, %v2786_v9  ;;  %v2979_v25 = vmul.f32 %v2947_v38, %v2787_v36  ;;  %v7763_v9 = vld [vmem:[#allocation11 + $0x2a8] sm:$0xf]  ;;  %4085 = vmatpush.bf16.msra.mxu0 %v7892_v42  ;;  %v7781_v42 = vld [vmem:[#allocation11 + $0x2d8] sm:$0xf0] }
 0x3eb   :  { %4119 = vmatpush.bf16.msrb.mxu1 %v7432_v56  ;;  %v7764_v47 = vor.u32 %v8824_v7, %v7763_v9  ;;  %v7747_v36 = vld [vmem:[#allocation11 + $0x288] sm:$0xf]  ;;  %v8840_v9 = vld [vmem:[#allocation11 + $0x334] sm:$0xf0] }
 0x3ec   :  { %v10597_v54 = vpack.c.bf16 %v2978_v14, %v2974_v27  ;;  %v10599_v41 = vpack.c.bf16 %v2979_v25, %v2975_v13  ;;  %4148 = vmatpush.bf16.msra.mxu2 %v7560_v6  ;;  %v7748_v16 = vor.u32 %v8820_v61, %v7747_v36  ;;  %v7699_v38 = vld [vmem:[#allocation11 + $0x228] sm:$0xf]  ;;  %v8844_v27 = vld [vmem:[#allocation11 + $0x354] sm:$0xf0] }
 0x3ed   :  { %4056 = vmatpush.bf16.msrb.mxu3 %v7764_v47  ;;  %v7843_v6 = vld [vmem:[#allocation11 + $0x348] sm:$0xf]  ;;  %v8804_v13 = vld [vmem:[#allocation11 + $0x214] sm:$0xf0] }
 0x3ee   :  { %4086 = vmatpush.bf16.msra.mxu0 %v7876_v60  ;;  %v7683_v14 = vld [vmem:[#allocation11 + $0x208] sm:$0xf]  ;;  %v7844_v25 = vor.u32 %v8844_v27, %v7843_v6  ;;  %v8836_v36 = vld [vmem:[#allocation11 + $0x314] sm:$0xf0]  ;;  %v7909_v60 = vld [vmem:[#allocation11 + $0x3d8] sm:$0xf0] }
 0x3ef   :  { %v7684_v7 = vor.u32 %v8804_v13, %v7683_v14  ;;  %v7812_v61 = vor.u32 %v8836_v36, %v7811_v57  ;;  %v7912_v23 = vor.u32 %v8858_v21, %v7909_v60  ;;  %v7893_v6 = vld [vmem:[#allocation11 + $0x3b8] sm:$0xf0] }
 0x3f0   :  { %v3814_v29 = vpop.f32.mrf.mxu2 }
 0x3f1   :  { %3845 = vmatmul.bf16.gmra.mxu3 %v10597_v54  ;;  %3874 = vmatmul.bf16.gmra.mxu0 %v10599_v41  ;;  %v10603_v45 = vadd.f32 %v3814_v29, %v3785_v12  ;;  %v3788_v49 = vpop.f32.mrf.mxu1  ;;  %v8808_v12 = vld [vmem:[#allocation11 + $0x234] sm:$0xf0]  ;;  %v7827_v29 = vld [vmem:[#allocation11 + $0x328] sm:$0xf] }
 0x3f2   :  { %4057 = vmatpush.bf16.msrb.mxu3 %v7748_v16  ;;  %4087 = vmatpush.bf16.msra.mxu0 %v7860_v3  ;;  %v7828_v44 = vor.u32 %v8840_v9, %v7827_v29  ;;  %v8826_v16 = vld [vmem:[#allocation11 + $0x2cc] sm:$0xf] }
 0x3f3   :  { %v8854_v3 = vld [vmem:[#allocation11 + $0x3ac] sm:$0xf] }
 0x3f4   :  { %4019 = vmatmul.bf16.gmra.mxu1 %v10394_v11 }
 0x3f5   :  { %4048 = vmatmul.bf16.gmra.mxu2 %v10396_v20 }
 0x3f6   :  { %4058 = vmatpush.bf16.msrb.mxu3 %v7732_v26  ;;  %4088 = vmatpush.bf16.msra.mxu0 %v7844_v25  ;;  %v8850_v25 = vld [vmem:[#allocation11 + $0x38c] sm:$0xf] }
 0x3f8   :  { %v3817_v28 = vpop.f32.mrf.mxu2 }
 0x3f9   :  { %v10607_v5 = vadd.f32 %v3817_v28, %v3788_v49  ;;  %v3790_v62 = vpop.f32.mrf.mxu1  ;;  %v8862_v28 = vld [vmem:[#allocation11 + $0x3ec] sm:$0xf] }
 0x3fa   :  { %4059 = vmatpush.bf16.msrb.mxu3 %v7716_v34  ;;  %4089 = vmatpush.bf16.msra.mxu0 %v7828_v44  ;;  %v7749_v34 = vld [vmem:[#allocation11 + $0x298] sm:$0xf0] }
 0x3fb   :  { %v7877_v44 = vld [vmem:[#allocation11 + $0x398] sm:$0xf0] }
 0x3fc   :  { %v7880_v36 = vor.u32 %v8850_v25, %v7877_v44 }
 0x3fe   :  { %4090 = vmatpush.bf16.msra.mxu0 %v7812_v61 }
 0x400   :  { %v3819_v59 = vpop.f32.mrf.mxu2 }
 0x401   :  { %3946 = vmatmul.bf16.vlgmr.msra.gmra.mxu3 %v10496_v0  ;;  %3975 = vmatmul.bf16.vlgmr.msrb.gmra.mxu0 %v10498_v63  ;;  %v10611_v22 = vadd.f32 %v3819_v59, %v3790_v62  ;;  %v10613_v55 = vpop.f32.mrf.mxu1  ;;  %v7784_v62 = vor.u32 %v8826_v16, %v7781_v42  ;;  %v7925_v59 = vld [vmem:[#allocation11 + $0x3f8] sm:$0xf0]  ;;  %v8846_v16 = vld [vmem:[#allocation11 + $0x36c] sm:$0xf] }
 0x402   :  { %v7928_v58 = vor.u32 %v8862_v28, %v7925_v59 }
 0x404   :  { %4120 = vmatmul.bf16.vlgmr.msrb.gmra.mxu1 %v10298_v52  ;;  %4199 = vmatpush.bf16.msrb.mxu0 %v7928_v58 }
 0x405   :  { %4149 = vmatmul.bf16.vlgmr.msra.gmra.mxu2 %v10300_v24  ;;  %v7700_v24 = vor.u32 %v8808_v12, %v7699_v38  ;;  %v7752_v12 = vor.u32 %v8818_v32, %v7749_v34  ;;  %v8806_v32 = vld [vmem:[#allocation11 + $0x22c] sm:$0xf]  ;;  %v7701_v34 = vld [vmem:[#allocation11 + $0x238] sm:$0xf0] }
 0x407   :  { %4060 = vmatpush.bf16.msrb.mxu3 %v7700_v24  ;;  %v7896_v24 = vor.u32 %v8854_v3, %v7893_v6  ;;  %v8842_v3 = vld [vmem:[#allocation11 + $0x34c] sm:$0xf]  ;;  %v7704_v6 = vor.u32 %v8806_v32, %v7701_v34 }
 0x408   :  { %v10617_v40 = vpop.f32.mrf.mxu2  ;;  %4200 = vmatpush.bf16.msrb.mxu0 %v7912_v23 }
 0x409   :  { %v10619_v56 = vpop.f32.mrf.mxu1 }
 0x40b   :  { %4061 = vmatpush.bf16.msrb.mxu3 %v7684_v7 }
 0x40c   :  { %4201 = vmatpush.bf16.msrb.mxu0 %v7896_v24  ;;  %v7845_v24 = vld [vmem:[#allocation11 + $0x358] sm:$0xf0] }
 0x410   :  { %v10621_v51 = vpop.f32.mrf.mxu2  ;;  %4202 = vmatpush.bf16.msrb.mxu0 %v7880_v36  ;;  %v7829_v36 = vld [vmem:[#allocation11 + $0x338] sm:$0xf0] }
 0x411   :  { %3951 = vmatmul.bf16.gmra.mxu3 %v10537_v31  ;;  %3980 = vmatmul.bf16.gmra.mxu0 %v10539_v10  ;;  %v10625_v52 = vpop.f32.mrf.mxu1 }
 0x414   :  { %4125 = vmatmul.bf16.gmra.mxu1 %v10338_v4  ;;  %v8830_v4 = vld [vmem:[#allocation11 + $0x2ec] sm:$0xf] }
 0x415   :  { %4154 = vmatmul.bf16.gmra.mxu2 %v10340_v1  ;;  %v7797_v1 = vld [vmem:[#allocation11 + $0x2f8] sm:$0xf0] }
 0x416   :  { %v7800_v18 = vor.u32 %v8830_v4, %v7797_v1  ;;  %v8810_v1 = vld [vmem:[#allocation11 + $0x24c] sm:$0xf] }
 0x418   :  { %v10629_v49 = vpop.f32.mrf.mxu2  ;;  %4170 = vmatpush.bf16.msra.mxu3 %v7800_v18  ;;  %v7717_v18 = vld [vmem:[#allocation11 + $0x258] sm:$0xf0] }
 0x419   :  { %v10631_v47 = vpop.f32.mrf.mxu1  ;;  %v7720_v28 = vor.u32 %v8810_v1, %v7717_v18 }
 0x41c   :  { %4171 = vmatpush.bf16.msra.mxu3 %v7784_v62  ;;  %v7861_v62 = vld [vmem:[#allocation11 + $0x378] sm:$0xf0] }
 0x41d   :  { %v7864_v58 = vor.u32 %v8846_v16, %v7861_v62  ;;  %v8834_v62 = vld [vmem:[#allocation11 + $0x30c] sm:$0xf] }
 0x41f   :  { %4203 = vmatpush.bf16.msrb.mxu0 %v7864_v58  ;;  %v7813_v58 = vld [vmem:[#allocation11 + $0x318] sm:$0xf0] }
 0x420   :  { %v10633_v15 = vpop.f32.mrf.mxu2 }
 0x421   :  { %3956 = vmatmul.bf16.gmra.mxu3 %v10577_v53  ;;  %3985 = vmatmul.bf16.gmra.mxu0 %v10579_v17  ;;  %v10637_v48 = vpop.f32.mrf.mxu1 }
 0x424   :  { %4130 = vmatmul.bf16.gmra.mxu1 %v10372_v50  ;;  %v8822_v50 = vld [vmem:[#allocation11 + $0x2ac] sm:$0xf] }
 0x425   :  { %4159 = vmatmul.bf16.gmra.mxu2 %v10374_v30  ;;  %v7765_v30 = vld [vmem:[#allocation11 + $0x2b8] sm:$0xf0] }
 0x426   :  { %v7768_v19 = vor.u32 %v8822_v50, %v7765_v30 }
 0x428   :  { %v10641_v8 = vpop.f32.mrf.mxu2  ;;  %4172 = vmatpush.bf16.msra.mxu3 %v7768_v19 }
 0x429   :  { %v10643_v33 = vpop.f32.mrf.mxu1 }
 0x42c   :  { %4173 = vmatpush.bf16.msra.mxu3 %v7752_v12 }
 0x430   :  { %v10645_v26 = vpop.f32.mrf.mxu2 }
 0x431   :  { %3961 = vmatmul.bf16.gmra.mxu3 %v10597_v54  ;;  %3990 = vmatmul.bf16.gmra.mxu0 %v10599_v41  ;;  %v10649_v2 = vpop.f32.mrf.mxu1 }
 0x434   :  { %4135 = vmatmul.bf16.gmra.mxu1 %v10394_v11  ;;  %v8814_v11 = vld [vmem:[#allocation11 + $0x26c] sm:$0xf] }
 0x435   :  { %4164 = vmatmul.bf16.gmra.mxu2 %v10396_v20  ;;  %v7733_v20 = vld [vmem:[#allocation11 + $0x278] sm:$0xf0] }
 0x436   :  { %v7736_v7 = vor.u32 %v8814_v11, %v7733_v20 }
 0x438   :  { %v10653_v38 = vpop.f32.mrf.mxu2  ;;  %4174 = vmatpush.bf16.msra.mxu3 %v7736_v7  ;;  %v8838_v7 = vld [vmem:[#allocation11 + $0x32c] sm:$0xf] }
 0x439   :  { %v10655_v27 = vpop.f32.mrf.mxu1  ;;  %v7832_v1 = vor.u32 %v8838_v7, %v7829_v36 }
 0x43c   :  { %v3860_v14 = vpop.f32.mrf.mxu0  ;;  %4175 = vmatpush.bf16.msra.mxu3 %v7720_v28 }
 0x440   :  { %v10657_v13 = vpop.f32.mrf.mxu2  ;;  %4176 = vmatpush.bf16.msra.mxu3 %v7704_v6 }
 0x441   :  { %4062 = vmatmul.bf16.vlgmr.msrb.gmra.mxu3 %v10496_v0  ;;  %4091 = vmatmul.bf16.vlgmr.msra.gmra.mxu0 %v10498_v63  ;;  %v4005_v9 = vpop.f32.mrf.mxu1 }
 0x442   :  { %v3831_v29 = vpop.f32.mrf.mxu3 }
 0x443   :  { %v3832_v57 = vadd.f32 %v3831_v29, %v10521_v39  ;;  %v8802_v29 = vld [vmem:[#allocation11 + $0x20c] sm:$0xf] }
 0x444   :  { %v3862_v61 = vpop.f32.mrf.mxu0 }
 0x445   :  { %v10662_v4 = vadd.f32 %v3860_v14, %v3832_v57  ;;  %v7848_v14 = vor.u32 %v8842_v3, %v7845_v24 }
 0x447   :  { %4204 = vmatpush.bf16.msrb.mxu0 %v7848_v14 }
 0x448   :  { %v4034_v42 = vpop.f32.mrf.mxu2 }
 0x449   :  { %v10664_v59 = vadd.f32 %v4034_v42, %v4005_v9  ;;  %v4007_v30 = vpop.f32.mrf.mxu1  ;;  %v7685_v9 = vld [vmem:[#allocation11 + $0x218] sm:$0xf0] }
 0x44a   :  { %v3833_v50 = vpop.f32.mrf.mxu3  ;;  %v7688_v57 = vor.u32 %v8802_v29, %v7685_v9 }
 0x44b   :  { %v3834_v39 = vadd.f32 %v3833_v50, %v10543_v46  ;;  %4205 = vmatpush.bf16.msrb.mxu0 %v7832_v1 }
 0x44c   :  { %4177 = vmatpush.bf16.msra.mxu3 %v7688_v57 }
 0x44d   :  { %v10667_v21 = vadd.f32 %v3862_v61, %v3834_v39 }
 0x44e   :  { %v3865_v19 = vpop.f32.mrf.mxu0 }
 0x450   :  { %v4036_v60 = vpop.f32.mrf.mxu2 }
 0x451   :  { %4067 = vmatmul.bf16.gmra.mxu3 %v10537_v31  ;;  %4096 = vmatmul.bf16.gmra.mxu0 %v10539_v10  ;;  %v10671_v23 = vadd.f32 %v4036_v60, %v4007_v30  ;;  %v4010_v12 = vpop.f32.mrf.mxu1  ;;  %v7816_v30 = vor.u32 %v8834_v62, %v7813_v58 }
 0x453   :  { %4206 = vmatpush.bf16.msrb.mxu0 %v7816_v30  ;;  %v4248_v30 = vld [vmem:[#allocation1 + $0x9] sm:$0xff] }
 0x454   :  { %v3836_v11 = vpop.f32.mrf.mxu3 }
 0x455   :  { %v3837_v46 = vadd.f32 %v3836_v11, %v10563_v35 }
 0x456   :  { %v3867_v20 = vpop.f32.mrf.mxu0 }
 0x457   :  { %v10674_v25 = vadd.f32 %v3865_v19, %v3837_v46 }
 0x458   :  { %v4039_v44 = vpop.f32.mrf.mxu2 }
 0x459   :  { %v10676_v61 = vadd.f32 %v4039_v44, %v4010_v12  ;;  %v4012_v18 = vpop.f32.mrf.mxu1 }
 0x45c   :  { %v3838_v16 = vpop.f32.mrf.mxu3 }
 0x45d   :  { %v3839_v42 = vadd.f32 %v3838_v16, %v10583_v43  ;;  %v8171_v16 = vld [vmem:[#allocation14 + $0x1e0] sm:$0xf] }
 0x45e   :  { %v3870_v35 = vpop.f32.mrf.mxu0 }
 0x45f   :  { %v10679_v28 = vadd.f32 %v3867_v20, %v3839_v42 }
 0x460   :  { %v4041_v50 = vpop.f32.mrf.mxu2 }
 0x461   :  { %4072 = vmatmul.bf16.gmra.mxu3 %v10577_v53  ;;  %4101 = vmatmul.bf16.gmra.mxu0 %v10579_v17  ;;  %v10683_v39 = vadd.f32 %v4041_v50, %v4012_v18  ;;  %v4015_v19 = vpop.f32.mrf.mxu1  ;;  %v8895_v18 = vld [vmem:[#allocation14 + $0xec] sm:$0xf0] }
 0x462   :  { %v4247_v50 = vld [vmem:[#allocation1] sm:$0xff] }
 0x464   :  { %v3841_v60 = vpop.f32.mrf.mxu3 }
 0x465   :  { %v3842_v32 = vadd.f32 %v3841_v60, %v10587_v37  ;;  %v8891_v60 = vld [vmem:[#allocation14 + $0xcc] sm:$0xf0] }
 0x466   :  { %v3872_v34 = vpop.f32.mrf.mxu0 }
 0x467   :  { %v10686_v43 = vadd.f32 %v3870_v35, %v3842_v32  ;;  %v8927_v35 = vld [vmem:[#allocation14 + $0x1ec] sm:$0xf0]  ;;  %v8155_v32 = vld [vmem:[#allocation14 + $0x1c0] sm:$0xf] }
 0x468   :  { %v4044_v3 = vpop.f32.mrf.mxu2  ;;  %v8172_v62 = vor.u32 %v8927_v35, %v8171_v16  ;;  %v8919_v16 = vld [vmem:[#allocation14 + $0x1ac] sm:$0xf0] }
 0x469   :  { %v10688_v12 = vadd.f32 %v4044_v3, %v4015_v19  ;;  %v4017_v24 = vpop.f32.mrf.mxu1 }
 0x46a   :  { %5464 = vmatpush.bf16.msrb.mxu2 %v8172_v62 }
 0x46c   :  { %v3843_v6 = vpop.f32.mrf.mxu3 }
 0x46d   :  { %v3844_v14 = vadd.f32 %v3843_v6, %v10603_v45  ;;  %v8043_v45 = vld [vmem:[#allocation14 + $0xe0] sm:$0xf]  ;;  %v8923_v6 = vld [vmem:[#allocation14 + $0x1cc] sm:$0xf0] }
 0x46e   :  { %v3875_v11 = vpop.f32.mrf.mxu0  ;;  %v8044_v42 = vor.u32 %v8895_v18, %v8043_v45  ;;  %v8139_v45 = vld [vmem:[#allocation14 + $0x1a0] sm:$0xf] }
 0x46f   :  { %v10691_v46 = vadd.f32 %v3872_v34, %v3844_v14  ;;  %v8156_v14 = vor.u32 %v8923_v6, %v8155_v32 }
 0x470   :  { %v4046_v20 = vpop.f32.mrf.mxu2  ;;  %5435 = vmatpush.bf16.msra.mxu1 %v8044_v42  ;;  %v8140_v42 = vor.u32 %v8919_v16, %v8139_v45 }
 0x471   :  { %4077 = vmatmul.bf16.gmra.mxu3 %v10597_v54  ;;  %4106 = vmatmul.bf16.gmra.mxu0 %v10599_v41  ;;  %v10695_v29 = vadd.f32 %v4046_v20, %v4017_v24  ;;  %v4020_v44 = vpop.f32.mrf.mxu1  ;;  %v4251_v20 = vpack.i.b16 %v4247_v50, %v4247_v50 }
 0x472   :  { %5465 = vmatpush.bf16.msrb.mxu2 %v8156_v14 }
 0x473   :  { %v4253_v62 = vperm.slane %v4251_v20, 0  ;;  %v8107_v20 = vld [vmem:[#allocation14 + $0x160] sm:$0xf] }
 0x474   :  { %v3846_v37 = vpop.f32.mrf.mxu3 }
 0x475   :  { %v3847_v9 = vadd.f32 %v3846_v37, %v10607_v5  ;;  %v8027_v5 = vld [vmem:[#allocation14 + $0xc0] sm:$0xf]  ;;  %v4254_v37 = vpack.i.b16 %v4248_v30, %v4248_v30  ;;  %v8883_v30 = vld [vmem:[#allocation14 + $0x8c] sm:$0xf0]  ;;  %v10712_v14 = vunpack.c.l.bf16 %v4253_v62 }
 0x476   :  { %v3877_v7 = vpop.f32.mrf.mxu0  ;;  %v8028_v3 = vor.u32 %v8891_v60, %v8027_v5  ;;  %5466 = vmatpush.bf16.msrb.mxu2 %v8140_v42  ;;  %v8915_v60 = vld [vmem:[#allocation14 + $0x18c] sm:$0xf0]  ;;  %v7963_v42 = vld [vmem:[#allocation14 + $0x40] sm:$0xf] }
 0x477   :  { %v10698_v57 = vadd.f32 %v3875_v11, %v3847_v9  ;;  %v8091_v62 = vld [vmem:[#allocation14 + $0x140] sm:$0xf] }
 0x478   :  { %v4049_v36 = vpop.f32.mrf.mxu2  ;;  %5436 = vmatpush.bf16.msra.mxu1 %v8028_v3 }
 0x479   :  { %v10700_v1 = vadd.f32 %v4049_v36, %v4020_v44  ;;  %v4022_v11 = vpop.f32.mrf.mxu1  ;;  %v8011_v44 = vld [vmem:[#allocation14 + $0xa0] sm:$0xf]  ;;  %v8887_v36 = vld [vmem:[#allocation14 + $0xac] sm:$0xf0] }
 0x47a   :  { %v8012_v18 = vor.u32 %v8887_v36, %v8011_v44  ;;  %v3921_v44 = vadd.f32 %v10621_v51, %v10619_v56 }
 0x47c   :  { %v3848_v58 = vpop.f32.mrf.mxu3  ;;  %5437 = vmatpush.bf16.msra.mxu1 %v8012_v18 }
 0x47d   :  { %v3849_v19 = vadd.f32 %v3848_v58, %v10611_v22  ;;  %v4256_v58 = vperm.slane %v4254_v37, 0 }
 0x47e   :  { %v3976_v34 = vpop.f32.mrf.mxu0 }
 0x47f   :  { %v10703_v24 = vadd.f32 %v3877_v7, %v3849_v19  ;;  %v3919_v7 = vadd.f32 %v10617_v40, %v10613_v55  ;;  %v10714_v55 = vunpack.c.l.bf16 %v4256_v58  ;;  %v7979_v40 = vld [vmem:[#allocation14 + $0x60] sm:$0xf] }
 0x480   :  { %v4051_v9 = vpop.f32.mrf.mxu2 }
 0x481   :  { %4178 = vmatmul.bf16.vlgmr.msra.gmra.mxu3 %v10496_v0  ;;  %4207 = vmatmul.bf16.vlgmr.msrb.gmra.mxu0 %v10498_v63  ;;  %v10707_v22 = vadd.f32 %v4051_v9, %v4022_v11  ;;  %v7995_v0 = vld [vmem:[#allocation14 + $0x80] sm:$0xf]  ;;  %v8879_v11 = vld [vmem:[#allocation14 + $0x6c] sm:$0xf0] }
 0x482   :  { %v8123_v63 = vld [vmem:[#allocation14 + $0x180] sm:$0xf]  ;;  %v7996_v5 = vor.u32 %v8883_v30, %v7995_v0  ;;  %v7980_v37 = vor.u32 %v8879_v11, %v7979_v40  ;;  %v8911_v9 = vld [vmem:[#allocation14 + $0x16c] sm:$0xf0]  ;;  %v3924_v40 = vadd.f32 %v10629_v49, %v10625_v52 }
 0x483   :  { %v8124_v3 = vor.u32 %v8915_v60, %v8123_v63  ;;  %v8907_v0 = vld [vmem:[#allocation14 + $0x14c] sm:$0xf0]  ;;  %v8059_v52 = vld [vmem:[#allocation14 + $0x100] sm:$0xf] }
 0x484   :  { %v3947_v35 = vpop.f32.mrf.mxu3  ;;  %5438 = vmatpush.bf16.msra.mxu1 %v7996_v5  ;;  %v8092_v56 = vor.u32 %v8907_v0, %v8091_v62 }
 0x485   :  { %v3948_v50 = vadd.f32 %v3947_v35, %v3919_v7  ;;  %5467 = vmatpush.bf16.msrb.mxu2 %v8124_v3  ;;  %v8875_v35 = vld [vmem:[#allocation14 + $0x4c] sm:$0xf0] }
 0x486   :  { %v3978_v19 = vpop.f32.mrf.mxu0  ;;  %v8871_v3 = vld [vmem:[#allocation14 + $0x2c] sm:$0xf0] }
 0x487   :  { %v3977_v32 = vadd.f32 %v3976_v34, %v3948_v50  ;;  %v8108_v34 = vor.u32 %v8911_v9, %v8107_v20  ;;  %v7964_v50 = vor.u32 %v8875_v35, %v7963_v42  ;;  %v8903_v20 = vld [vmem:[#allocation14 + $0x12c] sm:$0xf0] }
 0x488   :  { %5439 = vmatpush.bf16.msra.mxu1 %v7980_v37 }
 0x489   :  { %v4229_v6 = vpack.c.bf16 %v3977_v32, %v10662_v4  ;;  %5468 = vmatpush.bf16.msrb.mxu2 %v8108_v34  ;;  %v7947_v32 = vld [vmem:[#allocation14 + $0x20] sm:$0xf] }
 0x48a   :  { %v7948_v11 = vor.u32 %v8871_v3, %v7947_v32 }
 0x48b   :  { %v4263_v36 = vunpack.c.l.bf16 %v4229_v6  ;;  %v4264_v45 = vunpack.c.h.bf16 %v4229_v6  ;;  %v8075_v6 = vld [vmem:[#allocation14 + $0x120] sm:$0xf] }
 0x48c   :  { %v3949_v18 = vpop.f32.mrf.mxu3  ;;  %5440 = vmatpush.bf16.msra.mxu1 %v7964_v50 }
 0x48d   :  { %v4299_v4 = vadd.f32 %v10712_v14, %v4263_v36  ;;  %v4300_v16 = vadd.f32 %v10714_v55, %v4264_v45  ;;  %v3950_v7 = vadd.f32 %v3949_v18, %v3921_v44  ;;  %5469 = vmatpush.bf16.msrb.mxu2 %v8092_v56  ;;  %v7931_v18 = vld [vmem:[#allocation14] sm:$0xf] }
 0x48e   :  { %v3981_v58 = vpop.f32.mrf.mxu0 }
 0x48f   :  { %v4331_v30 = vpack.c.bf16 %v4300_v16, %v4299_v4  ;;  %v3979_v63 = vadd.f32 %v3978_v19, %v3950_v7  ;;  %v8867_v4 = vld [vmem:[#allocation14 + $0xc] sm:$0xf0] }
 0x490   :  { %5441 = vmatpush.bf16.msra.mxu1 %v7948_v11  ;;  %v7932_v16 = vor.u32 %v8867_v4, %v7931_v18  ;;  %v8899_v7 = vld [vmem:[#allocation14 + $0x10c] sm:$0xf0] }
 0x491   :  { %v4347_v51 = vunpack.c.l.bf16 %v4331_v30  ;;  %v4348_v5 = vunpack.c.h.bf16 %v4331_v30  ;;  %v4231_v60 = vpack.c.bf16 %v3979_v63, %v10667_v21  ;;  %4183 = vmatmul.bf16.gmra.mxu3 %v10537_v31  ;;  %4212 = vmatmul.bf16.gmra.mxu0 %v10539_v10  ;;  %v8076_v21 = vor.u32 %v8903_v20, %v8075_v6 }
 0x492   :  { %v8060_v50 = vor.u32 %v8899_v7, %v8059_v52 }
 0x493   :  { %v4379_v19 = vmul.f32 0.5, %v4347_v51  ;;  %v4380_v37 = vmul.f32 0.5, %v4348_v5  ;;  %v4267_v9 = vunpack.c.l.bf16 %v4231_v60  ;;  %v4268_v44 = vunpack.c.h.bf16 %v4231_v60  ;;  %5470 = vmatpush.bf16.msrb.mxu2 %v8076_v21 }
 0x494   :  { %v3952_v36 = vpop.f32.mrf.mxu3  ;;  %5442 = vmatpush.bf16.msra.mxu1 %v7932_v16  ;;  %v3926_v51 = vadd.f32 %v10633_v15, %v10631_v47 }
 0x495   :  { %v10725_v45 = vpack.c.bf16 %v4380_v37, %v4379_v19  ;;  %v4303_v31 = vadd.f32 %v10712_v14, %v4267_v9  ;;  %v4304_v10 = vadd.f32 %v10714_v55, %v4268_v44  ;;  %v3953_v34 = vadd.f32 %v3952_v36, %v3924_v40 }
 0x496   :  { %v3983_v49 = vpop.f32.mrf.mxu0 }
 0x497   :  { %v4428_v42 = vunpack.c.h.bf16 %v10725_v45  ;;  %v4333_v35 = vpack.c.bf16 %v4304_v10, %v4303_v31  ;;  %v3982_v62 = vadd.f32 %v3981_v58, %v3953_v34  ;;  %v4427_v0 = vunpack.c.l.bf16 %v10725_v45  ;;  %5471 = vmatpush.bf16.msrb.mxu2 %v8060_v50 }
 0x498   :  { %v3929_v10 = vadd.f32 %v10641_v8, %v10637_v48 }
 0x499   :  { %9224 = vtanh.f32 %v4428_v42  ;;  %v4351_v30 = vunpack.c.l.bf16 %v4333_v35  ;;  %v4352_v63 = vunpack.c.h.bf16 %v4333_v35  ;;  %v4233_v56 = vpack.c.bf16 %v3982_v62, %v10674_v25 }
 0x49a   :  { %9226 = vtanh.f32 %v4427_v0 }
 0x49b   :  { %v4383_v5 = vmul.f32 0.5, %v4351_v30  ;;  %v4384_v58 = vmul.f32 0.5, %v4352_v63  ;;  %v4271_v60 = vunpack.c.l.bf16 %v4233_v56  ;;  %v4272_v32 = vunpack.c.h.bf16 %v4233_v56 }
 0x49c   :  { %v3954_v3 = vpop.f32.mrf.mxu3 }
 0x49d   :  { %v10738_v6 = vpack.c.bf16 %v4384_v58, %v4383_v5  ;;  %v4307_v40 = vadd.f32 %v10712_v14, %v4271_v60  ;;  %v4308_v11 = vadd.f32 %v10714_v55, %v4272_v32  ;;  %v3955_v20 = vadd.f32 %v3954_v3, %v3926_v51 }
 0x49e   :  { %v3986_v25 = vpop.f32.mrf.mxu0  ;;  %v3931_v3 = vadd.f32 %v10645_v26, %v10643_v33 }
 0x49f   :  { %v9225_v19 = vpop.eup %9224  ;;  %v4432_v47 = vunpack.c.h.bf16 %v10738_v6  ;;  %v4335_v15 = vpack.c.bf16 %v4308_v11, %v4307_v40  ;;  %v3984_v37 = vadd.f32 %v3983_v49, %v3955_v20  ;;  %v4431_v9 = vunpack.c.l.bf16 %v10738_v6 }
 0x4a0   :  { %v9227_v44 = vpop.eup %9226 }
 0x4a1   :  { %9228 = vtanh.f32 %v4432_v47  ;;  %v4355_v36 = vunpack.c.l.bf16 %v4335_v15  ;;  %v4356_v21 = vunpack.c.h.bf16 %v4335_v15  ;;  %v4235_v31 = vpack.c.bf16 %v3984_v37, %v10679_v28  ;;  %4188 = vmatmul.bf16.gmra.mxu3 %v10577_v53  ;;  %4217 = vmatmul.bf16.gmra.mxu0 %v10579_v17 }
 0x4a2   :  { %9230 = vtanh.f32 %v4431_v9  ;;  %v4491_v34 = vpack.c.bf16 %v9225_v19, %v9227_v44 }
 0x4a3   :  { %v4387_v18 = vmul.f32 0.5, %v4355_v36  ;;  %v4388_v4 = vmul.f32 0.5, %v4356_v21  ;;  %v4275_v52 = vunpack.c.l.bf16 %v4235_v31  ;;  %v4276_v49 = vunpack.c.h.bf16 %v4235_v31 }
 0x4a4   :  { %v3957_v16 = vpop.f32.mrf.mxu3  ;;  %v4507_v7 = vunpack.c.l.bf16 %v4491_v34  ;;  %v4508_v35 = vunpack.c.h.bf16 %v4491_v34 }
 0x4a5   :  { %v4311_v28 = vadd.f32 %v10712_v14, %v4275_v52  ;;  %v4312_v53 = vadd.f32 %v10714_v55, %v4276_v49  ;;  %v3958_v62 = vadd.f32 %v3957_v16, %v3929_v10  ;;  %v10755_v17 = vpack.c.bf16 %v4388_v4, %v4387_v18 }
 0x4a6   :  { %v3988_v50 = vpop.f32.mrf.mxu0  ;;  %v4539_v48 = vadd.f32 1.0, %v4507_v7  ;;  %v4540_v8 = vadd.f32 1.0, %v4508_v35 }
 0x4a7   :  { %v9229_v30 = vpop.eup %9228  ;;  %v4337_v63 = vpack.c.bf16 %v4312_v53, %v4311_v28  ;;  %v3987_v56 = vadd.f32 %v3986_v25, %v3958_v62  ;;  %v4435_v5 = vunpack.c.l.bf16 %v10755_v17  ;;  %v4436_v20 = vunpack.c.h.bf16 %v10755_v17 }
 0x4a8   :  { %v9231_v51 = vpop.eup %9230  ;;  %v4571_v11 = vpack.c.bf16 %v4540_v8, %v4539_v48  ;;  %v3934_v53 = vadd.f32 %v10653_v38, %v10649_v2 }
 0x4a9   :  { %v4359_v58 = vunpack.c.l.bf16 %v4337_v63  ;;  %v4360_v60 = vunpack.c.h.bf16 %v4337_v63  ;;  %v4237_v32 = vpack.c.bf16 %v3987_v56, %v10686_v43  ;;  %v4493_v40 = vpack.c.bf16 %v9229_v30, %v9231_v51 }
 0x4aa   :  { %9232 = vtanh.f32 %v4435_v5  ;;  %v4587_v4 = vunpack.c.l.bf16 %v4571_v11  ;;  %v4588_v35 = vunpack.c.h.bf16 %v4571_v11 }
 0x4ab   :  { %v4391_v19 = vmul.f32 0.5, %v4359_v58  ;;  %v4392_v15 = vmul.f32 0.5, %v4360_v60  ;;  %v4279_v37 = vunpack.c.l.bf16 %v4237_v32  ;;  %v4280_v44 = vunpack.c.h.bf16 %v4237_v32 }
 0x4ac   :  { %v3959_v36 = vpop.f32.mrf.mxu3  ;;  %v4511_v25 = vunpack.c.l.bf16 %v4493_v40  ;;  %v4512_v21 = vunpack.c.h.bf16 %v4493_v40  ;;  %9234 = vtanh.f32 %v4436_v20 }
 0x4ad   :  { %v4315_v31 = vadd.f32 %v10712_v14, %v4279_v37  ;;  %v4316_v43 = vadd.f32 %v10714_v55, %v4280_v44  ;;  %v3960_v10 = vadd.f32 %v3959_v36, %v3931_v3  ;;  %v10766_v33 = vpack.c.bf16 %v4392_v15, %v4391_v19 }
 0x4ae   :  { %v3991_v26 = vpop.f32.mrf.mxu0  ;;  %v4543_v34 = vadd.f32 1.0, %v4511_v25  ;;  %v4544_v18 = vadd.f32 1.0, %v4512_v21 }
 0x4af   :  { %v4339_v52 = vpack.c.bf16 %v4316_v43, %v4315_v31  ;;  %v3989_v49 = vadd.f32 %v3988_v50, %v3960_v10  ;;  %v4439_v16 = vunpack.c.l.bf16 %v10766_v33  ;;  %v4440_v28 = vunpack.c.h.bf16 %v10766_v33 }
 0x4b0   :  { %v4573_v7 = vpack.c.bf16 %v4544_v18, %v4543_v34  ;;  %v9233_v30 = vpop.eup %9232  ;;  %v4619_v50 = vmul.f32 %v4587_v4, %v4427_v0  ;;  %v3936_v34 = vadd.f32 %v10657_v13, %v10655_v27  ;;  %v8893_v4 = vld [vmem:[#allocation14 + $0xe4] sm:$0xf] }
 0x4b1   :  { %v4363_v62 = vunpack.c.l.bf16 %v4339_v52  ;;  %v4364_v48 = vunpack.c.h.bf16 %v4339_v52  ;;  %v4239_v8 = vpack.c.bf16 %v3989_v49, %v10691_v46  ;;  %4193 = vmatmul.bf16.gmra.mxu3 %v10597_v54  ;;  %4222 = vmatmul.bf16.gmra.mxu0 %v10599_v41  ;;  %9236 = vtanh.f32 %v4439_v16  ;;  %v8045_v52 = vld [vmem:[#allocation14 + $0xf0] sm:$0xf0] }
 0x4b2   :  { %v4591_v63 = vunpack.c.l.bf16 %v4573_v7  ;;  %v4592_v56 = vunpack.c.h.bf16 %v4573_v7  ;;  %v9235_v60 = vpop.eup %9234  ;;  %v4620_v41 = vmul.f32 %v4588_v35, %v4428_v42  ;;  %9238 = vtanh.f32 %v4440_v28 }
 0x4b3   :  { %v4395_v51 = vmul.f32 0.5, %v4363_v62  ;;  %v4396_v58 = vmul.f32 0.5, %v4364_v48  ;;  %v4283_v2 = vunpack.c.l.bf16 %v4239_v8  ;;  %v4284_v38 = vunpack.c.h.bf16 %v4239_v8 }
 0x4b4   :  { %v3962_v32 = vpop.f32.mrf.mxu3  ;;  %v4623_v54 = vmul.f32 %v4591_v63, %v4431_v9  ;;  %v4624_v46 = vmul.f32 %v4592_v56, %v4432_v47  ;;  %v4495_v11 = vpack.c.bf16 %v9235_v60, %v9233_v30 }
 0x4b5   :  { %v4319_v0 = vadd.f32 %v10712_v14, %v4283_v2  ;;  %v4320_v3 = vadd.f32 %v10714_v55, %v4284_v38  ;;  %v3963_v40 = vadd.f32 %v3962_v32, %v3934_v53  ;;  %v10795_v9 = vpack.c.bf16 %v4396_v58, %v4395_v51  ;;  %v8925_v38 = vld [vmem:[#allocation14 + $0x1e4] sm:$0xf] }
 0x4b6   :  { %v3993_v19 = vpop.f32.mrf.mxu0  ;;  %v10791_v15 = vpack.c.bf16 %v4623_v54, %v4619_v50  ;;  %v10793_v37 = vpack.c.bf16 %v4624_v46, %v4620_v41  ;;  %v4515_v6 = vunpack.c.l.bf16 %v4495_v11  ;;  %v4516_v47 = vunpack.c.h.bf16 %v4495_v11  ;;  %v8173_v41 = vld [vmem:[#allocation14 + $0x1f0] sm:$0xf0]  ;;  %v8889_v46 = vld [vmem:[#allocation14 + $0xc4] sm:$0xf] }
 0x4b7   :  { %v4341_v45 = vpack.c.bf16 %v4320_v3, %v4319_v0  ;;  %v3992_v42 = vadd.f32 %v3991_v26, %v3963_v40  ;;  %v9237_v44 = vpop.eup %9236  ;;  %v4443_v36 = vunpack.c.l.bf16 %v10795_v9  ;;  %v4444_v25 = vunpack.c.h.bf16 %v10795_v9  ;;  %v8029_v0 = vld [vmem:[#allocation14 + $0xd0] sm:$0xf0] }
 0x4b8   :  { %5443 = vmatmul.bf16.vlgmr.msra.gmra.mxu1 %v10791_v15  ;;  %5472 = vmatmul.bf16.vlgmr.msrb.gmra.mxu2 %v10793_v37  ;;  %v9239_v10 = vpop.eup %9238  ;;  %v4547_v26 = vadd.f32 1.0, %v4515_v6  ;;  %v4548_v18 = vadd.f32 1.0, %v4516_v47  ;;  %v7933_v9 = vld [vmem:[#allocation14 + $0x10] sm:$0xf0] }
 0x4b9   :  { %v4367_v21 = vunpack.c.l.bf16 %v4341_v45  ;;  %v4368_v31 = vunpack.c.h.bf16 %v4341_v45  ;;  %v4241_v43 = vpack.c.bf16 %v3992_v42, %v10698_v57  ;;  %9240 = vtanh.f32 %v4443_v36 }
 0x4ba   :  { %v4497_v48 = vpack.c.bf16 %v9239_v10, %v9237_v44  ;;  %v4575_v8 = vpack.c.bf16 %v4548_v18, %v4547_v26  ;;  %9242 = vtanh.f32 %v4444_v25  ;;  %v8048_v57 = vor.u32 %v8893_v4, %v8045_v52  ;;  %v8157_v26 = vld [vmem:[#allocation14 + $0x1d0] sm:$0xf0] }
 0x4bb   :  { %v4399_v49 = vmul.f32 0.5, %v4367_v21  ;;  %v4400_v7 = vmul.f32 0.5, %v4368_v31  ;;  %v4287_v35 = vunpack.c.l.bf16 %v4241_v43  ;;  %v4288_v53 = vunpack.c.h.bf16 %v4241_v43 }
 0x4bc   :  { %v3964_v62 = vpop.f32.mrf.mxu3  ;;  %v4519_v56 = vunpack.c.l.bf16 %v4497_v48  ;;  %v4520_v51 = vunpack.c.h.bf16 %v4497_v48  ;;  %v4595_v58 = vunpack.c.l.bf16 %v4575_v8  ;;  %v4596_v2 = vunpack.c.h.bf16 %v4575_v8  ;;  %5551 = vmatpush.bf16.msrb.mxu1 %v8048_v57 }
 0x4bd   :  { %v4323_v27 = vadd.f32 %v10712_v14, %v4287_v35  ;;  %v4324_v13 = vadd.f32 %v10714_v55, %v4288_v53  ;;  %v3965_v30 = vadd.f32 %v3964_v62, %v3936_v34  ;;  %v10810_v63 = vpack.c.bf16 %v4400_v7, %v4399_v49  ;;  %v8921_v34 = vld [vmem:[#allocation14 + $0x1c4] sm:$0xf]  ;;  %v8141_v62 = vld [vmem:[#allocation14 + $0x1b0] sm:$0xf0] }
 0x4be   :  { %v4092_v50 = vpop.f32.mrf.mxu0  ;;  %v4551_v40 = vadd.f32 1.0, %v4519_v56  ;;  %v4552_v11 = vadd.f32 1.0, %v4520_v51  ;;  %v4627_v45 = vmul.f32 %v4595_v58, %v4435_v5  ;;  %v8176_v43 = vor.u32 %v8925_v38, %v8173_v41  ;;  %v8885_v49 = vld [vmem:[#allocation14 + $0xa4] sm:$0xf]  ;;  %v7997_v38 = vld [vmem:[#allocation14 + $0x90] sm:$0xf0] }
 0x4bf   :  { %v4343_v60 = vpack.c.bf16 %v4324_v13, %v4323_v27  ;;  %v3994_v32 = vadd.f32 %v3993_v19, %v3965_v30  ;;  %v4447_v54 = vunpack.c.l.bf16 %v10810_v63  ;;  %v9241_v3 = vpop.eup %9240  ;;  %v4448_v42 = vunpack.c.h.bf16 %v10810_v63  ;;  %v8917_v53 = vld [vmem:[#allocation14 + $0x1a4] sm:$0xf]  ;;  %v8959_v63 = vld [vmem:[#allocation14 + $0x2ec] sm:$0xf0] }
 0x4c0   :  { %v4628_v19 = vmul.f32 %v4596_v2, %v4436_v20  ;;  %v9243_v21 = vpop.eup %9242  ;;  %v4577_v31 = vpack.c.bf16 %v4552_v11, %v4551_v40  ;;  %v8032_v10 = vor.u32 %v8889_v46, %v8029_v0  ;;  %5580 = vmatpush.bf16.msra.mxu2 %v8176_v43  ;;  %v8013_v20 = vld [vmem:[#allocation14 + $0xb0] sm:$0xf0]  ;;  %v8160_v27 = vor.u32 %v8921_v34, %v8157_v26  ;;  %v8881_v2 = vld [vmem:[#allocation14 + $0x84] sm:$0xf] }
 0x4c1   :  { %v4371_v6 = vunpack.c.l.bf16 %v4343_v60  ;;  %v4372_v47 = vunpack.c.h.bf16 %v4343_v60  ;;  %v4243_v44 = vpack.c.bf16 %v3994_v32, %v10703_v24  ;;  %9244 = vtanh.f32 %v4447_v54  ;;  %v8913_v40 = vld [vmem:[#allocation14 + $0x184] sm:$0xf]  ;;  %v8125_v11 = vld [vmem:[#allocation14 + $0x190] sm:$0xf0] }
 0x4c2   :  { %v4599_v35 = vunpack.c.l.bf16 %v4577_v31  ;;  %v4600_v24 = vunpack.c.h.bf16 %v4577_v31  ;;  %9246 = vtanh.f32 %v4448_v42  ;;  %v4499_v17 = vpack.c.bf16 %v9243_v21, %v9241_v3  ;;  %5552 = vmatpush.bf16.msrb.mxu1 %v8032_v10 }
 0x4c3   :  { %v4403_v18 = vmul.f32 0.5, %v4371_v6  ;;  %v4404_v5 = vmul.f32 0.5, %v4372_v47  ;;  %v4291_v4 = vunpack.c.l.bf16 %v4243_v44  ;;  %v4292_v52 = vunpack.c.h.bf16 %v4243_v44  ;;  %v7981_v47 = vld [vmem:[#allocation14 + $0x70] sm:$0xf0] }
 0x4c4   :  { %v4063_v7 = vpop.f32.mrf.mxu3  ;;  %v4631_v30 = vmul.f32 %v4599_v35, %v4439_v16  ;;  %v4632_v56 = vmul.f32 %v4600_v24, %v4440_v28  ;;  %v4523_v51 = vunpack.c.l.bf16 %v4499_v17  ;;  %v4524_v58 = vunpack.c.h.bf16 %v4499_v17  ;;  %5581 = vmatpush.bf16.msra.mxu2 %v8160_v27  ;;  %v8873_v24 = vld [vmem:[#allocation14 + $0x44] sm:$0xf]  ;;  %v7965_v17 = vld [vmem:[#allocation14 + $0x50] sm:$0xf0] }
 0x4c5   :  { %v4327_v48 = vadd.f32 %v10712_v14, %v4291_v4  ;;  %v4328_v8 = vadd.f32 %v10714_v55, %v4292_v52  ;;  %v4064_v57 = vadd.f32 %v4063_v7, %v10664_v59  ;;  %v8016_v14 = vor.u32 %v8885_v49, %v8013_v20  ;;  %v8109_v7 = vld [vmem:[#allocation14 + $0x170] sm:$0xf0] }
 0x4c6   :  { %v10826_v13 = vpop.f32.mrf.mxu0  ;;  %v8144_v55 = vor.u32 %v8917_v53, %v8141_v62  ;;  %v10834_v59 = vpack.c.bf16 %v4631_v30, %v4627_v45  ;;  %v10836_v46 = vpack.c.bf16 %v4632_v56, %v4628_v19  ;;  %v4555_v0 = vadd.f32 1.0, %v4523_v51  ;;  %v8877_v45 = vld [vmem:[#allocation14 + $0x64] sm:$0xf] }
 0x4c7   :  { %v4345_v60 = vpack.c.bf16 %v4328_v8, %v4327_v48  ;;  %v10832_v32 = vadd.f32 %v4092_v50, %v4064_v57  ;;  %v9245_v41 = vpop.eup %9244  ;;  %v4556_v3 = vadd.f32 1.0, %v4524_v58  ;;  %5553 = vmatpush.bf16.msrb.mxu1 %v8016_v14  ;;  %v8000_v28 = vor.u32 %v8881_v2, %v7997_v38  ;;  %v8905_v51 = vld [vmem:[#allocation14 + $0x144] sm:$0xf]  ;;  %v8093_v58 = vld [vmem:[#allocation14 + $0x150] sm:$0xf0] }
 0x4c8   :  { %v9247_v6 = vpop.eup %9246  ;;  %5448 = vmatmul.bf16.gmra.mxu1 %v10834_v59  ;;  %5477 = vmatmul.bf16.gmra.mxu2 %v10836_v46  ;;  %v10840_v50 = vpack.c.bf16 %v4404_v5, %v4403_v18  ;;  %v8128_v10 = vor.u32 %v8913_v40, %v8125_v11  ;;  %v7984_v18 = vor.u32 %v8877_v45, %v7981_v47  ;;  %v8909_v5 = vld [vmem:[#allocation14 + $0x164] sm:$0xf]  ;;  %v7949_v38 = vld [vmem:[#allocation14 + $0x30] sm:$0xf0] }
 0x4c9   :  { %v4375_v16 = vunpack.c.l.bf16 %v4345_v60  ;;  %v4376_v33 = vunpack.c.h.bf16 %v4345_v60  ;;  %v4501_v21 = vpack.c.bf16 %v9247_v6, %v9245_v41  ;;  %v4579_v31 = vpack.c.bf16 %v4556_v3, %v4555_v0  ;;  %5582 = vmatpush.bf16.msra.mxu2 %v8144_v55  ;;  %v8869_v2 = vld [vmem:[#allocation14 + $0x24] sm:$0xf]  ;;  %v8077_v45 = vld [vmem:[#allocation14 + $0x130] sm:$0xf0] }
 0x4ca   :  { %v4451_v34 = vunpack.c.l.bf16 %v10840_v50  ;;  %v4452_v26 = vunpack.c.h.bf16 %v10840_v50  ;;  %v8112_v27 = vor.u32 %v8909_v5, %v8109_v7  ;;  %v7968_v56 = vor.u32 %v8873_v24, %v7965_v17  ;;  %v8901_v6 = vld [vmem:[#allocation14 + $0x124] sm:$0xf]  ;;  %v8061_v17 = vld [vmem:[#allocation14 + $0x110] sm:$0xf0] }
 0x4cb   :  { %v4407_v44 = vmul.f32 0.5, %v4375_v16  ;;  %v4408_v19 = vmul.f32 0.5, %v4376_v33  ;;  %v4527_v4 = vunpack.c.l.bf16 %v4501_v21  ;;  %v4528_v52 = vunpack.c.h.bf16 %v4501_v21  ;;  %5554 = vmatpush.bf16.msrb.mxu1 %v8000_v28  ;;  %v8897_v24 = vld [vmem:[#allocation14 + $0x104] sm:$0xf] }
 0x4cc   :  { %v10842_v43 = vpop.f32.mrf.mxu3  ;;  %9248 = vtanh.f32 %v4451_v34  ;;  %v4603_v62 = vunpack.c.l.bf16 %v4579_v31  ;;  %v4604_v8 = vunpack.c.h.bf16 %v4579_v31  ;;  %v8096_v16 = vor.u32 %v8905_v51, %v8093_v58  ;;  %v8299_v31 = vld [vmem:[#allocation14 + $0x2e0] sm:$0xf] }
 0x4cd   :  { %v10846_v49 = vpack.c.bf16 %v4408_v19, %v4407_v44  ;;  %v4559_v20 = vadd.f32 1.0, %v4527_v4  ;;  %v4560_v53 = vadd.f32 1.0, %v4528_v52  ;;  %5583 = vmatpush.bf16.msra.mxu2 %v8128_v10  ;;  %9250 = vtanh.f32 %v4452_v26 }
 0x4ce   :  { %v4097_v35 = vpop.f32.mrf.mxu0  ;;  %v4635_v0 = vmul.f32 %v4603_v62, %v4443_v36  ;;  %v4636_v3 = vmul.f32 %v4604_v8, %v4444_v25  ;;  %v7952_v11 = vor.u32 %v8869_v2, %v7949_v38  ;;  %v8865_v36 = vld [vmem:[#allocation14 + $0x4] sm:$0xf]  ;;  %v8080_v10 = vor.u32 %v8901_v6, %v8077_v45 }
 0x4cf   :  { %v4455_v48 = vunpack.c.l.bf16 %v10846_v49  ;;  %v4456_v57 = vunpack.c.h.bf16 %v10846_v49  ;;  %v4581_v30 = vpack.c.bf16 %v4560_v53, %v4559_v20  ;;  %5555 = vmatpush.bf16.msrb.mxu1 %v7984_v18  ;;  %v8300_v4 = vor.u32 %v8959_v63, %v8299_v31 }
 0x4d0   :  { %v7936_v7 = vor.u32 %v8865_v36, %v7933_v9 }
 0x4d1   :  { %9252 = vtanh.f32 %v4455_v48  ;;  %v4607_v60 = vunpack.c.l.bf16 %v4581_v30  ;;  %v4608_v14 = vunpack.c.h.bf16 %v4581_v30  ;;  %5584 = vmatpush.bf16.msra.mxu2 %v8112_v27  ;;  %5493 = vmatpush.bf16.msrb.mxu3 %v8300_v4  ;;  %v8064_v27 = vor.u32 %v8897_v24, %v8061_v17  ;;  %v8267_v4 = vld [vmem:[#allocation14 + $0x2a0] sm:$0xf]  ;;  %v8987_v24 = vld [vmem:[#allocation14 + $0x3cc] sm:$0xf0] }
 0x4d2   :  { %9254 = vtanh.f32 %v4456_v57  ;;  %v9249_v55 = vpop.eup %9248 }
 0x4d3   :  { %v4639_v28 = vmul.f32 %v4607_v60, %v4447_v54  ;;  %v4640_v40 = vmul.f32 %v4608_v14, %v4448_v42  ;;  %5556 = vmatpush.bf16.msrb.mxu1 %v7968_v56  ;;  %v9251_v47 = vpop.eup %9250  ;;  %v8283_v14 = vld [vmem:[#allocation14 + $0x2c0] sm:$0xf] }
 0x4d4   :  { %v4068_v41 = vpop.f32.mrf.mxu3  ;;  %v4503_v54 = vpack.c.bf16 %v9251_v47, %v9249_v55  ;;  %v8955_v55 = vld [vmem:[#allocation14 + $0x2cc] sm:$0xf0] }
 0x4d5   :  { %v4069_v33 = vadd.f32 %v4068_v41, %v10676_v61  ;;  %v10871_v21 = vpack.c.bf16 %v4639_v28, %v4635_v0  ;;  %v10873_v61 = vpack.c.bf16 %v4640_v40, %v4636_v3  ;;  %5585 = vmatpush.bf16.msra.mxu2 %v8096_v16  ;;  %v8427_v41 = vld [vmem:[#allocation14 + $0x3e0] sm:$0xf]  ;;  %v8284_v0 = vor.u32 %v8955_v55, %v8283_v14  ;;  %v8991_v3 = vld [vmem:[#allocation14 + $0x3ec] sm:$0xf0]  ;;  %v8892_v14 = vld [vmem:[#allocation14 + $0xd4] sm:$0xf0] }
 0x4d6   :  { %v10867_v44 = vpop.f32.mrf.mxu0  ;;  %v4531_v18 = vunpack.c.l.bf16 %v4503_v54  ;;  %v4532_v5 = vunpack.c.h.bf16 %v4503_v54  ;;  %v8428_v28 = vor.u32 %v8991_v3, %v8427_v41  ;;  %v8163_v55 = vld [vmem:[#allocation14 + $0x1c8] sm:$0xf] }
 0x4d7   :  { %v9253_v25 = vpop.eup %9252  ;;  %v10869_v19 = vadd.f32 %v4097_v35, %v4069_v33  ;;  %5557 = vmatpush.bf16.msrb.mxu1 %v7952_v11  ;;  %5494 = vmatpush.bf16.msrb.mxu3 %v8284_v0  ;;  %v8924_v0 = vld [vmem:[#allocation14 + $0x1d4] sm:$0xf0] }
 0x4d8   :  { %v9255_v42 = vpop.eup %9254  ;;  %5453 = vmatmul.bf16.gmra.mxu1 %v10871_v21  ;;  %5482 = vmatmul.bf16.gmra.mxu2 %v10873_v61  ;;  %v4563_v53 = vadd.f32 1.0, %v4531_v18  ;;  %v4564_v62 = vadd.f32 1.0, %v4532_v5  ;;  %v8411_v18 = vld [vmem:[#allocation14 + $0x3c0] sm:$0xf] }
 0x4d9   :  { %v4505_v52 = vpack.c.bf16 %v9255_v42, %v9253_v25  ;;  %5586 = vmatpush.bf16.msra.mxu2 %v8080_v10  ;;  %5522 = vmatpush.bf16.msra.mxu0 %v8428_v28  ;;  %v4249_v5 = vld [vmem:[#allocation1 + $0x12] sm:$0xff] }
 0x4da   :  { %v4583_v51 = vpack.c.bf16 %v4564_v62, %v4563_v53  ;;  %v8896_v53 = vld [vmem:[#allocation14 + $0xf4] sm:$0xf0]  ;;  %v8395_v28 = vld [vmem:[#allocation14 + $0x3a0] sm:$0xf] }
 0x4db   :  { %v4535_v35 = vunpack.c.l.bf16 %v4505_v52  ;;  %v4536_v20 = vunpack.c.h.bf16 %v4505_v52  ;;  %5558 = vmatpush.bf16.msrb.mxu1 %v7936_v7  ;;  %v8951_v52 = vld [vmem:[#allocation14 + $0x2ac] sm:$0xf0] }
 0x4dc   :  { %v10877_v8 = vpop.f32.mrf.mxu3  ;;  %v4611_v38 = vunpack.c.l.bf16 %v4583_v51  ;;  %v4612_v60 = vunpack.c.h.bf16 %v4583_v51  ;;  %v8268_v7 = vor.u32 %v8951_v52, %v8267_v4 }
 0x4dd   :  { %v4567_v30 = vadd.f32 1.0, %v4535_v35  ;;  %v4568_v56 = vadd.f32 1.0, %v4536_v20  ;;  %5587 = vmatpush.bf16.msra.mxu2 %v8064_v27  ;;  %v8412_v35 = vor.u32 %v8987_v24, %v8411_v18  ;;  %v8051_v20 = vld [vmem:[#allocation14 + $0xe8] sm:$0xf]  ;;  %v8979_v18 = vld [vmem:[#allocation14 + $0x38c] sm:$0xf0] }
 0x4de   :  { %v4102_v58 = vpop.f32.mrf.mxu0  ;;  %v4643_v40 = vmul.f32 %v4611_v38, %v4451_v34  ;;  %v4644_v6 = vmul.f32 %v4612_v60, %v4452_v26  ;;  %v4121_v34 = vpop.f32.mrf.mxu1  ;;  %5495 = vmatpush.bf16.msrb.mxu3 %v8268_v7  ;;  %v8052_v27 = vor.u32 %v8896_v53, %v8051_v20  ;;  %v4257_v38 = vpack.i.b16 %v4249_v5, %v4249_v5  ;;  %v8035_v60 = vld [vmem:[#allocation14 + $0xc8] sm:$0xf]  ;;  %v8888_v7 = vld [vmem:[#allocation14 + $0xb4] sm:$0xf0] }
 0x4df   :  { %v4585_v2 = vpack.c.bf16 %v4568_v56, %v4567_v30  ;;  %v8928_v30 = vld [vmem:[#allocation14 + $0x1f4] sm:$0xf0]  ;;  %5523 = vmatpush.bf16.msra.mxu0 %v8412_v35  ;;  %v8036_v41 = vor.u32 %v8892_v14, %v8035_v60  ;;  %v8019_v5 = vld [vmem:[#allocation14 + $0xa8] sm:$0xf] }
 0x4e0   :  { %5667 = vmatpush.bf16.msra.mxu1 %v8052_v27  ;;  %v8147_v27 = vld [vmem:[#allocation14 + $0x1a8] sm:$0xf]  ;;  %v8884_v60 = vld [vmem:[#allocation14 + $0x94] sm:$0xf0] }
 0x4e1   :  { %v4615_v16 = vunpack.c.l.bf16 %v4585_v2  ;;  %v4616_v33 = vunpack.c.h.bf16 %v4585_v2  ;;  %v4250_v2 = vld [vmem:[#allocation1 + $0x1b] sm:$0xff] }
 0x4e2   :  { %v4260_v3 = vpack.i.b16 %v4250_v2, %v4250_v2  ;;  %v8131_v14 = vld [vmem:[#allocation14 + $0x188] sm:$0xf] }
 0x4e3   :  { %v4647_v11 = vmul.f32 %v4615_v16, %v4455_v48  ;;  %v4648_v45 = vmul.f32 %v4616_v33, %v4456_v57  ;;  %v4150_v48 = vpop.f32.mrf.mxu2  ;;  %v8251_v16 = vld [vmem:[#allocation14 + $0x280] sm:$0xf]  ;;  %v8947_v33 = vld [vmem:[#allocation14 + $0x28c] sm:$0xf0] }
 0x4e4   :  { %v4073_v47 = vpop.f32.mrf.mxu3  ;;  %5668 = vmatpush.bf16.msra.mxu1 %v8036_v41  ;;  %v4262_v20 = vperm.slane %v4260_v3, 0  ;;  %v8916_v41 = vld [vmem:[#allocation14 + $0x194] sm:$0xf0] }
 0x4e5   :  { %v4074_v36 = vadd.f32 %v4073_v47, %v10688_v12  ;;  %v10888_v9 = vpack.c.bf16 %v4647_v11, %v4643_v40  ;;  %v10890_v25 = vpack.c.bf16 %v4648_v45, %v4644_v6  ;;  %v8164_v40 = vor.u32 %v8924_v0, %v8163_v55  ;;  %v8983_v45 = vld [vmem:[#allocation14 + $0x3ac] sm:$0xf0] }
 0x4e6   :  { %v10892_v54 = vpop.f32.mrf.mxu0  ;;  %v10900_v49 = vpop.f32.mrf.mxu1  ;;  %v4259_v11 = vperm.slane %v4257_v38, 0  ;;  %v8252_v6 = vor.u32 %v8947_v33, %v8251_v16  ;;  %v4151_v47 = vadd.f32 %v4150_v48, %v4121_v34  ;;  %v8920_v34 = vld [vmem:[#allocation14 + $0x1b4] sm:$0xf0]  ;;  %v8003_v38 = vld [vmem:[#allocation14 + $0x88] sm:$0xf]  ;;  %v10924_v16 = vunpack.c.l.bf16 %v4262_v20 }
 0x4e7   :  { %v10894_v31 = vadd.f32 %v4102_v58, %v4074_v36  ;;  %v8396_v36 = vor.u32 %v8983_v45, %v8395_v28  ;;  %v8004_v55 = vor.u32 %v8884_v60, %v8003_v38  ;;  %v8132_v33 = vor.u32 %v8916_v41, %v8131_v14  ;;  %v8219_v45 = vld [vmem:[#allocation14 + $0x240] sm:$0xf]  ;;  %v8876_v38 = vld [vmem:[#allocation14 + $0x54] sm:$0xf0]  ;;  %v8099_v60 = vld [vmem:[#allocation14 + $0x148] sm:$0xf] }
 0x4e8   :  { %5458 = vmatmul.bf16.gmra.mxu1 %v10888_v9  ;;  %5487 = vmatmul.bf16.gmra.mxu2 %v10890_v25  ;;  %v10922_v3 = vunpack.c.l.bf16 %v4259_v11  ;;  %v4066_v28 = vadd.f32 %v10842_v43, %v10671_v23  ;;  %v8363_v11 = vld [vmem:[#allocation14 + $0x360] sm:$0xf]  ;;  %v8912_v23 = vld [vmem:[#allocation14 + $0x174] sm:$0xf0] }
 0x4e9   :  { %5496 = vmatpush.bf16.msrb.mxu3 %v8252_v6  ;;  %5524 = vmatpush.bf16.msra.mxu0 %v8396_v36  ;;  %v8908_v14 = vld [vmem:[#allocation14 + $0x154] sm:$0xf0] }
 0x4ea   :  { %v4095_v20 = vadd.f32 %v10826_v13, %v4066_v28 }
 0x4eb   :  { %v10902_v12 = vpop.f32.mrf.mxu2 }
 0x4ec   :  { %v10898_v50 = vpop.f32.mrf.mxu3 }
 0x4ee   :  { %v4107_v26 = vpop.f32.mrf.mxu0  ;;  %v10911_v17 = vpop.f32.mrf.mxu1 }
 0x4f3   :  { %v10915_v56 = vpop.f32.mrf.mxu2 }
 0x4f4   :  { %v4078_v57 = vpop.f32.mrf.mxu3  ;;  %v4156_v13 = vadd.f32 %v10915_v56, %v10911_v17 }
 0x4f5   :  { %v4079_v63 = vadd.f32 %v4078_v57, %v10700_v1  ;;  %v8179_v1 = vld [vmem:[#allocation14 + $0x1e8] sm:$0xf]  ;;  %v8943_v57 = vld [vmem:[#allocation14 + $0x26c] sm:$0xf0] }
 0x4f6   :  { %v10905_v42 = vpop.f32.mrf.mxu0  ;;  %v8180_v51 = vor.u32 %v8928_v30, %v8179_v1  ;;  %v10917_v24 = vpop.f32.mrf.mxu1  ;;  %v8020_v1 = vor.u32 %v8888_v7, %v8019_v5  ;;  %v8148_v30 = vor.u32 %v8920_v34, %v8147_v27  ;;  %v8347_v27 = vld [vmem:[#allocation14 + $0x340] sm:$0xf]  ;;  %v8971_v34 = vld [vmem:[#allocation14 + $0x34c] sm:$0xf0] }
 0x4f7   :  { %v10907_v10 = vadd.f32 %v4107_v26, %v4079_v63  ;;  %v8235_v26 = vld [vmem:[#allocation14 + $0x260] sm:$0xf] }
 0x4f8   :  { %5559 = vmatmul.bf16.vlgmr.msrb.gmra.mxu1 %v10791_v15  ;;  %5588 = vmatmul.bf16.vlgmr.msra.gmra.mxu2 %v10793_v37  ;;  %v8379_v63 = vld [vmem:[#allocation14 + $0x380] sm:$0xf]  ;;  %v8236_v52 = vor.u32 %v8943_v57, %v8235_v26  ;;  %v8975_v26 = vld [vmem:[#allocation14 + $0x36c] sm:$0xf0]  ;;  %v7987_v57 = vld [vmem:[#allocation14 + $0x68] sm:$0xf] }
 0x4f9   :  { %5696 = vmatpush.bf16.msrb.mxu2 %v8180_v51  ;;  %v8380_v53 = vor.u32 %v8979_v18, %v8379_v63  ;;  %5669 = vmatpush.bf16.msra.mxu1 %v8020_v1  ;;  %v8880_v63 = vld [vmem:[#allocation14 + $0x74] sm:$0xf0]  ;;  %v8115_v18 = vld [vmem:[#allocation14 + $0x168] sm:$0xf] }
 0x4fa   :  { %5497 = vmatpush.bf16.msrb.mxu3 %v8236_v52  ;;  %v7988_v5 = vor.u32 %v8880_v63, %v7987_v57  ;;  %v8116_v7 = vor.u32 %v8912_v23, %v8115_v18  ;;  %v8967_v57 = vld [vmem:[#allocation14 + $0x32c] sm:$0xf0]  ;;  %v7955_v63 = vld [vmem:[#allocation14 + $0x28] sm:$0xf]  ;;  %v8904_v18 = vld [vmem:[#allocation14 + $0x134] sm:$0xf0] }
 0x4fb   :  { %v10919_v51 = vpop.f32.mrf.mxu2  ;;  %5525 = vmatpush.bf16.msra.mxu0 %v8380_v53 }
 0x4fc   :  { %v10913_v62 = vpop.f32.mrf.mxu3 }
 0x4fd   :  { %5697 = vmatpush.bf16.msrb.mxu2 %v8164_v40  ;;  %5670 = vmatpush.bf16.msra.mxu1 %v8004_v55 }
 0x4fe   :  { %v4208_v58 = vpop.f32.mrf.mxu0 }
 0x501   :  { %5698 = vmatpush.bf16.msrb.mxu2 %v8148_v30  ;;  %v7971_v30 = vld [vmem:[#allocation14 + $0x48] sm:$0xf]  ;;  %5671 = vmatpush.bf16.msra.mxu1 %v7988_v5 }
 0x503   :  { %v10937_v55 = vpop.f32.mrf.mxu2 }
 0x504   :  { %v4179_v4 = vpop.f32.mrf.mxu3 }
 0x505   :  { %v4180_v35 = vadd.f32 %v4179_v4, %v4151_v47  ;;  %5699 = vmatpush.bf16.msrb.mxu2 %v8132_v33 }
 0x506   :  { %v4210_v48 = vpop.f32.mrf.mxu0 }
 0x507   :  { %v4209_v2 = vadd.f32 %v4208_v58, %v4180_v35  ;;  %v4153_v58 = vadd.f32 %v10902_v12, %v10900_v49  ;;  %v8364_v12 = vor.u32 %v8975_v26, %v8363_v11  ;;  %v10934_v35 = vpop.f32.mrf.mxu1  ;;  %v8935_v11 = vld [vmem:[#allocation14 + $0x22c] sm:$0xf0]  ;;  %v8331_v26 = vld [vmem:[#allocation14 + $0x320] sm:$0xf] }
 0x508   :  { %5564 = vmatmul.bf16.gmra.mxu1 %v10834_v59  ;;  %5593 = vmatmul.bf16.gmra.mxu2 %v10836_v46  ;;  %v8332_v5 = vor.u32 %v8967_v57, %v8331_v26 }
 0x509   :  { %v4230_v0 = vpack.c.bf16 %v4209_v2, %v10832_v32  ;;  %v8939_v32 = vld [vmem:[#allocation14 + $0x24c] sm:$0xf0]  ;;  %5526 = vmatpush.bf16.msra.mxu0 %v8364_v12  ;;  %v8348_v2 = vor.u32 %v8971_v34, %v8347_v27  ;;  %5700 = vmatpush.bf16.msrb.mxu2 %v8116_v7  ;;  %v8083_v12 = vld [vmem:[#allocation14 + $0x128] sm:$0xf]  ;;  %v8187_v34 = vld [vmem:[#allocation14 + $0x200] sm:$0xf] }
 0x50a   :  { %v8220_v36 = vor.u32 %v8939_v32, %v8219_v45  ;;  %v8203_v32 = vld [vmem:[#allocation14 + $0x220] sm:$0xf] }
 0x50b   :  { %v4265_v40 = vunpack.c.l.bf16 %v4230_v0  ;;  %v4266_v6 = vunpack.c.h.bf16 %v4230_v0 }
 0x50c   :  { %v4181_v47 = vpop.f32.mrf.mxu3  ;;  %5498 = vmatpush.bf16.msrb.mxu3 %v8220_v36  ;;  %v8204_v36 = vor.u32 %v8935_v11, %v8203_v32 }
 0x50d   :  { %v4301_v4 = vadd.f32 %v10922_v3, %v4265_v40  ;;  %v4302_v52 = vadd.f32 %v10924_v16, %v4266_v6  ;;  %v4182_v49 = vadd.f32 %v4181_v47, %v4153_v58  ;;  %v7972_v58 = vor.u32 %v8876_v38, %v7971_v30  ;;  %5527 = vmatpush.bf16.msra.mxu0 %v8348_v2  ;;  %v8931_v30 = vld [vmem:[#allocation14 + $0x20c] sm:$0xf0]  ;;  %v8315_v2 = vld [vmem:[#allocation14 + $0x300] sm:$0xf] }
 0x50e   :  { %v4213_v43 = vpop.f32.mrf.mxu0 }
 0x50f   :  { %v4332_v53 = vpack.c.bf16 %v4302_v52, %v4301_v4  ;;  %v4211_v1 = vadd.f32 %v4210_v48, %v4182_v49  ;;  %v8100_v48 = vor.u32 %v8908_v14, %v8099_v60  ;;  %5672 = vmatpush.bf16.msra.mxu1 %v7972_v58  ;;  %v8872_v49 = vld [vmem:[#allocation14 + $0x34] sm:$0xf0]  ;;  %v4158_v60 = vadd.f32 %v10919_v51, %v10917_v24  ;;  %v8067_v24 = vld [vmem:[#allocation14 + $0x108] sm:$0xf] }
 0x510   :  { %5499 = vmatpush.bf16.msrb.mxu3 %v8204_v36  ;;  %v7956_v7 = vor.u32 %v8872_v49, %v7955_v63  ;;  %v4071_v14 = vadd.f32 %v10877_v8, %v10683_v39  ;;  %v8868_v58 = vld [vmem:[#allocation14 + $0x14] sm:$0xf0] }
 0x511   :  { %v4349_v41 = vunpack.c.l.bf16 %v4332_v53  ;;  %v4350_v0 = vunpack.c.h.bf16 %v4332_v53  ;;  %v4232_v33 = vpack.c.bf16 %v4211_v1, %v4095_v20  ;;  %5701 = vmatpush.bf16.msrb.mxu2 %v8100_v48  ;;  %v8084_v20 = vor.u32 %v8904_v18, %v8083_v12  ;;  %5528 = vmatpush.bf16.msra.mxu0 %v8332_v5  ;;  %v8900_v51 = vld [vmem:[#allocation14 + $0x114] sm:$0xf0] }
 0x513   :  { %v4381_v28 = vmul.f32 0.5, %v4349_v41  ;;  %v4382_v40 = vmul.f32 0.5, %v4350_v0  ;;  %v4269_v6 = vunpack.c.l.bf16 %v4232_v33  ;;  %v4270_v45 = vunpack.c.h.bf16 %v4232_v33  ;;  %5673 = vmatpush.bf16.msra.mxu1 %v7956_v7  ;;  %v8963_v0 = vld [vmem:[#allocation14 + $0x30c] sm:$0xf0]  ;;  %v7939_v33 = vld [vmem:[#allocation14 + $0x8] sm:$0xf] }
 0x514   :  { %v4184_v47 = vpop.f32.mrf.mxu3  ;;  %v8188_v41 = vor.u32 %v8931_v30, %v8187_v34  ;;  %v8316_v39 = vor.u32 %v8963_v0, %v8315_v2  ;;  %v7940_v8 = vor.u32 %v8868_v58, %v7939_v33  ;;  %v4161_v34 = vadd.f32 %v10937_v55, %v10934_v35  ;;  %v8301_v0 = vld [vmem:[#allocation14 + $0x2f0] sm:$0xf0] }
 0x515   :  { %v10941_v4 = vpack.c.bf16 %v4382_v40, %v4381_v28  ;;  %v4305_v52 = vadd.f32 %v10922_v3, %v4269_v6  ;;  %v4306_v17 = vadd.f32 %v10924_v16, %v4270_v45  ;;  %v4185_v56 = vadd.f32 %v4184_v47, %v4156_v13  ;;  %v10951_v13 = vpop.f32.mrf.mxu1  ;;  %5702 = vmatpush.bf16.msrb.mxu2 %v8084_v20  ;;  %v4162_v6 = vpop.f32.mrf.mxu2 }
 0x516   :  { %v4215_v23 = vpop.f32.mrf.mxu0  ;;  %v8068_v40 = vor.u32 %v8900_v51, %v8067_v24  ;;  %5500 = vmatpush.bf16.msrb.mxu3 %v8188_v41  ;;  %5529 = vmatpush.bf16.msra.mxu0 %v8316_v39  ;;  %v8957_v41 = vld [vmem:[#allocation14 + $0x2e4] sm:$0xf]  ;;  %v4076_v39 = vadd.f32 %v10898_v50, %v10695_v29 }
 0x517   :  { %v4430_v53 = vunpack.c.h.bf16 %v10941_v4  ;;  %v4334_v1 = vpack.c.bf16 %v4306_v17, %v4305_v52  ;;  %v4214_v27 = vadd.f32 %v4213_v43, %v4185_v56  ;;  %v4429_v38 = vunpack.c.l.bf16 %v10941_v4  ;;  %5674 = vmatpush.bf16.msra.mxu1 %v7940_v8 }
 0x518   :  { %5569 = vmatmul.bf16.gmra.mxu1 %v10871_v21  ;;  %5598 = vmatmul.bf16.gmra.mxu2 %v10873_v61  ;;  %v4100_v52 = vadd.f32 %v10867_v44, %v4071_v14  ;;  %v4105_v29 = vadd.f32 %v10892_v54, %v4076_v39 }
 0x519   :  { %9256 = vtanh.f32 %v4430_v53  ;;  %v4353_v43 = vunpack.c.l.bf16 %v4334_v1  ;;  %v4354_v48 = vunpack.c.h.bf16 %v4334_v1  ;;  %v4234_v28 = vpack.c.bf16 %v4214_v27, %v10869_v19  ;;  %5703 = vmatpush.bf16.msrb.mxu2 %v8068_v40 }
 0x51a   :  { %9258 = vtanh.f32 %v4429_v38 }
 0x51b   :  { %v4385_v45 = vmul.f32 0.5, %v4353_v43  ;;  %v4386_v32 = vmul.f32 0.5, %v4354_v48  ;;  %v4273_v11 = vunpack.c.l.bf16 %v4234_v28  ;;  %v4274_v47 = vunpack.c.h.bf16 %v4234_v28 }
 0x51c   :  { %v4186_v19 = vpop.f32.mrf.mxu3  ;;  %v8304_v48 = vor.u32 %v8957_v41, %v8301_v0 }
 0x51d   :  { %v10960_v36 = vpack.c.bf16 %v4386_v32, %v4385_v45  ;;  %v4309_v26 = vadd.f32 %v10922_v3, %v4273_v11  ;;  %v4310_v57 = vadd.f32 %v10924_v16, %v4274_v47  ;;  %v4187_v63 = vadd.f32 %v4186_v19, %v4158_v60  ;;  %v4136_v30 = vpop.f32.mrf.mxu1  ;;  %v4165_v28 = vpop.f32.mrf.mxu2 }
 0x51e   :  { %v4218_v7 = vpop.f32.mrf.mxu0  ;;  %5609 = vmatpush.bf16.msra.mxu3 %v8304_v48  ;;  %v4163_v19 = vadd.f32 %v4162_v6, %v10951_v13  ;;  %v8269_v48 = vld [vmem:[#allocation14 + $0x2b0] sm:$0xf0] }
 0x51f   :  { %v9257_v17 = vpop.eup %9256  ;;  %v4434_v56 = vunpack.c.h.bf16 %v10960_v36  ;;  %v4336_v49 = vpack.c.bf16 %v4310_v57, %v4309_v26  ;;  %v4216_v12 = vadd.f32 %v4215_v23, %v4187_v63  ;;  %v4433_v18 = vunpack.c.l.bf16 %v10960_v36 }
 0x520   :  { %v9259_v5 = vpop.eup %9258  ;;  %v10980_v26 = vadd.f32 %v4165_v28, %v4136_v30  ;;  %v8985_v28 = vld [vmem:[#allocation14 + $0x3c4] sm:$0xf] }
 0x521   :  { %9260 = vtanh.f32 %v4434_v56  ;;  %v4357_v20 = vunpack.c.l.bf16 %v4336_v49  ;;  %v4358_v1 = vunpack.c.h.bf16 %v4336_v49  ;;  %v4236_v27 = vpack.c.bf16 %v4216_v12, %v4100_v52 }
 0x522   :  { %9262 = vtanh.f32 %v4433_v18  ;;  %v4492_v44 = vpack.c.bf16 %v9257_v17, %v9259_v5 }
 0x523   :  { %v4389_v2 = vmul.f32 0.5, %v4357_v20  ;;  %v4390_v23 = vmul.f32 0.5, %v4358_v1  ;;  %v4277_v60 = vunpack.c.l.bf16 %v4236_v27  ;;  %v4278_v14 = vunpack.c.h.bf16 %v4236_v27 }
 0x524   :  { %v4189_v33 = vpop.f32.mrf.mxu3  ;;  %v4509_v58 = vunpack.c.l.bf16 %v4492_v44  ;;  %v4510_v43 = vunpack.c.h.bf16 %v4492_v44  ;;  %v8285_v44 = vld [vmem:[#allocation14 + $0x2d0] sm:$0xf0] }
 0x525   :  { %v4313_v24 = vadd.f32 %v10922_v3, %v4277_v60  ;;  %v4314_v35 = vadd.f32 %v10924_v16, %v4278_v14  ;;  %v4190_v55 = vadd.f32 %v4189_v33, %v4161_v34  ;;  %v10975_v51 = vpack.c.bf16 %v4390_v23, %v4389_v2  ;;  %v8953_v34 = vld [vmem:[#allocation14 + $0x2c4] sm:$0xf]  ;;  %v8429_v60 = vld [vmem:[#allocation14 + $0x3f0] sm:$0xf0]  ;;  %v10992_v41 = vpop.f32.mrf.mxu1 }
 0x526   :  { %v4541_v8 = vadd.f32 1.0, %v4509_v58  ;;  %v4542_v40 = vadd.f32 1.0, %v4510_v43  ;;  %v4220_v50 = vpop.f32.mrf.mxu0  ;;  %v8989_v23 = vld [vmem:[#allocation14 + $0x3e4] sm:$0xf]  ;;  %v8288_v43 = vor.u32 %v8953_v34, %v8285_v44  ;;  %v4167_v44 = vpop.f32.mrf.mxu2 }
 0x527   :  { %v9261_v45 = vpop.eup %9260  ;;  %v4338_v32 = vpack.c.bf16 %v4314_v35, %v4313_v24  ;;  %v4219_v11 = vadd.f32 %v4218_v7, %v4190_v55  ;;  %v4437_v63 = vunpack.c.l.bf16 %v10975_v51  ;;  %v4438_v13 = vunpack.c.h.bf16 %v10975_v51  ;;  %v8949_v14 = vld [vmem:[#allocation14 + $0x2a4] sm:$0xf]  ;;  %v8413_v24 = vld [vmem:[#allocation14 + $0x3d0] sm:$0xf0]  ;;  %v8181_v51 = vld [vmem:[#allocation14 + $0x1f8] sm:$0xf0] }
 0x528   :  { %v9263_v47 = vpop.eup %9262  ;;  %v4572_v57 = vpack.c.bf16 %v4542_v40, %v4541_v8  ;;  %5574 = vmatmul.bf16.gmra.mxu1 %v10888_v9  ;;  %5603 = vmatmul.bf16.gmra.mxu2 %v10890_v25 }
 0x529   :  { %v4361_v52 = vunpack.c.l.bf16 %v4338_v32  ;;  %v4362_v17 = vunpack.c.h.bf16 %v4338_v32  ;;  %v4238_v49 = vpack.c.bf16 %v4219_v11, %v10894_v31  ;;  %v4494_v12 = vpack.c.bf16 %v9261_v45, %v9263_v47  ;;  %5610 = vmatpush.bf16.msra.mxu3 %v8288_v43  ;;  %v8945_v32 = vld [vmem:[#allocation14 + $0x284] sm:$0xf]  ;;  %v8253_v11 = vld [vmem:[#allocation14 + $0x290] sm:$0xf0] }
 0x52a   :  { %v4589_v5 = vunpack.c.l.bf16 %v4572_v57  ;;  %v4590_v7 = vunpack.c.h.bf16 %v4572_v57  ;;  %9264 = vtanh.f32 %v4437_v63  ;;  %v8272_v45 = vor.u32 %v8949_v14, %v8269_v48 }
 0x52b   :  { %v4393_v6 = vmul.f32 0.5, %v4361_v52  ;;  %v4394_v20 = vmul.f32 0.5, %v4362_v17  ;;  %v4281_v1 = vunpack.c.l.bf16 %v4238_v49  ;;  %v4282_v27 = vunpack.c.h.bf16 %v4238_v49 }
 0x52c   :  { %v4191_v30 = vpop.f32.mrf.mxu3  ;;  %v4513_v31 = vunpack.c.l.bf16 %v4494_v12  ;;  %v4514_v2 = vunpack.c.h.bf16 %v4494_v12  ;;  %v4621_v54 = vmul.f32 %v4589_v5, %v4429_v38  ;;  %v8432_v38 = vor.u32 %v8989_v23, %v8429_v60  ;;  %v8981_v5 = vld [vmem:[#allocation14 + $0x3a4] sm:$0xf] }
 0x52d   :  { %v4317_v0 = vadd.f32 %v10922_v3, %v4281_v1  ;;  %v4318_v33 = vadd.f32 %v10924_v16, %v4282_v27  ;;  %v4192_v58 = vadd.f32 %v4191_v30, %v4163_v19  ;;  %v10996_v39 = vpack.c.bf16 %v4394_v20, %v4393_v6  ;;  %v8397_v6 = vld [vmem:[#allocation14 + $0x3b0] sm:$0xf0]  ;;  %5611 = vmatpush.bf16.msra.mxu3 %v8272_v45 }
 0x52e   :  { %v4545_v35 = vadd.f32 1.0, %v4513_v31  ;;  %v4546_v55 = vadd.f32 1.0, %v4514_v2  ;;  %9266 = vtanh.f32 %v4438_v13  ;;  %5638 = vmatpush.bf16.msrb.mxu0 %v8432_v38  ;;  %v8416_v52 = vor.u32 %v8985_v28, %v8413_v24  ;;  %v4223_v60 = vpop.f32.mrf.mxu0 }
 0x52f   :  { %v4340_v8 = vpack.c.bf16 %v4318_v33, %v4317_v0  ;;  %v4221_v40 = vadd.f32 %v4220_v50, %v4192_v58  ;;  %v4441_v19 = vunpack.c.l.bf16 %v10996_v39  ;;  %v4442_v57 = vunpack.c.h.bf16 %v10996_v39 }
 0x530   :  { %v4574_v47 = vpack.c.bf16 %v4546_v55, %v4545_v35  ;;  %v4622_v50 = vmul.f32 %v4590_v7, %v4430_v53  ;;  %v9265_v20 = vpop.eup %9264  ;;  %v8256_v34 = vor.u32 %v8945_v32, %v8253_v11  ;;  %v8400_v7 = vor.u32 %v8981_v5, %v8397_v6 }
 0x531   :  { %v4365_v17 = vunpack.c.l.bf16 %v4340_v8  ;;  %v4366_v49 = vunpack.c.h.bf16 %v4340_v8  ;;  %v4240_v12 = vpack.c.bf16 %v4221_v40, %v4105_v29  ;;  %9268 = vtanh.f32 %v4441_v19 }
 0x532   :  { %v4593_v1 = vunpack.c.l.bf16 %v4574_v47  ;;  %v4594_v27 = vunpack.c.h.bf16 %v4574_v47  ;;  %9270 = vtanh.f32 %v4442_v57  ;;  %5639 = vmatpush.bf16.msrb.mxu0 %v8416_v52  ;;  %5612 = vmatpush.bf16.msra.mxu3 %v8256_v34  ;;  %v8941_v52 = vld [vmem:[#allocation14 + $0x264] sm:$0xf] }
 0x533   :  { %v4397_v30 = vmul.f32 0.5, %v4365_v17  ;;  %v4398_v31 = vmul.f32 0.5, %v4366_v49  ;;  %v4285_v2 = vunpack.c.l.bf16 %v4240_v12  ;;  %v4286_v23 = vunpack.c.h.bf16 %v4240_v12  ;;  %v8237_v17 = vld [vmem:[#allocation14 + $0x270] sm:$0xf0] }
 0x534   :  { %v4194_v29 = vpop.f32.mrf.mxu3  ;;  %v4625_v4 = vmul.f32 %v4593_v1, %v4433_v18  ;;  %v4626_v53 = vmul.f32 %v4594_v27, %v4434_v56  ;;  %v9267_v14 = vpop.eup %9266  ;;  %v4081_v18 = vadd.f32 %v10913_v62, %v10707_v22  ;;  %v8240_v27 = vor.u32 %v8941_v52, %v8237_v17 }
 0x535   :  { %v4321_v0 = vadd.f32 %v10922_v3, %v4285_v2  ;;  %v4322_v33 = vadd.f32 %v10924_v16, %v4286_v23  ;;  %v5444_v58 = vpop.f32.mrf.mxu1  ;;  %v4195_v43 = vadd.f32 %v4194_v29, %v10980_v26  ;;  %v11015_v48 = vpack.c.bf16 %v4398_v31, %v4397_v30 }
 0x536   :  { %v11019_v36 = vpack.c.bf16 %v4625_v4, %v4621_v54  ;;  %v11021_v56 = vpack.c.bf16 %v4626_v53, %v4622_v50  ;;  %v4496_v28 = vpack.c.bf16 %v9267_v14, %v9265_v20  ;;  %v4168_v26 = vadd.f32 %v4167_v44, %v10992_v41  ;;  %5640 = vmatpush.bf16.msrb.mxu0 %v8400_v7  ;;  %v4225_v23 = vpop.f32.mrf.mxu0 }
 0x537   :  { %v4342_v24 = vpack.c.bf16 %v4322_v33, %v4321_v0  ;;  %v4224_v35 = vadd.f32 %v4223_v60, %v4195_v43  ;;  %v4445_v55 = vunpack.c.l.bf16 %v11015_v48  ;;  %v4446_v38 = vunpack.c.h.bf16 %v11015_v48  ;;  %v9269_v8 = vpop.eup %9268  ;;  %5613 = vmatpush.bf16.msra.mxu3 %v8240_v27  ;;  %v8977_v43 = vld [vmem:[#allocation14 + $0x384] sm:$0xf]  ;;  %v8101_v48 = vld [vmem:[#allocation14 + $0x158] sm:$0xf0] }
 0x538   :  { %5501 = vmatmul.bf16.vlgmr.msrb.gmra.mxu3 %v11019_v36  ;;  %5530 = vmatmul.bf16.vlgmr.msra.gmra.mxu0 %v11021_v56  ;;  %v4517_v22 = vunpack.c.l.bf16 %v4496_v28  ;;  %v4518_v62 = vunpack.c.h.bf16 %v4496_v28  ;;  %v9271_v32 = vpop.eup %9270  ;;  %v4110_v11 = vadd.f32 %v10905_v42, %v4081_v18  ;;  %v8381_v18 = vld [vmem:[#allocation14 + $0x390] sm:$0xf0] }
 0x539   :  { %v4369_v54 = vunpack.c.l.bf16 %v4342_v24  ;;  %v4370_v40 = vunpack.c.h.bf16 %v4342_v24  ;;  %v4242_v45 = vpack.c.bf16 %v4224_v35, %v10907_v10  ;;  %9272 = vtanh.f32 %v4445_v55  ;;  %5675 = vmatmul.bf16.vlgmr.msra.gmra.mxu1 %v10791_v15  ;;  %5704 = vmatmul.bf16.vlgmr.msrb.gmra.mxu2 %v10793_v37 }
 0x53a   :  { %v4549_v41 = vadd.f32 1.0, %v4517_v22  ;;  %v4550_v47 = vadd.f32 1.0, %v4518_v62  ;;  %9274 = vtanh.f32 %v4446_v38  ;;  %v4498_v42 = vpack.c.bf16 %v9271_v32, %v9269_v8  ;;  %v8894_v32 = vld [vmem:[#allocation14 + $0xec] sm:$0xf] }
 0x53b   :  { %v4401_v49 = vmul.f32 0.5, %v4369_v54  ;;  %v4402_v10 = vmul.f32 0.5, %v4370_v40  ;;  %v4289_v12 = vunpack.c.l.bf16 %v4242_v45  ;;  %v4290_v50 = vunpack.c.h.bf16 %v4242_v45  ;;  %v5473_v5 = vpop.f32.mrf.mxu2 }
 0x53c   :  { %v11036_v6 = vadd.f32 %v5473_v5, %v5444_v58  ;;  %v4196_v20 = vpop.f32.mrf.mxu3  ;;  %v4576_v1 = vpack.c.bf16 %v4550_v47, %v4549_v41  ;;  %v4521_v60 = vunpack.c.l.bf16 %v4498_v42  ;;  %v4522_v29 = vunpack.c.h.bf16 %v4498_v42  ;;  %v8053_v41 = vld [vmem:[#allocation14 + $0xf8] sm:$0xf0]  ;;  %v8890_v5 = vld [vmem:[#allocation14 + $0xcc] sm:$0xf] }
 0x53d   :  { %v4325_v34 = vadd.f32 %v10922_v3, %v4289_v12  ;;  %v4326_v44 = vadd.f32 %v10924_v16, %v4290_v50  ;;  %v5446_v30 = vpop.f32.mrf.mxu1  ;;  %v4197_v31 = vadd.f32 %v4196_v20, %v4168_v26  ;;  %v11040_v2 = vpack.c.bf16 %v4402_v10, %v4401_v49  ;;  %v8926_v49 = vld [vmem:[#allocation14 + $0x1ec] sm:$0xf]  ;;  %v8037_v20 = vld [vmem:[#allocation14 + $0xd8] sm:$0xf0] }
 0x53e   :  { %v4597_v4 = vunpack.c.l.bf16 %v4576_v1  ;;  %v4598_v53 = vunpack.c.h.bf16 %v4576_v1  ;;  %v4553_v24 = vadd.f32 1.0, %v4521_v60  ;;  %v4554_v35 = vadd.f32 1.0, %v4522_v29  ;;  %v8922_v42 = vld [vmem:[#allocation14 + $0x1cc] sm:$0xf]  ;;  %v8221_v60 = vld [vmem:[#allocation14 + $0x250] sm:$0xf0] }
 0x53f   :  { %v9273_v7 = vpop.eup %9272  ;;  %v4344_v14 = vpack.c.bf16 %v4326_v44, %v4325_v34  ;;  %v4226_v0 = vadd.f32 %v4225_v23, %v4197_v31  ;;  %v4449_v33 = vunpack.c.l.bf16 %v11040_v2  ;;  %v4450_v58 = vunpack.c.h.bf16 %v11040_v2  ;;  %v8165_v31 = vld [vmem:[#allocation14 + $0x1d8] sm:$0xf0]  ;;  %v8937_v23 = vld [vmem:[#allocation14 + $0x244] sm:$0xf] }
 0x540   :  { %v9275_v28 = vpop.eup %9274  ;;  %v4629_v8 = vmul.f32 %v4597_v4, %v4437_v63  ;;  %v4630_v62 = vmul.f32 %v4598_v53, %v4438_v13  ;;  %v4578_v54 = vpack.c.bf16 %v4554_v35, %v4553_v24  ;;  %v8384_v45 = vor.u32 %v8977_v43, %v8381_v18 }
 0x541   :  { %v4373_v26 = vunpack.c.l.bf16 %v4344_v14  ;;  %v4244_v22 = vpack.c.bf16 %v4226_v0, %v4110_v11  ;;  %9276 = vtanh.f32 %v4449_v33  ;;  %v4500_v40 = vpack.c.bf16 %v9275_v28, %v9273_v7  ;;  %v8973_v7 = vld [vmem:[#allocation14 + $0x364] sm:$0xf] }
 0x542   :  { %9278 = vtanh.f32 %v4450_v58  ;;  %v4374_v47 = vunpack.c.h.bf16 %v4344_v14  ;;  %v4601_v10 = vunpack.c.l.bf16 %v4578_v54  ;;  %v4602_v12 = vunpack.c.h.bf16 %v4578_v54  ;;  %5641 = vmatpush.bf16.msrb.mxu0 %v8384_v45  ;;  %v8365_v14 = vld [vmem:[#allocation14 + $0x370] sm:$0xf0] }
 0x543   :  { %v11052_v52 = vmul.f32 0.5, %v4373_v26  ;;  %v4293_v63 = vunpack.c.l.bf16 %v4244_v22  ;;  %v4294_v17 = vunpack.c.h.bf16 %v4244_v22  ;;  %v5475_v11 = vpop.f32.mrf.mxu2  ;;  %v4525_v50 = vunpack.c.l.bf16 %v4500_v40 }
 0x544   :  { %v11054_v13 = vadd.f32 %v5475_v11, %v5446_v30  ;;  %v4526_v34 = vunpack.c.h.bf16 %v4500_v40  ;;  %v8056_v44 = vor.u32 %v8894_v32, %v8053_v41  ;;  %v4633_v30 = vmul.f32 %v4601_v10, %v4441_v19  ;;  %v8021_v32 = vld [vmem:[#allocation14 + $0xb8] sm:$0xf0]  ;;  %v8918_v41 = vld [vmem:[#allocation14 + $0x1ac] sm:$0xf] }
 0x545   :  { %v4329_v1 = vadd.f32 %v10922_v3, %v4293_v63  ;;  %v4330_v27 = vadd.f32 %v10924_v16, %v4294_v17  ;;  %v4634_v29 = vmul.f32 %v4602_v12, %v4442_v57  ;;  %v4557_v4 = vadd.f32 1.0, %v4525_v50  ;;  %v5449_v18 = vpop.f32.mrf.mxu1  ;;  %v8886_v57 = vld [vmem:[#allocation14 + $0xac] sm:$0xf]  ;;  %v8205_v17 = vld [vmem:[#allocation14 + $0x230] sm:$0xf0] }
 0x546   :  { %v8184_v53 = vor.u32 %v8926_v49, %v8181_v51  ;;  %v4406_v43 = vmul.f32 0.5, %v4374_v47  ;;  %v4558_v16 = vadd.f32 1.0, %v4526_v34  ;;  %5783 = vmatpush.bf16.msrb.mxu1 %v8056_v44  ;;  %v8040_v28 = vor.u32 %v8890_v5, %v8037_v20  ;;  %v8149_v47 = vld [vmem:[#allocation14 + $0x1b8] sm:$0xf0]  ;;  %v8882_v10 = vld [vmem:[#allocation14 + $0x8c] sm:$0xf] }
 0x547   :  { %v9277_v0 = vpop.eup %9276  ;;  %v4346_v3 = vpack.c.bf16 %v4330_v27, %v4329_v1  ;;  %v11062_v35 = vpack.c.bf16 %v4633_v30, %v4629_v8  ;;  %v11064_v26 = vpack.c.bf16 %v4634_v29, %v4630_v62  ;;  %v8168_v19 = vor.u32 %v8922_v42, %v8165_v31  ;;  %v8933_v8 = vld [vmem:[#allocation14 + $0x224] sm:$0xf]  ;;  %v8005_v5 = vld [vmem:[#allocation14 + $0x98] sm:$0xf0]  ;;  %v8914_v20 = vld [vmem:[#allocation14 + $0x18c] sm:$0xf] }
 0x548   :  { %v9279_v24 = vpop.eup %9278  ;;  %5812 = vmatpush.bf16.msra.mxu2 %v8184_v53  ;;  %v8224_v39 = vor.u32 %v8937_v23, %v8221_v60  ;;  %v8368_v45 = vor.u32 %v8973_v7, %v8365_v14  ;;  %v4580_v63 = vpack.c.bf16 %v4558_v16, %v4557_v4  ;;  %v8024_v12 = vor.u32 %v8886_v57, %v8021_v32  ;;  %v8133_v42 = vld [vmem:[#allocation14 + $0x198] sm:$0xf0]  ;;  %v8969_v60 = vld [vmem:[#allocation14 + $0x344] sm:$0xf]  ;;  %v8349_v30 = vld [vmem:[#allocation14 + $0x350] sm:$0xf0] }
 0x549   :  { %v4377_v22 = vunpack.c.l.bf16 %v4346_v3  ;;  %v4378_v54 = vunpack.c.h.bf16 %v4346_v3  ;;  %v4502_v40 = vpack.c.bf16 %v9279_v24, %v9277_v0  ;;  %5506 = vmatmul.bf16.gmra.mxu3 %v11062_v35  ;;  %5535 = vmatmul.bf16.gmra.mxu0 %v11064_v26  ;;  %v8152_v50 = vor.u32 %v8918_v41, %v8149_v47  ;;  %v8878_v16 = vld [vmem:[#allocation14 + $0x6c] sm:$0xf]  ;;  %v8929_v57 = vld [vmem:[#allocation14 + $0x204] sm:$0xf]  ;;  %v8333_v41 = vld [vmem:[#allocation14 + $0x330] sm:$0xf0] }
 0x54a   :  { %5680 = vmatmul.bf16.gmra.mxu1 %v10834_v59  ;;  %5709 = vmatmul.bf16.gmra.mxu2 %v10836_v46  ;;  %v11071_v1 = vpack.c.bf16 %v4406_v43, %v11052_v52  ;;  %v8208_v23 = vor.u32 %v8933_v8, %v8205_v17  ;;  %v4605_v4 = vunpack.c.l.bf16 %v4580_v63  ;;  %v4606_v53 = vunpack.c.h.bf16 %v4580_v63  ;;  %v8965_v32 = vld [vmem:[#allocation14 + $0x324] sm:$0xf] }
 0x54b   :  { %v4409_v62 = vmul.f32 0.5, %v4377_v22  ;;  %v4410_v11 = vmul.f32 0.5, %v4378_v54  ;;  %v4529_v49 = vunpack.c.l.bf16 %v4502_v40  ;;  %v4530_v51 = vunpack.c.h.bf16 %v4502_v40  ;;  %5784 = vmatpush.bf16.msrb.mxu1 %v8040_v28  ;;  %v5478_v27 = vpop.f32.mrf.mxu2  ;;  %5614 = vmatpush.bf16.msra.mxu3 %v8224_v39  ;;  %v7989_v28 = vld [vmem:[#allocation14 + $0x78] sm:$0xf0]  ;;  %v8910_v39 = vld [vmem:[#allocation14 + $0x16c] sm:$0xf] }
 0x54c   :  { %5813 = vmatpush.bf16.msra.mxu2 %v8168_v19  ;;  %5642 = vmatpush.bf16.msrb.mxu0 %v8368_v45  ;;  %v11075_v29 = vadd.f32 %v5478_v27, %v5449_v18  ;;  %v4453_v7 = vunpack.c.l.bf16 %v11071_v1  ;;  %v4454_v52 = vunpack.c.h.bf16 %v11071_v1  ;;  %v8008_v24 = vor.u32 %v8882_v10, %v8005_v5  ;;  %v8189_v22 = vld [vmem:[#allocation14 + $0x210] sm:$0xf0]  ;;  %v8117_v45 = vld [vmem:[#allocation14 + $0x178] sm:$0xf0]  ;;  %v8906_v5 = vld [vmem:[#allocation14 + $0x14c] sm:$0xf] }
 0x54d   :  { %v4561_v34 = vadd.f32 1.0, %v4529_v49  ;;  %v4562_v44 = vadd.f32 1.0, %v4530_v51  ;;  %v11073_v31 = vpack.c.bf16 %v4410_v11, %v4409_v62  ;;  %v5451_v14 = vpop.f32.mrf.mxu1  ;;  %v8136_v19 = vor.u32 %v8914_v20, %v8133_v42  ;;  %v8874_v51 = vld [vmem:[#allocation14 + $0x4c] sm:$0xf]  ;;  %v8961_v27 = vld [vmem:[#allocation14 + $0x304] sm:$0xf] }
 0x54e   :  { %9280 = vtanh.f32 %v4453_v7  ;;  %v8352_v18 = vor.u32 %v8969_v60, %v8349_v30  ;;  %v4637_v47 = vmul.f32 %v4605_v4, %v4445_v55  ;;  %v8192_v63 = vor.u32 %v8929_v57, %v8189_v22  ;;  %v8870_v42 = vld [vmem:[#allocation14 + $0x2c] sm:$0xf]  ;;  %v7957_v4 = vld [vmem:[#allocation14 + $0x38] sm:$0xf0]  ;;  %v8952_v1 = vld [vmem:[#allocation14 + $0x2b4] sm:$0xf0] }
 0x54f   :  { %v4582_v0 = vpack.c.bf16 %v4562_v44, %v4561_v34  ;;  %v4457_v43 = vunpack.c.l.bf16 %v11073_v31  ;;  %v4458_v3 = vunpack.c.h.bf16 %v11073_v31  ;;  %5785 = vmatpush.bf16.msrb.mxu1 %v8024_v12  ;;  %9282 = vtanh.f32 %v4454_v52  ;;  %5615 = vmatpush.bf16.msra.mxu3 %v8208_v23  ;;  %v8317_v34 = vld [vmem:[#allocation14 + $0x310] sm:$0xf0] }
 0x550   :  { %5814 = vmatpush.bf16.msra.mxu2 %v8152_v50  ;;  %5643 = vmatpush.bf16.msrb.mxu0 %v8352_v18  ;;  %v8336_v8 = vor.u32 %v8965_v32, %v8333_v41  ;;  %v4638_v62 = vmul.f32 %v4606_v53, %v4446_v38  ;;  %v7992_v55 = vor.u32 %v8878_v16, %v7989_v28  ;;  %v8902_v53 = vld [vmem:[#allocation14 + $0x12c] sm:$0xf]  ;;  %v8307_v18 = vld [vmem:[#allocation14 + $0x2e8] sm:$0xf] }
 0x551   :  { %v4609_v54 = vunpack.c.l.bf16 %v4582_v0  ;;  %v4610_v40 = vunpack.c.h.bf16 %v4582_v0  ;;  %9284 = vtanh.f32 %v4457_v43  ;;  %v8120_v49 = vor.u32 %v8910_v39, %v8117_v45  ;;  %v8085_v0 = vld [vmem:[#allocation14 + $0x138] sm:$0xf0]  ;;  %v8960_v39 = vld [vmem:[#allocation14 + $0x2f4] sm:$0xf0] }
 0x552   :  { %9286 = vtanh.f32 %v4458_v3  ;;  %v8104_v30 = vor.u32 %v8906_v5, %v8101_v48  ;;  %v8320_v28 = vor.u32 %v8961_v27, %v8317_v34  ;;  %v7960_v57 = vor.u32 %v8870_v42, %v7957_v4  ;;  %v8291_v48 = vld [vmem:[#allocation14 + $0x2c8] sm:$0xf] }
 0x553   :  { %v4641_v17 = vmul.f32 %v4609_v54, %v4449_v33  ;;  %v4642_v11 = vmul.f32 %v4610_v40, %v4450_v58  ;;  %5786 = vmatpush.bf16.msrb.mxu1 %v8008_v24  ;;  %v5480_v10 = vpop.f32.mrf.mxu2  ;;  %v7973_v33 = vld [vmem:[#allocation14 + $0x58] sm:$0xf0]  ;;  %5616 = vmatpush.bf16.msra.mxu3 %v8192_v63  ;;  %v8088_v22 = vor.u32 %v8902_v53, %v8085_v0  ;;  %v8866_v54 = vld [vmem:[#allocation14 + $0xc] sm:$0xf] }
 0x554   :  { %5815 = vmatpush.bf16.msra.mxu2 %v8136_v19  ;;  %v9281_v38 = vpop.eup %9280  ;;  %v11101_v2 = vadd.f32 %v5480_v10, %v5451_v14  ;;  %5644 = vmatpush.bf16.msrb.mxu0 %v8336_v8  ;;  %v7976_v60 = vor.u32 %v8874_v51, %v7973_v33  ;;  %v7941_v40 = vld [vmem:[#allocation14 + $0x18] sm:$0xf0]  ;;  %v8308_v45 = vor.u32 %v8960_v39, %v8307_v18  ;;  %v8898_v8 = vld [vmem:[#allocation14 + $0x10c] sm:$0xf] }
 0x555   :  { %v11097_v12 = vpack.c.bf16 %v4641_v17, %v4637_v47  ;;  %v11099_v50 = vpack.c.bf16 %v4642_v11, %v4638_v62  ;;  %v9283_v58 = vpop.eup %9282  ;;  %v5454_v20 = vpop.f32.mrf.mxu1  ;;  %v8069_v17 = vld [vmem:[#allocation14 + $0x118] sm:$0xf0]  ;;  %v7944_v33 = vor.u32 %v8866_v54, %v7941_v40  ;;  %v8259_v54 = vld [vmem:[#allocation14 + $0x288] sm:$0xf]  ;;  %v8948_v40 = vld [vmem:[#allocation14 + $0x294] sm:$0xf0] }
 0x556   :  { %v4504_v23 = vpack.c.bf16 %v9283_v58, %v9281_v38  ;;  %v8072_v5 = vor.u32 %v8898_v8, %v8069_v17  ;;  %v8956_v38 = vld [vmem:[#allocation14 + $0x2d4] sm:$0xf0]  ;;  %v8435_v58 = vld [vmem:[#allocation14 + $0x3e8] sm:$0xf] }
 0x557   :  { %v9285_v44 = vpop.eup %9284  ;;  %5787 = vmatpush.bf16.msrb.mxu1 %v7992_v55  ;;  %5725 = vmatpush.bf16.msrb.mxu3 %v8308_v45  ;;  %v8403_v45 = vld [vmem:[#allocation14 + $0x3a8] sm:$0xf] }
 0x558   :  { %5816 = vmatpush.bf16.msra.mxu2 %v8120_v49  ;;  %v9287_v16 = vpop.eup %9286  ;;  %v4533_v24 = vunpack.c.l.bf16 %v4504_v23  ;;  %v4534_v19 = vunpack.c.h.bf16 %v4504_v23  ;;  %5645 = vmatpush.bf16.msrb.mxu0 %v8320_v28  ;;  %v8992_v23 = vld [vmem:[#allocation14 + $0x3f4] sm:$0xf0] }
 0x559   :  { %5511 = vmatmul.bf16.gmra.mxu3 %v11097_v12  ;;  %5540 = vmatmul.bf16.gmra.mxu0 %v11099_v50  ;;  %v4506_v14 = vpack.c.bf16 %v9287_v16, %v9285_v44  ;;  %v8292_v44 = vor.u32 %v8956_v38, %v8291_v48  ;;  %v8227_v38 = vld [vmem:[#allocation14 + $0x248] sm:$0xf] }
 0x55a   :  { %5685 = vmatmul.bf16.gmra.mxu1 %v10871_v21  ;;  %5714 = vmatmul.bf16.gmra.mxu2 %v10873_v61  ;;  %v4565_v47 = vadd.f32 1.0, %v4533_v24  ;;  %v4566_v63 = vadd.f32 1.0, %v4534_v19 }
 0x55b   :  { %v4537_v32 = vunpack.c.l.bf16 %v4506_v14  ;;  %v4538_v41 = vunpack.c.h.bf16 %v4506_v14  ;;  %5788 = vmatpush.bf16.msrb.mxu1 %v7976_v60  ;;  %v5483_v62 = vpop.f32.mrf.mxu2  ;;  %v8436_v60 = vor.u32 %v8992_v23, %v8435_v58  ;;  %5726 = vmatpush.bf16.msrb.mxu3 %v8292_v44  ;;  %v8940_v58 = vld [vmem:[#allocation14 + $0x254] sm:$0xf0]  ;;  %v8211_v23 = vld [vmem:[#allocation14 + $0x228] sm:$0xf] }
 0x55c   :  { %5817 = vmatpush.bf16.msra.mxu2 %v8104_v30  ;;  %v11107_v11 = vadd.f32 %v5483_v62, %v5454_v20  ;;  %v4584_v51 = vpack.c.bf16 %v4566_v63, %v4565_v47  ;;  %v8243_v62 = vld [vmem:[#allocation14 + $0x268] sm:$0xf] }
 0x55d   :  { %v4569_v55 = vadd.f32 1.0, %v4537_v32  ;;  %v4570_v49 = vadd.f32 1.0, %v4538_v41  ;;  %v5456_v10 = vpop.f32.mrf.mxu1  ;;  %5754 = vmatpush.bf16.msra.mxu0 %v8436_v60  ;;  %v8260_v32 = vor.u32 %v8948_v40, %v8259_v54  ;;  %v8984_v41 = vld [vmem:[#allocation14 + $0x3b4] sm:$0xf0]  ;;  %v8309_v54 = vld [vmem:[#allocation14 + $0x2f8] sm:$0xf0] }
 0x55e   :  { %v4613_v27 = vunpack.c.l.bf16 %v4584_v51  ;;  %v4614_v34 = vunpack.c.h.bf16 %v4584_v51  ;;  %v8404_v47 = vor.u32 %v8984_v41, %v8403_v45  ;;  %v8936_v60 = vld [vmem:[#allocation14 + $0x234] sm:$0xf0]  ;;  %v8954_v41 = vld [vmem:[#allocation14 + $0x2cc] sm:$0xf] }
 0x55f   :  { %v4586_v42 = vpack.c.bf16 %v4570_v49, %v4569_v55  ;;  %5789 = vmatpush.bf16.msrb.mxu1 %v7960_v57  ;;  %v8944_v55 = vld [vmem:[#allocation14 + $0x274] sm:$0xf0]  ;;  %v8387_v49 = vld [vmem:[#allocation14 + $0x388] sm:$0xf] }
 0x560   :  { %5818 = vmatpush.bf16.msra.mxu2 %v8088_v22  ;;  %v4645_v4 = vmul.f32 %v4613_v27, %v4453_v7  ;;  %v4646_v0 = vmul.f32 %v4614_v34, %v4454_v52  ;;  %v8419_v52 = vld [vmem:[#allocation14 + $0x3c8] sm:$0xf]  ;;  %v8244_v51 = vor.u32 %v8944_v55, %v8243_v62  ;;  %v8228_v27 = vor.u32 %v8940_v58, %v8227_v38  ;;  %v8976_v34 = vld [vmem:[#allocation14 + $0x374] sm:$0xf0]  ;;  %v8437_v55 = vld [vmem:[#allocation14 + $0x3f8] sm:$0xf0] }
 0x561   :  { %v4617_v30 = vunpack.c.l.bf16 %v4586_v42  ;;  %v4618_v20 = vunpack.c.h.bf16 %v4586_v42  ;;  %v8371_v42 = vld [vmem:[#allocation14 + $0x368] sm:$0xf]  ;;  %v8421_v58 = vld [vmem:[#allocation14 + $0x3d8] sm:$0xf0] }
 0x562   :  { %v8372_v44 = vor.u32 %v8976_v34, %v8371_v42 }
 0x563   :  { %v4649_v53 = vmul.f32 %v4617_v30, %v4457_v43  ;;  %v4650_v16 = vmul.f32 %v4618_v20, %v4458_v3  ;;  %5790 = vmatpush.bf16.msrb.mxu1 %v7944_v33  ;;  %v5485_v28 = vpop.f32.mrf.mxu2  ;;  %v8275_v43 = vld [vmem:[#allocation14 + $0x2a8] sm:$0xf]  ;;  %v8988_v3 = vld [vmem:[#allocation14 + $0x3d4] sm:$0xf0]  ;;  %v8212_v20 = vor.u32 %v8936_v60, %v8211_v23  ;;  %v8261_v23 = vld [vmem:[#allocation14 + $0x298] sm:$0xf0] }
 0x564   :  { %5819 = vmatpush.bf16.msra.mxu2 %v8072_v5  ;;  %v11117_v14 = vadd.f32 %v5485_v28, %v5456_v10  ;;  %v8276_v31 = vor.u32 %v8952_v1, %v8275_v43  ;;  %v8420_v18 = vor.u32 %v8988_v3, %v8419_v52  ;;  %v8980_v10 = vld [vmem:[#allocation14 + $0x394] sm:$0xf0]  ;;  %v8355_v30 = vld [vmem:[#allocation14 + $0x348] sm:$0xf]  ;;  %v8982_v60 = vld [vmem:[#allocation14 + $0x3ac] sm:$0xf] }
 0x565   :  { %v11119_v24 = vpack.c.bf16 %v4649_v53, %v4645_v4  ;;  %v11121_v19 = vpack.c.bf16 %v4650_v16, %v4646_v0  ;;  %v5459_v7 = vpop.f32.mrf.mxu1  ;;  %v8388_v33 = vor.u32 %v8980_v10, %v8387_v49  ;;  %v8972_v4 = vld [vmem:[#allocation14 + $0x354] sm:$0xf0]  ;;  %v8195_v28 = vld [vmem:[#allocation14 + $0x208] sm:$0xf]  ;;  %v8277_v10 = vld [vmem:[#allocation14 + $0x2b8] sm:$0xf0] }
 0x566   :  { %5727 = vmatpush.bf16.msrb.mxu3 %v8276_v31  ;;  %5755 = vmatpush.bf16.msra.mxu0 %v8420_v18  ;;  %v8356_v53 = vor.u32 %v8972_v4, %v8355_v30  ;;  %v8339_v43 = vld [vmem:[#allocation14 + $0x328] sm:$0xf]  ;;  %v8968_v52 = vld [vmem:[#allocation14 + $0x334] sm:$0xf0] }
 0x567   :  { %v8340_v31 = vor.u32 %v8968_v52, %v8339_v43  ;;  %v8323_v3 = vld [vmem:[#allocation14 + $0x308] sm:$0xf]  ;;  %v8964_v18 = vld [vmem:[#allocation14 + $0x314] sm:$0xf0]  ;;  %v8978_v43 = vld [vmem:[#allocation14 + $0x38c] sm:$0xf] }
 0x569   :  { %5516 = vmatmul.bf16.gmra.mxu3 %v11119_v24  ;;  %5545 = vmatmul.bf16.gmra.mxu0 %v11121_v19 }
 0x56a   :  { %5690 = vmatmul.bf16.gmra.mxu1 %v10888_v9  ;;  %5719 = vmatmul.bf16.gmra.mxu2 %v10890_v25 }
 0x56b   :  { %v5488_v39 = vpop.f32.mrf.mxu2  ;;  %5728 = vmatpush.bf16.msrb.mxu3 %v8260_v32  ;;  %5756 = vmatpush.bf16.msra.mxu0 %v8404_v47  ;;  %v8293_v47 = vld [vmem:[#allocation14 + $0x2d8] sm:$0xf0] }
 0x56c   :  { %v11127_v57 = vadd.f32 %v5488_v39, %v5459_v7  ;;  %v8932_v7 = vld [vmem:[#allocation14 + $0x214] sm:$0xf0]  ;;  %v8324_v39 = vor.u32 %v8964_v18, %v8323_v3  ;;  %v8296_v62 = vor.u32 %v8954_v41, %v8293_v47  ;;  %v8938_v47 = vld [vmem:[#allocation14 + $0x24c] sm:$0xf] }
 0x56d   :  { %v5461_v22 = vpop.f32.mrf.mxu1  ;;  %v8196_v1 = vor.u32 %v8932_v7, %v8195_v28  ;;  %v8942_v28 = vld [vmem:[#allocation14 + $0x26c] sm:$0xf]  ;;  %v8245_v7 = vld [vmem:[#allocation14 + $0x278] sm:$0xf0] }
 0x56e   :  { %v8248_v52 = vor.u32 %v8942_v28, %v8245_v7 }
 0x56f   :  { %5729 = vmatpush.bf16.msrb.mxu3 %v8244_v51  ;;  %5757 = vmatpush.bf16.msra.mxu0 %v8388_v33  ;;  %v8986_v33 = vld [vmem:[#allocation14 + $0x3cc] sm:$0xf] }
 0x570   :  { %v8424_v42 = vor.u32 %v8986_v33, %v8421_v58 }
 0x573   :  { %v5490_v63 = vpop.f32.mrf.mxu2  ;;  %5730 = vmatpush.bf16.msrb.mxu3 %v8228_v27  ;;  %5758 = vmatpush.bf16.msra.mxu0 %v8372_v44  ;;  %v8946_v44 = vld [vmem:[#allocation14 + $0x28c] sm:$0xf] }
 0x574   :  { %v11129_v8 = vadd.f32 %v5490_v63, %v5461_v22  ;;  %v8958_v22 = vld [vmem:[#allocation14 + $0x2ec] sm:$0xf]  ;;  %v8264_v30 = vor.u32 %v8946_v44, %v8261_v23  ;;  %v8213_v23 = vld [vmem:[#allocation14 + $0x238] sm:$0xf0] }
 0x575   :  { %v11131_v17 = vpop.f32.mrf.mxu1  ;;  %v8312_v40 = vor.u32 %v8958_v22, %v8309_v54  ;;  %v8990_v63 = vld [vmem:[#allocation14 + $0x3ec] sm:$0xf] }
 0x576   :  { %v8440_v49 = vor.u32 %v8990_v63, %v8437_v55  ;;  %v8229_v63 = vld [vmem:[#allocation14 + $0x258] sm:$0xf0]  ;;  %v8934_v44 = vld [vmem:[#allocation14 + $0x22c] sm:$0xf] }
 0x577   :  { %5731 = vmatpush.bf16.msrb.mxu3 %v8212_v20  ;;  %5759 = vmatpush.bf16.msra.mxu0 %v8356_v53  ;;  %v8405_v20 = vld [vmem:[#allocation14 + $0x3b8] sm:$0xf0]  ;;  %v8232_v55 = vor.u32 %v8938_v47, %v8229_v63 }
 0x578   :  { %v8408_v4 = vor.u32 %v8982_v60, %v8405_v20  ;;  %v8970_v60 = vld [vmem:[#allocation14 + $0x34c] sm:$0xf]  ;;  %v8357_v20 = vld [vmem:[#allocation14 + $0x358] sm:$0xf0] }
 0x579   :  { %5617 = vmatmul.bf16.vlgmr.msra.gmra.mxu3 %v11019_v36  ;;  %5646 = vmatmul.bf16.vlgmr.msrb.gmra.mxu0 %v11021_v56 }
 0x57a   :  { %5791 = vmatmul.bf16.vlgmr.msrb.gmra.mxu1 %v10791_v15  ;;  %5820 = vmatmul.bf16.vlgmr.msra.gmra.mxu2 %v10793_v37 }
 0x57b   :  { %v11137_v5 = vpop.f32.mrf.mxu2  ;;  %5732 = vmatpush.bf16.msrb.mxu3 %v8196_v1  ;;  %5760 = vmatpush.bf16.msra.mxu0 %v8340_v31  ;;  %v8389_v31 = vld [vmem:[#allocation14 + $0x398] sm:$0xf0] }
 0x57c   :  { %v8392_v18 = vor.u32 %v8978_v43, %v8389_v31  ;;  %v8197_v31 = vld [vmem:[#allocation14 + $0x218] sm:$0xf0] }
 0x57d   :  { %v11139_v48 = vpop.f32.mrf.mxu1 }
 0x57f   :  { %5761 = vmatpush.bf16.msra.mxu0 %v8324_v39  ;;  %5841 = vmatpush.bf16.msra.mxu3 %v8312_v40 }
 0x583   :  { %v11141_v15 = vpop.f32.mrf.mxu2  ;;  %5842 = vmatpush.bf16.msra.mxu3 %v8296_v62  ;;  %5870 = vmatpush.bf16.msrb.mxu0 %v8440_v49  ;;  %v8974_v62 = vld [vmem:[#allocation14 + $0x36c] sm:$0xf]  ;;  %v8373_v49 = vld [vmem:[#allocation14 + $0x378] sm:$0xf0] }
 0x585   :  { %v11143_v37 = vpop.f32.mrf.mxu1 }
 0x587   :  { %5871 = vmatpush.bf16.msrb.mxu0 %v8424_v42 }
 0x589   :  { %5622 = vmatmul.bf16.gmra.mxu3 %v11062_v35  ;;  %5651 = vmatmul.bf16.gmra.mxu0 %v11064_v26 }
 0x58a   :  { %5796 = vmatmul.bf16.gmra.mxu1 %v10834_v59  ;;  %5825 = vmatmul.bf16.gmra.mxu2 %v10836_v46 }
 0x58b   :  { %v11149_v0 = vpop.f32.mrf.mxu2  ;;  %5872 = vmatpush.bf16.msrb.mxu0 %v8408_v4  ;;  %v8360_v4 = vor.u32 %v8970_v60, %v8357_v20 }
 0x58d   :  { %v11151_v16 = vpop.f32.mrf.mxu1 }
 0x58f   :  { %5873 = vmatpush.bf16.msrb.mxu0 %v8392_v18 }
 0x593   :  { %v11153_v59 = vpop.f32.mrf.mxu2 }
 0x595   :  { %v11155_v46 = vpop.f32.mrf.mxu1 }
 0x599   :  { %5627 = vmatmul.bf16.gmra.mxu3 %v11097_v12  ;;  %5656 = vmatmul.bf16.gmra.mxu0 %v11099_v50 }
 0x59a   :  { %5801 = vmatmul.bf16.gmra.mxu1 %v10871_v21  ;;  %5830 = vmatmul.bf16.gmra.mxu2 %v10873_v61  ;;  %v8950_v61 = vld [vmem:[#allocation14 + $0x2ac] sm:$0xf] }
 0x59b   :  { %v11161_v45 = vpop.f32.mrf.mxu2  ;;  %v8280_v38 = vor.u32 %v8950_v61, %v8277_v10  ;;  %v8376_v61 = vor.u32 %v8974_v62, %v8373_v49 }
 0x59d   :  { %v11163_v32 = vpop.f32.mrf.mxu1  ;;  %5843 = vmatpush.bf16.msra.mxu3 %v8280_v38  ;;  %5874 = vmatpush.bf16.msrb.mxu0 %v8376_v61 }
 0x5a1   :  { %5844 = vmatpush.bf16.msra.mxu3 %v8264_v30  ;;  %v8216_v30 = vor.u32 %v8934_v44, %v8213_v23  ;;  %5875 = vmatpush.bf16.msrb.mxu0 %v8360_v4 }
 0x5a3   :  { %v11165_v51 = vpop.f32.mrf.mxu2 }
 0x5a5   :  { %v11167_v21 = vpop.f32.mrf.mxu1  ;;  %5845 = vmatpush.bf16.msra.mxu3 %v8248_v52  ;;  %v8930_v52 = vld [vmem:[#allocation14 + $0x20c] sm:$0xf] }
 0x5a6   :  { %v8200_v18 = vor.u32 %v8930_v52, %v8197_v31 }
 0x5a9   :  { %5632 = vmatmul.bf16.gmra.mxu3 %v11119_v24  ;;  %5661 = vmatmul.bf16.gmra.mxu0 %v11121_v19 }
 0x5aa   :  { %5806 = vmatmul.bf16.gmra.mxu1 %v10888_v9  ;;  %5835 = vmatmul.bf16.gmra.mxu2 %v10890_v25 }
 0x5ab   :  { %v11173_v27 = vpop.f32.mrf.mxu2  ;;  %5846 = vmatpush.bf16.msra.mxu3 %v8232_v55 }
 0x5ad   :  { %v11175_v34 = vpop.f32.mrf.mxu1 }
 0x5af   :  { %5847 = vmatpush.bf16.msra.mxu3 %v8216_v30 }
 0x5b3   :  { %v11177_v9 = vpop.f32.mrf.mxu2  ;;  %5848 = vmatpush.bf16.msra.mxu3 %v8200_v18 }
 0x5b5   :  { %v5531_v25 = vpop.f32.mrf.mxu0 }
 0x5b6   :  { %v5676_v53 = vpop.f32.mrf.mxu1 }
 0x5b9   :  { %5733 = vmatmul.bf16.vlgmr.msrb.gmra.mxu3 %v11019_v36  ;;  %5762 = vmatmul.bf16.vlgmr.msra.gmra.mxu0 %v11021_v56 }
 0x5bb   :  { %v5502_v1 = vpop.f32.mrf.mxu3 }
 0x5bc   :  { %v5503_v3 = vadd.f32 %v5502_v1, %v11036_v6  ;;  %v5705_v39 = vpop.f32.mrf.mxu2 }
 0x5bd   :  { %v5533_v22 = vpop.f32.mrf.mxu0  ;;  %v11184_v40 = vadd.f32 %v5705_v39, %v5676_v53  ;;  %v8341_v39 = vld [vmem:[#allocation14 + $0x338] sm:$0xf0] }
 0x5be   :  { %v11182_v54 = vadd.f32 %v5531_v25, %v5503_v3  ;;  %v11186_v41 = vpop.f32.mrf.mxu1  ;;  %v8966_v3 = vld [vmem:[#allocation14 + $0x32c] sm:$0xf] }
 0x5c3   :  { %v5504_v10 = vpop.f32.mrf.mxu3 }
 0x5c4   :  { %v5505_v6 = vadd.f32 %v5504_v10, %v11054_v13  ;;  %v11189_v33 = vpop.f32.mrf.mxu2  ;;  %v8962_v10 = vld [vmem:[#allocation14 + $0x30c] sm:$0xf] }
 0x5c6   :  { %v11191_v38 = vadd.f32 %v5533_v22, %v5505_v6  ;;  %v5536_v58 = vpop.f32.mrf.mxu0  ;;  %v8344_v22 = vor.u32 %v8966_v3, %v8341_v39  ;;  %v8325_v6 = vld [vmem:[#allocation14 + $0x318] sm:$0xf0] }
 0x5c7   :  { %v5681_v42 = vpop.f32.mrf.mxu1 }
 0x5c8   :  { %5876 = vmatpush.bf16.msrb.mxu0 %v8344_v22 }
 0x5c9   :  { %5738 = vmatmul.bf16.gmra.mxu3 %v11062_v35  ;;  %5767 = vmatmul.bf16.gmra.mxu0 %v11064_v26 }
 0x5cc   :  { %v5507_v25 = vpop.f32.mrf.mxu3 }
 0x5cd   :  { %v5508_v13 = vadd.f32 %v5507_v25, %v11075_v29  ;;  %v5710_v53 = vpop.f32.mrf.mxu2 }
 0x5ce   :  { %v11196_v28 = vadd.f32 %v5710_v53, %v5681_v42  ;;  %v5538_v7 = vpop.f32.mrf.mxu0  ;;  %v5899_v42 = vld [vmem:[%s11507_s12] sm:$0xf] }
 0x5cf   :  { %v11198_v43 = vadd.f32 %v5536_v58, %v5508_v13  ;;  %v5683_v1 = vpop.f32.mrf.mxu1  ;;  %v8328_v58 = vor.u32 %v8962_v10, %v8325_v6  ;;  %5917 = vst [vmem:[#allocation1] ss:$9 sm:$0xff] %v5899_v42  ;;  %v8999_v6 = vld [vmem:[#allocation16 + $0x30] sm:$0xff] }
 0x5d1   :  { %5877 = vmatpush.bf16.msrb.mxu0 %v8328_v58  ;;  %v9007_v58 = vld [vmem:[#allocation16 + $0x70] sm:$0xff] }
 0x5d4   :  { %v5509_v47 = vpop.f32.mrf.mxu3 }
 0x5d5   :  { %v5510_v63 = vadd.f32 %v5509_v47, %v11101_v2  ;;  %v5712_v29 = vpop.f32.mrf.mxu2 }
 0x5d6   :  { %v11201_v62 = vadd.f32 %v5712_v29, %v5683_v1  ;;  %v5541_v55 = vpop.f32.mrf.mxu0 }
 0x5d7   :  { %v11203_v49 = vadd.f32 %v5538_v7, %v5510_v63  ;;  %v5686_v61 = vpop.f32.mrf.mxu1  ;;  %v9008_v63 = vld [vmem:[#allocation16 + $0x78] sm:$0xff] }
 0x5d8   :  { %6627 = vmatpush.bf16.msrb.mxu2 %v9008_v63 }
 0x5d9   :  { %5743 = vmatmul.bf16.gmra.mxu3 %v11097_v12  ;;  %5772 = vmatmul.bf16.gmra.mxu0 %v11099_v50 }
 0x5dc   :  { %v5512_v2 = vpop.f32.mrf.mxu3  ;;  %6628 = vmatpush.bf16.msrb.mxu2 %v9007_v58 }
 0x5dd   :  { %v5513_v44 = vadd.f32 %v5512_v2, %v11107_v11  ;;  %v5715_v23 = vpop.f32.mrf.mxu2  ;;  %v5918_v2 = vld [vmem:[#allocation1] sm:$0xff] }
 0x5de   :  { %v11211_v60 = vadd.f32 %v5715_v23, %v5686_v61  ;;  %v5543_v30 = vpop.f32.mrf.mxu0 }
 0x5df   :  { %v11213_v20 = vadd.f32 %v5541_v55, %v5513_v44  ;;  %v5688_v4 = vpop.f32.mrf.mxu1  ;;  %v5919_v44 = vld [vmem:[#allocation1 + $0x9] sm:$0xff] }
 0x5e4   :  { %v5514_v25 = vpop.f32.mrf.mxu3 }
 0x5e5   :  { %v5515_v13 = vadd.f32 %v5514_v25, %v11117_v14  ;;  %v5717_v53 = vpop.f32.mrf.mxu2  ;;  %v9000_v14 = vld [vmem:[#allocation16 + $0x38] sm:$0xff]  ;;  %v8998_v25 = vld [vmem:[#allocation16 + $0x28] sm:$0xff] }
 0x5e6   :  { %v11216_v7 = vadd.f32 %v5717_v53, %v5688_v4  ;;  %v5546_v1 = vpop.f32.mrf.mxu0  ;;  %6598 = vmatpush.bf16.msra.mxu1 %v9000_v14  ;;  %v5925_v4 = vpack.i.b16 %v5919_v44, %v5919_v44 }
 0x5e7   :  { %v11218_v52 = vadd.f32 %v5543_v30, %v5515_v13  ;;  %v5691_v11 = vpop.f32.mrf.mxu1  ;;  %v5922_v30 = vpack.i.b16 %v5918_v2, %v5918_v2  ;;  %v5590_v13 = vadd.f32 %v11137_v5, %v11131_v17  ;;  %v9004_v17 = vld [vmem:[#allocation16 + $0x58] sm:$0xff]  ;;  %v5592_v5 = vadd.f32 %v11141_v15, %v11139_v48  ;;  %v9003_v2 = vld [vmem:[#allocation16 + $0x50] sm:$0xff]  ;;  %v8994_v15 = vld [vmem:[#allocation16 + $0x8] sm:$0xff] }
 0x5e9   :  { %5748 = vmatmul.bf16.gmra.mxu3 %v11119_v24  ;;  %5777 = vmatmul.bf16.gmra.mxu0 %v11121_v19 }
 0x5ea   :  { %6599 = vmatpush.bf16.msra.mxu1 %v8999_v6 }
 0x5ec   :  { %v5517_v31 = vpop.f32.mrf.mxu3 }
 0x5ed   :  { %v5518_v3 = vadd.f32 %v5517_v31, %v11127_v57  ;;  %v5720_v18 = vpop.f32.mrf.mxu2  ;;  %v5927_v31 = vperm.slane %v5925_v4, 0 }
 0x5ee   :  { %v11223_v39 = vadd.f32 %v5720_v18, %v5691_v11  ;;  %v5548_v22 = vpop.f32.mrf.mxu0  ;;  %6600 = vmatpush.bf16.msra.mxu1 %v8998_v25  ;;  %v5924_v11 = vperm.slane %v5922_v30, 0  ;;  %v9005_v18 = vld [vmem:[#allocation16 + $0x60] sm:$0xff] }
 0x5ef   :  { %v11225_v47 = vadd.f32 %v5546_v1, %v5518_v3  ;;  %v5693_v55 = vpop.f32.mrf.mxu1  ;;  %v8997_v3 = vld [vmem:[#allocation16 + $0x20] sm:$0xff]  ;;  %v11239_v63 = vunpack.c.l.bf16 %v5927_v31 }
 0x5f2   :  { %6601 = vmatpush.bf16.msra.mxu1 %v8997_v3 }
 0x5f4   :  { %v5519_v29 = vpop.f32.mrf.mxu3 }
 0x5f5   :  { %v5520_v61 = vadd.f32 %v5519_v29, %v11129_v8  ;;  %v5722_v10 = vpop.f32.mrf.mxu2  ;;  %v9006_v8 = vld [vmem:[#allocation16 + $0x68] sm:$0xff]  ;;  %v8996_v29 = vld [vmem:[#allocation16 + $0x18] sm:$0xff] }
 0x5f6   :  { %v11228_v42 = vadd.f32 %v5722_v10, %v5693_v55  ;;  %v5647_v57 = vpop.f32.mrf.mxu0  ;;  %6629 = vmatpush.bf16.msrb.mxu2 %v9006_v8  ;;  %6602 = vmatpush.bf16.msra.mxu1 %v8996_v29 }
 0x5f7   :  { %v11230_v23 = vadd.f32 %v5548_v22, %v5520_v61 }
 0x5f9   :  { %5849 = vmatmul.bf16.vlgmr.msra.gmra.mxu3 %v11019_v36  ;;  %5878 = vmatmul.bf16.vlgmr.msrb.gmra.mxu0 %v11021_v56  ;;  %v11237_v56 = vunpack.c.l.bf16 %v5924_v11 }
 0x5fa   :  { %6630 = vmatpush.bf16.msrb.mxu2 %v9005_v18 }
 0x5fc   :  { %v5618_v53 = vpop.f32.mrf.mxu3 }
 0x5fd   :  { %v5619_v1 = vadd.f32 %v5618_v53, %v5590_v13  ;;  %v9002_v13 = vld [vmem:[#allocation16 + $0x48] sm:$0xff]  ;;  %v5595_v53 = vadd.f32 %v11149_v0, %v11143_v37 }
 0x5fe   :  { %v5649_v22 = vpop.f32.mrf.mxu0  ;;  %6631 = vmatpush.bf16.msrb.mxu2 %v9004_v17 }
 0x5ff   :  { %v5648_v14 = vadd.f32 %v5647_v57, %v5619_v1 }
 0x601   :  { %v5900_v36 = vpack.c.bf16 %v5648_v14, %v11182_v54  ;;  %v8995_v54 = vld [vmem:[#allocation16 + $0x10] sm:$0xff] }
 0x602   :  { %6603 = vmatpush.bf16.msra.mxu1 %v8995_v54  ;;  %6632 = vmatpush.bf16.msrb.mxu2 %v9003_v2 }
 0x603   :  { %v5934_v55 = vunpack.c.l.bf16 %v5900_v36  ;;  %v5935_v61 = vunpack.c.h.bf16 %v5900_v36  ;;  %v9001_v36 = vld [vmem:[#allocation16 + $0x40] sm:$0xff] }
 0x604   :  { %v5620_v10 = vpop.f32.mrf.mxu3 }
 0x605   :  { %v5970_v6 = vadd.f32 %v11237_v56, %v5934_v55  ;;  %v5971_v58 = vadd.f32 %v11239_v63, %v5935_v61  ;;  %v5621_v57 = vadd.f32 %v5620_v10, %v5592_v5 }
 0x606   :  { %v5652_v44 = vpop.f32.mrf.mxu0  ;;  %6604 = vmatpush.bf16.msra.mxu1 %v8994_v15  ;;  %6633 = vmatpush.bf16.msrb.mxu2 %v9002_v13 }
 0x607   :  { %v6002_v30 = vpack.c.bf16 %v5971_v58, %v5970_v6  ;;  %v5650_v4 = vadd.f32 %v5649_v22, %v5621_v57  ;;  %v5597_v6 = vadd.f32 %v11153_v59, %v11151_v16 }
 0x609   :  { %v6018_v25 = vunpack.c.l.bf16 %v6002_v30  ;;  %v6019_v8 = vunpack.c.h.bf16 %v6002_v30  ;;  %v5902_v48 = vpack.c.bf16 %v5650_v4, %v11191_v38  ;;  %5854 = vmatmul.bf16.gmra.mxu3 %v11062_v35  ;;  %5883 = vmatmul.bf16.gmra.mxu0 %v11064_v26  ;;  %v8993_v26 = vld [vmem:[#allocation16] sm:$0xff] }
 0x60a   :  { %6605 = vmatpush.bf16.msra.mxu1 %v8993_v26  ;;  %6634 = vmatpush.bf16.msrb.mxu2 %v9001_v36 }
 0x60b   :  { %v6050_v1 = vmul.f32 0.5, %v6018_v25  ;;  %v6051_v11 = vmul.f32 0.5, %v6019_v8  ;;  %v5938_v31 = vunpack.c.l.bf16 %v5902_v48  ;;  %v5939_v3 = vunpack.c.h.bf16 %v5902_v48 }
 0x60c   :  { %v5623_v18 = vpop.f32.mrf.mxu3 }
 0x60d   :  { %v11250_v22 = vpack.c.bf16 %v6051_v11, %v6050_v1  ;;  %v5974_v38 = vadd.f32 %v11237_v56, %v5938_v31  ;;  %v5975_v35 = vadd.f32 %v11239_v63, %v5939_v3  ;;  %v5624_v14 = vadd.f32 %v5623_v18, %v5595_v53 }
 0x60e   :  { %v5654_v29 = vpop.f32.mrf.mxu0  ;;  %v5600_v3 = vadd.f32 %v11161_v45, %v11155_v46 }
 0x60f   :  { %v6099_v17 = vunpack.c.h.bf16 %v11250_v22  ;;  %v6004_v37 = vpack.c.bf16 %v5975_v35, %v5974_v38  ;;  %v5653_v0 = vadd.f32 %v5652_v44, %v5624_v14  ;;  %v6098_v5 = vunpack.c.l.bf16 %v11250_v22 }
 0x611   :  { %9288 = vtanh.f32 %v6099_v17  ;;  %v6022_v55 = vunpack.c.l.bf16 %v6004_v37  ;;  %v6023_v61 = vunpack.c.h.bf16 %v6004_v37  ;;  %v5904_v10 = vpack.c.bf16 %v5653_v0, %v11198_v43 }
 0x612   :  { %9290 = vtanh.f32 %v6098_v5 }
 0x613   :  { %v6054_v58 = vmul.f32 0.5, %v6022_v55  ;;  %v6055_v57 = vmul.f32 0.5, %v6023_v61  ;;  %v5942_v54 = vunpack.c.l.bf16 %v5904_v10  ;;  %v5943_v2 = vunpack.c.h.bf16 %v5904_v10 }
 0x614   :  { %v5625_v44 = vpop.f32.mrf.mxu3 }
 0x615   :  { %v11263_v30 = vpack.c.bf16 %v6055_v57, %v6054_v58  ;;  %v5978_v4 = vadd.f32 %v11237_v56, %v5942_v54  ;;  %v5979_v25 = vadd.f32 %v11239_v63, %v5943_v2  ;;  %v5626_v8 = vadd.f32 %v5625_v44, %v5597_v6 }
 0x616   :  { %v5657_v48 = vpop.f32.mrf.mxu0 }
 0x617   :  { %v9289_v43 = vpop.eup %9288  ;;  %v6103_v15 = vunpack.c.h.bf16 %v11263_v30  ;;  %v6006_v16 = vpack.c.bf16 %v5979_v25, %v5978_v4  ;;  %v5655_v59 = vadd.f32 %v5654_v29, %v5626_v8  ;;  %v6102_v13 = vunpack.c.l.bf16 %v11263_v30 }
 0x618   :  { %v9291_v53 = vpop.eup %9290  ;;  %v5602_v25 = vadd.f32 %v11165_v51, %v11163_v32 }
 0x619   :  { %9292 = vtanh.f32 %v6103_v15  ;;  %v5906_v1 = vpack.c.bf16 %v5655_v59, %v11203_v49  ;;  %5859 = vmatmul.bf16.gmra.mxu3 %v11097_v12  ;;  %5888 = vmatmul.bf16.gmra.mxu0 %v11099_v50  ;;  %v6162_v11 = vpack.c.bf16 %v9289_v43, %v9291_v53  ;;  %v6026_v31 = vunpack.c.l.bf16 %v6006_v16 }
 0x61a   :  { %9294 = vtanh.f32 %v6102_v13  ;;  %v6027_v18 = vunpack.c.h.bf16 %v6006_v16 }
 0x61b   :  { %v5946_v38 = vunpack.c.l.bf16 %v5906_v1  ;;  %v5947_v35 = vunpack.c.h.bf16 %v5906_v1  ;;  %v6178_v14 = vunpack.c.l.bf16 %v6162_v11  ;;  %v6179_v26 = vunpack.c.h.bf16 %v6162_v11 }
 0x61c   :  { %v5628_v36 = vpop.f32.mrf.mxu3  ;;  %v6058_v29 = vmul.f32 0.5, %v6026_v31  ;;  %v6059_v49 = vmul.f32 0.5, %v6027_v18 }
 0x61d   :  { %v5982_v12 = vadd.f32 %v11237_v56, %v5946_v38  ;;  %v5983_v50 = vadd.f32 %v11239_v63, %v5947_v35  ;;  %v5629_v37 = vadd.f32 %v5628_v36, %v5600_v3  ;;  %v6210_v55 = vadd.f32 1.0, %v6178_v14 }
 0x61e   :  { %v5659_v0 = vpop.f32.mrf.mxu0  ;;  %v6211_v61 = vadd.f32 1.0, %v6179_v26  ;;  %v11280_v46 = vpack.c.bf16 %v6059_v49, %v6058_v29 }
 0x61f   :  { %v9293_v45 = vpop.eup %9292  ;;  %v6008_v10 = vpack.c.bf16 %v5983_v50, %v5982_v12  ;;  %v5658_v6 = vadd.f32 %v5657_v48, %v5629_v37  ;;  %v5605_v37 = vadd.f32 %v11173_v27, %v11167_v21 }
 0x620   :  { %v9295_v58 = vpop.eup %9294  ;;  %v6106_v57 = vunpack.c.l.bf16 %v11280_v46  ;;  %v6242_v8 = vpack.c.bf16 %v6211_v61, %v6210_v55  ;;  %v6107_v43 = vunpack.c.h.bf16 %v11280_v46 }
 0x621   :  { %v5908_v54 = vpack.c.bf16 %v5658_v6, %v11213_v20  ;;  %v6164_v2 = vpack.c.bf16 %v9293_v45, %v9295_v58  ;;  %v6030_v44 = vunpack.c.l.bf16 %v6008_v10  ;;  %v6031_v4 = vunpack.c.h.bf16 %v6008_v10 }
 0x622   :  { %9296 = vtanh.f32 %v6106_v57  ;;  %v6258_v35 = vunpack.c.l.bf16 %v6242_v8  ;;  %v6259_v49 = vunpack.c.h.bf16 %v6242_v8 }
 0x623   :  { %v5950_v16 = vunpack.c.l.bf16 %v5908_v54  ;;  %v5951_v59 = vunpack.c.h.bf16 %v5908_v54  ;;  %v6182_v53 = vunpack.c.l.bf16 %v6164_v2  ;;  %v6183_v1 = vunpack.c.h.bf16 %v6164_v2 }
 0x624   :  { %v5630_v11 = vpop.f32.mrf.mxu3  ;;  %v6062_v48 = vmul.f32 0.5, %v6030_v44  ;;  %v6063_v31 = vmul.f32 0.5, %v6031_v4  ;;  %9298 = vtanh.f32 %v6107_v43 }
 0x625   :  { %v5986_v20 = vadd.f32 %v11237_v56, %v5950_v16  ;;  %v5987_v3 = vadd.f32 %v11239_v63, %v5951_v59  ;;  %v5631_v18 = vadd.f32 %v5630_v11, %v5602_v25  ;;  %v6214_v38 = vadd.f32 1.0, %v6182_v53 }
 0x626   :  { %v5662_v32 = vpop.f32.mrf.mxu0  ;;  %v6215_v51 = vadd.f32 1.0, %v6183_v1  ;;  %v11291_v14 = vpack.c.bf16 %v6063_v31, %v6062_v48 }
 0x627   :  { %v6010_v26 = vpack.c.bf16 %v5987_v3, %v5986_v20  ;;  %v5660_v36 = vadd.f32 %v5659_v0, %v5631_v18  ;;  %v6290_v0 = vmul.f32 %v6258_v35, %v6098_v5  ;;  %v5607_v35 = vadd.f32 %v11177_v9, %v11175_v34 }
 0x628   :  { %v6244_v29 = vpack.c.bf16 %v6215_v51, %v6214_v38  ;;  %v6110_v12 = vunpack.c.l.bf16 %v11291_v14  ;;  %v6111_v50 = vunpack.c.h.bf16 %v11291_v14  ;;  %v9297_v10 = vpop.eup %9296 }
 0x629   :  { %v5910_v55 = vpack.c.bf16 %v5660_v36, %v11218_v52  ;;  %5864 = vmatmul.bf16.gmra.mxu3 %v11119_v24  ;;  %5893 = vmatmul.bf16.gmra.mxu0 %v11121_v19  ;;  %v6034_v61 = vunpack.c.l.bf16 %v6010_v26  ;;  %v6035_v45 = vunpack.c.h.bf16 %v6010_v26  ;;  %v6291_v52 = vmul.f32 %v6259_v49, %v6099_v17 }
 0x62a   :  { %v6262_v6 = vunpack.c.l.bf16 %v6244_v29  ;;  %v6263_v58 = vunpack.c.h.bf16 %v6244_v29  ;;  %9300 = vtanh.f32 %v6110_v12  ;;  %v9299_v24 = vpop.eup %9298 }
 0x62b   :  { %v5954_v54 = vunpack.c.l.bf16 %v5910_v55  ;;  %v5955_v2 = vunpack.c.h.bf16 %v5910_v55  ;;  %9302 = vtanh.f32 %v6111_v50  ;;  %v6066_v21 = vmul.f32 0.5, %v6034_v61 }
 0x62c   :  { %v5633_v27 = vpop.f32.mrf.mxu3  ;;  %v6294_v19 = vmul.f32 %v6262_v6, %v6102_v13  ;;  %v6295_v5 = vmul.f32 %v6263_v58, %v6103_v15  ;;  %v6067_v44 = vmul.f32 0.5, %v6035_v45  ;;  %v6166_v16 = vpack.c.bf16 %v9299_v24, %v9297_v10 }
 0x62d   :  { %v5990_v4 = vadd.f32 %v11237_v56, %v5954_v54  ;;  %v5991_v25 = vadd.f32 %v11239_v63, %v5955_v2  ;;  %v5634_v8 = vadd.f32 %v5633_v27, %v5605_v37 }
 0x62e   :  { %v5664_v59 = vpop.f32.mrf.mxu0  ;;  %v6322_v53 = vpack.c.bf16 %v6294_v19, %v6290_v0  ;;  %v6323_v1 = vpack.c.bf16 %v6295_v5, %v6291_v52  ;;  %v11316_v11 = vpack.c.bf16 %v6067_v44, %v6066_v21  ;;  %v6186_v31 = vunpack.c.l.bf16 %v6166_v16 }
 0x62f   :  { %v6012_v48 = vpack.c.bf16 %v5991_v25, %v5990_v4  ;;  %v5663_v13 = vadd.f32 %v5662_v32, %v5634_v8  ;;  %v6187_v22 = vunpack.c.h.bf16 %v6166_v16 }
 0x630   :  { %v9301_v17 = vpop.eup %9300  ;;  %6606 = vmatmul.bf16.vlgmr.msra.gmra.mxu1 %v6322_v53  ;;  %6635 = vmatmul.bf16.vlgmr.msrb.gmra.mxu2 %v6323_v1  ;;  %v6114_v30 = vunpack.c.l.bf16 %v11316_v11  ;;  %v6115_v15 = vunpack.c.h.bf16 %v11316_v11  ;;  %v6218_v18 = vadd.f32 1.0, %v6186_v31 }
 0x631   :  { %v9303_v20 = vpop.eup %9302  ;;  %v5912_v3 = vpack.c.bf16 %v5663_v13, %v11225_v47  ;;  %v6219_v38 = vadd.f32 1.0, %v6187_v22  ;;  %v6038_v51 = vunpack.c.l.bf16 %v6012_v48  ;;  %v6039_v32 = vunpack.c.h.bf16 %v6012_v48 }
 0x632   :  { %v6168_v26 = vpack.c.bf16 %v9303_v20, %v9301_v17  ;;  %9304 = vtanh.f32 %v6114_v30 }
 0x633   :  { %v5958_v36 = vunpack.c.l.bf16 %v5912_v3  ;;  %v5959_v29 = vunpack.c.h.bf16 %v5912_v3  ;;  %v6246_v49 = vpack.c.bf16 %v6219_v38, %v6218_v18  ;;  %v6070_v37 = vmul.f32 0.5, %v6038_v51 }
 0x634   :  { %v5635_v55 = vpop.f32.mrf.mxu3  ;;  %v6190_v61 = vunpack.c.l.bf16 %v6168_v26  ;;  %v6191_v45 = vunpack.c.h.bf16 %v6168_v26  ;;  %v6071_v10 = vmul.f32 0.5, %v6039_v32  ;;  %9306 = vtanh.f32 %v6115_v15 }
 0x635   :  { %v5994_v47 = vadd.f32 %v11237_v56, %v5958_v36  ;;  %v5995_v34 = vadd.f32 %v11239_v63, %v5959_v29  ;;  %v5636_v9 = vadd.f32 %v5635_v55, %v5607_v35  ;;  %v6266_v6 = vunpack.c.l.bf16 %v6246_v49 }
 0x636   :  { %v5763_v0 = vpop.f32.mrf.mxu0  ;;  %v6222_v58 = vadd.f32 1.0, %v6190_v61  ;;  %v6223_v54 = vadd.f32 1.0, %v6191_v45  ;;  %v6267_v2 = vunpack.c.h.bf16 %v6246_v49  ;;  %v11329_v27 = vpack.c.bf16 %v6071_v10, %v6070_v37 }
 0x637   :  { %v6014_v21 = vpack.c.bf16 %v5995_v34, %v5994_v47  ;;  %v5665_v24 = vadd.f32 %v5664_v59, %v5636_v9  ;;  %v6298_v5 = vmul.f32 %v6266_v6, %v6106_v57  ;;  %v5708_v61 = vadd.f32 %v11189_v33, %v11186_v41 }
 0x638   :  { %v9305_v19 = vpop.eup %9304  ;;  %v6248_v52 = vpack.c.bf16 %v6223_v54, %v6222_v58  ;;  %v6118_v4 = vunpack.c.l.bf16 %v11329_v27  ;;  %v6119_v25 = vunpack.c.h.bf16 %v11329_v27  ;;  %v6299_v59 = vmul.f32 %v6267_v2, %v6107_v43 }
 0x639   :  { %v5914_v44 = vpack.c.bf16 %v5665_v24, %v11230_v23  ;;  %v6042_v8 = vunpack.c.l.bf16 %v6014_v21  ;;  %v6043_v48 = vunpack.c.h.bf16 %v6014_v21 }
 0x63a   :  { %v9307_v16 = vpop.eup %9306  ;;  %v6270_v53 = vunpack.c.l.bf16 %v6248_v52  ;;  %v6271_v1 = vunpack.c.h.bf16 %v6248_v52  ;;  %9308 = vtanh.f32 %v6118_v4 }
 0x63b   :  { %v5962_v13 = vunpack.c.l.bf16 %v5914_v44  ;;  %v5963_v31 = vunpack.c.h.bf16 %v5914_v44  ;;  %v6170_v57 = vpack.c.bf16 %v9307_v16, %v9305_v19  ;;  %9310 = vtanh.f32 %v6119_v25 }
 0x63c   :  { %v5734_v22 = vpop.f32.mrf.mxu3  ;;  %v6302_v23 = vmul.f32 %v6270_v53, %v6110_v12  ;;  %v6303_v17 = vmul.f32 %v6271_v1, %v6111_v50  ;;  %v6074_v20 = vmul.f32 0.5, %v6042_v8  ;;  %v6075_v32 = vmul.f32 0.5, %v6043_v48 }
 0x63d   :  { %v5998_v46 = vadd.f32 %v11237_v56, %v5962_v13  ;;  %v5999_v43 = vadd.f32 %v11239_v63, %v5963_v31  ;;  %v5735_v3 = vadd.f32 %v5734_v22, %v11184_v40  ;;  %v6194_v18 = vunpack.c.l.bf16 %v6170_v57 }
 0x63e   :  { %v5765_v38 = vpop.f32.mrf.mxu0  ;;  %v6326_v51 = vpack.c.bf16 %v6302_v23, %v6298_v5  ;;  %v6327_v35 = vpack.c.bf16 %v6303_v17, %v6299_v59  ;;  %v6195_v26 = vunpack.c.h.bf16 %v6170_v57  ;;  %v11351_v29 = vpack.c.bf16 %v6075_v32, %v6074_v20 }
 0x63f   :  { %v6016_v12 = vpack.c.bf16 %v5999_v43, %v5998_v46  ;;  %v11349_v36 = vadd.f32 %v5763_v0, %v5735_v3  ;;  %v6226_v14 = vadd.f32 1.0, %v6194_v18 }
 0x640   :  { %6611 = vmatmul.bf16.gmra.mxu1 %v6326_v51  ;;  %6640 = vmatmul.bf16.gmra.mxu2 %v6327_v35  ;;  %v6227_v50 = vadd.f32 1.0, %v6195_v26  ;;  %v9309_v56 = vpop.eup %9308  ;;  %v6122_v40 = vunpack.c.l.bf16 %v11351_v29  ;;  %v6123_v55 = vunpack.c.h.bf16 %v11351_v29  ;;  %v5792_v29 = vpop.f32.mrf.mxu1 }
 0x641   :  { %v6046_v49 = vunpack.c.l.bf16 %v6016_v12  ;;  %v6047_v63 = vunpack.c.h.bf16 %v6016_v12  ;;  %v9311_v37 = vpop.eup %9310 }
 0x642   :  { %v6172_v45 = vpack.c.bf16 %v9311_v37, %v9309_v56  ;;  %v6250_v9 = vpack.c.bf16 %v6227_v50, %v6226_v14  ;;  %9312 = vtanh.f32 %v6122_v40  ;;  %v9015_v37 = vld [vmem:[#allocation16 + $0xb0] sm:$0xff] }
 0x643   :  { %v6078_v10 = vmul.f32 0.5, %v6046_v49  ;;  %v6079_v47 = vmul.f32 0.5, %v6047_v63  ;;  %9314 = vtanh.f32 %v6123_v55 }
 0x644   :  { %v5736_v34 = vpop.f32.mrf.mxu3  ;;  %v6198_v0 = vunpack.c.l.bf16 %v6172_v45  ;;  %v6199_v58 = vunpack.c.h.bf16 %v6172_v45  ;;  %v6274_v19 = vunpack.c.l.bf16 %v6250_v9  ;;  %v6275_v52 = vunpack.c.h.bf16 %v6250_v9 }
 0x645   :  { %v5737_v6 = vadd.f32 %v5736_v34, %v5708_v61  ;;  %v6096_v54 = vpack.c.bf16 %v6079_v47, %v6078_v10 }
 0x646   :  { %v5768_v2 = vpop.f32.mrf.mxu0  ;;  %v6230_v24 = vadd.f32 1.0, %v6198_v0  ;;  %v6231_v41 = vadd.f32 1.0, %v6199_v58  ;;  %v6306_v48 = vmul.f32 %v6274_v19, %v6114_v30  ;;  %v6307_v13 = vmul.f32 %v6275_v52, %v6115_v15  ;;  %v9016_v30 = vld [vmem:[#allocation16 + $0xb8] sm:$0xff] }
 0x647   :  { %v11361_v21 = vadd.f32 %v5765_v38, %v5737_v6  ;;  %v6126_v33 = vunpack.c.l.bf16 %v6096_v54  ;;  %v6127_v5 = vunpack.c.h.bf16 %v6096_v54  ;;  %6656 = vmatpush.bf16.msrb.mxu3 %v9016_v30 }
 0x648   :  { %v6252_v44 = vpack.c.bf16 %v6231_v41, %v6230_v24  ;;  %v9313_v8 = vpop.eup %9312 }
 0x649   :  { %9316 = vtanh.f32 %v6126_v33  ;;  %v9315_v1 = vpop.eup %9314 }
 0x64a   :  { %9318 = vtanh.f32 %v6127_v5  ;;  %v6278_v16 = vunpack.c.l.bf16 %v6252_v44  ;;  %v6279_v53 = vunpack.c.h.bf16 %v6252_v44  ;;  %v6174_v23 = vpack.c.bf16 %v9315_v1, %v9313_v8  ;;  %v9014_v44 = vld [vmem:[#allocation16 + $0xa8] sm:$0xff]  ;;  %v5794_v1 = vpop.f32.mrf.mxu1 }
 0x64b   :  { %6657 = vmatpush.bf16.msrb.mxu3 %v9015_v37 }
 0x64c   :  { %v5739_v59 = vpop.f32.mrf.mxu3  ;;  %v6310_v57 = vmul.f32 %v6278_v16, %v6118_v4  ;;  %v6311_v22 = vmul.f32 %v6279_v53, %v6119_v25  ;;  %v6202_v18 = vunpack.c.l.bf16 %v6174_v23  ;;  %v6203_v11 = vunpack.c.h.bf16 %v6174_v23  ;;  %v9024_v16 = vld [vmem:[#allocation16 + $0xf8] sm:$0xff]  ;;  %v9013_v23 = vld [vmem:[#allocation16 + $0xa0] sm:$0xff] }
 0x64d   :  { %v5740_v31 = vadd.f32 %v5739_v59, %v11196_v28  ;;  %6685 = vmatpush.bf16.msra.mxu0 %v9024_v16  ;;  %9033 = vmatpush.bf16.msra.mxu2 %v9024_v16 }
 0x64e   :  { %v5770_v17 = vpop.f32.mrf.mxu0  ;;  %v6330_v43 = vpack.c.bf16 %v6310_v57, %v6306_v48  ;;  %v6331_v3 = vpack.c.bf16 %v6311_v22, %v6307_v13  ;;  %v6234_v15 = vadd.f32 1.0, %v6202_v18  ;;  %v6235_v51 = vadd.f32 1.0, %v6203_v11  ;;  %v5920_v48 = vld [vmem:[#allocation1 + $0x12] sm:$0xff]  ;;  %v5921_v13 = vld [vmem:[#allocation1 + $0x1b] sm:$0xff] }
 0x64f   :  { %v9317_v20 = vpop.eup %9316  ;;  %v11372_v46 = vadd.f32 %v5768_v2, %v5740_v31  ;;  %6658 = vmatpush.bf16.msrb.mxu3 %v9014_v44  ;;  %v9023_v57 = vld [vmem:[#allocation16 + $0xf0] sm:$0xff]  ;;  %v5931_v22 = vpack.i.b16 %v5921_v13, %v5921_v13 }
 0x650   :  { %v9319_v38 = vpop.eup %9318  ;;  %6616 = vmatmul.bf16.gmra.mxu1 %v6330_v43  ;;  %6645 = vmatmul.bf16.gmra.mxu2 %v6331_v3  ;;  %v6254_v35 = vpack.c.bf16 %v6235_v51, %v6234_v15  ;;  %v9022_v43 = vld [vmem:[#allocation16 + $0xe8] sm:$0xff]  ;;  %v9011_v51 = vld [vmem:[#allocation16 + $0x90] sm:$0xff] }
 0x651   :  { %v6176_v28 = vpack.c.bf16 %v9319_v38, %v9317_v20  ;;  %6686 = vmatpush.bf16.msra.mxu0 %v9023_v57  ;;  %9034 = vmatpush.bf16.msra.mxu2 %v9023_v57  ;;  %v9012_v20 = vld [vmem:[#allocation16 + $0x98] sm:$0xff]  ;;  %v5933_v38 = vperm.slane %v5931_v22, 0 }
 0x652   :  { %v6282_v49 = vunpack.c.l.bf16 %v6254_v35  ;;  %v6283_v63 = vunpack.c.h.bf16 %v6254_v35 }
 0x653   :  { %v6206_v4 = vunpack.c.l.bf16 %v6176_v28  ;;  %v6207_v27 = vunpack.c.h.bf16 %v6176_v28  ;;  %6659 = vmatpush.bf16.msrb.mxu3 %v9013_v23  ;;  %v5797_v28 = vpop.f32.mrf.mxu1  ;;  %v11396_v35 = vunpack.c.l.bf16 %v5933_v38 }
 0x654   :  { %v5741_v25 = vpop.f32.mrf.mxu3  ;;  %v6314_v10 = vmul.f32 %v6282_v49, %v6122_v40  ;;  %v6315_v34 = vmul.f32 %v6283_v63, %v6123_v55 }
 0x655   :  { %v5742_v26 = vadd.f32 %v5741_v25, %v11201_v62  ;;  %v6238_v32 = vadd.f32 1.0, %v6206_v4  ;;  %v6239_v12 = vadd.f32 1.0, %v6207_v27  ;;  %6687 = vmatpush.bf16.msra.mxu0 %v9022_v43  ;;  %9035 = vmatpush.bf16.msra.mxu2 %v9022_v43  ;;  %v9021_v4 = vld [vmem:[#allocation16 + $0xe0] sm:$0xff] }
 0x656   :  { %v5773_v14 = vpop.f32.mrf.mxu0 }
 0x657   :  { %v11375_v50 = vadd.f32 %v5770_v17, %v5742_v26  ;;  %v6256_v56 = vpack.c.bf16 %v6239_v12, %v6238_v32  ;;  %6660 = vmatpush.bf16.msrb.mxu3 %v9012_v20 }
 0x659   :  { %v6286_v61 = vunpack.c.l.bf16 %v6256_v56  ;;  %v6287_v45 = vunpack.c.h.bf16 %v6256_v56  ;;  %6688 = vmatpush.bf16.msra.mxu0 %v9021_v4  ;;  %9036 = vmatpush.bf16.msra.mxu2 %v9021_v4 }
 0x65b   :  { %v6318_v47 = vmul.f32 %v6286_v61, %v6126_v33  ;;  %v6319_v62 = vmul.f32 %v6287_v45, %v6127_v5  ;;  %v5821_v33 = vpop.f32.mrf.mxu2  ;;  %6661 = vmatpush.bf16.msrb.mxu3 %v9011_v51 }
 0x65c   :  { %v5744_v9 = vpop.f32.mrf.mxu3  ;;  %v5822_v17 = vadd.f32 %v5821_v33, %v5792_v29  ;;  %v9018_v33 = vld [vmem:[#allocation16 + $0xc8] sm:$0xff] }
 0x65d   :  { %v5745_v6 = vadd.f32 %v5744_v9, %v11211_v60  ;;  %v6334_v0 = vpack.c.bf16 %v6318_v47, %v6314_v10  ;;  %v6335_v58 = vpack.c.bf16 %v6319_v62, %v6315_v34  ;;  %v9010_v47 = vld [vmem:[#allocation16 + $0x88] sm:$0xff]  ;;  %v9019_v34 = vld [vmem:[#allocation16 + $0xd0] sm:$0xff]  ;;  %v5799_v62 = vpop.f32.mrf.mxu1 }
 0x65e   :  { %v5775_v54 = vpop.f32.mrf.mxu0 }
 0x65f   :  { %v11382_v2 = vadd.f32 %v5773_v14, %v5745_v6  ;;  %v9020_v14 = vld [vmem:[#allocation16 + $0xd8] sm:$0xff]  ;;  %6662 = vmatpush.bf16.msrb.mxu3 %v9010_v47 }
 0x660   :  { %6621 = vmatmul.bf16.gmra.mxu1 %v6334_v0  ;;  %6650 = vmatmul.bf16.gmra.mxu2 %v6335_v58 }
 0x661   :  { %6689 = vmatpush.bf16.msra.mxu0 %v9020_v14  ;;  %9037 = vmatpush.bf16.msra.mxu2 %v9020_v14 }
 0x663   :  { %v5823_v8 = vpop.f32.mrf.mxu2 }
 0x664   :  { %v5746_v24 = vpop.f32.mrf.mxu3  ;;  %v5824_v26 = vadd.f32 %v5823_v8, %v5794_v1  ;;  %v9009_v1 = vld [vmem:[#allocation16 + $0x80] sm:$0xff] }
 0x665   :  { %v5747_v41 = vadd.f32 %v5746_v24, %v11216_v7  ;;  %6690 = vmatpush.bf16.msra.mxu0 %v9019_v34  ;;  %9038 = vmatpush.bf16.msra.mxu2 %v9019_v34  ;;  %v5802_v23 = vpop.f32.mrf.mxu1 }
 0x666   :  { %v5778_v19 = vpop.f32.mrf.mxu0  ;;  %6663 = vmatpush.bf16.msrb.mxu3 %v9009_v1 }
 0x667   :  { %v11385_v40 = vadd.f32 %v5775_v54, %v5747_v41 }
 0x669   :  { %6691 = vmatpush.bf16.msra.mxu0 %v9018_v33  ;;  %9039 = vmatpush.bf16.msra.mxu2 %v9018_v33 }
 0x66b   :  { %v5826_v18 = vpop.f32.mrf.mxu2 }
 0x66c   :  { %v5749_v55 = vpop.f32.mrf.mxu3  ;;  %v5827_v58 = vadd.f32 %v5826_v18, %v5797_v28 }
 0x66d   :  { %v5750_v52 = vadd.f32 %v5749_v55, %v11223_v39  ;;  %v5928_v39 = vpack.i.b16 %v5920_v48, %v5920_v48 }
 0x66e   :  { %v5780_v5 = vpop.f32.mrf.mxu0 }
 0x66f   :  { %v11388_v60 = vadd.f32 %v5778_v19, %v5750_v52  ;;  %v5930_v30 = vperm.slane %v5928_v39, 0 }
 0x671   :  { %v11394_v25 = vunpack.c.l.bf16 %v5930_v30 }
 0x673   :  { %v5828_v61 = vpop.f32.mrf.mxu2 }
 0x674   :  { %v5751_v53 = vpop.f32.mrf.mxu3  ;;  %v5829_v22 = vadd.f32 %v5828_v61, %v5799_v62  ;;  %v5804_v62 = vpop.f32.mrf.mxu1 }
 0x675   :  { %v5752_v59 = vadd.f32 %v5751_v53, %v11228_v42 }
 0x676   :  { %v5879_v7 = vpop.f32.mrf.mxu0 }
 0x677   :  { %v11391_v31 = vadd.f32 %v5780_v5, %v5752_v59  ;;  %v9017_v59 = vld [vmem:[#allocation16 + $0xc0] sm:$0xff] }
 0x678   :  { %6692 = vmatpush.bf16.msra.mxu0 %v9017_v59  ;;  %9040 = vmatpush.bf16.msra.mxu2 %v9017_v59 }
 0x67b   :  { %v5831_v48 = vpop.f32.mrf.mxu2 }
 0x67c   :  { %v5850_v3 = vpop.f32.mrf.mxu3 }
 0x67d   :  { %v5851_v42 = vadd.f32 %v5850_v3, %v5822_v17 }
 0x67e   :  { %v5881_v11 = vpop.f32.mrf.mxu0 }
 0x67f   :  { %v5880_v15 = vadd.f32 %v5879_v7, %v5851_v42 }
 0x681   :  { %v5901_v27 = vpack.c.bf16 %v5880_v15, %v11349_v36 }
 0x683   :  { %v5936_v32 = vunpack.c.l.bf16 %v5901_v27  ;;  %v5937_v12 = vunpack.c.h.bf16 %v5901_v27 }
 0x684   :  { %v5852_v56 = vpop.f32.mrf.mxu3 }
 0x685   :  { %v5972_v49 = vadd.f32 %v11394_v25, %v5936_v32  ;;  %v5973_v63 = vadd.f32 %v11396_v35, %v5937_v12  ;;  %v5853_v37 = vadd.f32 %v5852_v56, %v5824_v26  ;;  %v5832_v56 = vadd.f32 %v5831_v48, %v5802_v23 }
 0x686   :  { %v5884_v36 = vpop.f32.mrf.mxu0 }
 0x687   :  { %v6003_v45 = vpack.c.bf16 %v5973_v63, %v5972_v49  ;;  %v5882_v10 = vadd.f32 %v5881_v11, %v5853_v37  ;;  %v5833_v63 = vpop.f32.mrf.mxu2 }
 0x689   :  { %v6020_v9 = vunpack.c.l.bf16 %v6003_v45  ;;  %v6021_v6 = vunpack.c.h.bf16 %v6003_v45  ;;  %v5903_v0 = vpack.c.bf16 %v5882_v10, %v11361_v21 }
 0x68b   :  { %v6052_v54 = vmul.f32 0.5, %v6020_v9  ;;  %v6053_v24 = vmul.f32 0.5, %v6021_v6  ;;  %v5940_v41 = vunpack.c.l.bf16 %v5903_v0  ;;  %v5941_v19 = vunpack.c.h.bf16 %v5903_v0 }
 0x68c   :  { %v5855_v29 = vpop.f32.mrf.mxu3 }
 0x68d   :  { %v11401_v55 = vpack.c.bf16 %v6053_v24, %v6052_v54  ;;  %v5976_v52 = vadd.f32 %v11394_v25, %v5940_v41  ;;  %v5977_v5 = vadd.f32 %v11396_v35, %v5941_v19  ;;  %v5856_v44 = vadd.f32 %v5855_v29, %v5827_v58 }
 0x68e   :  { %v5886_v8 = vpop.f32.mrf.mxu0 }
 0x68f   :  { %v6101_v21 = vunpack.c.h.bf16 %v11401_v55  ;;  %v6005_v16 = vpack.c.bf16 %v5977_v5, %v5976_v52  ;;  %v5885_v53 = vadd.f32 %v5884_v36, %v5856_v44  ;;  %v6100_v7 = vunpack.c.l.bf16 %v11401_v55 }
 0x691   :  { %9320 = vtanh.f32 %v6101_v21  ;;  %v6024_v13 = vunpack.c.l.bf16 %v6005_v16  ;;  %v6025_v57 = vunpack.c.h.bf16 %v6005_v16  ;;  %v5905_v39 = vpack.c.bf16 %v5885_v53, %v11372_v46 }
 0x692   :  { %9322 = vtanh.f32 %v6100_v7  ;;  %v5834_v16 = vadd.f32 %v5833_v63, %v5804_v62 }
 0x693   :  { %v6056_v17 = vmul.f32 0.5, %v6024_v13  ;;  %v6057_v20 = vmul.f32 0.5, %v6025_v57  ;;  %v5944_v43 = vunpack.c.l.bf16 %v5905_v39  ;;  %v5945_v3 = vunpack.c.h.bf16 %v5905_v39 }
 0x694   :  { %v5857_v18 = vpop.f32.mrf.mxu3 }
 0x695   :  { %v11412_v42 = vpack.c.bf16 %v6057_v20, %v6056_v17  ;;  %v5980_v30 = vadd.f32 %v11394_v25, %v5944_v43  ;;  %v5981_v38 = vadd.f32 %v11396_v35, %v5945_v3  ;;  %v5858_v46 = vadd.f32 %v5857_v18, %v5829_v22  ;;  %v5836_v20 = vpop.f32.mrf.mxu2 }
 0x696   :  { %v5889_v26 = vpop.f32.mrf.mxu0 }
 0x697   :  { %v9321_v11 = vpop.eup %9320  ;;  %v6105_v28 = vunpack.c.h.bf16 %v11412_v42  ;;  %v6007_v15 = vpack.c.bf16 %v5981_v38, %v5980_v30  ;;  %v5887_v51 = vadd.f32 %v5886_v8, %v5858_v46  ;;  %v6104_v4 = vunpack.c.l.bf16 %v11412_v42 }
 0x698   :  { %v9323_v27 = vpop.eup %9322 }
 0x699   :  { %9324 = vtanh.f32 %v6105_v28  ;;  %v5907_v32 = vpack.c.bf16 %v5887_v51, %v11375_v50  ;;  %v6163_v12 = vpack.c.bf16 %v9321_v11, %v9323_v27  ;;  %v6028_v14 = vunpack.c.l.bf16 %v6007_v15  ;;  %v5807_v11 = vpop.f32.mrf.mxu1 }
 0x69a   :  { %9326 = vtanh.f32 %v6104_v4  ;;  %v6029_v49 = vunpack.c.h.bf16 %v6007_v15 }
 0x69b   :  { %v5948_v37 = vunpack.c.l.bf16 %v5907_v32  ;;  %v5949_v36 = vunpack.c.h.bf16 %v5907_v32  ;;  %v6180_v61 = vunpack.c.l.bf16 %v6163_v12  ;;  %v6181_v45 = vunpack.c.h.bf16 %v6163_v12 }
 0x69c   :  { %v5860_v10 = vpop.f32.mrf.mxu3  ;;  %v6060_v47 = vmul.f32 0.5, %v6028_v14  ;;  %v6061_v34 = vmul.f32 0.5, %v6029_v49  ;;  %v5837_v14 = vadd.f32 %v5836_v20, %v5807_v11 }
 0x69d   :  { %v5984_v9 = vadd.f32 %v11394_v25, %v5948_v37  ;;  %v5985_v50 = vadd.f32 %v11396_v35, %v5949_v36  ;;  %v5861_v6 = vadd.f32 %v5860_v10, %v5832_v56  ;;  %v6212_v0 = vadd.f32 1.0, %v6180_v61 }
 0x69e   :  { %v6213_v58 = vadd.f32 1.0, %v6181_v45  ;;  %v11425_v54 = vpack.c.bf16 %v6061_v34, %v6060_v47  ;;  %v5891_v53 = vpop.f32.mrf.mxu0 }
 0x69f   :  { %v9325_v24 = vpop.eup %9324  ;;  %v6009_v41 = vpack.c.bf16 %v5985_v50, %v5984_v9  ;;  %v5890_v19 = vadd.f32 %v5889_v26, %v5861_v6 }
 0x6a0   :  { %v9327_v33 = vpop.eup %9326  ;;  %v6108_v29 = vunpack.c.l.bf16 %v11425_v54  ;;  %v6243_v1 = vpack.c.bf16 %v6213_v58, %v6212_v0  ;;  %v6109_v59 = vunpack.c.h.bf16 %v11425_v54 }
 0x6a1   :  { %v5909_v52 = vpack.c.bf16 %v5890_v19, %v11382_v2  ;;  %v6165_v5 = vpack.c.bf16 %v9325_v24, %v9327_v33  ;;  %v6032_v44 = vunpack.c.l.bf16 %v6009_v41  ;;  %v6033_v8 = vunpack.c.h.bf16 %v6009_v41 }
 0x6a2   :  { %9328 = vtanh.f32 %v6108_v29  ;;  %v6260_v38 = vunpack.c.l.bf16 %v6243_v1  ;;  %v6261_v26 = vunpack.c.h.bf16 %v6243_v1 }
 0x6a3   :  { %v5952_v48 = vunpack.c.l.bf16 %v5909_v52  ;;  %v5953_v13 = vunpack.c.h.bf16 %v5909_v52  ;;  %v6184_v57 = vunpack.c.l.bf16 %v6165_v5  ;;  %v6185_v39 = vunpack.c.h.bf16 %v6165_v5 }
 0x6a4   :  { %v5862_v22 = vpop.f32.mrf.mxu3  ;;  %v6064_v23 = vmul.f32 0.5, %v6032_v44  ;;  %v6065_v17 = vmul.f32 0.5, %v6033_v8  ;;  %9330 = vtanh.f32 %v6109_v59  ;;  %v6292_v61 = vmul.f32 %v6260_v38, %v6100_v7  ;;  %v5838_v44 = vpop.f32.mrf.mxu2 }
 0x6a5   :  { %v5988_v2 = vadd.f32 %v11394_v25, %v5952_v48  ;;  %v5989_v43 = vadd.f32 %v11396_v35, %v5953_v13  ;;  %v5863_v3 = vadd.f32 %v5862_v22, %v5834_v16  ;;  %v6216_v18 = vadd.f32 1.0, %v6184_v57 }
 0x6a6   :  { %v6217_v30 = vadd.f32 1.0, %v6185_v39  ;;  %v11434_v46 = vpack.c.bf16 %v6065_v17, %v6064_v23  ;;  %v5894_v9 = vpop.f32.mrf.mxu0  ;;  %v6293_v6 = vmul.f32 %v6261_v26, %v6101_v21 }
 0x6a7   :  { %v6011_v15 = vpack.c.bf16 %v5989_v43, %v5988_v2  ;;  %v5892_v51 = vadd.f32 %v5891_v53, %v5863_v3 }
 0x6a8   :  { %v6245_v27 = vpack.c.bf16 %v6217_v30, %v6216_v18  ;;  %v6112_v32 = vunpack.c.l.bf16 %v11434_v46  ;;  %v6113_v12 = vunpack.c.h.bf16 %v11434_v46  ;;  %v9329_v37 = vpop.eup %9328 }
 0x6a9   :  { %v5911_v56 = vpack.c.bf16 %v5892_v51, %v11385_v40  ;;  %v6036_v49 = vunpack.c.l.bf16 %v6011_v15  ;;  %v6037_v63 = vunpack.c.h.bf16 %v6011_v15 }
 0x6aa   :  { %v6264_v36 = vunpack.c.l.bf16 %v6245_v27  ;;  %v6265_v45 = vunpack.c.h.bf16 %v6245_v27  ;;  %9332 = vtanh.f32 %v6112_v32  ;;  %v9331_v62 = vpop.eup %9330 }
 0x6ab   :  { %v5956_v10 = vunpack.c.l.bf16 %v5911_v56  ;;  %v5957_v47 = vunpack.c.h.bf16 %v5911_v56  ;;  %9334 = vtanh.f32 %v6113_v12  ;;  %v6068_v34 = vmul.f32 0.5, %v6036_v49 }
 0x6ac   :  { %v5865_v40 = vpop.f32.mrf.mxu3  ;;  %v6296_v50 = vmul.f32 %v6264_v36, %v6104_v4  ;;  %v6297_v7 = vmul.f32 %v6265_v45, %v6105_v28  ;;  %v6069_v0 = vmul.f32 0.5, %v6037_v63  ;;  %v6167_v19 = vpack.c.bf16 %v9331_v62, %v9329_v37  ;;  %v5809_v28 = vpop.f32.mrf.mxu1 }
 0x6ad   :  { %v5992_v58 = vadd.f32 %v11394_v25, %v5956_v10  ;;  %v5993_v24 = vadd.f32 %v11396_v35, %v5957_v47  ;;  %v5866_v41 = vadd.f32 %v5865_v40, %v5837_v14  ;;  %v5839_v57 = vadd.f32 %v5838_v44, %v5809_v28 }
 0x6ae   :  { %v6324_v33 = vpack.c.bf16 %v6296_v50, %v6292_v61  ;;  %v6325_v52 = vpack.c.bf16 %v6297_v7, %v6293_v6  ;;  %v11455_v5 = vpack.c.bf16 %v6069_v0, %v6068_v34  ;;  %v6188_v16 = vunpack.c.l.bf16 %v6167_v19  ;;  %v5896_v27 = vpop.f32.mrf.mxu0 }
 0x6af   :  { %v6013_v8 = vpack.c.bf16 %v5993_v24, %v5992_v58  ;;  %v5895_v4 = vadd.f32 %v5894_v9, %v5866_v41  ;;  %v6189_v55 = vunpack.c.h.bf16 %v6167_v19 }
 0x6b0   :  { %v9333_v21 = vpop.eup %9332  ;;  %6664 = vmatmul.bf16.vlgmr.msrb.gmra.mxu3 %v6324_v33  ;;  %6693 = vmatmul.bf16.vlgmr.msra.gmra.mxu0 %v6325_v52  ;;  %v6220_v1 = vadd.f32 1.0, %v6188_v16  ;;  %v6116_v23 = vunpack.c.l.bf16 %v11455_v5  ;;  %v6117_v11 = vunpack.c.h.bf16 %v11455_v5 }
 0x6b1   :  { %v9335_v42 = vpop.eup %9334  ;;  %v5913_v53 = vpack.c.bf16 %v5895_v4, %v11388_v60  ;;  %v6221_v48 = vadd.f32 1.0, %v6189_v55  ;;  %v6040_v13 = vunpack.c.l.bf16 %v6013_v8  ;;  %v6041_v22 = vunpack.c.h.bf16 %v6013_v8 }
 0x6b2   :  { %v6169_v39 = vpack.c.bf16 %v9335_v42, %v9333_v21  ;;  %9336 = vtanh.f32 %v6116_v23 }
 0x6b3   :  { %v5960_v17 = vunpack.c.l.bf16 %v5913_v53  ;;  %v5961_v20 = vunpack.c.h.bf16 %v5913_v53  ;;  %v6247_v2 = vpack.c.bf16 %v6221_v48, %v6220_v1  ;;  %v6072_v43 = vmul.f32 0.5, %v6040_v13 }
 0x6b4   :  { %v5867_v3 = vpop.f32.mrf.mxu3  ;;  %v6192_v18 = vunpack.c.l.bf16 %v6169_v39  ;;  %v6193_v30 = vunpack.c.h.bf16 %v6169_v39  ;;  %v6073_v38 = vmul.f32 0.5, %v6041_v22  ;;  %9338 = vtanh.f32 %v6117_v11 }
 0x6b5   :  { %v5996_v60 = vadd.f32 %v11394_v25, %v5960_v17  ;;  %v5997_v15 = vadd.f32 %v11396_v35, %v5961_v20  ;;  %v5868_v51 = vadd.f32 %v5867_v3, %v5839_v57  ;;  %v6268_v56 = vunpack.c.l.bf16 %v6247_v2 }
 0x6b6   :  { %v6224_v26 = vadd.f32 1.0, %v6192_v18  ;;  %v6225_v14 = vadd.f32 1.0, %v6193_v30  ;;  %v11464_v37 = vpack.c.bf16 %v6073_v38, %v6072_v43  ;;  %v6269_v61 = vunpack.c.h.bf16 %v6247_v2 }
 0x6b7   :  { %v6015_v49 = vpack.c.bf16 %v5997_v15, %v5996_v60  ;;  %v5897_v63 = vadd.f32 %v5896_v27, %v5868_v51  ;;  %v6300_v9 = vmul.f32 %v6268_v56, %v6108_v29 }
 0x6b8   :  { %v6249_v36 = vpack.c.bf16 %v6225_v14, %v6224_v26  ;;  %v6120_v10 = vunpack.c.l.bf16 %v11464_v37  ;;  %v6121_v47 = vunpack.c.h.bf16 %v11464_v37  ;;  %v9337_v58 = vpop.eup %9336 }
 0x6b9   :  { %v5915_v45 = vpack.c.bf16 %v5897_v63, %v11391_v31  ;;  %v6044_v34 = vunpack.c.l.bf16 %v6015_v49  ;;  %v6045_v50 = vunpack.c.h.bf16 %v6015_v49  ;;  %v6301_v31 = vmul.f32 %v6269_v61, %v6109_v59 }
 0x6ba   :  { %v6272_v62 = vunpack.c.l.bf16 %v6249_v36  ;;  %v6273_v40 = vunpack.c.h.bf16 %v6249_v36  ;;  %9340 = vtanh.f32 %v6120_v10  ;;  %v9339_v52 = vpop.eup %9338 }
 0x6bb   :  { %v5964_v6 = vunpack.c.l.bf16 %v5915_v45  ;;  %v5965_v7 = vunpack.c.h.bf16 %v5915_v45  ;;  %v6076_v0 = vmul.f32 0.5, %v6044_v34  ;;  %9342 = vtanh.f32 %v6121_v47 }
 0x6bc   :  { %v6304_v24 = vmul.f32 %v6272_v62, %v6112_v32  ;;  %v6305_v41 = vmul.f32 %v6273_v40, %v6113_v12  ;;  %v6077_v33 = vmul.f32 0.5, %v6045_v50  ;;  %v6171_v16 = vpack.c.bf16 %v9339_v52, %v9337_v58  ;;  %v6636_v52 = vpop.f32.mrf.mxu2 }
 0x6bd   :  { %v6000_v19 = vadd.f32 %v11394_v25, %v5964_v6  ;;  %v6001_v29 = vadd.f32 %v11396_v35, %v5965_v7 }
 0x6be   :  { %v6328_v44 = vpack.c.bf16 %v6304_v24, %v6300_v9  ;;  %v6329_v8 = vpack.c.bf16 %v6305_v41, %v6301_v31  ;;  %v11481_v55 = vpack.c.bf16 %v6077_v33, %v6076_v0  ;;  %v6196_v59 = vunpack.c.l.bf16 %v6171_v16 }
 0x6bf   :  { %v6017_v4 = vpack.c.bf16 %v6001_v29, %v6000_v19  ;;  %v6197_v32 = vunpack.c.h.bf16 %v6171_v16 }
 0x6c0   :  { %6669 = vmatmul.bf16.gmra.mxu3 %v6328_v44  ;;  %6698 = vmatmul.bf16.gmra.mxu0 %v6329_v8  ;;  %v9341_v54 = vpop.eup %9340  ;;  %v6124_v25 = vunpack.c.l.bf16 %v11481_v55  ;;  %v6125_v35 = vunpack.c.h.bf16 %v11481_v55  ;;  %v6228_v28 = vadd.f32 1.0, %v6196_v59  ;;  %v6607_v44 = vpop.f32.mrf.mxu1  ;;  %v9063_v55 = vld [vmem:[%s11509_s14] ss:$0 sm:$0xff]  ;;  %s9618_s14 = smov [#allocation17]  }
 0x6c1   :  { %v6048_v46 = vunpack.c.l.bf16 %v6017_v4  ;;  %v6049_v12 = vunpack.c.h.bf16 %v6017_v4  ;;  %v9343_v21 = vpop.eup %9342  ;;  %v6229_v53 = vadd.f32 1.0, %v6197_v32  ;;  %v6608_v59 = vadd.f32 %v9063_v55, %v6607_v44  ;;  %s6726_s19 = sshll.u32 %s9618_s14, 4  ;;  %s6727_s19 = int_to_ptr.vmem [resolvable:$true] %s6726_s19 }
 0x6c2   :  { %v6173_v42 = vpack.c.bf16 %v9343_v21, %v9341_v54  ;;  %9344 = vtanh.f32 %v6124_v25 }
 0x6c3   :  { %v6080_v1 = vmul.f32 0.5, %v6048_v46  ;;  %v6081_v48 = vmul.f32 0.5, %v6049_v12  ;;  %v6251_v39 = vpack.c.bf16 %v6229_v53, %v6228_v28  ;;  %9346 = vtanh.f32 %v6125_v35 }
 0x6c4   :  { %v6200_v13 = vunpack.c.l.bf16 %v6173_v42  ;;  %v6201_v57 = vunpack.c.h.bf16 %v6173_v42  ;;  %v6638_v8 = vpop.f32.mrf.mxu2  ;;  %v6637_v32 = vadd.f32 %v6636_v52, %v6608_v59 }
 0x6c5   :  { %v6097_v22 = vpack.c.bf16 %v6081_v48, %v6080_v1  ;;  %v6276_v18 = vunpack.c.l.bf16 %v6251_v39  ;;  %v6277_v30 = vunpack.c.h.bf16 %v6251_v39 }
 0x6c6   :  { %v6232_v17 = vadd.f32 1.0, %v6200_v13  ;;  %v6233_v20 = vadd.f32 1.0, %v6201_v57 }
 0x6c7   :  { %v6128_v2 = vunpack.c.l.bf16 %v6097_v22  ;;  %v6129_v43 = vunpack.c.h.bf16 %v6097_v22  ;;  %v6308_v26 = vmul.f32 %v6276_v18, %v6116_v23  ;;  %v6309_v56 = vmul.f32 %v6277_v30, %v6117_v11 }
 0x6c8   :  { %v6253_v3 = vpack.c.bf16 %v6233_v20, %v6232_v17  ;;  %v9345_v38 = vpop.eup %9344  ;;  %v6609_v4 = vpop.f32.mrf.mxu1 }
 0x6c9   :  { %9348 = vtanh.f32 %v6128_v2  ;;  %v9347_v60 = vpop.eup %9346  ;;  %v6610_v28 = vadd.f32 %v9063_v55, %v6609_v4 }
 0x6ca   :  { %v6280_v15 = vunpack.c.l.bf16 %v6253_v3  ;;  %v6281_v51 = vunpack.c.h.bf16 %v6253_v3  ;;  %9350 = vtanh.f32 %v6129_v43  ;;  %v6175_v27 = vpack.c.bf16 %v9347_v60, %v9345_v38 }
 0x6cb   :  { %v6639_v53 = vadd.f32 %v6638_v8, %v6610_v28 }
 0x6cc   :  { %v6312_v14 = vmul.f32 %v6280_v15, %v6120_v10  ;;  %v6313_v49 = vmul.f32 %v6281_v51, %v6121_v47  ;;  %v6204_v63 = vunpack.c.l.bf16 %v6175_v27  ;;  %v6205_v37 = vunpack.c.h.bf16 %v6175_v27  ;;  %v6641_v16 = vpop.f32.mrf.mxu2 }
 0x6ce   :  { %v6332_v36 = vpack.c.bf16 %v6312_v14, %v6308_v26  ;;  %v6333_v61 = vpack.c.bf16 %v6313_v49, %v6309_v56  ;;  %v6236_v34 = vadd.f32 1.0, %v6204_v63  ;;  %v6237_v62 = vadd.f32 1.0, %v6205_v37 }
 0x6cf   :  { %v9349_v45 = vpop.eup %9348 }
 0x6d0   :  { %v9351_v9 = vpop.eup %9350  ;;  %6674 = vmatmul.bf16.gmra.mxu3 %v6332_v36  ;;  %6703 = vmatmul.bf16.gmra.mxu0 %v6333_v61  ;;  %v6255_v7 = vpack.c.bf16 %v6237_v62, %v6236_v34  ;;  %v6612_v46 = vpop.f32.mrf.mxu1 }
 0x6d1   :  { %v6177_v40 = vpack.c.bf16 %v9351_v9, %v9349_v45  ;;  %v6613_v22 = vadd.f32 %v9063_v55, %v6612_v46 }
 0x6d2   :  { %v6284_v5 = vunpack.c.l.bf16 %v6255_v7  ;;  %v6285_v11 = vunpack.c.h.bf16 %v6255_v7 }
 0x6d3   :  { %v6208_v50 = vunpack.c.l.bf16 %v6177_v40  ;;  %v6209_v6 = vunpack.c.h.bf16 %v6177_v40  ;;  %v6642_v20 = vadd.f32 %v6641_v16, %v6613_v22 }
 0x6d4   :  { %v6316_v24 = vmul.f32 %v6284_v5, %v6124_v25  ;;  %v6317_v41 = vmul.f32 %v6285_v11, %v6125_v35  ;;  %v6643_v21 = vpop.f32.mrf.mxu2 }
 0x6d5   :  { %v6240_v23 = vadd.f32 1.0, %v6208_v50  ;;  %v6241_v10 = vadd.f32 1.0, %v6209_v6 }
 0x6d7   :  { %v6257_v0 = vpack.c.bf16 %v6241_v10, %v6240_v23 }
 0x6d8   :  { %v6614_v13 = vpop.f32.mrf.mxu1 }
 0x6d9   :  { %v6288_v47 = vunpack.c.l.bf16 %v6257_v0  ;;  %v6289_v58 = vunpack.c.h.bf16 %v6257_v0  ;;  %v6615_v30 = vadd.f32 %v9063_v55, %v6614_v13 }
 0x6db   :  { %v6320_v31 = vmul.f32 %v6288_v47, %v6128_v2  ;;  %v6321_v19 = vmul.f32 %v6289_v58, %v6129_v43  ;;  %v6644_v60 = vadd.f32 %v6643_v21, %v6615_v30 }
 0x6dc   :  { %v6646_v57 = vpop.f32.mrf.mxu2 }
 0x6dd   :  { %v6336_v29 = vpack.c.bf16 %v6320_v31, %v6316_v24  ;;  %v6337_v33 = vpack.c.bf16 %v6321_v19, %v6317_v41 }
 0x6df   :  { %6708 = vmatmul.bf16.vlgmr.msra.gmra.mxu2 %v6337_v33 }
 0x6e0   :  { %6679 = vmatmul.bf16.gmra.mxu3 %v6336_v29  ;;  %v6617_v18 = vpop.f32.mrf.mxu1 }
 0x6e1   :  { %v6618_v14 = vadd.f32 %v9063_v55, %v6617_v18 }
 0x6e3   :  { %v6647_v63 = vadd.f32 %v6646_v57, %v6618_v14 }
 0x6e4   :  { %v6648_v38 = vpop.f32.mrf.mxu2 }
 0x6e8   :  { %v6619_v56 = vpop.f32.mrf.mxu1 }
 0x6e9   :  { %v6620_v34 = vadd.f32 %v9063_v55, %v6619_v56 }
 0x6eb   :  { %v6649_v62 = vadd.f32 %v6648_v38, %v6620_v34 }
 0x6ec   :  { %v6651_v49 = vpop.f32.mrf.mxu2 }
 0x6f0   :  { %v6622_v9 = vpop.f32.mrf.mxu1 }
 0x6f1   :  { %v6623_v10 = vadd.f32 %v9063_v55, %v6622_v9 }
 0x6f3   :  { %v6652_v0 = vadd.f32 %v6651_v49, %v6623_v10 }
 0x6f4   :  { %v6653_v40 = vpop.f32.mrf.mxu2 }
 0x6f8   :  { %v6624_v58 = vpop.f32.mrf.mxu1 }
 0x6f9   :  { %v6625_v31 = vadd.f32 %v9063_v55, %v6624_v58 }
 0x6fb   :  { %v6654_v41 = vadd.f32 %v6653_v40, %v6625_v31 }
 0x72d   :  { %v6694_v54 = vpop.f32.mrf.mxu0 }
 0x733   :  { %v6665_v12 = vpop.f32.mrf.mxu3 }
 0x734   :  { %v6666_v25 = vadd.f32 %v6665_v12, %v6637_v32 }
 0x735   :  { %v6696_v42 = vpop.f32.mrf.mxu0 }
 0x736   :  { %v6695_v35 = vadd.f32 %v6694_v54, %v6666_v25 }
 0x738   :  { %6714 = vst [vmem:[#allocation17] sm:$0xff] %v6695_v35 }
 0x73b   :  { %v6667_v1 = vpop.f32.mrf.mxu3 }
 0x73c   :  { %v6668_v48 = vadd.f32 %v6667_v1, %v6639_v53 }
 0x73d   :  { %v6699_v17 = vpop.f32.mrf.mxu0 }
 0x73e   :  { %v6697_v39 = vadd.f32 %v6696_v42, %v6668_v48 }
 0x740   :  { %6715 = vst [vmem:[#allocation17 + $0x8] sm:$0xff] %v6697_v39 }
 0x743   :  { %v6670_v2 = vpop.f32.mrf.mxu3 }
 0x744   :  { %v6671_v43 = vadd.f32 %v6670_v2, %v6642_v20 }
 0x745   :  { %v6701_v15 = vpop.f32.mrf.mxu0 }
 0x746   :  { %v6700_v3 = vadd.f32 %v6699_v17, %v6671_v43 }
 0x748   :  { %6716 = vst [vmem:[#allocation17 + $0x10] sm:$0xff] %v6700_v3 }
 0x74b   :  { %v6672_v51 = vpop.f32.mrf.mxu3 }
 0x74c   :  { %v6673_v27 = vadd.f32 %v6672_v51, %v6644_v60 }
 0x74d   :  { %v6704_v37 = vpop.f32.mrf.mxu0 }
 0x74e   :  { %v6702_v26 = vadd.f32 %v6701_v15, %v6673_v27 }
 0x750   :  { %6717 = vst [vmem:[#allocation17 + $0x18] sm:$0xff] %v6702_v26 }
 0x753   :  { %v6675_v36 = vpop.f32.mrf.mxu3 }
 0x754   :  { %v6676_v61 = vadd.f32 %v6675_v36, %v6647_v63 }
 0x755   :  { %v6706_v7 = vpop.f32.mrf.mxu0 }
 0x756   :  { %v6705_v45 = vadd.f32 %v6704_v37, %v6676_v61 }
 0x758   :  { %6718 = vst [vmem:[#allocation17 + $0x20] sm:$0xff] %v6705_v45 }
 0x75b   :  { %v6677_v50 = vpop.f32.mrf.mxu3 }
 0x75c   :  { %v6678_v6 = vadd.f32 %v6677_v50, %v6649_v62 }
 0x75e   :  { %v6707_v23 = vadd.f32 %v6706_v7, %v6678_v6 }
 0x760   :  { %6719 = vst [vmem:[#allocation17 + $0x28] sm:$0xff] %v6707_v23 }
 0x762   :  { %v6709_v11 = vpop.f32.mrf.mxu2 }
 0x763   :  { %v6680_v5 = vpop.f32.mrf.mxu3 }
 0x764   :  { %v6681_v47 = vadd.f32 %v6680_v5, %v6652_v0 }
 0x766   :  { %v6710_v24 = vadd.f32 %v6709_v11, %v6681_v47 }
 0x768   :  { %6720 = vst [vmem:[#allocation17 + $0x30] sm:$0xff] %v6710_v24 }
 0x76a   :  { %v6711_v33 = vpop.f32.mrf.mxu2 }
 0x76b   :  { %v6682_v19 = vpop.f32.mrf.mxu3 }
 0x76c   :  { %v6683_v29 = vadd.f32 %v6682_v19, %v6654_v41 }
 0x76e   :  { %v6712_v52 = vadd.f32 %v6711_v33, %v6683_v29 }
 0x770   :  { %6721 = vst [vmem:[#allocation17 + $0x38] sm:$0xff] %v6712_v52 }
 0x771   :  { %6734 = dma.vmem_to_hbm [thread:$0]  %s6727_s19, 1024, %s6729_s4, [#allocation4], %s9619_s22, %s9619_s22, %s9620_s23  }
 0x772   :  { %9602 = dma.done.wait [#allocation4], 1024  }
 0x773   :  { %9603 = vsyncadd [#allocation4], 4294966272 }
 0x774   :  { %6739 = vsyncpa [#allocation3], 1 }
 0x775   :  { %6740 = vsyncpa [#allocation6], 1 }
 0x776   :  { %6741 = vsyncpa [#allocation9], 1 }
 0x777   :  { %6742 = vsyncpa [#allocation12], 1 }
 0x778   :  { %6743 = vsyncpa [#allocation15], 1 }
 0x779   :  { %6744 = vsyncpa [#allocation4], 1 }

</bundles_post_ra>
